<compile_context>
chip_gen: v7x
topology: tpu7x:2x2x1
jax: 0.10.0
libtpu: 0.0.40
codegen_flags: <defaults>
</compile_context>

<pallas_src>
import functools
import math

import jax
import jax.numpy as jnp
from jax.experimental import pallas as pl
from jax.experimental.pallas import tpu as pltpu

_VMEM_LIMIT = 60 * 1024 * 1024  # <= v7x 64 MiB physical VMEM; fine on v5e/v6e


def _const_spec(shape, buffered):
    """BlockSpec for a grid-invariant (weight) operand."""
    nd = len(shape)
    imap = lambda *_, _nd=nd: (0,) * _nd
    if buffered:
        # single-buffer grid-invariant weights (halves weight VMEM residency)
        return pl.BlockSpec(shape, imap, pipeline_mode=pl.Buffered(1))
    return pl.BlockSpec(shape, imap)


def _layer_norm(x, g, b, eps):
    mu = jnp.mean(x, axis=-1, keepdims=True)
    xc = x - mu
    var = jnp.mean(xc * xc, axis=-1, keepdims=True)
    return xc * jax.lax.rsqrt(var + eps) * g + b


# ---------------- kernel A: LN1 + fused QKV projection (row tiled) ----------

def _qkv_kernel(h_ref, ln1_g_ref, ln1_b_ref, wqkv_ref, bqkv_ref,
                q_ref, kv_ref, *, n_embd, eps):
    x = _layer_norm(h_ref[...], ln1_g_ref[...], ln1_b_ref[...], eps)      # f32
    qkv = jnp.dot(x.astype(jnp.bfloat16), wqkv_ref[...],
                  preferred_element_type=jnp.float32) + bqkv_ref[...]     # (tq,3E)
    q_ref[...] = qkv[:, :n_embd].astype(q_ref.dtype)
    kv_ref[...] = qkv[:, n_embd:].astype(kv_ref.dtype)


def qkv_projection(h, lyr, *, rows_tile, buffered, eps=1e-5):
    n, e = h.shape
    assert n % rows_tile == 0
    row_spec = lambda width: pl.BlockSpec((rows_tile, width), lambda i: (i, 0))
    return pl.pallas_call(
        functools.partial(_qkv_kernel, n_embd=e, eps=eps),
        grid=(n // rows_tile,),
        in_specs=[row_spec(e),
                  _const_spec((1, e), buffered),
                  _const_spec((1, e), buffered),
                  _const_spec((e, 3 * e), buffered),
                  _const_spec((1, 3 * e), buffered)],
        out_specs=(row_spec(e), row_spec(2 * e)),
        out_shape=(jax.ShapeDtypeStruct((n, e), jnp.bfloat16),
                   jax.ShapeDtypeStruct((n, 2 * e), jnp.bfloat16)),
        compiler_params=pltpu.CompilerParams(
            dimension_semantics=("parallel",),
            vmem_limit_bytes=_VMEM_LIMIT),
    )(h, lyr["ln1_g"], lyr["ln1_b"], lyr["attn_w"], lyr["attn_b"])


# -------- kernel B: attention + out-proj + residual + MLP (q-row tiled) -----

def _attn_mlp_kernel(mask_ref, h_ref, q_ref, kv_ref,
                     wproj_ref, bproj_ref, ln2_g_ref, ln2_b_ref,
                     wfc_ref, bfc_ref, wfp_ref, bfp_ref,
                     o_ref, ctx_ref, *, n_head, head_dim, q_tile, scale, eps):
    S = kv_ref.shape[0]
    E = h_ref.shape[1]
    D = head_dim

    h = h_ref[...]                                   # (tq, E) f32 residual
    q = q_ref[...]                                   # (tq, E) bf16
    k = kv_ref[:, :E]                                # (S,  E) bf16
    v = kv_ref[:, E:]                                # (S,  E) bf16

    key_mask = mask_ref[0] > 0.5                     # (1, S) bool
    q0 = pl.program_id(1) * q_tile                   # global query-row offset
    row = q0 + jax.lax.broadcasted_iota(jnp.int32, (q_tile, S), 0)
    col = jax.lax.broadcasted_iota(jnp.int32, (q_tile, S), 1)
    keep = (row >= col) & key_mask                   # causal & key padding

    # Per-head attention. Each head's context is written straight into the
    # (tq, E) VMEM scratch (only the scratch is live across heads); the head
    # merge + output projection then run as ONE full-K (tq,E)x(E,E) matmul.
    for hd in range(n_head):                         # static, small (12 for GPT-2)
        qh = q[:, hd * D:(hd + 1) * D]               # (tq, D) bf16
        kh = k[:, hd * D:(hd + 1) * D]               # (S,  D) bf16
        vh = v[:, hd * D:(hd + 1) * D]
        s = jax.lax.dot_general(qh, kh, (((1,), (1,)), ((), ())),
                                preferred_element_type=jnp.float32) * scale
        s = jnp.where(keep, s, -1e9)
        s = s - jnp.max(s, axis=-1, keepdims=True)   # f32 softmax
        p = jnp.exp(s)
        p = p * pl.reciprocal(jnp.sum(p, axis=-1, keepdims=True), approx=True)
        ctx_ref[:, hd * D:(hd + 1) * D] = jnp.dot(
            p.astype(jnp.bfloat16), vh,
            preferred_element_type=jnp.float32).astype(ctx_ref.dtype)

    attn = jnp.dot(ctx_ref[...], wproj_ref[...],
                   preferred_element_type=jnp.float32) + bproj_ref[...]
    h = h + attn                                     # residual (f32)

    x = _layer_norm(h, ln2_g_ref[...], ln2_b_ref[...], eps)
    u = jnp.dot(x.astype(jnp.bfloat16), wfc_ref[...],
                preferred_element_type=jnp.float32) + bfc_ref[...]        # (tq,4E)
    c = math.sqrt(2.0 / math.pi)                     # gelu_new (tanh), f32
    u = 0.5 * u * (1.0 + jnp.tanh(c * (u + 0.044715 * u * u * u)))
    h = h + jnp.dot(u.astype(jnp.bfloat16), wfp_ref[...],
                    preferred_element_type=jnp.float32) + bfp_ref[...]
    o_ref[...] = h.astype(o_ref.dtype)


def attn_mlp(h, q, kv, mask3, lyr, *, batch, seq, q_tile, n_head,
             buffered, eps=1e-5):
    n, e = h.shape
    d = e // n_head
    assert seq % q_tile == 0
    qt_per_seq = seq // q_tile
    row_map = lambda b, qi: (b * qt_per_seq + qi, 0)

    in_specs = [
        pl.BlockSpec((1, 1, seq), lambda b, qi: (b, 0, 0)),   # key-padding mask
        pl.BlockSpec((q_tile, e), row_map),                   # residual rows
        pl.BlockSpec((q_tile, e), row_map),                   # Q rows (bf16)
        pl.BlockSpec((seq, 2 * e), lambda b, qi: (b, 0)),     # full-S K/V per batch
        _const_spec((e, e), buffered),                        # wproj
        _const_spec((1, e), buffered),                        # bproj
        _const_spec((1, e), buffered),                        # ln2_g
        _const_spec((1, e), buffered),                        # ln2_b
        _const_spec((e, 4 * e), buffered),                    # wfc
        _const_spec((1, 4 * e), buffered),                    # bfc
        _const_spec((4 * e, e), buffered),                    # wfp
        _const_spec((1, e), buffered),                        # bfp
    ]
    kernel = functools.partial(_attn_mlp_kernel, n_head=n_head, head_dim=d,
                               q_tile=q_tile, scale=1.0 / math.sqrt(d), eps=eps)
    return pl.pallas_call(
        kernel,
        grid=(batch, qt_per_seq),
        in_specs=in_specs,
        out_specs=pl.BlockSpec((q_tile, e), row_map),
        out_shape=jax.ShapeDtypeStruct((n, e), jnp.float32),
        scratch_shapes=[pltpu.VMEM((q_tile, e), jnp.bfloat16)],  # head contexts
        input_output_aliases={1: 0},                             # h -> out (no extra HBM copy)
        compiler_params=pltpu.CompilerParams(
            dimension_semantics=("parallel", "parallel"),
            vmem_limit_bytes=_VMEM_LIMIT),
    )(mask3, h, q, kv,
      lyr["proj_w"], lyr["proj_b"], lyr["ln2_g"], lyr["ln2_b"],
      lyr["fc_w"], lyr["fc_b"], lyr["fc_proj_w"], lyr["fc_proj_b"])


# -------- fused final-LN + masked mean + mlp + feature_extractor head -------

def _head_kernel(mask_ref, h_ref, lnf_g_ref, lnf_b_ref,
                 mlp_w_ref, mlp_b_ref, fe1_w_ref, fe1_b_ref,
                 fe2_w_ref, fe2_b_ref, fe3_w_ref, fe3_b_ref,
                 o_ref, *, eps):
    h = _layer_norm(h_ref[...], lnf_g_ref[...], lnf_b_ref[...], eps)   # (S,E) f32
    m = mask_ref[0]                                                    # (1,S) f32
    num = jnp.dot(m, h, preferred_element_type=jnp.float32)            # masked sum (MXU matvec)
    den = jnp.maximum(jnp.sum(m, axis=-1, keepdims=True), 1.0)         # no /0
    z = num * pl.reciprocal(den, approx=True)                          # (1,E) masked mean

    def lin(x, w_ref, b_ref):
        return jnp.dot(x.astype(jnp.bfloat16), w_ref[...],
                       preferred_element_type=jnp.float32) + b_ref[...]

    z = lin(z, mlp_w_ref, mlp_b_ref)
    z = jnp.maximum(lin(z, fe1_w_ref, fe1_b_ref), 0.0)
    z = jnp.maximum(lin(z, fe2_w_ref, fe2_b_ref), 0.0)
    z = lin(z, fe3_w_ref, fe3_b_ref)
    o_ref[0] = z.astype(o_ref.dtype)


def encoder_head(h, mask3, params, *, batch, seq, buffered, eps=1e-5):
    n, e = h.shape
    hid = params["mlp_w"].shape[1]
    lat = params["fe3_w"].shape[1]
    out = pl.pallas_call(
        functools.partial(_head_kernel, eps=eps),
        grid=(batch,),
        in_specs=[pl.BlockSpec((1, 1, seq), lambda b: (b, 0, 0)),
                  pl.BlockSpec((seq, e), lambda b: (b, 0)),
                  _const_spec((1, e), buffered), _const_spec((1, e), buffered),
                  _const_spec((e, hid), buffered), _const_spec((1, hid), buffered),
                  _const_spec((hid, hid), buffered), _const_spec((1, hid), buffered),
                  _const_spec((hid, hid), buffered), _const_spec((1, hid), buffered),
                  _const_spec((hid, lat), buffered), _const_spec((1, lat), buffered)],
        out_specs=pl.BlockSpec((1, 1, lat), lambda b: (b, 0, 0)),
        out_shape=jax.ShapeDtypeStruct((batch, 1, lat), jnp.float32),
        compiler_params=pltpu.CompilerParams(
            dimension_semantics=("parallel",),
            vmem_limit_bytes=_VMEM_LIMIT),
    )(mask3, h, params["ln_f_g"], params["ln_f_b"],
      params["mlp_w"], params["mlp_b"], params["fe1_w"], params["fe1_b"],
      params["fe2_w"], params["fe2_b"], params["fe3_w"], params["fe3_b"])
    return out.reshape(batch, lat)


# ------------------------ parameter initialization --------------------------

def init_params(key, *, vocab, n_pos, n_embd, n_head, n_layer,
                hidden_dim, latent_dim):
    ks = iter(jax.random.split(key, 4 * n_layer + 16))

    def nrm(shape, std=0.02):
        return std * jax.random.normal(next(ks), shape, jnp.float32)

    def wmat(shape, std=0.02):
        # matmul weights stored bf16 (MXU-native, halves HBM/VMEM traffic)
        return nrm(shape, std).astype(jnp.bfloat16)

    def lin(fan_in, fan_out):
        # PyTorch nn.Linear default init (uniform); bias zeroed by weights_init
        bound = 1.0 / math.sqrt(fan_in)
        w = jax.random.uniform(next(ks), (fan_in, fan_out), jnp.float32,
                               -bound, bound).astype(jnp.bfloat16)
        b = jnp.zeros((1, fan_out), jnp.float32)
        return w, b

    params = {
        "wte": nrm((vocab, n_embd)),
        "wpe": nrm((n_pos, n_embd), 0.01),
        "ln_f_g": jnp.ones((1, n_embd), jnp.float32),
        "ln_f_b": jnp.zeros((1, n_embd), jnp.float32),
        "layers": [],
    }
    for _ in range(n_layer):
        params["layers"].append({
            "ln1_g": jnp.ones((1, n_embd), jnp.float32),
            "ln1_b": jnp.zeros((1, n_embd), jnp.float32),
            "attn_w": wmat((n_embd, 3 * n_embd)),
            "attn_b": jnp.zeros((1, 3 * n_embd), jnp.float32),
            "proj_w": wmat((n_embd, n_embd)),
            "proj_b": jnp.zeros((1, n_embd), jnp.float32),
            "ln2_g": jnp.ones((1, n_embd), jnp.float32),
            "ln2_b": jnp.zeros((1, n_embd), jnp.float32),
            "fc_w": wmat((n_embd, 4 * n_embd)),
            "fc_b": jnp.zeros((1, 4 * n_embd), jnp.float32),
            "fc_proj_w": wmat((4 * n_embd, n_embd)),
            "fc_proj_b": jnp.zeros((1, n_embd), jnp.float32),
        })

    # projection head (mlp + feature_extractor); biases zeroed by weights_init
    params["mlp_w"], params["mlp_b"] = lin(n_embd, hidden_dim)
    params["fe1_w"], params["fe1_b"] = lin(hidden_dim, hidden_dim)
    params["fe2_w"], params["fe2_b"] = lin(hidden_dim, hidden_dim)
    params["fe3_w"], params["fe3_b"] = lin(hidden_dim, latent_dim)
    return params


# ------------------------------ forward pass --------------------------------

def gpt2_encoder_forward(params, input_ids, attention_mask, *,
                         n_head, q_tile, weights_buffered=False):
    B, S = input_ids.shape
    E = params["wte"].shape[1]
    mask3 = attention_mask.astype(jnp.float32).reshape(B, 1, S)

    # TODO(synk): token/position embedding gather stays as a single XLA gather;
    # could be fused via scalar-prefetched DMA gather.
    h = params["wte"][input_ids] + params["wpe"][:S][None, :, :]
    h = h.reshape(B * S, E).astype(jnp.float32)       # f32 residual stream

    # TODO(synk): cross-layer weight prefetch (stacked weights + layer grid axis
    # or cross-call DMA futures) not implemented; weight DMA is paid per layer.
    for lyr in params["layers"]:
        q, kv = qkv_projection(h, lyr, rows_tile=q_tile,
                               buffered=weights_buffered)
        h = attn_mlp(h, q, kv, mask3, lyr, batch=B, seq=S, q_tile=q_tile,
                     n_head=n_head, buffered=weights_buffered)

    return encoder_head(h, mask3, params, batch=B, seq=S,
                        buffered=weights_buffered)


# ---------------------------------- main ------------------------------------

if __name__ == "__main__":
    # Small synthetic GPT-2 config with lane-dense (multiple-of-128) dims.
    VOCAB, N_POS, E, H, L = 256, 128, 128, 4, 2
    HIDDEN_DIM, LATENT_DIM = 128, 128
    B, S, TQ = 2, 128, 64

    key = jax.random.PRNGKey(0)
    k_par, k_ids = jax.random.split(key)
    params = init_params(k_par, vocab=VOCAB, n_pos=N_POS, n_embd=E,
                         n_head=H, n_layer=L,
                         hidden_dim=HIDDEN_DIM, latent_dim=LATENT_DIM)

    input_ids = jax.random.randint(k_ids, (B, S), 0, VOCAB, dtype=jnp.int32)
    # row 0: no padding; row 1: last 32 positions padded
    attention_mask = jnp.concatenate(
        [jnp.ones((B, S - 32), jnp.int32),
         jnp.concatenate([jnp.ones((1, 32), jnp.int32),
                          jnp.zeros((1, 32), jnp.int32)], axis=0)], axis=1)

    def run(buffered):
        fwd = jax.jit(functools.partial(gpt2_encoder_forward, n_head=H,
                                        q_tile=TQ, weights_buffered=buffered))
        return jax.block_until_ready(fwd(params, input_ids, attention_mask))

    try:
        out = run(True)        # grid-invariant weights single-buffered
    except Exception:
        out = run(False)       # fallback: default (double-buffered) weight specs

    assert out.shape == (B, LATENT_DIM)
    assert bool(jnp.all(jnp.isfinite(out)))
    print("KERNEL_OK")
</pallas_src>

<mosaic_0001>
module attributes {stable_mosaic.version = 11 : i64} {
  func.func @_qkv_kernel(%arg0: i32, %arg1: memref<64x128xf32, #tpu.memory_space<vmem>>, %arg2: memref<1x128xf32, #tpu.memory_space<vmem>>, %arg3: memref<1x128xf32, #tpu.memory_space<vmem>>, %arg4: memref<128x384xbf16, #tpu.memory_space<vmem>>, %arg5: memref<1x384xf32, #tpu.memory_space<vmem>>, %arg6: memref<64x128xbf16, #tpu.memory_space<vmem>>, %arg7: memref<64x256xbf16, #tpu.memory_space<vmem>>) attributes {dimension_semantics = [#tpu.dimension_semantics<parallel>], iteration_bounds = array<i64: 4>, scalar_prefetch = 0 : i64, scratch_operands = 0 : i64, tpu.core_type = #tpu.core_type<tc>, window_params = [{transform_indices = @transform_0, window_bounds = array<i64: 64, 128>}, {pipeline_mode = #tpu.pipeline_mode<synchronous>, transform_indices = @transform_1, window_bounds = array<i64: 1, 128>}, {pipeline_mode = #tpu.pipeline_mode<synchronous>, transform_indices = @transform_2, window_bounds = array<i64: 1, 128>}, {pipeline_mode = #tpu.pipeline_mode<synchronous>, transform_indices = @transform_3, window_bounds = array<i64: 128, 384>}, {pipeline_mode = #tpu.pipeline_mode<synchronous>, transform_indices = @transform_4, window_bounds = array<i64: 1, 384>}, {transform_indices = @transform_5, window_bounds = array<i64: 64, 128>}, {transform_indices = @transform_6, window_bounds = array<i64: 64, 256>}]} {
    %c0 = arith.constant 0 : index
    %c0_0 = arith.constant 0 : index
    %0 = vector.load %arg1[%c0, %c0_0] : memref<64x128xf32, #tpu.memory_space<vmem>>, vector<64x128xf32>
    %c0_1 = arith.constant 0 : index
    %c0_2 = arith.constant 0 : index
    %1 = vector.load %arg2[%c0_1, %c0_2] : memref<1x128xf32, #tpu.memory_space<vmem>>, vector<1x128xf32>
    %c0_3 = arith.constant 0 : index
    %c0_4 = arith.constant 0 : index
    %2 = vector.load %arg3[%c0_3, %c0_4] : memref<1x128xf32, #tpu.memory_space<vmem>>, vector<1x128xf32>
    %cst = arith.constant dense<0.000000e+00> : vector<64xf32>
    %3 = vector.multi_reduction <add>, %0, %cst [1] : vector<64x128xf32> to vector<64xf32>
    %4 = vector.shape_cast %3 : vector<64xf32> to vector<64x1xf32>
    %cst_5 = arith.constant 1.280000e+02 : f32
    %5 = vector.broadcast %cst_5 : f32 to vector<64x1xf32>
    %6 = arith.divf %4, %5 : vector<64x1xf32>
    %7 = vector.broadcast %6 : vector<64x1xf32> to vector<64x128xf32>
    %8 = arith.subf %0, %7 : vector<64x128xf32>
    %9 = arith.mulf %8, %8 : vector<64x128xf32>
    %cst_6 = arith.constant dense<0.000000e+00> : vector<64xf32>
    %10 = vector.multi_reduction <add>, %9, %cst_6 [1] : vector<64x128xf32> to vector<64xf32>
    %11 = vector.shape_cast %10 : vector<64xf32> to vector<64x1xf32>
    %cst_7 = arith.constant 1.280000e+02 : f32
    %12 = vector.broadcast %cst_7 : f32 to vector<64x1xf32>
    %13 = arith.divf %11, %12 : vector<64x1xf32>
    %cst_8 = arith.constant 9.99999974E-6 : f32
    %14 = vector.broadcast %cst_8 : f32 to vector<64x1xf32>
    %15 = arith.addf %13, %14 : vector<64x1xf32>
    %16 = math.rsqrt %15 : vector<64x1xf32>
    %17 = vector.broadcast %16 : vector<64x1xf32> to vector<64x128xf32>
    %18 = arith.mulf %8, %17 : vector<64x128xf32>
    %19 = vector.broadcast %1 : vector<1x128xf32> to vector<64x128xf32>
    %20 = arith.mulf %18, %19 : vector<64x128xf32>
    %21 = vector.broadcast %2 : vector<1x128xf32> to vector<64x128xf32>
    %22 = arith.addf %20, %21 : vector<64x128xf32>
    %23 = arith.truncf %22 : vector<64x128xf32> to vector<64x128xbf16>
    %c0_9 = arith.constant 0 : index
    %c0_10 = arith.constant 0 : index
    %24 = vector.load %arg4[%c0_9, %c0_10] : memref<128x384xbf16, #tpu.memory_space<vmem>>, vector<128x384xbf16>
    %cst_11 = arith.constant dense<0.000000e+00> : vector<64x384xf32>
    %25 = tpu.matmul %23, %24, %cst_11 {dimension_numbers = #tpu.dot_dimension_numbers<[1], [0], [0], [1], [0, 0, 1, 1], [], []>} : vector<64x128xbf16>, vector<128x384xbf16>, vector<64x384xf32> -> vector<64x384xf32>
    %c0_12 = arith.constant 0 : index
    %c0_13 = arith.constant 0 : index
    %26 = vector.load %arg5[%c0_12, %c0_13] : memref<1x384xf32, #tpu.memory_space<vmem>>, vector<1x384xf32>
    %27 = vector.broadcast %26 : vector<1x384xf32> to vector<64x384xf32>
    %28 = arith.addf %25, %27 : vector<64x384xf32>
    %29 = vector.extract_strided_slice %28 {offsets = [0, 0], sizes = [64, 128], strides = [1, 1]} : vector<64x384xf32> to vector<64x128xf32>
    %30 = arith.truncf %29 : vector<64x128xf32> to vector<64x128xbf16>
    %c0_14 = arith.constant 0 : index
    %c0_15 = arith.constant 0 : index
    %31 = vector.load %arg6[%c0_14, %c0_15] : memref<64x128xbf16, #tpu.memory_space<vmem>>, vector<64x128xbf16>
    tpu.vector_store %arg6[%c0_14, %c0_15], %30 {strides = array<i32>} : memref<64x128xbf16, #tpu.memory_space<vmem>>, vector<64x128xbf16>,
    %32 = vector.extract_strided_slice %28 {offsets = [0, 128], sizes = [64, 256], strides = [1, 1]} : vector<64x384xf32> to vector<64x256xf32>
    %33 = arith.truncf %32 : vector<64x256xf32> to vector<64x256xbf16>
    %c0_16 = arith.constant 0 : index
    %c0_17 = arith.constant 0 : index
    %34 = vector.load %arg7[%c0_16, %c0_17] : memref<64x256xbf16, #tpu.memory_space<vmem>>, vector<64x256xbf16>
    tpu.vector_store %arg7[%c0_16, %c0_17], %33 {strides = array<i32>} : memref<64x256xbf16, #tpu.memory_space<vmem>>, vector<64x256xbf16>,
    return
  }
  func.func @transform_0(%arg0: i32) -> (i32, i32) {
    %c0_i32 = arith.constant 0 : i32
    %c0_i32_0 = arith.constant 0 : i32
    return %arg0, %c0_i32 : i32, i32
  }
  func.func @transform_1(%arg0: i32) -> (i32, i32) {
    %c0_i32 = arith.constant 0 : i32
    %c0_i32_0 = arith.constant 0 : i32
    %c0_i32_1 = arith.constant 0 : i32
    return %c0_i32, %c0_i32_0 : i32, i32
  }
  func.func @transform_2(%arg0: i32) -> (i32, i32) {
    %c0_i32 = arith.constant 0 : i32
    %c0_i32_0 = arith.constant 0 : i32
    %c0_i32_1 = arith.constant 0 : i32
    return %c0_i32, %c0_i32_0 : i32, i32
  }
  func.func @transform_3(%arg0: i32) -> (i32, i32) {
    %c0_i32 = arith.constant 0 : i32
    %c0_i32_0 = arith.constant 0 : i32
    %c0_i32_1 = arith.constant 0 : i32
    return %c0_i32, %c0_i32_0 : i32, i32
  }
  func.func @transform_4(%arg0: i32) -> (i32, i32) {
    %c0_i32 = arith.constant 0 : i32
    %c0_i32_0 = arith.constant 0 : i32
    %c0_i32_1 = arith.constant 0 : i32
    return %c0_i32, %c0_i32_0 : i32, i32
  }
  func.func @transform_5(%arg0: i32) -> (i32, i32) {
    %c0_i32 = arith.constant 0 : i32
    %c0_i32_0 = arith.constant 0 : i32
    return %arg0, %c0_i32 : i32, i32
  }
  func.func @transform_6(%arg0: i32) -> (i32, i32) {
    %c0_i32 = arith.constant 0 : i32
    %c0_i32_0 = arith.constant 0 : i32
    return %arg0, %c0_i32 : i32, i32
  }
}

module attributes {stable_mosaic.version = 11 : i64} {
  func.func @_attn_mlp_kernel(%arg0: i32, %arg1: i32, %arg2: memref<1x1x128xf32, #tpu.memory_space<vmem>>, %arg3: memref<64x128xf32, #tpu.memory_space<vmem>>, %arg4: memref<64x128xbf16, #tpu.memory_space<vmem>>, %arg5: memref<128x256xbf16, #tpu.memory_space<vmem>>, %arg6: memref<128x128xbf16, #tpu.memory_space<vmem>>, %arg7: memref<1x128xf32, #tpu.memory_space<vmem>>, %arg8: memref<1x128xf32, #tpu.memory_space<vmem>>, %arg9: memref<1x128xf32, #tpu.memory_space<vmem>>, %arg10: memref<128x512xbf16, #tpu.memory_space<vmem>>, %arg11: memref<1x512xf32, #tpu.memory_space<vmem>>, %arg12: memref<512x128xbf16, #tpu.memory_space<vmem>>, %arg13: memref<1x128xf32, #tpu.memory_space<vmem>>, %arg14: memref<64x128xf32, #tpu.memory_space<vmem>>, %arg15: memref<64x128xbf16, #tpu.memory_space<vmem>>) attributes {dimension_semantics = [#tpu.dimension_semantics<parallel>, #tpu.dimension_semantics<parallel>], iteration_bounds = array<i64: 2, 2>, scalar_prefetch = 0 : i64, scratch_operands = 1 : i64, tpu.core_type = #tpu.core_type<tc>, window_params = [{transform_indices = @transform_0, window_bounds = array<i64: 1, 1, 128>}, {transform_indices = @transform_1, window_bounds = array<i64: 64, 128>}, {transform_indices = @transform_2, window_bounds = array<i64: 64, 128>}, {transform_indices = @transform_3, window_bounds = array<i64: 128, 256>}, {pipeline_mode = #tpu.pipeline_mode<synchronous>, transform_indices = @transform_4, window_bounds = array<i64: 128, 128>}, {pipeline_mode = #tpu.pipeline_mode<synchronous>, transform_indices = @transform_5, window_bounds = array<i64: 1, 128>}, {pipeline_mode = #tpu.pipeline_mode<synchronous>, transform_indices = @transform_6, window_bounds = array<i64: 1, 128>}, {pipeline_mode = #tpu.pipeline_mode<synchronous>, transform_indices = @transform_7, window_bounds = array<i64: 1, 128>}, {pipeline_mode = #tpu.pipeline_mode<synchronous>, transform_indices = @transform_8, window_bounds = array<i64: 128, 512>}, {pipeline_mode = #tpu.pipeline_mode<synchronous>, transform_indices = @transform_9, window_bounds = array<i64: 1, 512>}, {pipeline_mode = #tpu.pipeline_mode<synchronous>, transform_indices = @transform_10, window_bounds = array<i64: 512, 128>}, {pipeline_mode = #tpu.pipeline_mode<synchronous>, transform_indices = @transform_11, window_bounds = array<i64: 1, 128>}, {transform_indices = @transform_12, window_bounds = array<i64: 64, 128>}]} {
    %c0 = arith.constant 0 : index
    %c0_0 = arith.constant 0 : index
    %0 = vector.load %arg3[%c0, %c0_0] : memref<64x128xf32, #tpu.memory_space<vmem>>, vector<64x128xf32>
    %c0_1 = arith.constant 0 : index
    %c0_2 = arith.constant 0 : index
    %1 = vector.load %arg4[%c0_1, %c0_2] : memref<64x128xbf16, #tpu.memory_space<vmem>>, vector<64x128xbf16>
    %c0_3 = arith.constant 0 : index
    %c0_4 = arith.constant 0 : index
    %2 = vector.load %arg5[%c0_3, %c0_4] : memref<128x256xbf16, #tpu.memory_space<vmem>>, vector<128x128xbf16>
    %c0_5 = arith.constant 0 : index
    %c128 = arith.constant 128 : index
    %3 = vector.load %arg5[%c0_5, %c128] : memref<128x256xbf16, #tpu.memory_space<vmem>>, vector<128x128xbf16>
    %c0_6 = arith.constant 0 : index
    %c0_7 = arith.constant 0 : index
    %c0_8 = arith.constant 0 : index
    %4 = vector.load %arg2[%c0_6, %c0_7, %c0_8] : memref<1x1x128xf32, #tpu.memory_space<vmem>>, vector<1x1x128xf32>
    %5 = vector.shape_cast %4 : vector<1x1x128xf32> to vector<1x128xf32>
    %cst = arith.constant 5.000000e-01 : f32
    %6 = vector.broadcast %cst : f32 to vector<1x128xf32>
    %7 = arith.cmpf ogt, %5, %6 : vector<1x128xf32>
    %c64_i32 = arith.constant 64 : i32
    %8 = arith.muli %arg1, %c64_i32 : i32
    %9 = tpu.iota {dimensions = array<i32: 0>} : vector<64x128xi32>
    %10 = vector.broadcast %8 : i32 to vector<64x128xi32>
    %11 = arith.addi %10, %9 : vector<64x128xi32>
    %12 = tpu.iota {dimensions = array<i32: 1>} : vector<64x128xi32>
    %13 = arith.cmpi sge, %11, %12 : vector<64x128xi32>
    %14 = vector.broadcast %7 : vector<1x128xi1> to vector<64x128xi1>
    %15 = arith.andi %13, %14 : vector<64x128xi1>
    %16 = vector.extract_strided_slice %1 {offsets = [0, 0], sizes = [64, 32], strides = [1, 1]} : vector<64x128xbf16> to vector<64x32xbf16>
    %17 = vector.extract_strided_slice %2 {offsets = [0, 0], sizes = [128, 32], strides = [1, 1]} : vector<128x128xbf16> to vector<128x32xbf16>
    %18 = vector.extract_strided_slice %3 {offsets = [0, 0], sizes = [128, 32], strides = [1, 1]} : vector<128x128xbf16> to vector<128x32xbf16>
    %cst_9 = arith.constant dense<0.000000e+00> : vector<64x128xf32>
    %19 = tpu.matmul %16, %17, %cst_9 {dimension_numbers = #tpu.dot_dimension_numbers<[1], [1], [0], [0], [0, 0, 1, 0], [], []>} : vector<64x32xbf16>, vector<128x32xbf16>, vector<64x128xf32> -> vector<64x128xf32>
    %cst_10 = arith.constant 0.176776692 : f32
    %20 = vector.broadcast %cst_10 : f32 to vector<64x128xf32>
    %21 = arith.mulf %19, %20 : vector<64x128xf32>
    %cst_11 = arith.constant -1.000000e+09 : f32
    %22 = vector.broadcast %cst_11 : f32 to vector<64x128xf32>
    %23 = arith.select %15, %21, %22 : vector<64x128xi1>, vector<64x128xf32>
    %cst_12 = arith.constant dense<0xFF800000> : vector<64xf32>
    %24 = vector.multi_reduction <maximumf>, %23, %cst_12 [1] : vector<64x128xf32> to vector<64xf32>
    %25 = vector.shape_cast %24 : vector<64xf32> to vector<64x1xf32>
    %26 = vector.broadcast %25 : vector<64x1xf32> to vector<64x128xf32>
    %27 = arith.subf %23, %26 : vector<64x128xf32>
    %28 = math.exp %27 : vector<64x128xf32>
    %cst_13 = arith.constant dense<0.000000e+00> : vector<64xf32>
    %29 = vector.multi_reduction <add>, %28, %cst_13 [1] : vector<64x128xf32> to vector<64xf32>
    %30 = vector.shape_cast %29 : vector<64xf32> to vector<64x1xf32>
    %31 = tpu.reciprocal %30 {approx = true} : vector<64x1xf32> -> vector<64x1xf32>
    %32 = vector.broadcast %31 : vector<64x1xf32> to vector<64x128xf32>
    %33 = arith.mulf %28, %32 : vector<64x128xf32>
    %34 = arith.truncf %33 : vector<64x128xf32> to vector<64x128xbf16>
    %cst_14 = arith.constant dense<0.000000e+00> : vector<64x32xf32>
    %35 = tpu.matmul %34, %18, %cst_14 {dimension_numbers = #tpu.dot_dimension_numbers<[1], [0], [0], [1], [0, 0, 1, 1], [], []>} : vector<64x128xbf16>, vector<128x32xbf16>, vector<64x32xf32> -> vector<64x32xf32>
    %36 = arith.truncf %35 : vector<64x32xf32> to vector<64x32xbf16>
    %c0_15 = arith.constant 0 : index
    %c0_16 = arith.constant 0 : index
    %37 = vector.load %arg15[%c0_15, %c0_16] : memref<64x128xbf16, #tpu.memory_space<vmem>>, vector<64x32xbf16>
    tpu.vector_store %arg15[%c0_15, %c0_16], %36 {strides = array<i32>} : memref<64x128xbf16, #tpu.memory_space<vmem>>, vector<64x32xbf16>,
    %38 = vector.extract_strided_slice %1 {offsets = [0, 32], sizes = [64, 32], strides = [1, 1]} : vector<64x128xbf16> to vector<64x32xbf16>
    %39 = vector.extract_strided_slice %2 {offsets = [0, 32], sizes = [128, 32], strides = [1, 1]} : vector<128x128xbf16> to vector<128x32xbf16>
    %40 = vector.extract_strided_slice %3 {offsets = [0, 32], sizes = [128, 32], strides = [1, 1]} : vector<128x128xbf16> to vector<128x32xbf16>
    %cst_17 = arith.constant dense<0.000000e+00> : vector<64x128xf32>
    %41 = tpu.matmul %38, %39, %cst_17 {dimension_numbers = #tpu.dot_dimension_numbers<[1], [1], [0], [0], [0, 0, 1, 0], [], []>} : vector<64x32xbf16>, vector<128x32xbf16>, vector<64x128xf32> -> vector<64x128xf32>
    %cst_18 = arith.constant 0.176776692 : f32
    %42 = vector.broadcast %cst_18 : f32 to vector<64x128xf32>
    %43 = arith.mulf %41, %42 : vector<64x128xf32>
    %cst_19 = arith.constant -1.000000e+09 : f32
    %44 = vector.broadcast %cst_19 : f32 to vector<64x128xf32>
    %45 = arith.select %15, %43, %44 : vector<64x128xi1>, vector<64x128xf32>
    %cst_20 = arith.constant dense<0xFF800000> : vector<64xf32>
    %46 = vector.multi_reduction <maximumf>, %45, %cst_20 [1] : vector<64x128xf32> to vector<64xf32>
    %47 = vector.shape_cast %46 : vector<64xf32> to vector<64x1xf32>
    %48 = vector.broadcast %47 : vector<64x1xf32> to vector<64x128xf32>
    %49 = arith.subf %45, %48 : vector<64x128xf32>
    %50 = math.exp %49 : vector<64x128xf32>
    %cst_21 = arith.constant dense<0.000000e+00> : vector<64xf32>
    %51 = vector.multi_reduction <add>, %50, %cst_21 [1] : vector<64x128xf32> to vector<64xf32>
    %52 = vector.shape_cast %51 : vector<64xf32> to vector<64x1xf32>
    %53 = tpu.reciprocal %52 {approx = true} : vector<64x1xf32> -> vector<64x1xf32>
    %54 = vector.broadcast %53 : vector<64x1xf32> to vector<64x128xf32>
    %55 = arith.mulf %50, %54 : vector<64x128xf32>
    %56 = arith.truncf %55 : vector<64x128xf32> to vector<64x128xbf16>
    %cst_22 = arith.constant dense<0.000000e+00> : vector<64x32xf32>
    %57 = tpu.matmul %56, %40, %cst_22 {dimension_numbers = #tpu.dot_dimension_numbers<[1], [0], [0], [1], [0, 0, 1, 1], [], []>} : vector<64x128xbf16>, vector<128x32xbf16>, vector<64x32xf32> -> vector<64x32xf32>
    %58 = arith.truncf %57 : vector<64x32xf32> to vector<64x32xbf16>
    %c0_23 = arith.constant 0 : index
    %c32 = arith.constant 32 : index
    %59 = vector.load %arg15[%c0_23, %c32] : memref<64x128xbf16, #tpu.memory_space<vmem>>, vector<64x32xbf16>
    tpu.vector_store %arg15[%c0_23, %c32], %58 {strides = array<i32>} : memref<64x128xbf16, #tpu.memory_space<vmem>>, vector<64x32xbf16>,
    %60 = vector.extract_strided_slice %1 {offsets = [0, 64], sizes = [64, 32], strides = [1, 1]} : vector<64x128xbf16> to vector<64x32xbf16>
    %61 = vector.extract_strided_slice %2 {offsets = [0, 64], sizes = [128, 32], strides = [1, 1]} : vector<128x128xbf16> to vector<128x32xbf16>
    %62 = vector.extract_strided_slice %3 {offsets = [0, 64], sizes = [128, 32], strides = [1, 1]} : vector<128x128xbf16> to vector<128x32xbf16>
    %cst_24 = arith.constant dense<0.000000e+00> : vector<64x128xf32>
    %63 = tpu.matmul %60, %61, %cst_24 {dimension_numbers = #tpu.dot_dimension_numbers<[1], [1], [0], [0], [0, 0, 1, 0], [], []>} : vector<64x32xbf16>, vector<128x32xbf16>, vector<64x128xf32> -> vector<64x128xf32>
    %cst_25 = arith.constant 0.176776692 : f32
    %64 = vector.broadcast %cst_25 : f32 to vector<64x128xf32>
    %65 = arith.mulf %63, %64 : vector<64x128xf32>
    %cst_26 = arith.constant -1.000000e+09 : f32
    %66 = vector.broadcast %cst_26 : f32 to vector<64x128xf32>
    %67 = arith.select %15, %65, %66 : vector<64x128xi1>, vector<64x128xf32>
    %cst_27 = arith.constant dense<0xFF800000> : vector<64xf32>
    %68 = vector.multi_reduction <maximumf>, %67, %cst_27 [1] : vector<64x128xf32> to vector<64xf32>
    %69 = vector.shape_cast %68 : vector<64xf32> to vector<64x1xf32>
    %70 = vector.broadcast %69 : vector<64x1xf32> to vector<64x128xf32>
    %71 = arith.subf %67, %70 : vector<64x128xf32>
    %72 = math.exp %71 : vector<64x128xf32>
    %cst_28 = arith.constant dense<0.000000e+00> : vector<64xf32>
    %73 = vector.multi_reduction <add>, %72, %cst_28 [1] : vector<64x128xf32> to vector<64xf32>
    %74 = vector.shape_cast %73 : vector<64xf32> to vector<64x1xf32>
    %75 = tpu.reciprocal %74 {approx = true} : vector<64x1xf32> -> vector<64x1xf32>
    %76 = vector.broadcast %75 : vector<64x1xf32> to vector<64x128xf32>
    %77 = arith.mulf %72, %76 : vector<64x128xf32>
    %78 = arith.truncf %77 : vector<64x128xf32> to vector<64x128xbf16>
    %cst_29 = arith.constant dense<0.000000e+00> : vector<64x32xf32>
    %79 = tpu.matmul %78, %62, %cst_29 {dimension_numbers = #tpu.dot_dimension_numbers<[1], [0], [0], [1], [0, 0, 1, 1], [], []>} : vector<64x128xbf16>, vector<128x32xbf16>, vector<64x32xf32> -> vector<64x32xf32>
    %80 = arith.truncf %79 : vector<64x32xf32> to vector<64x32xbf16>
    %c0_30 = arith.constant 0 : index
    %c64 = arith.constant 64 : index
    %81 = vector.load %arg15[%c0_30, %c64] : memref<64x128xbf16, #tpu.memory_space<vmem>>, vector<64x32xbf16>
    tpu.vector_store %arg15[%c0_30, %c64], %80 {strides = array<i32>} : memref<64x128xbf16, #tpu.memory_space<vmem>>, vector<64x32xbf16>,
    %82 = vector.extract_strided_slice %1 {offsets = [0, 96], sizes = [64, 32], strides = [1, 1]} : vector<64x128xbf16> to vector<64x32xbf16>
    %83 = vector.extract_strided_slice %2 {offsets = [0, 96], sizes = [128, 32], strides = [1, 1]} : vector<128x128xbf16> to vector<128x32xbf16>
    %84 = vector.extract_strided_slice %3 {offsets = [0, 96], sizes = [128, 32], strides = [1, 1]} : vector<128x128xbf16> to vector<128x32xbf16>
    %cst_31 = arith.constant dense<0.000000e+00> : vector<64x128xf32>
    %85 = tpu.matmul %82, %83, %cst_31 {dimension_numbers = #tpu.dot_dimension_numbers<[1], [1], [0], [0], [0, 0, 1, 0], [], []>} : vector<64x32xbf16>, vector<128x32xbf16>, vector<64x128xf32> -> vector<64x128xf32>
    %cst_32 = arith.constant 0.176776692 : f32
    %86 = vector.broadcast %cst_32 : f32 to vector<64x128xf32>
    %87 = arith.mulf %85, %86 : vector<64x128xf32>
    %cst_33 = arith.constant -1.000000e+09 : f32
    %88 = vector.broadcast %cst_33 : f32 to vector<64x128xf32>
    %89 = arith.select %15, %87, %88 : vector<64x128xi1>, vector<64x128xf32>
    %cst_34 = arith.constant dense<0xFF800000> : vector<64xf32>
    %90 = vector.multi_reduction <maximumf>, %89, %cst_34 [1] : vector<64x128xf32> to vector<64xf32>
    %91 = vector.shape_cast %90 : vector<64xf32> to vector<64x1xf32>
    %92 = vector.broadcast %91 : vector<64x1xf32> to vector<64x128xf32>
    %93 = arith.subf %89, %92 : vector<64x128xf32>
    %94 = math.exp %93 : vector<64x128xf32>
    %cst_35 = arith.constant dense<0.000000e+00> : vector<64xf32>
    %95 = vector.multi_reduction <add>, %94, %cst_35 [1] : vector<64x128xf32> to vector<64xf32>
    %96 = vector.shape_cast %95 : vector<64xf32> to vector<64x1xf32>
    %97 = tpu.reciprocal %96 {approx = true} : vector<64x1xf32> -> vector<64x1xf32>
    %98 = vector.broadcast %97 : vector<64x1xf32> to vector<64x128xf32>
    %99 = arith.mulf %94, %98 : vector<64x128xf32>
    %100 = arith.truncf %99 : vector<64x128xf32> to vector<64x128xbf16>
    %cst_36 = arith.constant dense<0.000000e+00> : vector<64x32xf32>
    %101 = tpu.matmul %100, %84, %cst_36 {dimension_numbers = #tpu.dot_dimension_numbers<[1], [0], [0], [1], [0, 0, 1, 1], [], []>} : vector<64x128xbf16>, vector<128x32xbf16>, vector<64x32xf32> -> vector<64x32xf32>
    %102 = arith.truncf %101 : vector<64x32xf32> to vector<64x32xbf16>
    %c0_37 = arith.constant 0 : index
    %c96 = arith.constant 96 : index
    %103 = vector.load %arg15[%c0_37, %c96] : memref<64x128xbf16, #tpu.memory_space<vmem>>, vector<64x32xbf16>
    tpu.vector_store %arg15[%c0_37, %c96], %102 {strides = array<i32>} : memref<64x128xbf16, #tpu.memory_space<vmem>>, vector<64x32xbf16>,
    %c0_38 = arith.constant 0 : index
    %c0_39 = arith.constant 0 : index
    %104 = vector.load %arg15[%c0_38, %c0_39] : memref<64x128xbf16, #tpu.memory_space<vmem>>, vector<64x128xbf16>
    %c0_40 = arith.constant 0 : index
    %c0_41 = arith.constant 0 : index
    %105 = vector.load %arg6[%c0_40, %c0_41] : memref<128x128xbf16, #tpu.memory_space<vmem>>, vector<128x128xbf16>
    %cst_42 = arith.constant dense<0.000000e+00> : vector<64x128xf32>
    %106 = tpu.matmul %104, %105, %cst_42 {dimension_numbers = #tpu.dot_dimension_numbers<[1], [0], [0], [1], [0, 0, 1, 1], [], []>} : vector<64x128xbf16>, vector<128x128xbf16>, vector<64x128xf32> -> vector<64x128xf32>
    %c0_43 = arith.constant 0 : index
    %c0_44 = arith.constant 0 : index
    %107 = vector.load %arg7[%c0_43, %c0_44] : memref<1x128xf32, #tpu.memory_space<vmem>>, vector<1x128xf32>
    %108 = vector.broadcast %107 : vector<1x128xf32> to vector<64x128xf32>
    %109 = arith.addf %106, %108 : vector<64x128xf32>
    %110 = arith.addf %0, %109 : vector<64x128xf32>
    %c0_45 = arith.constant 0 : index
    %c0_46 = arith.constant 0 : index
    %111 = vector.load %arg8[%c0_45, %c0_46] : memref<1x128xf32, #tpu.memory_space<vmem>>, vector<1x128xf32>
    %c0_47 = arith.constant 0 : index
    %c0_48 = arith.constant 0 : index
    %112 = vector.load %arg9[%c0_47, %c0_48] : memref<1x128xf32, #tpu.memory_space<vmem>>, vector<1x128xf32>
    %cst_49 = arith.constant dense<0.000000e+00> : vector<64xf32>
    %113 = vector.multi_reduction <add>, %110, %cst_49 [1] : vector<64x128xf32> to vector<64xf32>
    %114 = vector.shape_cast %113 : vector<64xf32> to vector<64x1xf32>
    %cst_50 = arith.constant 1.280000e+02 : f32
    %115 = vector.broadcast %cst_50 : f32 to vector<64x1xf32>
    %116 = arith.divf %114, %115 : vector<64x1xf32>
    %117 = vector.broadcast %116 : vector<64x1xf32> to vector<64x128xf32>
    %118 = arith.subf %110, %117 : vector<64x128xf32>
    %119 = arith.mulf %118, %118 : vector<64x128xf32>
    %cst_51 = arith.constant dense<0.000000e+00> : vector<64xf32>
    %120 = vector.multi_reduction <add>, %119, %cst_51 [1] : vector<64x128xf32> to vector<64xf32>
    %121 = vector.shape_cast %120 : vector<64xf32> to vector<64x1xf32>
    %cst_52 = arith.constant 1.280000e+02 : f32
    %122 = vector.broadcast %cst_52 : f32 to vector<64x1xf32>
    %123 = arith.divf %121, %122 : vector<64x1xf32>
    %cst_53 = arith.constant 9.99999974E-6 : f32
    %124 = vector.broadcast %cst_53 : f32 to vector<64x1xf32>
    %125 = arith.addf %123, %124 : vector<64x1xf32>
    %126 = math.rsqrt %125 : vector<64x1xf32>
    %127 = vector.broadcast %126 : vector<64x1xf32> to vector<64x128xf32>
    %128 = arith.mulf %118, %127 : vector<64x128xf32>
    %129 = vector.broadcast %111 : vector<1x128xf32> to vector<64x128xf32>
    %130 = arith.mulf %128, %129 : vector<64x128xf32>
    %131 = vector.broadcast %112 : vector<1x128xf32> to vector<64x128xf32>
    %132 = arith.addf %130, %131 : vector<64x128xf32>
    %133 = arith.truncf %132 : vector<64x128xf32> to vector<64x128xbf16>
    %c0_54 = arith.constant 0 : index
    %c0_55 = arith.constant 0 : index
    %134 = vector.load %arg10[%c0_54, %c0_55] : memref<128x512xbf16, #tpu.memory_space<vmem>>, vector<128x512xbf16>
    %cst_56 = arith.constant dense<0.000000e+00> : vector<64x512xf32>
    %135 = tpu.matmul %133, %134, %cst_56 {dimension_numbers = #tpu.dot_dimension_numbers<[1], [0], [0], [1], [0, 0, 1, 1], [], []>} : vector<64x128xbf16>, vector<128x512xbf16>, vector<64x512xf32> -> vector<64x512xf32>
    %c0_57 = arith.constant 0 : index
    %c0_58 = arith.constant 0 : index
    %136 = vector.load %arg11[%c0_57, %c0_58] : memref<1x512xf32, #tpu.memory_space<vmem>>, vector<1x512xf32>
    %137 = vector.broadcast %136 : vector<1x512xf32> to vector<64x512xf32>
    %138 = arith.addf %135, %137 : vector<64x512xf32>
    %cst_59 = arith.constant 5.000000e-01 : f32
    %139 = vector.broadcast %cst_59 : f32 to vector<64x512xf32>
    %140 = arith.mulf %139, %138 : vector<64x512xf32>
    %cst_60 = arith.constant 4.471500e-02 : f32
    %141 = vector.broadcast %cst_60 : f32 to vector<64x512xf32>
    %142 = arith.mulf %141, %138 : vector<64x512xf32>
    %143 = arith.mulf %142, %138 : vector<64x512xf32>
    %144 = arith.mulf %143, %138 : vector<64x512xf32>
    %145 = arith.addf %138, %144 : vector<64x512xf32>
    %cst_61 = arith.constant 0.797884583 : f32
    %146 = vector.broadcast %cst_61 : f32 to vector<64x512xf32>
    %147 = arith.mulf %146, %145 : vector<64x512xf32>
    %148 = math.tanh %147 : vector<64x512xf32>
    %cst_62 = arith.constant 1.000000e+00 : f32
    %149 = vector.broadcast %cst_62 : f32 to vector<64x512xf32>
    %150 = arith.addf %149, %148 : vector<64x512xf32>
    %151 = arith.mulf %140, %150 : vector<64x512xf32>
    %152 = arith.truncf %151 : vector<64x512xf32> to vector<64x512xbf16>
    %c0_63 = arith.constant 0 : index
    %c0_64 = arith.constant 0 : index
    %153 = vector.load %arg12[%c0_63, %c0_64] : memref<512x128xbf16, #tpu.memory_space<vmem>>, vector<512x128xbf16>
    %cst_65 = arith.constant dense<0.000000e+00> : vector<64x128xf32>
    %154 = tpu.matmul %152, %153, %cst_65 {dimension_numbers = #tpu.dot_dimension_numbers<[1], [0], [0], [1], [0, 0, 1, 1], [], []>} : vector<64x512xbf16>, vector<512x128xbf16>, vector<64x128xf32> -> vector<64x128xf32>
    %155 = arith.addf %110, %154 : vector<64x128xf32>
    %c0_66 = arith.constant 0 : index
    %c0_67 = arith.constant 0 : index
    %156 = vector.load %arg13[%c0_66, %c0_67] : memref<1x128xf32, #tpu.memory_space<vmem>>, vector<1x128xf32>
    %157 = vector.broadcast %156 : vector<1x128xf32> to vector<64x128xf32>
    %158 = arith.addf %155, %157 : vector<64x128xf32>
    %c0_68 = arith.constant 0 : index
    %c0_69 = arith.constant 0 : index
    %159 = vector.load %arg14[%c0_68, %c0_69] : memref<64x128xf32, #tpu.memory_space<vmem>>, vector<64x128xf32>
    tpu.vector_store %arg14[%c0_68, %c0_69], %158 {strides = array<i32>} : memref<64x128xf32, #tpu.memory_space<vmem>>, vector<64x128xf32>,
    return
  }
  func.func @transform_0(%arg0: i32, %arg1: i32) -> (i32, i32, i32) {
    %c0_i32 = arith.constant 0 : i32
    %c0_i32_0 = arith.constant 0 : i32
    %c0_i32_1 = arith.constant 0 : i32
    return %arg0, %c0_i32, %c0_i32_0 : i32, i32, i32
  }
  func.func @transform_1(%arg0: i32, %arg1: i32) -> (i32, i32) {
    %c2_i32 = arith.constant 2 : i32
    %0 = arith.muli %arg0, %c2_i32 : i32
    %1 = arith.addi %0, %arg1 : i32
    %c0_i32 = arith.constant 0 : i32
    %c0_i32_0 = arith.constant 0 : i32
    return %1, %c0_i32 : i32, i32
  }
  func.func @transform_2(%arg0: i32, %arg1: i32) -> (i32, i32) {
    %c2_i32 = arith.constant 2 : i32
    %0 = arith.muli %arg0, %c2_i32 : i32
    %1 = arith.addi %0, %arg1 : i32
    %c0_i32 = arith.constant 0 : i32
    %c0_i32_0 = arith.constant 0 : i32
    return %1, %c0_i32 : i32, i32
  }
  func.func @transform_3(%arg0: i32, %arg1: i32) -> (i32, i32) {
    %c0_i32 = arith.constant 0 : i32
    %c0_i32_0 = arith.constant 0 : i32
    return %arg0, %c0_i32 : i32, i32
  }
  func.func @transform_4(%arg0: i32, %arg1: i32) -> (i32, i32) {
    %c0_i32 = arith.constant 0 : i32
    %c0_i32_0 = arith.constant 0 : i32
    %c0_i32_1 = arith.constant 0 : i32
    return %c0_i32, %c0_i32_0 : i32, i32
  }
  func.func @transform_5(%arg0: i32, %arg1: i32) -> (i32, i32) {
    %c0_i32 = arith.constant 0 : i32
    %c0_i32_0 = arith.constant 0 : i32
    %c0_i32_1 = arith.constant 0 : i32
    return %c0_i32, %c0_i32_0 : i32, i32
  }
  func.func @transform_6(%arg0: i32, %arg1: i32) -> (i32, i32) {
    %c0_i32 = arith.constant 0 : i32
    %c0_i32_0 = arith.constant 0 : i32
    %c0_i32_1 = arith.constant 0 : i32
    return %c0_i32, %c0_i32_0 : i32, i32
  }
  func.func @transform_7(%arg0: i32, %arg1: i32) -> (i32, i32) {
    %c0_i32 = arith.constant 0 : i32
    %c0_i32_0 = arith.constant 0 : i32
    %c0_i32_1 = arith.constant 0 : i32
    return %c0_i32, %c0_i32_0 : i32, i32
  }
  func.func @transform_8(%arg0: i32, %arg1: i32) -> (i32, i32) {
    %c0_i32 = arith.constant 0 : i32
    %c0_i32_0 = arith.constant 0 : i32
    %c0_i32_1 = arith.constant 0 : i32
    return %c0_i32, %c0_i32_0 : i32, i32
  }
  func.func @transform_9(%arg0: i32, %arg1: i32) -> (i32, i32) {
    %c0_i32 = arith.constant 0 : i32
    %c0_i32_0 = arith.constant 0 : i32
    %c0_i32_1 = arith.constant 0 : i32
    return %c0_i32, %c0_i32_0 : i32, i32
  }
  func.func @transform_10(%arg0: i32, %arg1: i32) -> (i32, i32) {
    %c0_i32 = arith.constant 0 : i32
    %c0_i32_0 = arith.constant 0 : i32
    %c0_i32_1 = arith.constant 0 : i32
    return %c0_i32, %c0_i32_0 : i32, i32
  }
  func.func @transform_11(%arg0: i32, %arg1: i32) -> (i32, i32) {
    %c0_i32 = arith.constant 0 : i32
    %c0_i32_0 = arith.constant 0 : i32
    %c0_i32_1 = arith.constant 0 : i32
    return %c0_i32, %c0_i32_0 : i32, i32
  }
  func.func @transform_12(%arg0: i32, %arg1: i32) -> (i32, i32) {
    %c2_i32 = arith.constant 2 : i32
    %0 = arith.muli %arg0, %c2_i32 : i32
    %1 = arith.addi %0, %arg1 : i32
    %c0_i32 = arith.constant 0 : i32
    %c0_i32_0 = arith.constant 0 : i32
    return %1, %c0_i32 : i32, i32
  }
}

module attributes {stable_mosaic.version = 11 : i64} {
  func.func @_head_kernel(%arg0: i32, %arg1: memref<1x1x128xf32, #tpu.memory_space<vmem>>, %arg2: memref<128x128xf32, #tpu.memory_space<vmem>>, %arg3: memref<1x128xf32, #tpu.memory_space<vmem>>, %arg4: memref<1x128xf32, #tpu.memory_space<vmem>>, %arg5: memref<128x128xbf16, #tpu.memory_space<vmem>>, %arg6: memref<1x128xf32, #tpu.memory_space<vmem>>, %arg7: memref<128x128xbf16, #tpu.memory_space<vmem>>, %arg8: memref<1x128xf32, #tpu.memory_space<vmem>>, %arg9: memref<128x128xbf16, #tpu.memory_space<vmem>>, %arg10: memref<1x128xf32, #tpu.memory_space<vmem>>, %arg11: memref<128x128xbf16, #tpu.memory_space<vmem>>, %arg12: memref<1x128xf32, #tpu.memory_space<vmem>>, %arg13: memref<1x1x128xf32, #tpu.memory_space<vmem>>) attributes {dimension_semantics = [#tpu.dimension_semantics<parallel>], iteration_bounds = array<i64: 2>, scalar_prefetch = 0 : i64, scratch_operands = 0 : i64, tpu.core_type = #tpu.core_type<tc>, window_params = [{transform_indices = @transform_0, window_bounds = array<i64: 1, 1, 128>}, {transform_indices = @transform_1, window_bounds = array<i64: 128, 128>}, {pipeline_mode = #tpu.pipeline_mode<synchronous>, transform_indices = @transform_2, window_bounds = array<i64: 1, 128>}, {pipeline_mode = #tpu.pipeline_mode<synchronous>, transform_indices = @transform_3, window_bounds = array<i64: 1, 128>}, {pipeline_mode = #tpu.pipeline_mode<synchronous>, transform_indices = @transform_4, window_bounds = array<i64: 128, 128>}, {pipeline_mode = #tpu.pipeline_mode<synchronous>, transform_indices = @transform_5, window_bounds = array<i64: 1, 128>}, {pipeline_mode = #tpu.pipeline_mode<synchronous>, transform_indices = @transform_6, window_bounds = array<i64: 128, 128>}, {pipeline_mode = #tpu.pipeline_mode<synchronous>, transform_indices = @transform_7, window_bounds = array<i64: 1, 128>}, {pipeline_mode = #tpu.pipeline_mode<synchronous>, transform_indices = @transform_8, window_bounds = array<i64: 128, 128>}, {pipeline_mode = #tpu.pipeline_mode<synchronous>, transform_indices = @transform_9, window_bounds = array<i64: 1, 128>}, {pipeline_mode = #tpu.pipeline_mode<synchronous>, transform_indices = @transform_10, window_bounds = array<i64: 128, 128>}, {pipeline_mode = #tpu.pipeline_mode<synchronous>, transform_indices = @transform_11, window_bounds = array<i64: 1, 128>}, {transform_indices = @transform_12, window_bounds = array<i64: 1, 1, 128>}]} {
    %c0 = arith.constant 0 : index
    %c0_0 = arith.constant 0 : index
    %0 = vector.load %arg2[%c0, %c0_0] : memref<128x128xf32, #tpu.memory_space<vmem>>, vector<128x128xf32>
    %c0_1 = arith.constant 0 : index
    %c0_2 = arith.constant 0 : index
    %1 = vector.load %arg3[%c0_1, %c0_2] : memref<1x128xf32, #tpu.memory_space<vmem>>, vector<1x128xf32>
    %c0_3 = arith.constant 0 : index
    %c0_4 = arith.constant 0 : index
    %2 = vector.load %arg4[%c0_3, %c0_4] : memref<1x128xf32, #tpu.memory_space<vmem>>, vector<1x128xf32>
    %cst = arith.constant dense<0.000000e+00> : vector<128xf32>
    %3 = vector.multi_reduction <add>, %0, %cst [1] : vector<128x128xf32> to vector<128xf32>
    %4 = vector.shape_cast %3 : vector<128xf32> to vector<128x1xf32>
    %cst_5 = arith.constant 1.280000e+02 : f32
    %5 = vector.broadcast %cst_5 : f32 to vector<128x1xf32>
    %6 = arith.divf %4, %5 : vector<128x1xf32>
    %7 = vector.broadcast %6 : vector<128x1xf32> to vector<128x128xf32>
    %8 = arith.subf %0, %7 : vector<128x128xf32>
    %9 = arith.mulf %8, %8 : vector<128x128xf32>
    %cst_6 = arith.constant dense<0.000000e+00> : vector<128xf32>
    %10 = vector.multi_reduction <add>, %9, %cst_6 [1] : vector<128x128xf32> to vector<128xf32>
    %11 = vector.shape_cast %10 : vector<128xf32> to vector<128x1xf32>
    %cst_7 = arith.constant 1.280000e+02 : f32
    %12 = vector.broadcast %cst_7 : f32 to vector<128x1xf32>
    %13 = arith.divf %11, %12 : vector<128x1xf32>
    %cst_8 = arith.constant 9.99999974E-6 : f32
    %14 = vector.broadcast %cst_8 : f32 to vector<128x1xf32>
    %15 = arith.addf %13, %14 : vector<128x1xf32>
    %16 = math.rsqrt %15 : vector<128x1xf32>
    %17 = vector.broadcast %16 : vector<128x1xf32> to vector<128x128xf32>
    %18 = arith.mulf %8, %17 : vector<128x128xf32>
    %19 = vector.broadcast %1 : vector<1x128xf32> to vector<128x128xf32>
    %20 = arith.mulf %18, %19 : vector<128x128xf32>
    %21 = vector.broadcast %2 : vector<1x128xf32> to vector<128x128xf32>
    %22 = arith.addf %20, %21 : vector<128x128xf32>
    %c0_9 = arith.constant 0 : index
    %c0_10 = arith.constant 0 : index
    %c0_11 = arith.constant 0 : index
    %23 = vector.load %arg1[%c0_9, %c0_10, %c0_11] : memref<1x1x128xf32, #tpu.memory_space<vmem>>, vector<1x1x128xf32>
    %24 = vector.shape_cast %23 : vector<1x1x128xf32> to vector<1x128xf32>
    %cst_12 = arith.constant dense<0.000000e+00> : vector<1x128xf32>
    %25 = tpu.matmul %24, %22, %cst_12 {dimension_numbers = #tpu.dot_dimension_numbers<[1], [0], [0], [1], [0, 0, 1, 1], [], []>} : vector<1x128xf32>, vector<128x128xf32>, vector<1x128xf32> -> vector<1x128xf32>
    %cst_13 = arith.constant dense<0.000000e+00> : vector<1xf32>
    %26 = vector.multi_reduction <add>, %24, %cst_13 [1] : vector<1x128xf32> to vector<1xf32>
    %27 = vector.shape_cast %26 : vector<1xf32> to vector<1x1xf32>
    %cst_14 = arith.constant 1.000000e+00 : f32
    %28 = vector.broadcast %cst_14 : f32 to vector<1x1xf32>
    %29 = arith.maximumf %27, %28 : vector<1x1xf32>
    %30 = tpu.reciprocal %29 {approx = true} : vector<1x1xf32> -> vector<1x1xf32>
    %31 = vector.broadcast %30 : vector<1x1xf32> to vector<1x128xf32>
    %32 = arith.mulf %25, %31 : vector<1x128xf32>
    %33 = arith.truncf %32 : vector<1x128xf32> to vector<1x128xbf16>
    %c0_15 = arith.constant 0 : index
    %c0_16 = arith.constant 0 : index
    %34 = vector.load %arg5[%c0_15, %c0_16] : memref<128x128xbf16, #tpu.memory_space<vmem>>, vector<128x128xbf16>
    %cst_17 = arith.constant dense<0.000000e+00> : vector<1x128xf32>
    %35 = tpu.matmul %33, %34, %cst_17 {dimension_numbers = #tpu.dot_dimension_numbers<[1], [0], [0], [1], [0, 0, 1, 1], [], []>} : vector<1x128xbf16>, vector<128x128xbf16>, vector<1x128xf32> -> vector<1x128xf32>
    %c0_18 = arith.constant 0 : index
    %c0_19 = arith.constant 0 : index
    %36 = vector.load %arg6[%c0_18, %c0_19] : memref<1x128xf32, #tpu.memory_space<vmem>>, vector<1x128xf32>
    %37 = arith.addf %35, %36 : vector<1x128xf32>
    %38 = arith.truncf %37 : vector<1x128xf32> to vector<1x128xbf16>
    %c0_20 = arith.constant 0 : index
    %c0_21 = arith.constant 0 : index
    %39 = vector.load %arg7[%c0_20, %c0_21] : memref<128x128xbf16, #tpu.memory_space<vmem>>, vector<128x128xbf16>
    %cst_22 = arith.constant dense<0.000000e+00> : vector<1x128xf32>
    %40 = tpu.matmul %38, %39, %cst_22 {dimension_numbers = #tpu.dot_dimension_numbers<[1], [0], [0], [1], [0, 0, 1, 1], [], []>} : vector<1x128xbf16>, vector<128x128xbf16>, vector<1x128xf32> -> vector<1x128xf32>
    %c0_23 = arith.constant 0 : index
    %c0_24 = arith.constant 0 : index
    %41 = vector.load %arg8[%c0_23, %c0_24] : memref<1x128xf32, #tpu.memory_space<vmem>>, vector<1x128xf32>
    %42 = arith.addf %40, %41 : vector<1x128xf32>
    %cst_25 = arith.constant 0.000000e+00 : f32
    %43 = vector.broadcast %cst_25 : f32 to vector<1x128xf32>
    %44 = arith.maximumf %42, %43 : vector<1x128xf32>
    %45 = arith.truncf %44 : vector<1x128xf32> to vector<1x128xbf16>
    %c0_26 = arith.constant 0 : index
    %c0_27 = arith.constant 0 : index
    %46 = vector.load %arg9[%c0_26, %c0_27] : memref<128x128xbf16, #tpu.memory_space<vmem>>, vector<128x128xbf16>
    %cst_28 = arith.constant dense<0.000000e+00> : vector<1x128xf32>
    %47 = tpu.matmul %45, %46, %cst_28 {dimension_numbers = #tpu.dot_dimension_numbers<[1], [0], [0], [1], [0, 0, 1, 1], [], []>} : vector<1x128xbf16>, vector<128x128xbf16>, vector<1x128xf32> -> vector<1x128xf32>
    %c0_29 = arith.constant 0 : index
    %c0_30 = arith.constant 0 : index
    %48 = vector.load %arg10[%c0_29, %c0_30] : memref<1x128xf32, #tpu.memory_space<vmem>>, vector<1x128xf32>
    %49 = arith.addf %47, %48 : vector<1x128xf32>
    %cst_31 = arith.constant 0.000000e+00 : f32
    %50 = vector.broadcast %cst_31 : f32 to vector<1x128xf32>
    %51 = arith.maximumf %49, %50 : vector<1x128xf32>
    %52 = arith.truncf %51 : vector<1x128xf32> to vector<1x128xbf16>
    %c0_32 = arith.constant 0 : index
    %c0_33 = arith.constant 0 : index
    %53 = vector.load %arg11[%c0_32, %c0_33] : memref<128x128xbf16, #tpu.memory_space<vmem>>, vector<128x128xbf16>
    %cst_34 = arith.constant dense<0.000000e+00> : vector<1x128xf32>
    %54 = tpu.matmul %52, %53, %cst_34 {dimension_numbers = #tpu.dot_dimension_numbers<[1], [0], [0], [1], [0, 0, 1, 1], [], []>} : vector<1x128xbf16>, vector<128x128xbf16>, vector<1x128xf32> -> vector<1x128xf32>
    %c0_35 = arith.constant 0 : index
    %c0_36 = arith.constant 0 : index
    %55 = vector.load %arg12[%c0_35, %c0_36] : memref<1x128xf32, #tpu.memory_space<vmem>>, vector<1x128xf32>
    %56 = arith.addf %54, %55 : vector<1x128xf32>
    %c0_37 = arith.constant 0 : index
    %c0_38 = arith.constant 0 : index
    %c0_39 = arith.constant 0 : index
    %57 = vector.load %arg13[%c0_37, %c0_38, %c0_39] : memref<1x1x128xf32, #tpu.memory_space<vmem>>, vector<1x1x128xf32>
    %58 = vector.shape_cast %57 : vector<1x1x128xf32> to vector<1x128xf32>
    %59 = vector.shape_cast %56 : vector<1x128xf32> to vector<1x1x128xf32>
    tpu.vector_store %arg13[%c0_37, %c0_38, %c0_39], %59 {strides = array<i32>} : memref<1x1x128xf32, #tpu.memory_space<vmem>>, vector<1x1x128xf32>,
    return
  }
  func.func @transform_0(%arg0: i32) -> (i32, i32, i32) {
    %c0_i32 = arith.constant 0 : i32
    %c0_i32_0 = arith.constant 0 : i32
    %c0_i32_1 = arith.constant 0 : i32
    return %arg0, %c0_i32, %c0_i32_0 : i32, i32, i32
  }
  func.func @transform_1(%arg0: i32) -> (i32, i32) {
    %c0_i32 = arith.constant 0 : i32
    %c0_i32_0 = arith.constant 0 : i32
    return %arg0, %c0_i32 : i32, i32
  }
  func.func @transform_2(%arg0: i32) -> (i32, i32) {
    %c0_i32 = arith.constant 0 : i32
    %c0_i32_0 = arith.constant 0 : i32
    %c0_i32_1 = arith.constant 0 : i32
    return %c0_i32, %c0_i32_0 : i32, i32
  }
  func.func @transform_3(%arg0: i32) -> (i32, i32) {
    %c0_i32 = arith.constant 0 : i32
    %c0_i32_0 = arith.constant 0 : i32
    %c0_i32_1 = arith.constant 0 : i32
    return %c0_i32, %c0_i32_0 : i32, i32
  }
  func.func @transform_4(%arg0: i32) -> (i32, i32) {
    %c0_i32 = arith.constant 0 : i32
    %c0_i32_0 = arith.constant 0 : i32
    %c0_i32_1 = arith.constant 0 : i32
    return %c0_i32, %c0_i32_0 : i32, i32
  }
  func.func @transform_5(%arg0: i32) -> (i32, i32) {
    %c0_i32 = arith.constant 0 : i32
    %c0_i32_0 = arith.constant 0 : i32
    %c0_i32_1 = arith.constant 0 : i32
    return %c0_i32, %c0_i32_0 : i32, i32
  }
  func.func @transform_6(%arg0: i32) -> (i32, i32) {
    %c0_i32 = arith.constant 0 : i32
    %c0_i32_0 = arith.constant 0 : i32
    %c0_i32_1 = arith.constant 0 : i32
    return %c0_i32, %c0_i32_0 : i32, i32
  }
  func.func @transform_7(%arg0: i32) -> (i32, i32) {
    %c0_i32 = arith.constant 0 : i32
    %c0_i32_0 = arith.constant 0 : i32
    %c0_i32_1 = arith.constant 0 : i32
    return %c0_i32, %c0_i32_0 : i32, i32
  }
  func.func @transform_8(%arg0: i32) -> (i32, i32) {
    %c0_i32 = arith.constant 0 : i32
    %c0_i32_0 = arith.constant 0 : i32
    %c0_i32_1 = arith.constant 0 : i32
    return %c0_i32, %c0_i32_0 : i32, i32
  }
  func.func @transform_9(%arg0: i32) -> (i32, i32) {
    %c0_i32 = arith.constant 0 : i32
    %c0_i32_0 = arith.constant 0 : i32
    %c0_i32_1 = arith.constant 0 : i32
    return %c0_i32, %c0_i32_0 : i32, i32
  }
  func.func @transform_10(%arg0: i32) -> (i32, i32) {
    %c0_i32 = arith.constant 0 : i32
    %c0_i32_0 = arith.constant 0 : i32
    %c0_i32_1 = arith.constant 0 : i32
    return %c0_i32, %c0_i32_0 : i32, i32
  }
  func.func @transform_11(%arg0: i32) -> (i32, i32) {
    %c0_i32 = arith.constant 0 : i32
    %c0_i32_0 = arith.constant 0 : i32
    %c0_i32_1 = arith.constant 0 : i32
    return %c0_i32, %c0_i32_0 : i32, i32
  }
  func.func @transform_12(%arg0: i32) -> (i32, i32, i32) {
    %c0_i32 = arith.constant 0 : i32
    %c0_i32_0 = arith.constant 0 : i32
    %c0_i32_1 = arith.constant 0 : i32
    return %arg0, %c0_i32, %c0_i32_0 : i32, i32, i32
  }
}

module attributes {stable_mosaic.version = 11 : i64} {
  func.func @_qkv_kernel(%arg0: i32, %arg1: memref<64x128xf32, #tpu.memory_space<vmem>>, %arg2: memref<1x128xf32, #tpu.memory_space<vmem>>, %arg3: memref<1x128xf32, #tpu.memory_space<vmem>>, %arg4: memref<128x384xbf16, #tpu.memory_space<vmem>>, %arg5: memref<1x384xf32, #tpu.memory_space<vmem>>, %arg6: memref<64x128xbf16, #tpu.memory_space<vmem>>, %arg7: memref<64x256xbf16, #tpu.memory_space<vmem>>) attributes {dimension_semantics = [#tpu.dimension_semantics<parallel>], iteration_bounds = array<i64: 4>, scalar_prefetch = 0 : i64, scratch_operands = 0 : i64, tpu.core_type = #tpu.core_type<tc>, window_params = [{transform_indices = @transform_0, window_bounds = array<i64: 64, 128>}, {pipeline_mode = #tpu.pipeline_mode<synchronous>, transform_indices = @transform_1, window_bounds = array<i64: 1, 128>}, {pipeline_mode = #tpu.pipeline_mode<synchronous>, transform_indices = @transform_2, window_bounds = array<i64: 1, 128>}, {pipeline_mode = #tpu.pipeline_mode<synchronous>, transform_indices = @transform_3, window_bounds = array<i64: 128, 384>}, {pipeline_mode = #tpu.pipeline_mode<synchronous>, transform_indices = @transform_4, window_bounds = array<i64: 1, 384>}, {transform_indices = @transform_5, window_bounds = array<i64: 64, 128>}, {transform_indices = @transform_6, window_bounds = array<i64: 64, 256>}]} {
    %c0 = arith.constant 0 : index
    %c0_0 = arith.constant 0 : index
    %0 = vector.load %arg1[%c0, %c0_0] : memref<64x128xf32, #tpu.memory_space<vmem>>, vector<64x128xf32>
    %c0_1 = arith.constant 0 : index
    %c0_2 = arith.constant 0 : index
    %1 = vector.load %arg2[%c0_1, %c0_2] : memref<1x128xf32, #tpu.memory_space<vmem>>, vector<1x128xf32>
    %c0_3 = arith.constant 0 : index
    %c0_4 = arith.constant 0 : index
    %2 = vector.load %arg3[%c0_3, %c0_4] : memref<1x128xf32, #tpu.memory_space<vmem>>, vector<1x128xf32>
    %cst = arith.constant dense<0.000000e+00> : vector<64xf32>
    %3 = vector.multi_reduction <add>, %0, %cst [1] : vector<64x128xf32> to vector<64xf32>
    %4 = vector.shape_cast %3 : vector<64xf32> to vector<64x1xf32>
    %cst_5 = arith.constant 1.280000e+02 : f32
    %5 = vector.broadcast %cst_5 : f32 to vector<64x1xf32>
    %6 = arith.divf %4, %5 : vector<64x1xf32>
    %7 = vector.broadcast %6 : vector<64x1xf32> to vector<64x128xf32>
    %8 = arith.subf %0, %7 : vector<64x128xf32>
    %9 = arith.mulf %8, %8 : vector<64x128xf32>
    %cst_6 = arith.constant dense<0.000000e+00> : vector<64xf32>
    %10 = vector.multi_reduction <add>, %9, %cst_6 [1] : vector<64x128xf32> to vector<64xf32>
    %11 = vector.shape_cast %10 : vector<64xf32> to vector<64x1xf32>
    %cst_7 = arith.constant 1.280000e+02 : f32
    %12 = vector.broadcast %cst_7 : f32 to vector<64x1xf32>
    %13 = arith.divf %11, %12 : vector<64x1xf32>
    %cst_8 = arith.constant 9.99999974E-6 : f32
    %14 = vector.broadcast %cst_8 : f32 to vector<64x1xf32>
    %15 = arith.addf %13, %14 : vector<64x1xf32>
    %16 = math.rsqrt %15 : vector<64x1xf32>
    %17 = vector.broadcast %16 : vector<64x1xf32> to vector<64x128xf32>
    %18 = arith.mulf %8, %17 : vector<64x128xf32>
    %19 = vector.broadcast %1 : vector<1x128xf32> to vector<64x128xf32>
    %20 = arith.mulf %18, %19 : vector<64x128xf32>
    %21 = vector.broadcast %2 : vector<1x128xf32> to vector<64x128xf32>
    %22 = arith.addf %20, %21 : vector<64x128xf32>
    %23 = arith.truncf %22 : vector<64x128xf32> to vector<64x128xbf16>
    %c0_9 = arith.constant 0 : index
    %c0_10 = arith.constant 0 : index
    %24 = vector.load %arg4[%c0_9, %c0_10] : memref<128x384xbf16, #tpu.memory_space<vmem>>, vector<128x384xbf16>
    %cst_11 = arith.constant dense<0.000000e+00> : vector<64x384xf32>
    %25 = tpu.matmul %23, %24, %cst_11 {dimension_numbers = #tpu.dot_dimension_numbers<[1], [0], [0], [1], [0, 0, 1, 1], [], []>} : vector<64x128xbf16>, vector<128x384xbf16>, vector<64x384xf32> -> vector<64x384xf32>
    %c0_12 = arith.constant 0 : index
    %c0_13 = arith.constant 0 : index
    %26 = vector.load %arg5[%c0_12, %c0_13] : memref<1x384xf32, #tpu.memory_space<vmem>>, vector<1x384xf32>
    %27 = vector.broadcast %26 : vector<1x384xf32> to vector<64x384xf32>
    %28 = arith.addf %25, %27 : vector<64x384xf32>
    %29 = vector.extract_strided_slice %28 {offsets = [0, 0], sizes = [64, 128], strides = [1, 1]} : vector<64x384xf32> to vector<64x128xf32>
    %30 = arith.truncf %29 : vector<64x128xf32> to vector<64x128xbf16>
    %c0_14 = arith.constant 0 : index
    %c0_15 = arith.constant 0 : index
    %31 = vector.load %arg6[%c0_14, %c0_15] : memref<64x128xbf16, #tpu.memory_space<vmem>>, vector<64x128xbf16>
    tpu.vector_store %arg6[%c0_14, %c0_15], %30 {strides = array<i32>} : memref<64x128xbf16, #tpu.memory_space<vmem>>, vector<64x128xbf16>,
    %32 = vector.extract_strided_slice %28 {offsets = [0, 128], sizes = [64, 256], strides = [1, 1]} : vector<64x384xf32> to vector<64x256xf32>
    %33 = arith.truncf %32 : vector<64x256xf32> to vector<64x256xbf16>
    %c0_16 = arith.constant 0 : index
    %c0_17 = arith.constant 0 : index
    %34 = vector.load %arg7[%c0_16, %c0_17] : memref<64x256xbf16, #tpu.memory_space<vmem>>, vector<64x256xbf16>
    tpu.vector_store %arg7[%c0_16, %c0_17], %33 {strides = array<i32>} : memref<64x256xbf16, #tpu.memory_space<vmem>>, vector<64x256xbf16>,
    return
  }
  func.func @transform_0(%arg0: i32) -> (i32, i32) {
    %c0_i32 = arith.constant 0 : i32
    %c0_i32_0 = arith.constant 0 : i32
    return %arg0, %c0_i32 : i32, i32
  }
  func.func @transform_1(%arg0: i32) -> (i32, i32) {
    %c0_i32 = arith.constant 0 : i32
    %c0_i32_0 = arith.constant 0 : i32
    %c0_i32_1 = arith.constant 0 : i32
    return %c0_i32, %c0_i32_0 : i32, i32
  }
  func.func @transform_2(%arg0: i32) -> (i32, i32) {
    %c0_i32 = arith.constant 0 : i32
    %c0_i32_0 = arith.constant 0 : i32
    %c0_i32_1 = arith.constant 0 : i32
    return %c0_i32, %c0_i32_0 : i32, i32
  }
  func.func @transform_3(%arg0: i32) -> (i32, i32) {
    %c0_i32 = arith.constant 0 : i32
    %c0_i32_0 = arith.constant 0 : i32
    %c0_i32_1 = arith.constant 0 : i32
    return %c0_i32, %c0_i32_0 : i32, i32
  }
  func.func @transform_4(%arg0: i32) -> (i32, i32) {
    %c0_i32 = arith.constant 0 : i32
    %c0_i32_0 = arith.constant 0 : i32
    %c0_i32_1 = arith.constant 0 : i32
    return %c0_i32, %c0_i32_0 : i32, i32
  }
  func.func @transform_5(%arg0: i32) -> (i32, i32) {
    %c0_i32 = arith.constant 0 : i32
    %c0_i32_0 = arith.constant 0 : i32
    return %arg0, %c0_i32 : i32, i32
  }
  func.func @transform_6(%arg0: i32) -> (i32, i32) {
    %c0_i32 = arith.constant 0 : i32
    %c0_i32_0 = arith.constant 0 : i32
    return %arg0, %c0_i32 : i32, i32
  }
}

module attributes {stable_mosaic.version = 11 : i64} {
  func.func @_head_kernel(%arg0: i32, %arg1: memref<1x1x128xf32, #tpu.memory_space<vmem>>, %arg2: memref<128x128xf32, #tpu.memory_space<vmem>>, %arg3: memref<1x128xf32, #tpu.memory_space<vmem>>, %arg4: memref<1x128xf32, #tpu.memory_space<vmem>>, %arg5: memref<128x128xbf16, #tpu.memory_space<vmem>>, %arg6: memref<1x128xf32, #tpu.memory_space<vmem>>, %arg7: memref<128x128xbf16, #tpu.memory_space<vmem>>, %arg8: memref<1x128xf32, #tpu.memory_space<vmem>>, %arg9: memref<128x128xbf16, #tpu.memory_space<vmem>>, %arg10: memref<1x128xf32, #tpu.memory_space<vmem>>, %arg11: memref<128x128xbf16, #tpu.memory_space<vmem>>, %arg12: memref<1x128xf32, #tpu.memory_space<vmem>>, %arg13: memref<1x1x128xf32, #tpu.memory_space<vmem>>) attributes {dimension_semantics = [#tpu.dimension_semantics<parallel>], iteration_bounds = array<i64: 2>, scalar_prefetch = 0 : i64, scratch_operands = 0 : i64, tpu.core_type = #tpu.core_type<tc>, window_params = [{transform_indices = @transform_0, window_bounds = array<i64: 1, 1, 128>}, {transform_indices = @transform_1, window_bounds = array<i64: 128, 128>}, {pipeline_mode = #tpu.pipeline_mode<synchronous>, transform_indices = @transform_2, window_bounds = array<i64: 1, 128>}, {pipeline_mode = #tpu.pipeline_mode<synchronous>, transform_indices = @transform_3, window_bounds = array<i64: 1, 128>}, {pipeline_mode = #tpu.pipeline_mode<synchronous>, transform_indices = @transform_4, window_bounds = array<i64: 128, 128>}, {pipeline_mode = #tpu.pipeline_mode<synchronous>, transform_indices = @transform_5, window_bounds = array<i64: 1, 128>}, {pipeline_mode = #tpu.pipeline_mode<synchronous>, transform_indices = @transform_6, window_bounds = array<i64: 128, 128>}, {pipeline_mode = #tpu.pipeline_mode<synchronous>, transform_indices = @transform_7, window_bounds = array<i64: 1, 128>}, {pipeline_mode = #tpu.pipeline_mode<synchronous>, transform_indices = @transform_8, window_bounds = array<i64: 128, 128>}, {pipeline_mode = #tpu.pipeline_mode<synchronous>, transform_indices = @transform_9, window_bounds = array<i64: 1, 128>}, {pipeline_mode = #tpu.pipeline_mode<synchronous>, transform_indices = @transform_10, window_bounds = array<i64: 128, 128>}, {pipeline_mode = #tpu.pipeline_mode<synchronous>, transform_indices = @transform_11, window_bounds = array<i64: 1, 128>}, {transform_indices = @transform_12, window_bounds = array<i64: 1, 1, 128>}]} {
    %c0 = arith.constant 0 : index
    %c0_0 = arith.constant 0 : index
    %0 = vector.load %arg2[%c0, %c0_0] : memref<128x128xf32, #tpu.memory_space<vmem>>, vector<128x128xf32>
    %c0_1 = arith.constant 0 : index
    %c0_2 = arith.constant 0 : index
    %1 = vector.load %arg3[%c0_1, %c0_2] : memref<1x128xf32, #tpu.memory_space<vmem>>, vector<1x128xf32>
    %c0_3 = arith.constant 0 : index
    %c0_4 = arith.constant 0 : index
    %2 = vector.load %arg4[%c0_3, %c0_4] : memref<1x128xf32, #tpu.memory_space<vmem>>, vector<1x128xf32>
    %cst = arith.constant dense<0.000000e+00> : vector<128xf32>
    %3 = vector.multi_reduction <add>, %0, %cst [1] : vector<128x128xf32> to vector<128xf32>
    %4 = vector.shape_cast %3 : vector<128xf32> to vector<128x1xf32>
    %cst_5 = arith.constant 1.280000e+02 : f32
    %5 = vector.broadcast %cst_5 : f32 to vector<128x1xf32>
    %6 = arith.divf %4, %5 : vector<128x1xf32>
    %7 = vector.broadcast %6 : vector<128x1xf32> to vector<128x128xf32>
    %8 = arith.subf %0, %7 : vector<128x128xf32>
    %9 = arith.mulf %8, %8 : vector<128x128xf32>
    %cst_6 = arith.constant dense<0.000000e+00> : vector<128xf32>
    %10 = vector.multi_reduction <add>, %9, %cst_6 [1] : vector<128x128xf32> to vector<128xf32>
    %11 = vector.shape_cast %10 : vector<128xf32> to vector<128x1xf32>
    %cst_7 = arith.constant 1.280000e+02 : f32
    %12 = vector.broadcast %cst_7 : f32 to vector<128x1xf32>
    %13 = arith.divf %11, %12 : vector<128x1xf32>
    %cst_8 = arith.constant 9.99999974E-6 : f32
    %14 = vector.broadcast %cst_8 : f32 to vector<128x1xf32>
    %15 = arith.addf %13, %14 : vector<128x1xf32>
    %16 = math.rsqrt %15 : vector<128x1xf32>
    %17 = vector.broadcast %16 : vector<128x1xf32> to vector<128x128xf32>
    %18 = arith.mulf %8, %17 : vector<128x128xf32>
    %19 = vector.broadcast %1 : vector<1x128xf32> to vector<128x128xf32>
    %20 = arith.mulf %18, %19 : vector<128x128xf32>
    %21 = vector.broadcast %2 : vector<1x128xf32> to vector<128x128xf32>
    %22 = arith.addf %20, %21 : vector<128x128xf32>
    %c0_9 = arith.constant 0 : index
    %c0_10 = arith.constant 0 : index
    %c0_11 = arith.constant 0 : index
    %23 = vector.load %arg1[%c0_9, %c0_10, %c0_11] : memref<1x1x128xf32, #tpu.memory_space<vmem>>, vector<1x1x128xf32>
    %24 = vector.shape_cast %23 : vector<1x1x128xf32> to vector<1x128xf32>
    %cst_12 = arith.constant dense<0.000000e+00> : vector<1x128xf32>
    %25 = tpu.matmul %24, %22, %cst_12 {dimension_numbers = #tpu.dot_dimension_numbers<[1], [0], [0], [1], [0, 0, 1, 1], [], []>} : vector<1x128xf32>, vector<128x128xf32>, vector<1x128xf32> -> vector<1x128xf32>
    %cst_13 = arith.constant dense<0.000000e+00> : vector<1xf32>
    %26 = vector.multi_reduction <add>, %24, %cst_13 [1] : vector<1x128xf32> to vector<1xf32>
    %27 = vector.shape_cast %26 : vector<1xf32> to vector<1x1xf32>
    %cst_14 = arith.constant 1.000000e+00 : f32
    %28 = vector.broadcast %cst_14 : f32 to vector<1x1xf32>
    %29 = arith.maximumf %27, %28 : vector<1x1xf32>
    %30 = tpu.reciprocal %29 {approx = true} : vector<1x1xf32> -> vector<1x1xf32>
    %31 = vector.broadcast %30 : vector<1x1xf32> to vector<1x128xf32>
    %32 = arith.mulf %25, %31 : vector<1x128xf32>
    %33 = arith.truncf %32 : vector<1x128xf32> to vector<1x128xbf16>
    %c0_15 = arith.constant 0 : index
    %c0_16 = arith.constant 0 : index
    %34 = vector.load %arg5[%c0_15, %c0_16] : memref<128x128xbf16, #tpu.memory_space<vmem>>, vector<128x128xbf16>
    %cst_17 = arith.constant dense<0.000000e+00> : vector<1x128xf32>
    %35 = tpu.matmul %33, %34, %cst_17 {dimension_numbers = #tpu.dot_dimension_numbers<[1], [0], [0], [1], [0, 0, 1, 1], [], []>} : vector<1x128xbf16>, vector<128x128xbf16>, vector<1x128xf32> -> vector<1x128xf32>
    %c0_18 = arith.constant 0 : index
    %c0_19 = arith.constant 0 : index
    %36 = vector.load %arg6[%c0_18, %c0_19] : memref<1x128xf32, #tpu.memory_space<vmem>>, vector<1x128xf32>
    %37 = arith.addf %35, %36 : vector<1x128xf32>
    %38 = arith.truncf %37 : vector<1x128xf32> to vector<1x128xbf16>
    %c0_20 = arith.constant 0 : index
    %c0_21 = arith.constant 0 : index
    %39 = vector.load %arg7[%c0_20, %c0_21] : memref<128x128xbf16, #tpu.memory_space<vmem>>, vector<128x128xbf16>
    %cst_22 = arith.constant dense<0.000000e+00> : vector<1x128xf32>
    %40 = tpu.matmul %38, %39, %cst_22 {dimension_numbers = #tpu.dot_dimension_numbers<[1], [0], [0], [1], [0, 0, 1, 1], [], []>} : vector<1x128xbf16>, vector<128x128xbf16>, vector<1x128xf32> -> vector<1x128xf32>
    %c0_23 = arith.constant 0 : index
    %c0_24 = arith.constant 0 : index
    %41 = vector.load %arg8[%c0_23, %c0_24] : memref<1x128xf32, #tpu.memory_space<vmem>>, vector<1x128xf32>
    %42 = arith.addf %40, %41 : vector<1x128xf32>
    %cst_25 = arith.constant 0.000000e+00 : f32
    %43 = vector.broadcast %cst_25 : f32 to vector<1x128xf32>
    %44 = arith.maximumf %42, %43 : vector<1x128xf32>
    %45 = arith.truncf %44 : vector<1x128xf32> to vector<1x128xbf16>
    %c0_26 = arith.constant 0 : index
    %c0_27 = arith.constant 0 : index
    %46 = vector.load %arg9[%c0_26, %c0_27] : memref<128x128xbf16, #tpu.memory_space<vmem>>, vector<128x128xbf16>
    %cst_28 = arith.constant dense<0.000000e+00> : vector<1x128xf32>
    %47 = tpu.matmul %45, %46, %cst_28 {dimension_numbers = #tpu.dot_dimension_numbers<[1], [0], [0], [1], [0, 0, 1, 1], [], []>} : vector<1x128xbf16>, vector<128x128xbf16>, vector<1x128xf32> -> vector<1x128xf32>
    %c0_29 = arith.constant 0 : index
    %c0_30 = arith.constant 0 : index
    %48 = vector.load %arg10[%c0_29, %c0_30] : memref<1x128xf32, #tpu.memory_space<vmem>>, vector<1x128xf32>
    %49 = arith.addf %47, %48 : vector<1x128xf32>
    %cst_31 = arith.constant 0.000000e+00 : f32
    %50 = vector.broadcast %cst_31 : f32 to vector<1x128xf32>
    %51 = arith.maximumf %49, %50 : vector<1x128xf32>
    %52 = arith.truncf %51 : vector<1x128xf32> to vector<1x128xbf16>
    %c0_32 = arith.constant 0 : index
    %c0_33 = arith.constant 0 : index
    %53 = vector.load %arg11[%c0_32, %c0_33] : memref<128x128xbf16, #tpu.memory_space<vmem>>, vector<128x128xbf16>
    %cst_34 = arith.constant dense<0.000000e+00> : vector<1x128xf32>
    %54 = tpu.matmul %52, %53, %cst_34 {dimension_numbers = #tpu.dot_dimension_numbers<[1], [0], [0], [1], [0, 0, 1, 1], [], []>} : vector<1x128xbf16>, vector<128x128xbf16>, vector<1x128xf32> -> vector<1x128xf32>
    %c0_35 = arith.constant 0 : index
    %c0_36 = arith.constant 0 : index
    %55 = vector.load %arg12[%c0_35, %c0_36] : memref<1x128xf32, #tpu.memory_space<vmem>>, vector<1x128xf32>
    %56 = arith.addf %54, %55 : vector<1x128xf32>
    %c0_37 = arith.constant 0 : index
    %c0_38 = arith.constant 0 : index
    %c0_39 = arith.constant 0 : index
    %57 = vector.load %arg13[%c0_37, %c0_38, %c0_39] : memref<1x1x128xf32, #tpu.memory_space<vmem>>, vector<1x1x128xf32>
    %58 = vector.shape_cast %57 : vector<1x1x128xf32> to vector<1x128xf32>
    %59 = vector.shape_cast %56 : vector<1x128xf32> to vector<1x1x128xf32>
    tpu.vector_store %arg13[%c0_37, %c0_38, %c0_39], %59 {strides = array<i32>} : memref<1x1x128xf32, #tpu.memory_space<vmem>>, vector<1x1x128xf32>,
    return
  }
  func.func @transform_0(%arg0: i32) -> (i32, i32, i32) {
    %c0_i32 = arith.constant 0 : i32
    %c0_i32_0 = arith.constant 0 : i32
    %c0_i32_1 = arith.constant 0 : i32
    return %arg0, %c0_i32, %c0_i32_0 : i32, i32, i32
  }
  func.func @transform_1(%arg0: i32) -> (i32, i32) {
    %c0_i32 = arith.constant 0 : i32
    %c0_i32_0 = arith.constant 0 : i32
    return %arg0, %c0_i32 : i32, i32
  }
  func.func @transform_2(%arg0: i32) -> (i32, i32) {
    %c0_i32 = arith.constant 0 : i32
    %c0_i32_0 = arith.constant 0 : i32
    %c0_i32_1 = arith.constant 0 : i32
    return %c0_i32, %c0_i32_0 : i32, i32
  }
  func.func @transform_3(%arg0: i32) -> (i32, i32) {
    %c0_i32 = arith.constant 0 : i32
    %c0_i32_0 = arith.constant 0 : i32
    %c0_i32_1 = arith.constant 0 : i32
    return %c0_i32, %c0_i32_0 : i32, i32
  }
  func.func @transform_4(%arg0: i32) -> (i32, i32) {
    %c0_i32 = arith.constant 0 : i32
    %c0_i32_0 = arith.constant 0 : i32
    %c0_i32_1 = arith.constant 0 : i32
    return %c0_i32, %c0_i32_0 : i32, i32
  }
  func.func @transform_5(%arg0: i32) -> (i32, i32) {
    %c0_i32 = arith.constant 0 : i32
    %c0_i32_0 = arith.constant 0 : i32
    %c0_i32_1 = arith.constant 0 : i32
    return %c0_i32, %c0_i32_0 : i32, i32
  }
  func.func @transform_6(%arg0: i32) -> (i32, i32) {
    %c0_i32 = arith.constant 0 : i32
    %c0_i32_0 = arith.constant 0 : i32
    %c0_i32_1 = arith.constant 0 : i32
    return %c0_i32, %c0_i32_0 : i32, i32
  }
  func.func @transform_7(%arg0: i32) -> (i32, i32) {
    %c0_i32 = arith.constant 0 : i32
    %c0_i32_0 = arith.constant 0 : i32
    %c0_i32_1 = arith.constant 0 : i32
    return %c0_i32, %c0_i32_0 : i32, i32
  }
  func.func @transform_8(%arg0: i32) -> (i32, i32) {
    %c0_i32 = arith.constant 0 : i32
    %c0_i32_0 = arith.constant 0 : i32
    %c0_i32_1 = arith.constant 0 : i32
    return %c0_i32, %c0_i32_0 : i32, i32
  }
  func.func @transform_9(%arg0: i32) -> (i32, i32) {
    %c0_i32 = arith.constant 0 : i32
    %c0_i32_0 = arith.constant 0 : i32
    %c0_i32_1 = arith.constant 0 : i32
    return %c0_i32, %c0_i32_0 : i32, i32
  }
  func.func @transform_10(%arg0: i32) -> (i32, i32) {
    %c0_i32 = arith.constant 0 : i32
    %c0_i32_0 = arith.constant 0 : i32
    %c0_i32_1 = arith.constant 0 : i32
    return %c0_i32, %c0_i32_0 : i32, i32
  }
  func.func @transform_11(%arg0: i32) -> (i32, i32) {
    %c0_i32 = arith.constant 0 : i32
    %c0_i32_0 = arith.constant 0 : i32
    %c0_i32_1 = arith.constant 0 : i32
    return %c0_i32, %c0_i32_0 : i32, i32
  }
  func.func @transform_12(%arg0: i32) -> (i32, i32, i32) {
    %c0_i32 = arith.constant 0 : i32
    %c0_i32_0 = arith.constant 0 : i32
    %c0_i32_1 = arith.constant 0 : i32
    return %arg0, %c0_i32, %c0_i32_0 : i32, i32, i32
  }
}

module attributes {stable_mosaic.version = 11 : i64} {
  func.func @_attn_mlp_kernel(%arg0: i32, %arg1: i32, %arg2: memref<1x1x128xf32, #tpu.memory_space<vmem>>, %arg3: memref<64x128xf32, #tpu.memory_space<vmem>>, %arg4: memref<64x128xbf16, #tpu.memory_space<vmem>>, %arg5: memref<128x256xbf16, #tpu.memory_space<vmem>>, %arg6: memref<128x128xbf16, #tpu.memory_space<vmem>>, %arg7: memref<1x128xf32, #tpu.memory_space<vmem>>, %arg8: memref<1x128xf32, #tpu.memory_space<vmem>>, %arg9: memref<1x128xf32, #tpu.memory_space<vmem>>, %arg10: memref<128x512xbf16, #tpu.memory_space<vmem>>, %arg11: memref<1x512xf32, #tpu.memory_space<vmem>>, %arg12: memref<512x128xbf16, #tpu.memory_space<vmem>>, %arg13: memref<1x128xf32, #tpu.memory_space<vmem>>, %arg14: memref<64x128xf32, #tpu.memory_space<vmem>>, %arg15: memref<64x128xbf16, #tpu.memory_space<vmem>>) attributes {dimension_semantics = [#tpu.dimension_semantics<parallel>, #tpu.dimension_semantics<parallel>], iteration_bounds = array<i64: 2, 2>, scalar_prefetch = 0 : i64, scratch_operands = 1 : i64, tpu.core_type = #tpu.core_type<tc>, window_params = [{transform_indices = @transform_0, window_bounds = array<i64: 1, 1, 128>}, {transform_indices = @transform_1, window_bounds = array<i64: 64, 128>}, {transform_indices = @transform_2, window_bounds = array<i64: 64, 128>}, {transform_indices = @transform_3, window_bounds = array<i64: 128, 256>}, {pipeline_mode = #tpu.pipeline_mode<synchronous>, transform_indices = @transform_4, window_bounds = array<i64: 128, 128>}, {pipeline_mode = #tpu.pipeline_mode<synchronous>, transform_indices = @transform_5, window_bounds = array<i64: 1, 128>}, {pipeline_mode = #tpu.pipeline_mode<synchronous>, transform_indices = @transform_6, window_bounds = array<i64: 1, 128>}, {pipeline_mode = #tpu.pipeline_mode<synchronous>, transform_indices = @transform_7, window_bounds = array<i64: 1, 128>}, {pipeline_mode = #tpu.pipeline_mode<synchronous>, transform_indices = @transform_8, window_bounds = array<i64: 128, 512>}, {pipeline_mode = #tpu.pipeline_mode<synchronous>, transform_indices = @transform_9, window_bounds = array<i64: 1, 512>}, {pipeline_mode = #tpu.pipeline_mode<synchronous>, transform_indices = @transform_10, window_bounds = array<i64: 512, 128>}, {pipeline_mode = #tpu.pipeline_mode<synchronous>, transform_indices = @transform_11, window_bounds = array<i64: 1, 128>}, {transform_indices = @transform_12, window_bounds = array<i64: 64, 128>}]} {
    %c0 = arith.constant 0 : index
    %c0_0 = arith.constant 0 : index
    %0 = vector.load %arg3[%c0, %c0_0] : memref<64x128xf32, #tpu.memory_space<vmem>>, vector<64x128xf32>
    %c0_1 = arith.constant 0 : index
    %c0_2 = arith.constant 0 : index
    %1 = vector.load %arg4[%c0_1, %c0_2] : memref<64x128xbf16, #tpu.memory_space<vmem>>, vector<64x128xbf16>
    %c0_3 = arith.constant 0 : index
    %c0_4 = arith.constant 0 : index
    %2 = vector.load %arg5[%c0_3, %c0_4] : memref<128x256xbf16, #tpu.memory_space<vmem>>, vector<128x128xbf16>
    %c0_5 = arith.constant 0 : index
    %c128 = arith.constant 128 : index
    %3 = vector.load %arg5[%c0_5, %c128] : memref<128x256xbf16, #tpu.memory_space<vmem>>, vector<128x128xbf16>
    %c0_6 = arith.constant 0 : index
    %c0_7 = arith.constant 0 : index
    %c0_8 = arith.constant 0 : index
    %4 = vector.load %arg2[%c0_6, %c0_7, %c0_8] : memref<1x1x128xf32, #tpu.memory_space<vmem>>, vector<1x1x128xf32>
    %5 = vector.shape_cast %4 : vector<1x1x128xf32> to vector<1x128xf32>
    %cst = arith.constant 5.000000e-01 : f32
    %6 = vector.broadcast %cst : f32 to vector<1x128xf32>
    %7 = arith.cmpf ogt, %5, %6 : vector<1x128xf32>
    %c64_i32 = arith.constant 64 : i32
    %8 = arith.muli %arg1, %c64_i32 : i32
    %9 = tpu.iota {dimensions = array<i32: 0>} : vector<64x128xi32>
    %10 = vector.broadcast %8 : i32 to vector<64x128xi32>
    %11 = arith.addi %10, %9 : vector<64x128xi32>
    %12 = tpu.iota {dimensions = array<i32: 1>} : vector<64x128xi32>
    %13 = arith.cmpi sge, %11, %12 : vector<64x128xi32>
    %14 = vector.broadcast %7 : vector<1x128xi1> to vector<64x128xi1>
    %15 = arith.andi %13, %14 : vector<64x128xi1>
    %16 = vector.extract_strided_slice %1 {offsets = [0, 0], sizes = [64, 32], strides = [1, 1]} : vector<64x128xbf16> to vector<64x32xbf16>
    %17 = vector.extract_strided_slice %2 {offsets = [0, 0], sizes = [128, 32], strides = [1, 1]} : vector<128x128xbf16> to vector<128x32xbf16>
    %18 = vector.extract_strided_slice %3 {offsets = [0, 0], sizes = [128, 32], strides = [1, 1]} : vector<128x128xbf16> to vector<128x32xbf16>
    %cst_9 = arith.constant dense<0.000000e+00> : vector<64x128xf32>
    %19 = tpu.matmul %16, %17, %cst_9 {dimension_numbers = #tpu.dot_dimension_numbers<[1], [1], [0], [0], [0, 0, 1, 0], [], []>} : vector<64x32xbf16>, vector<128x32xbf16>, vector<64x128xf32> -> vector<64x128xf32>
    %cst_10 = arith.constant 0.176776692 : f32
    %20 = vector.broadcast %cst_10 : f32 to vector<64x128xf32>
    %21 = arith.mulf %19, %20 : vector<64x128xf32>
    %cst_11 = arith.constant -1.000000e+09 : f32
    %22 = vector.broadcast %cst_11 : f32 to vector<64x128xf32>
    %23 = arith.select %15, %21, %22 : vector<64x128xi1>, vector<64x128xf32>
    %cst_12 = arith.constant dense<0xFF800000> : vector<64xf32>
    %24 = vector.multi_reduction <maximumf>, %23, %cst_12 [1] : vector<64x128xf32> to vector<64xf32>
    %25 = vector.shape_cast %24 : vector<64xf32> to vector<64x1xf32>
    %26 = vector.broadcast %25 : vector<64x1xf32> to vector<64x128xf32>
    %27 = arith.subf %23, %26 : vector<64x128xf32>
    %28 = math.exp %27 : vector<64x128xf32>
    %cst_13 = arith.constant dense<0.000000e+00> : vector<64xf32>
    %29 = vector.multi_reduction <add>, %28, %cst_13 [1] : vector<64x128xf32> to vector<64xf32>
    %30 = vector.shape_cast %29 : vector<64xf32> to vector<64x1xf32>
    %31 = tpu.reciprocal %30 {approx = true} : vector<64x1xf32> -> vector<64x1xf32>
    %32 = vector.broadcast %31 : vector<64x1xf32> to vector<64x128xf32>
    %33 = arith.mulf %28, %32 : vector<64x128xf32>
    %34 = arith.truncf %33 : vector<64x128xf32> to vector<64x128xbf16>
    %cst_14 = arith.constant dense<0.000000e+00> : vector<64x32xf32>
    %35 = tpu.matmul %34, %18, %cst_14 {dimension_numbers = #tpu.dot_dimension_numbers<[1], [0], [0], [1], [0, 0, 1, 1], [], []>} : vector<64x128xbf16>, vector<128x32xbf16>, vector<64x32xf32> -> vector<64x32xf32>
    %36 = arith.truncf %35 : vector<64x32xf32> to vector<64x32xbf16>
    %c0_15 = arith.constant 0 : index
    %c0_16 = arith.constant 0 : index
    %37 = vector.load %arg15[%c0_15, %c0_16] : memref<64x128xbf16, #tpu.memory_space<vmem>>, vector<64x32xbf16>
    tpu.vector_store %arg15[%c0_15, %c0_16], %36 {strides = array<i32>} : memref<64x128xbf16, #tpu.memory_space<vmem>>, vector<64x32xbf16>,
    %38 = vector.extract_strided_slice %1 {offsets = [0, 32], sizes = [64, 32], strides = [1, 1]} : vector<64x128xbf16> to vector<64x32xbf16>
    %39 = vector.extract_strided_slice %2 {offsets = [0, 32], sizes = [128, 32], strides = [1, 1]} : vector<128x128xbf16> to vector<128x32xbf16>
    %40 = vector.extract_strided_slice %3 {offsets = [0, 32], sizes = [128, 32], strides = [1, 1]} : vector<128x128xbf16> to vector<128x32xbf16>
    %cst_17 = arith.constant dense<0.000000e+00> : vector<64x128xf32>
    %41 = tpu.matmul %38, %39, %cst_17 {dimension_numbers = #tpu.dot_dimension_numbers<[1], [1], [0], [0], [0, 0, 1, 0], [], []>} : vector<64x32xbf16>, vector<128x32xbf16>, vector<64x128xf32> -> vector<64x128xf32>
    %cst_18 = arith.constant 0.176776692 : f32
    %42 = vector.broadcast %cst_18 : f32 to vector<64x128xf32>
    %43 = arith.mulf %41, %42 : vector<64x128xf32>
    %cst_19 = arith.constant -1.000000e+09 : f32
    %44 = vector.broadcast %cst_19 : f32 to vector<64x128xf32>
    %45 = arith.select %15, %43, %44 : vector<64x128xi1>, vector<64x128xf32>
    %cst_20 = arith.constant dense<0xFF800000> : vector<64xf32>
    %46 = vector.multi_reduction <maximumf>, %45, %cst_20 [1] : vector<64x128xf32> to vector<64xf32>
    %47 = vector.shape_cast %46 : vector<64xf32> to vector<64x1xf32>
    %48 = vector.broadcast %47 : vector<64x1xf32> to vector<64x128xf32>
    %49 = arith.subf %45, %48 : vector<64x128xf32>
    %50 = math.exp %49 : vector<64x128xf32>
    %cst_21 = arith.constant dense<0.000000e+00> : vector<64xf32>
    %51 = vector.multi_reduction <add>, %50, %cst_21 [1] : vector<64x128xf32> to vector<64xf32>
    %52 = vector.shape_cast %51 : vector<64xf32> to vector<64x1xf32>
    %53 = tpu.reciprocal %52 {approx = true} : vector<64x1xf32> -> vector<64x1xf32>
    %54 = vector.broadcast %53 : vector<64x1xf32> to vector<64x128xf32>
    %55 = arith.mulf %50, %54 : vector<64x128xf32>
    %56 = arith.truncf %55 : vector<64x128xf32> to vector<64x128xbf16>
    %cst_22 = arith.constant dense<0.000000e+00> : vector<64x32xf32>
    %57 = tpu.matmul %56, %40, %cst_22 {dimension_numbers = #tpu.dot_dimension_numbers<[1], [0], [0], [1], [0, 0, 1, 1], [], []>} : vector<64x128xbf16>, vector<128x32xbf16>, vector<64x32xf32> -> vector<64x32xf32>
    %58 = arith.truncf %57 : vector<64x32xf32> to vector<64x32xbf16>
    %c0_23 = arith.constant 0 : index
    %c32 = arith.constant 32 : index
    %59 = vector.load %arg15[%c0_23, %c32] : memref<64x128xbf16, #tpu.memory_space<vmem>>, vector<64x32xbf16>
    tpu.vector_store %arg15[%c0_23, %c32], %58 {strides = array<i32>} : memref<64x128xbf16, #tpu.memory_space<vmem>>, vector<64x32xbf16>,
    %60 = vector.extract_strided_slice %1 {offsets = [0, 64], sizes = [64, 32], strides = [1, 1]} : vector<64x128xbf16> to vector<64x32xbf16>
    %61 = vector.extract_strided_slice %2 {offsets = [0, 64], sizes = [128, 32], strides = [1, 1]} : vector<128x128xbf16> to vector<128x32xbf16>
    %62 = vector.extract_strided_slice %3 {offsets = [0, 64], sizes = [128, 32], strides = [1, 1]} : vector<128x128xbf16> to vector<128x32xbf16>
    %cst_24 = arith.constant dense<0.000000e+00> : vector<64x128xf32>
    %63 = tpu.matmul %60, %61, %cst_24 {dimension_numbers = #tpu.dot_dimension_numbers<[1], [1], [0], [0], [0, 0, 1, 0], [], []>} : vector<64x32xbf16>, vector<128x32xbf16>, vector<64x128xf32> -> vector<64x128xf32>
    %cst_25 = arith.constant 0.176776692 : f32
    %64 = vector.broadcast %cst_25 : f32 to vector<64x128xf32>
    %65 = arith.mulf %63, %64 : vector<64x128xf32>
    %cst_26 = arith.constant -1.000000e+09 : f32
    %66 = vector.broadcast %cst_26 : f32 to vector<64x128xf32>
    %67 = arith.select %15, %65, %66 : vector<64x128xi1>, vector<64x128xf32>
    %cst_27 = arith.constant dense<0xFF800000> : vector<64xf32>
    %68 = vector.multi_reduction <maximumf>, %67, %cst_27 [1] : vector<64x128xf32> to vector<64xf32>
    %69 = vector.shape_cast %68 : vector<64xf32> to vector<64x1xf32>
    %70 = vector.broadcast %69 : vector<64x1xf32> to vector<64x128xf32>
    %71 = arith.subf %67, %70 : vector<64x128xf32>
    %72 = math.exp %71 : vector<64x128xf32>
    %cst_28 = arith.constant dense<0.000000e+00> : vector<64xf32>
    %73 = vector.multi_reduction <add>, %72, %cst_28 [1] : vector<64x128xf32> to vector<64xf32>
    %74 = vector.shape_cast %73 : vector<64xf32> to vector<64x1xf32>
    %75 = tpu.reciprocal %74 {approx = true} : vector<64x1xf32> -> vector<64x1xf32>
    %76 = vector.broadcast %75 : vector<64x1xf32> to vector<64x128xf32>
    %77 = arith.mulf %72, %76 : vector<64x128xf32>
    %78 = arith.truncf %77 : vector<64x128xf32> to vector<64x128xbf16>
    %cst_29 = arith.constant dense<0.000000e+00> : vector<64x32xf32>
    %79 = tpu.matmul %78, %62, %cst_29 {dimension_numbers = #tpu.dot_dimension_numbers<[1], [0], [0], [1], [0, 0, 1, 1], [], []>} : vector<64x128xbf16>, vector<128x32xbf16>, vector<64x32xf32> -> vector<64x32xf32>
    %80 = arith.truncf %79 : vector<64x32xf32> to vector<64x32xbf16>
    %c0_30 = arith.constant 0 : index
    %c64 = arith.constant 64 : index
    %81 = vector.load %arg15[%c0_30, %c64] : memref<64x128xbf16, #tpu.memory_space<vmem>>, vector<64x32xbf16>
    tpu.vector_store %arg15[%c0_30, %c64], %80 {strides = array<i32>} : memref<64x128xbf16, #tpu.memory_space<vmem>>, vector<64x32xbf16>,
    %82 = vector.extract_strided_slice %1 {offsets = [0, 96], sizes = [64, 32], strides = [1, 1]} : vector<64x128xbf16> to vector<64x32xbf16>
    %83 = vector.extract_strided_slice %2 {offsets = [0, 96], sizes = [128, 32], strides = [1, 1]} : vector<128x128xbf16> to vector<128x32xbf16>
    %84 = vector.extract_strided_slice %3 {offsets = [0, 96], sizes = [128, 32], strides = [1, 1]} : vector<128x128xbf16> to vector<128x32xbf16>
    %cst_31 = arith.constant dense<0.000000e+00> : vector<64x128xf32>
    %85 = tpu.matmul %82, %83, %cst_31 {dimension_numbers = #tpu.dot_dimension_numbers<[1], [1], [0], [0], [0, 0, 1, 0], [], []>} : vector<64x32xbf16>, vector<128x32xbf16>, vector<64x128xf32> -> vector<64x128xf32>
    %cst_32 = arith.constant 0.176776692 : f32
    %86 = vector.broadcast %cst_32 : f32 to vector<64x128xf32>
    %87 = arith.mulf %85, %86 : vector<64x128xf32>
    %cst_33 = arith.constant -1.000000e+09 : f32
    %88 = vector.broadcast %cst_33 : f32 to vector<64x128xf32>
    %89 = arith.select %15, %87, %88 : vector<64x128xi1>, vector<64x128xf32>
    %cst_34 = arith.constant dense<0xFF800000> : vector<64xf32>
    %90 = vector.multi_reduction <maximumf>, %89, %cst_34 [1] : vector<64x128xf32> to vector<64xf32>
    %91 = vector.shape_cast %90 : vector<64xf32> to vector<64x1xf32>
    %92 = vector.broadcast %91 : vector<64x1xf32> to vector<64x128xf32>
    %93 = arith.subf %89, %92 : vector<64x128xf32>
    %94 = math.exp %93 : vector<64x128xf32>
    %cst_35 = arith.constant dense<0.000000e+00> : vector<64xf32>
    %95 = vector.multi_reduction <add>, %94, %cst_35 [1] : vector<64x128xf32> to vector<64xf32>
    %96 = vector.shape_cast %95 : vector<64xf32> to vector<64x1xf32>
    %97 = tpu.reciprocal %96 {approx = true} : vector<64x1xf32> -> vector<64x1xf32>
    %98 = vector.broadcast %97 : vector<64x1xf32> to vector<64x128xf32>
    %99 = arith.mulf %94, %98 : vector<64x128xf32>
    %100 = arith.truncf %99 : vector<64x128xf32> to vector<64x128xbf16>
    %cst_36 = arith.constant dense<0.000000e+00> : vector<64x32xf32>
    %101 = tpu.matmul %100, %84, %cst_36 {dimension_numbers = #tpu.dot_dimension_numbers<[1], [0], [0], [1], [0, 0, 1, 1], [], []>} : vector<64x128xbf16>, vector<128x32xbf16>, vector<64x32xf32> -> vector<64x32xf32>
    %102 = arith.truncf %101 : vector<64x32xf32> to vector<64x32xbf16>
    %c0_37 = arith.constant 0 : index
    %c96 = arith.constant 96 : index
    %103 = vector.load %arg15[%c0_37, %c96] : memref<64x128xbf16, #tpu.memory_space<vmem>>, vector<64x32xbf16>
    tpu.vector_store %arg15[%c0_37, %c96], %102 {strides = array<i32>} : memref<64x128xbf16, #tpu.memory_space<vmem>>, vector<64x32xbf16>,
    %c0_38 = arith.constant 0 : index
    %c0_39 = arith.constant 0 : index
    %104 = vector.load %arg15[%c0_38, %c0_39] : memref<64x128xbf16, #tpu.memory_space<vmem>>, vector<64x128xbf16>
    %c0_40 = arith.constant 0 : index
    %c0_41 = arith.constant 0 : index
    %105 = vector.load %arg6[%c0_40, %c0_41] : memref<128x128xbf16, #tpu.memory_space<vmem>>, vector<128x128xbf16>
    %cst_42 = arith.constant dense<0.000000e+00> : vector<64x128xf32>
    %106 = tpu.matmul %104, %105, %cst_42 {dimension_numbers = #tpu.dot_dimension_numbers<[1], [0], [0], [1], [0, 0, 1, 1], [], []>} : vector<64x128xbf16>, vector<128x128xbf16>, vector<64x128xf32> -> vector<64x128xf32>
    %c0_43 = arith.constant 0 : index
    %c0_44 = arith.constant 0 : index
    %107 = vector.load %arg7[%c0_43, %c0_44] : memref<1x128xf32, #tpu.memory_space<vmem>>, vector<1x128xf32>
    %108 = vector.broadcast %107 : vector<1x128xf32> to vector<64x128xf32>
    %109 = arith.addf %106, %108 : vector<64x128xf32>
    %110 = arith.addf %0, %109 : vector<64x128xf32>
    %c0_45 = arith.constant 0 : index
    %c0_46 = arith.constant 0 : index
    %111 = vector.load %arg8[%c0_45, %c0_46] : memref<1x128xf32, #tpu.memory_space<vmem>>, vector<1x128xf32>
    %c0_47 = arith.constant 0 : index
    %c0_48 = arith.constant 0 : index
    %112 = vector.load %arg9[%c0_47, %c0_48] : memref<1x128xf32, #tpu.memory_space<vmem>>, vector<1x128xf32>
    %cst_49 = arith.constant dense<0.000000e+00> : vector<64xf32>
    %113 = vector.multi_reduction <add>, %110, %cst_49 [1] : vector<64x128xf32> to vector<64xf32>
    %114 = vector.shape_cast %113 : vector<64xf32> to vector<64x1xf32>
    %cst_50 = arith.constant 1.280000e+02 : f32
    %115 = vector.broadcast %cst_50 : f32 to vector<64x1xf32>
    %116 = arith.divf %114, %115 : vector<64x1xf32>
    %117 = vector.broadcast %116 : vector<64x1xf32> to vector<64x128xf32>
    %118 = arith.subf %110, %117 : vector<64x128xf32>
    %119 = arith.mulf %118, %118 : vector<64x128xf32>
    %cst_51 = arith.constant dense<0.000000e+00> : vector<64xf32>
    %120 = vector.multi_reduction <add>, %119, %cst_51 [1] : vector<64x128xf32> to vector<64xf32>
    %121 = vector.shape_cast %120 : vector<64xf32> to vector<64x1xf32>
    %cst_52 = arith.constant 1.280000e+02 : f32
    %122 = vector.broadcast %cst_52 : f32 to vector<64x1xf32>
    %123 = arith.divf %121, %122 : vector<64x1xf32>
    %cst_53 = arith.constant 9.99999974E-6 : f32
    %124 = vector.broadcast %cst_53 : f32 to vector<64x1xf32>
    %125 = arith.addf %123, %124 : vector<64x1xf32>
    %126 = math.rsqrt %125 : vector<64x1xf32>
    %127 = vector.broadcast %126 : vector<64x1xf32> to vector<64x128xf32>
    %128 = arith.mulf %118, %127 : vector<64x128xf32>
    %129 = vector.broadcast %111 : vector<1x128xf32> to vector<64x128xf32>
    %130 = arith.mulf %128, %129 : vector<64x128xf32>
    %131 = vector.broadcast %112 : vector<1x128xf32> to vector<64x128xf32>
    %132 = arith.addf %130, %131 : vector<64x128xf32>
    %133 = arith.truncf %132 : vector<64x128xf32> to vector<64x128xbf16>
    %c0_54 = arith.constant 0 : index
    %c0_55 = arith.constant 0 : index
    %134 = vector.load %arg10[%c0_54, %c0_55] : memref<128x512xbf16, #tpu.memory_space<vmem>>, vector<128x512xbf16>
    %cst_56 = arith.constant dense<0.000000e+00> : vector<64x512xf32>
    %135 = tpu.matmul %133, %134, %cst_56 {dimension_numbers = #tpu.dot_dimension_numbers<[1], [0], [0], [1], [0, 0, 1, 1], [], []>} : vector<64x128xbf16>, vector<128x512xbf16>, vector<64x512xf32> -> vector<64x512xf32>
    %c0_57 = arith.constant 0 : index
    %c0_58 = arith.constant 0 : index
    %136 = vector.load %arg11[%c0_57, %c0_58] : memref<1x512xf32, #tpu.memory_space<vmem>>, vector<1x512xf32>
    %137 = vector.broadcast %136 : vector<1x512xf32> to vector<64x512xf32>
    %138 = arith.addf %135, %137 : vector<64x512xf32>
    %cst_59 = arith.constant 5.000000e-01 : f32
    %139 = vector.broadcast %cst_59 : f32 to vector<64x512xf32>
    %140 = arith.mulf %139, %138 : vector<64x512xf32>
    %cst_60 = arith.constant 4.471500e-02 : f32
    %141 = vector.broadcast %cst_60 : f32 to vector<64x512xf32>
    %142 = arith.mulf %141, %138 : vector<64x512xf32>
    %143 = arith.mulf %142, %138 : vector<64x512xf32>
    %144 = arith.mulf %143, %138 : vector<64x512xf32>
    %145 = arith.addf %138, %144 : vector<64x512xf32>
    %cst_61 = arith.constant 0.797884583 : f32
    %146 = vector.broadcast %cst_61 : f32 to vector<64x512xf32>
    %147 = arith.mulf %146, %145 : vector<64x512xf32>
    %148 = math.tanh %147 : vector<64x512xf32>
    %cst_62 = arith.constant 1.000000e+00 : f32
    %149 = vector.broadcast %cst_62 : f32 to vector<64x512xf32>
    %150 = arith.addf %149, %148 : vector<64x512xf32>
    %151 = arith.mulf %140, %150 : vector<64x512xf32>
    %152 = arith.truncf %151 : vector<64x512xf32> to vector<64x512xbf16>
    %c0_63 = arith.constant 0 : index
    %c0_64 = arith.constant 0 : index
    %153 = vector.load %arg12[%c0_63, %c0_64] : memref<512x128xbf16, #tpu.memory_space<vmem>>, vector<512x128xbf16>
    %cst_65 = arith.constant dense<0.000000e+00> : vector<64x128xf32>
    %154 = tpu.matmul %152, %153, %cst_65 {dimension_numbers = #tpu.dot_dimension_numbers<[1], [0], [0], [1], [0, 0, 1, 1], [], []>} : vector<64x512xbf16>, vector<512x128xbf16>, vector<64x128xf32> -> vector<64x128xf32>
    %155 = arith.addf %110, %154 : vector<64x128xf32>
    %c0_66 = arith.constant 0 : index
    %c0_67 = arith.constant 0 : index
    %156 = vector.load %arg13[%c0_66, %c0_67] : memref<1x128xf32, #tpu.memory_space<vmem>>, vector<1x128xf32>
    %157 = vector.broadcast %156 : vector<1x128xf32> to vector<64x128xf32>
    %158 = arith.addf %155, %157 : vector<64x128xf32>
    %c0_68 = arith.constant 0 : index
    %c0_69 = arith.constant 0 : index
    %159 = vector.load %arg14[%c0_68, %c0_69] : memref<64x128xf32, #tpu.memory_space<vmem>>, vector<64x128xf32>
    tpu.vector_store %arg14[%c0_68, %c0_69], %158 {strides = array<i32>} : memref<64x128xf32, #tpu.memory_space<vmem>>, vector<64x128xf32>,
    return
  }
  func.func @transform_0(%arg0: i32, %arg1: i32) -> (i32, i32, i32) {
    %c0_i32 = arith.constant 0 : i32
    %c0_i32_0 = arith.constant 0 : i32
    %c0_i32_1 = arith.constant 0 : i32
    return %arg0, %c0_i32, %c0_i32_0 : i32, i32, i32
  }
  func.func @transform_1(%arg0: i32, %arg1: i32) -> (i32, i32) {
    %c2_i32 = arith.constant 2 : i32
    %0 = arith.muli %arg0, %c2_i32 : i32
    %1 = arith.addi %0, %arg1 : i32
    %c0_i32 = arith.constant 0 : i32
    %c0_i32_0 = arith.constant 0 : i32
    return %1, %c0_i32 : i32, i32
  }
  func.func @transform_2(%arg0: i32, %arg1: i32) -> (i32, i32) {
    %c2_i32 = arith.constant 2 : i32
    %0 = arith.muli %arg0, %c2_i32 : i32
    %1 = arith.addi %0, %arg1 : i32
    %c0_i32 = arith.constant 0 : i32
    %c0_i32_0 = arith.constant 0 : i32
    return %1, %c0_i32 : i32, i32
  }
  func.func @transform_3(%arg0: i32, %arg1: i32) -> (i32, i32) {
    %c0_i32 = arith.constant 0 : i32
    %c0_i32_0 = arith.constant 0 : i32
    return %arg0, %c0_i32 : i32, i32
  }
  func.func @transform_4(%arg0: i32, %arg1: i32) -> (i32, i32) {
    %c0_i32 = arith.constant 0 : i32
    %c0_i32_0 = arith.constant 0 : i32
    %c0_i32_1 = arith.constant 0 : i32
    return %c0_i32, %c0_i32_0 : i32, i32
  }
  func.func @transform_5(%arg0: i32, %arg1: i32) -> (i32, i32) {
    %c0_i32 = arith.constant 0 : i32
    %c0_i32_0 = arith.constant 0 : i32
    %c0_i32_1 = arith.constant 0 : i32
    return %c0_i32, %c0_i32_0 : i32, i32
  }
  func.func @transform_6(%arg0: i32, %arg1: i32) -> (i32, i32) {
    %c0_i32 = arith.constant 0 : i32
    %c0_i32_0 = arith.constant 0 : i32
    %c0_i32_1 = arith.constant 0 : i32
    return %c0_i32, %c0_i32_0 : i32, i32
  }
  func.func @transform_7(%arg0: i32, %arg1: i32) -> (i32, i32) {
    %c0_i32 = arith.constant 0 : i32
    %c0_i32_0 = arith.constant 0 : i32
    %c0_i32_1 = arith.constant 0 : i32
    return %c0_i32, %c0_i32_0 : i32, i32
  }
  func.func @transform_8(%arg0: i32, %arg1: i32) -> (i32, i32) {
    %c0_i32 = arith.constant 0 : i32
    %c0_i32_0 = arith.constant 0 : i32
    %c0_i32_1 = arith.constant 0 : i32
    return %c0_i32, %c0_i32_0 : i32, i32
  }
  func.func @transform_9(%arg0: i32, %arg1: i32) -> (i32, i32) {
    %c0_i32 = arith.constant 0 : i32
    %c0_i32_0 = arith.constant 0 : i32
    %c0_i32_1 = arith.constant 0 : i32
    return %c0_i32, %c0_i32_0 : i32, i32
  }
  func.func @transform_10(%arg0: i32, %arg1: i32) -> (i32, i32) {
    %c0_i32 = arith.constant 0 : i32
    %c0_i32_0 = arith.constant 0 : i32
    %c0_i32_1 = arith.constant 0 : i32
    return %c0_i32, %c0_i32_0 : i32, i32
  }
  func.func @transform_11(%arg0: i32, %arg1: i32) -> (i32, i32) {
    %c0_i32 = arith.constant 0 : i32
    %c0_i32_0 = arith.constant 0 : i32
    %c0_i32_1 = arith.constant 0 : i32
    return %c0_i32, %c0_i32_0 : i32, i32
  }
  func.func @transform_12(%arg0: i32, %arg1: i32) -> (i32, i32) {
    %c2_i32 = arith.constant 2 : i32
    %0 = arith.muli %arg0, %c2_i32 : i32
    %1 = arith.addi %0, %arg1 : i32
    %c0_i32 = arith.constant 0 : i32
    %c0_i32_0 = arith.constant 0 : i32
    return %1, %c0_i32 : i32, i32
  }
}

</mosaic_0001>

<bundles_post_ra>
// kernel: gpt2_encoder_forward.5
= control target key start
LH: loop header
LB: loop body
LE: loop exit
PB: predicated region body
PF: predicated region fallthrough
CT: control target
= control target key end

     0   :  { %s1139_s21 = smov 0   ;;  %s1338_s0 = inlined_call_operand.vmem [shape: f32[256,128], index: 0, kind: input, shape index: {}]   ;;  %s1339_s1 = inlined_call_operand.vmem [shape: f32[1,128], index: 1, kind: input, shape index: {}]   ;;  %s1340_s2 = inlined_call_operand.vmem [shape: f32[1,128], index: 2, kind: input, shape index: {}]   ;;  %s1341_s3 = inlined_call_operand.vmem [shape: bf16[128,384], index: 3, kind: input, shape index: {}]   ;;  %s1342_s4 = inlined_call_operand.vmem [shape: f32[1,384], index: 4, kind: input, shape index: {}]   ;;  %s1343_s5 = inlined_call_operand.vmem [shape: bf16[256,128], index: 5, kind: output, shape index: {0}]   ;;  %s1344_s6 = inlined_call_operand.vmem [shape: bf16[256,256], index: 6, kind: output, shape index: {1}]  }
   0x1 LB: > { %s906_s22 = sadd.s32 4294967295, %s1101_s21   ;;  %p910_p0 = scmp.ge.s32.totalorder %s1101_s21, 1  ;;  %s1101_s21 = sphi %s1139_s21, %s17_s21  }
   0x2   : > { %p216_p1 = scmp.lt.s32.totalorder %s1101_s21, 5 }
   0x4   : > { %p217_p2 = pnand %p910_p0, %p216_p1 }
   0x5   : > { %s911_s23 = sshll.u32 (!%p217_p2), %s906_s22, 3  ;;  %v1047_v8 = vld [vmem:[%s1341_s3 + $0x4] ss:$12 sps:$4 sm:$0xff] (!%p217_p2)   ;;  %v1049_v9 = vld [vmem:[%s1341_s3] ss:$12 sps:$4 sm:$0xff] (!%p217_p2)   ;;  %v1103_v63 = vmov (!%p217_p2), 0  }
   0x6   : > { %220 = sbr.rel (%p217_p2) target bundleno = 578 (0x242), region = 40  ;;  %p253_p3 = scmp.lt.s32.totalorder (!%p217_p2), %s911_s23, 31  ;;  %v1050_v10 = vld [vmem:[%s1341_s3 + $0x1c] ss:$12 sps:$4 sm:$0xff] (!%p217_p2)   ;;  %580 = vmatprep.subr.bf16.mxu0 (!%p217_p2), %v1047_v8  ;;  %v1053_v44 = vld [vmem:[%s1341_s3 + $0x18] ss:$12 sps:$4 sm:$0xff] (!%p217_p2)   ;;  %612 = vmatprep.mubr.bf16.mxu0 (!%p217_p2), %v1103_v63 }
   0x7   : > { %v1052_v11 = vld [vmem:[%s1341_s3 + $0x8] ss:$12 sps:$4 sm:$0xff] (!%p217_p2)   ;;  %581 = vmatpush1.bf16.msra.mxu0 (!%p217_p2), %v1049_v9  ;;  %v1056_v46 = vld [vmem:[%s1341_s3 + $0x20] ss:$12 sps:$4 sm:$0xff] (!%p217_p2)   ;;  %v1057_v47 = vld [vmem:[%s1341_s3 + $0x30] ss:$12 sps:$4 sm:$0xff] (!%p217_p2)  }
   0x8   : > { %1014 = vmatprep.subr.bf16.mxu1 (!%p217_p2), %v1052_v11  ;;  %582 = vmatprep.subr.bf16.mxu0 (!%p217_p2), %v1050_v10  ;;  %v1054_v45 = vld [vmem:[%s1341_s3 + $0x34] ss:$12 sps:$4 sm:$0xff] (!%p217_p2)   ;;  %v1058_v48 = vld [vmem:[%s1341_s3 + $0x4c] ss:$12 sps:$4 sm:$0xff] (!%p217_p2)   ;;  %v1062_v51 = vld [vmem:[%s1341_s3 + $0x64] ss:$12 sps:$4 sm:$0xff] (!%p217_p2)  }
   0x9   : > { %1015 = vmatpush3.bf16.msra.mxu1 (!%p217_p2), %v1052_v11  ;;  %v1060_v49 = vld [vmem:[%s1341_s3 + $0x38] ss:$12 sps:$4 sm:$0xff] (!%p217_p2)   ;;  %v1061_v50 = vld [vmem:[%s1341_s3 + $0x48] ss:$12 sps:$4 sm:$0xff] (!%p217_p2)   ;;  %v1064_v52 = vld [vmem:[%s1341_s3 + $0x50] ss:$12 sps:$4 sm:$0xff] (!%p217_p2)  }
   0xa   : > { %1016 = vmatprep.subr.bf16.mxu1 (!%p217_p2), %v1056_v46  ;;  %v1065_v53 = vld [vmem:[%s1341_s3 + $0x60] ss:$12 sps:$4 sm:$0xff] (!%p217_p2)   ;;  %v1066_v54 = vld [vmem:[%s1341_s3 + $0x7c] ss:$12 sps:$4 sm:$0xff] (!%p217_p2)   ;;  %v1069_v56 = vld [vmem:[%s1341_s3 + $0x78] ss:$12 sps:$4 sm:$0xff] (!%p217_p2)  }
   0xb   : > { %583 = vmatpush1.bf16.msra.mxu0 (!%p217_p2), %v1053_v44  ;;  %v1068_v55 = vld [vmem:[%s1341_s3 + $0x68] ss:$12 sps:$4 sm:$0xff] (!%p217_p2)   ;;  %v1072_v58 = vld [vmem:[%s1341_s3 + $0x80] ss:$12 sps:$4 sm:$0xff] (!%p217_p2)   ;;  %v1073_v59 = vld [vmem:[%s1341_s3 + $0x90] ss:$12 sps:$4 sm:$0xff] (!%p217_p2)  }
   0xc   : > { %584 = vmatprep.subr.bf16.mxu0 (!%p217_p2), %v1054_v45  ;;  %v1070_v57 = vld [vmem:[%s1341_s3 + $0x94] ss:$12 sps:$4 sm:$0xff] (!%p217_p2)   ;;  %v1074_v60 = vld [vmem:[%s1341_s3 + $0xac] ss:$12 sps:$4 sm:$0xff] (!%p217_p2)  }
   0xd   : > { %s1346_s23 = smov (!%p253_p3, %s911_s23), 31  ;;  %1017 = vmatpush3.bf16.msra.mxu1 %v1056_v46  ;;  %v1076_v61 = vld [vmem:[%s1341_s3 + $0x98] ss:$12 sps:$4 sm:$0xff]   ;;  %v1077_v62 = vld [vmem:[%s1341_s3 + $0xa8] ss:$12 sps:$4 sm:$0xff]  }
   0xe   : > { %s912_s24 = sshll.u32 %s1346_s23, 3  ;;  %1018 = vmatprep.subr.bf16.mxu1 %v1060_v49  ;;  %s914_s16 = sshll.u32 %s1346_s23, 2 }
   0xf   : > { %s256_s27 = scalar_lea.vmem %s1338_s0, %s912_s24  ;;  %585 = vmatpush1.bf16.msra.mxu0 %v1057_v47  ;;  %s1292_s19 = scalar_lea.vmem %s1343_s5, %s914_s16 }
  0x10   : > { %v272_v0 = vld [vmem:[%s256_s27] sm:$0xff]  ;;  %v274_v1 = vld [vmem:[%s256_s27 + $0x10] sm:$0xff]  ;;  %v273_v2 = vld [vmem:[%s256_s27 + $0x8] sm:$0xff]  ;;  %586 = vmatprep.subr.bf16.mxu0 %v1058_v48  ;;  %s1301_s25 = scalar_lea.vmem %s1344_s6, %s912_s24 }
  0x11   : > { %282 = vadd.xlane.f32.xlu0 %v272_v0  ;;  %286 = vadd.xlane.f32.xlu1 %v274_v1  ;;  %v275_v3 = vld [vmem:[%s256_s27 + $0x18] sm:$0xff]  ;;  %v276_v4 = vld [vmem:[%s256_s27 + $0x20] sm:$0xff]  ;;  %v277_v5 = vld [vmem:[%s256_s27 + $0x28] sm:$0xff] }
  0x12   : > { %v278_v6 = vld [vmem:[%s256_s27 + $0x30] sm:$0xff]  ;;  %v279_v7 = vld [vmem:[%s256_s27 + $0x38] sm:$0xff]  ;;  %1019 = vmatpush3.bf16.msra.mxu1 %v1060_v49 }
  0x13   : > { %587 = vmatpush1.bf16.msra.mxu0 %v1061_v50  ;;  %1020 = vmatprep.subr.bf16.mxu1 %v1064_v52 }
  0x14   : > { %588 = vmatprep.subr.bf16.mxu0 %v1062_v51 }
  0x15   : > { %284 = vadd.xlane.f32.xlu0 %v273_v2  ;;  %288 = vadd.xlane.f32.xlu1 %v275_v3 }
  0x16   : > { %1021 = vmatpush3.bf16.msra.mxu1 %v1064_v52 }
  0x17   : > { %589 = vmatpush1.bf16.msra.mxu0 %v1065_v53  ;;  %1022 = vmatprep.subr.bf16.mxu1 %v1068_v55 }
  0x18   : > { %590 = vmatprep.subr.bf16.mxu0 %v1066_v54 }
  0x19   : > { %290 = vadd.xlane.f32.xlu0 %v276_v4  ;;  %292 = vadd.xlane.f32.xlu1 %v277_v5 }
  0x1a   : > { %1023 = vmatpush3.bf16.msra.mxu1 %v1068_v55 }
  0x1b   : > { %591 = vmatpush1.bf16.msra.mxu0 %v1069_v56  ;;  %1024 = vmatprep.subr.bf16.mxu1 %v1072_v58 }
  0x1c   : > { %592 = vmatprep.subr.bf16.mxu0 %v1070_v57 }
  0x1d   : > { %294 = vadd.xlane.f32.xlu0 %v278_v6  ;;  %296 = vadd.xlane.f32.xlu1 %v279_v7 }
  0x1e   : > { %1025 = vmatpush3.bf16.msra.mxu1 %v1072_v58 }
  0x1f   : > { %593 = vmatpush1.bf16.msra.mxu0 %v1073_v59  ;;  %1026 = vmatprep.subr.bf16.mxu1 %v1076_v61 }
  0x20   : > { %594 = vmatprep.subr.bf16.mxu0 %v1074_v60 }
  0x22   : > { %1027 = vmatpush3.bf16.msra.mxu1 %v1076_v61 }
  0x23   : > { %595 = vmatpush1.bf16.msra.mxu0 %v1077_v62 }
  0x9e   : > { %v283_v12 = vpop.xlane.xlu0 %282  ;;  %v287_v13 = vpop.xlane.xlu1 %286 }
  0x9f   : > { %v299_v14 = vmul.f32 0.0078125, %v283_v12  ;;  %v301_v15 = vmul.f32 0.0078125, %v287_v13 }
  0xa1   : > { %v1167_v16 = vsub.f32 %v272_v0, %v299_v14  ;;  %v1169_v17 = vsub.f32 %v274_v1, %v301_v15  ;;  %v1078_v0 = vld [vmem:[%s1341_s3 + $0xb0] ss:$12 sps:$4 sm:$0xff]  }
  0xa2   : > { %v285_v18 = vpop.xlane.xlu0 %284  ;;  %v289_v19 = vpop.xlane.xlu1 %288  ;;  %1028 = vmatprep.subr.bf16.mxu1 %v1078_v0 }
  0xa3   : > { %v300_v20 = vmul.f32 0.0078125, %v285_v18  ;;  %v315_v21 = vmul.f32 %v1167_v16, %v1167_v16  ;;  %v302_v22 = vmul.f32 0.0078125, %v289_v19  ;;  %v317_v25 = vmul.f32 %v1169_v17, %v1169_v17  ;;  %1029 = vmatpush3.bf16.msra.mxu1 %v1078_v0 }
  0xa5   : > { %v1173_v23 = vsub.f32 %v273_v2, %v300_v20  ;;  %323 = vadd.xlane.f32.xlu0 %v315_v21  ;;  %v1175_v24 = vsub.f32 %v275_v3, %v302_v22 }
  0xa6   : > { %v291_v26 = vpop.xlane.xlu0 %290  ;;  %v293_v27 = vpop.xlane.xlu1 %292 }
  0xa7   : > { %v303_v28 = vmul.f32 0.0078125, %v291_v26  ;;  %v316_v29 = vmul.f32 %v1173_v23, %v1173_v23  ;;  %v304_v30 = vmul.f32 0.0078125, %v293_v27  ;;  %v318_v33 = vmul.f32 %v1175_v24, %v1175_v24 }
  0xa9   : > { %v1181_v31 = vsub.f32 %v276_v4, %v303_v28  ;;  %327 = vadd.xlane.f32.xlu0 %v317_v25  ;;  %325 = vadd.xlane.f32.xlu1 %v316_v29  ;;  %v1183_v32 = vsub.f32 %v277_v5, %v304_v30  ;;  %v918_v30 = vld [vmem:[%s1339_s1] ss:$0 sm:$0xff] }
  0xaa   : > { %v295_v34 = vpop.xlane.xlu0 %294  ;;  %v297_v35 = vpop.xlane.xlu1 %296 }
  0xab   : > { %v305_v36 = vmul.f32 0.0078125, %v295_v34  ;;  %v319_v37 = vmul.f32 %v1181_v31, %v1181_v31  ;;  %v306_v38 = vmul.f32 0.0078125, %v297_v35  ;;  %v320_v41 = vmul.f32 %v1183_v32, %v1183_v32 }
  0xad   : > { %v1189_v39 = vsub.f32 %v278_v6, %v305_v36  ;;  %329 = vadd.xlane.f32.xlu1 %v318_v33  ;;  %331 = vadd.xlane.f32.xlu0 %v319_v37  ;;  %v1191_v40 = vsub.f32 %v279_v7, %v306_v38  ;;  %v919_v38 = vld [vmem:[%s1340_s2] ss:$0 sm:$0xff] }
  0xaf   : > { %v321_v42 = vmul.f32 %v1189_v39, %v1189_v39  ;;  %v322_v43 = vmul.f32 %v1191_v40, %v1191_v40 }
  0xb1   : > { %333 = vadd.xlane.f32.xlu1 %v320_v41  ;;  %335 = vadd.xlane.f32.xlu0 %v321_v42 }
  0xb5   : > { %337 = vadd.xlane.f32.xlu1 %v322_v43 }
 0x132   : > { %v324_v1 = vpop.xlane.xlu0 %323 }
 0x133   : > { %v339_v2 = vmul.f32 0.0078125, %v324_v1 }
 0x135   : > { %v347_v3 = vadd.f32 1e-05, %v339_v2 }
 0x136   : > { %v326_v4 = vpop.xlane.xlu1 %325  ;;  %v328_v5 = vpop.xlane.xlu0 %327 }
 0x137   : > { %1079 = vrsqrt.f32 %v347_v3  ;;  %v340_v6 = vmul.f32 0.0078125, %v326_v4  ;;  %v341_v7 = vmul.f32 0.0078125, %v328_v5 }
 0x139   : > { %v348_v8 = vadd.f32 1e-05, %v340_v6  ;;  %v349_v9 = vadd.f32 1e-05, %v341_v7 }
 0x13a   : > { %v330_v10 = vpop.xlane.xlu1 %329  ;;  %v332_v11 = vpop.xlane.xlu0 %331 }
 0x13b   : > { %1081 = vrsqrt.f32 %v348_v8  ;;  %v342_v12 = vmul.f32 0.0078125, %v330_v10  ;;  %v343_v13 = vmul.f32 0.0078125, %v332_v11 }
 0x13c   : > { %1083 = vrsqrt.f32 %v349_v9 }
 0x13d   : > { %v350_v14 = vadd.f32 1e-05, %v342_v12  ;;  %v351_v15 = vadd.f32 1e-05, %v343_v13 }
 0x13e   : > { %v334_v18 = vpop.xlane.xlu1 %333  ;;  %v336_v19 = vpop.xlane.xlu0 %335 }
 0x13f   : > { %1085 = vrsqrt.f32 %v350_v14  ;;  %v344_v20 = vmul.f32 0.0078125, %v334_v18  ;;  %v345_v21 = vmul.f32 0.0078125, %v336_v19 }
 0x140   : > { %1087 = vrsqrt.f32 %v351_v15 }
 0x141   : > { %v1080_v22 = vpop.eup %1079  ;;  %v352_v25 = vadd.f32 1e-05, %v344_v20  ;;  %v353_v26 = vadd.f32 1e-05, %v345_v21 }
 0x142   : > { %v338_v27 = vpop.xlane.xlu1 %337  ;;  %v363_v28 = vmul.f32 %v1080_v22, %v1167_v16 }
 0x143   : > { %1089 = vrsqrt.f32 %v352_v25  ;;  %v346_v29 = vmul.f32 0.0078125, %v338_v27 }
 0x144   : > { %1091 = vrsqrt.f32 %v353_v26  ;;  %v377_v37 = vmul.f32 %v918_v30, %v363_v28 }
 0x145   : > { %v1082_v33 = vpop.eup %1081  ;;  %v354_v34 = vadd.f32 1e-05, %v346_v29 }
 0x146   : > { %v1084_v35 = vpop.eup %1083  ;;  %v364_v36 = vmul.f32 %v1082_v33, %v1173_v23  ;;  %v391_v45 = vadd.f32 %v919_v38, %v377_v37 }
 0x147   : > { %1093 = vrsqrt.f32 %v354_v34  ;;  %v365_v16 = vmul.f32 %v1084_v35, %v1169_v17 }
 0x148   : > { %v378_v41 = vmul.f32 %v918_v30, %v364_v36 }
 0x149   : > { %v1086_v42 = vpop.eup %1085  ;;  %v379_v43 = vmul.f32 %v918_v30, %v365_v16 }
 0x14a   : > { %v1088_v44 = vpop.eup %1087  ;;  %v392_v46 = vadd.f32 %v919_v38, %v378_v41  ;;  %v366_v47 = vmul.f32 %v1086_v42, %v1175_v24 }
 0x14b   : > { %v367_v48 = vmul.f32 %v1088_v44, %v1181_v31  ;;  %v393_v51 = vadd.f32 %v919_v38, %v379_v43 }
 0x14c   : > { %v399_v49 = vpack.c.bf16 %v392_v46, %v391_v45  ;;  %v380_v23 = vmul.f32 %v918_v30, %v366_v47 }
 0x14d   : > { %v1090_v50 = vpop.eup %1089  ;;  %v381_v54 = vmul.f32 %v918_v30, %v367_v48 }
 0x14e   : > { %v1092_v52 = vpop.eup %1091  ;;  %613 = vmatmul.mubr.bf16.vlgmr.msra.gmra.mrb[0].mxu0 %v399_v49  ;;  %1030 = vmatprep.mubr.bf16.mxu1 %v399_v49  ;;  %v394_v53 = vadd.f32 %v919_v38, %v380_v23  ;;  %v368_v17 = vmul.f32 %v1090_v50, %v1183_v32 }
 0x14f   : > { %622 = vmatprep.mubr.bf16.mxu0 %v1103_v63  ;;  %v369_v55 = vmul.f32 %v1092_v52, %v1189_v39  ;;  %v395_v31 = vadd.f32 %v919_v38, %v381_v54  ;;  %v437_v39 = vlaneseq }
 0x150   : > { %v400_v56 = vpack.c.bf16 %v394_v53, %v393_v51  ;;  %v382_v57 = vmul.f32 %v918_v30, %v368_v17 }
 0x151   : > { %v1094_v24 = vpop.eup %1093  ;;  %v383_v60 = vmul.f32 %v918_v30, %v369_v55  ;;  %v438_v2 = vshrl.u32 %v437_v39, 7 }
 0x152   : > { %1031 = vmatmul.mubr.bf16.vlgmr.msra.gmra.mrb[0].mxu1 %v400_v56  ;;  %v396_v58 = vadd.f32 %v919_v38, %v382_v57  ;;  %v370_v59 = vmul.f32 %v1094_v24, %v1191_v40  ;;  %v435_v40 = vld [vmem:[%s1342_s4] sm:$0x7] }
 0x153   : > { %v397_v0 = vadd.f32 %v919_v38, %v383_v60  ;;  %v439_v3 = vsub.s32 0, %v438_v2  ;;  %v443_v4 = vsub.s32 1, %v438_v2  ;;  %v447_v5 = vsub.s32 2, %v438_v2 }
 0x154   : > { %v401_v61 = vpack.c.bf16 %v396_v58, %v395_v31  ;;  %v384_v62 = vmul.f32 %v918_v30, %v370_v59 }
 0x155   : > { %v1280_v6 = vrot.slane %v435_v40, %v439_v3  ;;  %v1283_v9 = vrot.slane %v435_v40, %v443_v4 }
 0x156   : > { %623 = vmatmul.mubr.bf16.gmra.mrb[4].mxu0 %v400_v56  ;;  %1034 = vmatprep.mubr.bf16.mxu1 %v401_v61  ;;  %v398_v32 = vadd.f32 %v919_v38, %v384_v62 }
 0x157   : > { %632 = vmatprep.mubr.bf16.mxu0 %v1103_v63 }
 0x158   : > { %v402_v1 = vpack.c.bf16 %v398_v32, %v397_v0 }
 0x15a   : > { %1035 = vmatmul.mubr.bf16.gmra.mrb[4].mxu1 %v402_v1 }
 0x15e   : > { %633 = vmatmul.mubr.bf16.gmra.mrb[8].mxu0 %v401_v61 }
 0x15f   : > { %642 = vmatprep.mubr.bf16.mxu0 %v1103_v63  ;;  %v1285_v63 = vrot.slane %v435_v40, %v447_v5 }
 0x166   : > { %643 = vmatmul.mubr.bf16.gmra.mrb[12].mxu0 %v402_v1 }
 0x221   : > { %v614_v7 = vpop.f32.mrb[0].mxu0 }
 0x222   : > { %v616_v8 = vpop.f32.mrb[1].mxu0  ;;  %v615_v11 = vadd.f32 %v614_v7, %v1280_v6 }
 0x223   : > { %v618_v10 = vpop.f32.mrb[2].mxu0  ;;  %v617_v19 = vadd.f32 %v616_v8, %v1283_v9 }
 0x224   : > { %v619_v12 = vadd.f32 %v618_v10, %v1280_v6  ;;  %v620_v13 = vpop.f32.mrb[3].mxu0 }
 0x225   : > { %v1032_v14 = vpop.f32.mrb[0].mxu1  ;;  %v621_v25 = vadd.f32 %v620_v13, %v1283_v9 }
 0x226   : > { %v982_v15 = vpack.c.bf16 %v619_v12, %v615_v11  ;;  %v687_v18 = vpop.f32.mrb[1].mxu1  ;;  %v696_v30 = vadd.f32 %v1032_v14, %v1285_v63 }
 0x227   : > { %v688_v20 = vadd.f32 %v687_v18, %v1285_v63  ;;  %v1033_v21 = vpop.f32.mrb[2].mxu1 }
 0x228   : > { %983 = vst [vmem:[%s1292_s19] sm:$0xff] %v982_v15   ;;  %v690_v22 = vpop.f32.mrb[3].mxu1  ;;  %v699_v16 = vadd.f32 %v1033_v21, %v1285_v63 }
 0x229   : > { %v971_v26 = vpack.c.bf16 %v688_v20, %v617_v19  ;;  %v691_v27 = vadd.f32 %v690_v22, %v1285_v63  ;;  %v624_v28 = vpop.f32.mrb[4].mxu0 }
 0x22a   : > { %v626_v29 = vpop.f32.mrb[5].mxu0  ;;  %v625_v36 = vadd.f32 %v624_v28, %v1280_v6 }
 0x22b   : > { %806 = vst [vmem:[%s1301_s25] sm:$0xff] %v971_v26  ;;  %v972_v33 = vpack.c.bf16 %v691_v27, %v621_v25  ;;  %v627_v34 = vadd.f32 %v626_v29, %v1283_v9  ;;  %v628_v35 = vpop.f32.mrb[6].mxu0 }
 0x22c   : > { %v629_v37 = vadd.f32 %v628_v35, %v1280_v6  ;;  %v630_v38 = vpop.f32.mrb[7].mxu0 }
 0x22d   : > { %807 = vst [vmem:[%s1301_s25 + $0x8] sm:$0xff] %v972_v33  ;;  %v973_v41 = vpack.c.bf16 %v696_v30, %v627_v34  ;;  %v631_v42 = vadd.f32 %v630_v38, %v1283_v9  ;;  %v1036_v43 = vpop.f32.mrb[4].mxu1 }
 0x22e   : > { %v987_v44 = vpack.c.bf16 %v629_v37, %v625_v36  ;;  %v703_v45 = vpop.f32.mrb[5].mxu1  ;;  %v712_v60 = vadd.f32 %v1036_v43, %v1285_v63 }
 0x22f   : > { %808 = vst [vmem:[%s1301_s25 + $0x10] sm:$0xff] %v973_v41  ;;  %v974_v46 = vpack.c.bf16 %v699_v16, %v631_v42  ;;  %v1037_v47 = vpop.f32.mrb[6].mxu1  ;;  %v704_v50 = vadd.f32 %v703_v45, %v1285_v63 }
 0x230   : > { %999 = vst [vmem:[%s1292_s19 + $0x8] sm:$0xff] %v987_v44   ;;  %v706_v48 = vpop.f32.mrb[7].mxu1  ;;  %v715_v39 = vadd.f32 %v1037_v47, %v1285_v63 }
 0x231   : > { %809 = vst [vmem:[%s1301_s25 + $0x18] sm:$0xff] %v974_v46  ;;  %v634_v49 = vpop.f32.mrb[8].mxu0  ;;  %v707_v55 = vadd.f32 %v706_v48, %v1285_v63 }
 0x232   : > { %v636_v23 = vpop.f32.mrb[9].mxu0  ;;  %v635_v53 = vadd.f32 %v634_v49, %v1280_v6 }
 0x233   : > { %v637_v51 = vadd.f32 %v636_v23, %v1283_v9  ;;  %v638_v52 = vpop.f32.mrb[10].mxu0 }
 0x234   : > { %v639_v17 = vadd.f32 %v638_v52, %v1280_v6  ;;  %v640_v54 = vpop.f32.mrb[11].mxu0 }
 0x235   : > { %v975_v56 = vpack.c.bf16 %v704_v50, %v637_v51  ;;  %v641_v57 = vadd.f32 %v640_v54, %v1283_v9 }
 0x236   : > { %v992_v24 = vpack.c.bf16 %v639_v17, %v635_v53 }
 0x237   : > { %810 = vst [vmem:[%s1301_s25 + $0x20] sm:$0xff] %v975_v56  ;;  %v976_v31 = vpack.c.bf16 %v707_v55, %v641_v57 }
 0x238   : > { %1000 = vst [vmem:[%s1292_s19 + $0x10] sm:$0xff] %v992_v24  }
 0x239   : > { %811 = vst [vmem:[%s1301_s25 + $0x28] sm:$0xff] %v976_v31  ;;  %v644_v58 = vpop.f32.mrb[12].mxu0 }
 0x23a   : > { %v646_v59 = vpop.f32.mrb[13].mxu0  ;;  %v645_v0 = vadd.f32 %v644_v58, %v1280_v6 }
 0x23b   : > { %v647_v61 = vadd.f32 %v646_v59, %v1283_v9  ;;  %v648_v62 = vpop.f32.mrb[14].mxu0 }
 0x23c   : > { %v649_v32 = vadd.f32 %v648_v62, %v1280_v6  ;;  %v650_v1 = vpop.f32.mrb[15].mxu0 }
 0x23d   : > { %v977_v2 = vpack.c.bf16 %v712_v60, %v647_v61  ;;  %v651_v3 = vadd.f32 %v650_v1, %v1283_v9 }
 0x23e   : > { %v997_v40 = vpack.c.bf16 %v649_v32, %v645_v0 }
 0x23f   : > { %812 = vst [vmem:[%s1301_s25 + $0x30] sm:$0xff] %v977_v2  ;;  %v978_v4 = vpack.c.bf16 %v715_v39, %v651_v3 }
 0x240   : > { %1001 = vst [vmem:[%s1292_s19 + $0x18] sm:$0xff] %v997_v40  }
 0x241   : > { %813 = vst [vmem:[%s1301_s25 + $0x38] sm:$0xff] %v978_v4 }
 0x242 PF: > { %s17_s21 = sadd.s32 1, %s1101_s21  }
 0x243   : > { %p14_p4 = scmp.ge.s32.totalorder %s17_s21, 6  }
 0x245   :  { %16 = sbr.rel (!%p14_p4) target bundleno = 1 (0x1), region = 82 }

// kernel: gpt2_encoder_forward.9
= control target key start
LH: loop header
LB: loop body
LE: loop exit
PB: predicated region body
PF: predicated region fallthrough
CT: control target
= control target key end

     0   :  { %s2141_s0 = inlined_call_operand.vmem [shape: f32[2,1,128], index: 0, kind: input, shape index: {}]   ;;  %s2142_s1 = inlined_call_operand.vmem [shape: f32[256,128], index: 1, kind: input, shape index: {}]   ;;  %s2143_s2 = inlined_call_operand.vmem [shape: f32[1,128], index: 2, kind: input, shape index: {}]   ;;  %s2144_s3 = inlined_call_operand.vmem [shape: f32[1,128], index: 3, kind: input, shape index: {}]   ;;  %s2145_s4 = inlined_call_operand.vmem [shape: bf16[128,128], index: 4, kind: input, shape index: {}]   ;;  %s2146_s5 = inlined_call_operand.vmem [shape: f32[1,128], index: 5, kind: input, shape index: {}]   ;;  %s2147_s6 = inlined_call_operand.vmem [shape: bf16[128,128], index: 6, kind: input, shape index: {}]   ;;  %s2148_s7 = inlined_call_operand.vmem [shape: f32[1,128], index: 7, kind: input, shape index: {}]   ;;  %s2149_s8 = inlined_call_operand.vmem [shape: bf16[128,128], index: 8, kind: input, shape index: {}]   ;;  %s2150_s9 = inlined_call_operand.vmem [shape: f32[1,128], index: 9, kind: input, shape index: {}]   ;;  %s2151_s10 = inlined_call_operand.vmem [shape: bf16[128,128], index: 10, kind: input, shape index: {}]   ;;  %s2152_s11 = inlined_call_operand.vmem [shape: f32[1,128], index: 11, kind: input, shape index: {}]   ;;  %s2153_s12 = inlined_call_operand.hbm [shape: f32[2,1,128], index: 12, kind: output, shape index: {}]  }
   0x1   :  { %2154 = sst [smem:[#allocation5_spill]] %s2141_s0 }
   0x2   :  { %17 = vsyncpa [#allocation3], 0 }
   0x3   :  { %19 = vsyncpa [#allocation3 + $0x1], 0  ;;  %s1725_s21 = smov 0   ;;  %s1727_s22 = smov 0  }
   0x4   :  { %s1729_s23 = smov 0   ;;  %s1731_s24 = smov 0  }
   0x5 LB: > { %s1746_s25 = sadd.s32 4294967295, %s1654_s24   ;;  %s1249_s26 = sadd.s32 4294967294, %s1654_s24   ;;  %s1654_s24 = sphi %s1731_s24, %s2161_s24   ;;  %s1650_s23 = sphi %s1729_s23, %s2160_s23   ;;  %s1646_s22 = sphi %s1727_s22, %s2159_s22   ;;  %s1642_s21 = sphi %s1725_s21, %s2158_s21  }
   0x6   : > { %s1750_s27 = sadd.s32 1, %s1654_s24   ;;  %s294_s28 = sadd.s32 1, %s1650_s23 }
   0x7   : > { %s291_s29 = ssub.s32 %s1654_s24, %s1750_s27  ;;  %p304_p0 = scmp.ne.s32.totalorder %s1650_s23, %s1646_s22 }
   0x8   : > { %p292_p1 = scmp.eq.s32.totalorder %s291_s29, 0  ;;  %p305_p2 = scmp.eq.s32.totalorder %s1746_s25, 1 }
   0x9   : > { %p310_p3 = scmp.ne.s32.totalorder %s1646_s22, %s1642_s21  ;;  %p311_p4 = scmp.eq.s32.totalorder %s1249_s26, 1 }
   0xa   : > { %s1761_s30 = scalar_select %p292_p1, %s1650_s23, %s294_s28  }
   0xb   : > { %p1763_p5 = por %p305_p2, %p304_p0  ;;  %p1767_p6 = por %p311_p4, %p310_p3 }
   0xc   : > { %p1252_p7 = scmp.ge.s32.totalorder %s1654_s24, 1  ;;  %p374_p8 = scmp.lt.s32.totalorder %s1654_s24, 3 }
   0xe   : > { %p375_p9 = pnand %p1252_p7, %p374_p8 }
   0xf   : > { %s1774_s15 = sshll.u32 (!%p375_p9), %s1746_s25, 4  ;;  %p418_p11 = scmp.lt.s32.totalorder (!%p375_p9), %s1746_s25, 1  ;;  %vm1657_vm0 = vmmov (!%p375_p9), 0   ;;  %vm738_vm1 = vcmask (!%p375_p9), 1040384  }
  0x10   : > { %378 = sbr.rel (%p375_p9) target bundleno = 1472 (0x5c0), region = 68  ;;  %p422_p10 = scmp.lt.s32.totalorder (!%p375_p9), %s1774_s15, 31 }
  0x11   : > { %s2157_s0 = sld [smem:[#allocation5_spill]] (!%p375_p9)  ;;  %s416_s18 = sand.u32 (!%p375_p9), 1, %s1646_s22  }
  0x17   : > { %s423_s16 = scalar_select %p422_p10, %s1774_s15, 31 }
  0x18   : > { %s2163_s25 = smov (!%p418_p11, %s1746_s25), 1 }
  0x19   : > { %s1254_s17 = sshll.u32 %s423_s16, 3  ;;  %s420_s29 = scalar_lea.vmem %s2157_s0, %s2163_s25 }
  0x1a   : > { %s425_s20 = scalar_lea.vmem %s2142_s1, %s1254_s17  ;;  %s417_s25 = scalar_lea.vmem [#allocation2], %s416_s18 }
  0x1b   : > { %v428_v0 = vld [vmem:[%s425_s20] sm:$0xff]  ;;  %v430_v1 = vld [vmem:[%s425_s20 + $0x10] sm:$0xff]  ;;  %v429_v2 = vld [vmem:[%s425_s20 + $0x8] sm:$0xff]  ;;  %s1185_s26 = sshll.u32 %s417_s25, 4  ;;  %s2099_s16 = scalar_lea.hbm %s2153_s12, %s1774_s15  ;;  %s2101_s26 = int_to_ptr.vmem [resolvable:$true] %s1185_s26 }
  0x1c   : > { %446 = vadd.xlane.f32.xlu0 %v428_v0  ;;  %450 = vadd.xlane.f32.xlu1 %v430_v1  ;;  %v431_v3 = vld [vmem:[%s425_s20 + $0x18] sm:$0xff]  ;;  %v432_v4 = vld [vmem:[%s425_s20 + $0x20] sm:$0xff]  ;;  %v433_v5 = vld [vmem:[%s425_s20 + $0x28] sm:$0xff]  ;;  %s1173_s17 = scalar_lea.sflag [#allocation3], %s416_s18  ;;  %s1592_s19 = scalar_lea.vmem %s2101_s26, 16 }
  0x1d   : > { %v434_v6 = vld [vmem:[%s425_s20 + $0x30] sm:$0xff]  ;;  %v435_v7 = vld [vmem:[%s425_s20 + $0x38] sm:$0xff]  ;;  %v436_v8 = vld [vmem:[%s425_s20 + $0x40] sm:$0xff]  ;;  %p1593_p12 = scmp.ne.s32.totalorder %s2101_s26, %s1592_s19 }
  0x1e   : > { %v437_v9 = vld [vmem:[%s425_s20 + $0x48] sm:$0xff]  ;;  %v1781_v10 = vld [vmem:[%s425_s20 + $0x50] sm:$0xff]  ;;  %v1783_v11 = vld [vmem:[%s425_s20 + $0x58] sm:$0xff] }
  0x1f   : > { %v1787_v12 = vld [vmem:[%s425_s20 + $0x60] sm:$0xff]  ;;  %v1789_v13 = vld [vmem:[%s425_s20 + $0x68] sm:$0xff]  ;;  %v1793_v14 = vld [vmem:[%s425_s20 + $0x70] sm:$0xff]  ;;  %p1594_p13 = pnand %p1593_p12, %p1763_p5 }
  0x20   : > { %448 = vadd.xlane.f32.xlu0 %v429_v2  ;;  %452 = vadd.xlane.f32.xlu1 %v431_v3  ;;  %v1795_v15 = vld [vmem:[%s425_s20 + $0x78] sm:$0xff]  ;;  %s1659_s20 = smov [#allocation2]  }
  0x21   : > { %p1595_p0 = pneg %p1594_p13  ;;  %s1596_s0 = sshll.u32 %s1659_s20, 4  ;;  %s1597_s0 = int_to_ptr.vmem [resolvable:$false] %s1596_s0 }
  0x22   : > { %s1598_s28 = scalar_lea.vmem %s1597_s0, 32  ;;  %p1599_p1 = scmp.lt.s32.totalorder %s2101_s26, %s1597_s0 }
  0x23   : > { %p1600_p2 = scmp.lt.s32.totalorder %s1598_s28, %s1592_s19 }
  0x24   : > { %454 = vadd.xlane.f32.xlu0 %v432_v4  ;;  %456 = vadd.xlane.f32.xlu1 %v433_v5 }
  0x25   : > { %p1601_p3 = por %p1600_p2, %p1599_p1 }
  0x27   : > { %p1602_p4 = pnand %p1601_p3, %p1595_p0 }
  0x28   : > { %458 = vadd.xlane.f32.xlu0 %v434_v6  ;;  %460 = vadd.xlane.f32.xlu1 %v435_v7 }
  0x2c   : > { %462 = vadd.xlane.f32.xlu0 %v436_v8  ;;  %464 = vadd.xlane.f32.xlu1 %v437_v9 }
  0x30   : > { %466 = vadd.xlane.f32.xlu0 %v1781_v10  ;;  %468 = vadd.xlane.f32.xlu1 %v1783_v11 }
  0x34   : > { %470 = vadd.xlane.f32.xlu0 %v1787_v12  ;;  %472 = vadd.xlane.f32.xlu1 %v1789_v13 }
  0x38   : > { %474 = vadd.xlane.f32.xlu0 %v1793_v14  ;;  %476 = vadd.xlane.f32.xlu1 %v1795_v15 }
  0xa9   : > { %v447_v16 = vpop.xlane.xlu0 %446  ;;  %v451_v17 = vpop.xlane.xlu1 %450 }
  0xaa   : > { %v479_v18 = vmul.f32 0.0078125, %v447_v16  ;;  %v481_v19 = vmul.f32 0.0078125, %v451_v17 }
  0xac   : > { %v1799_v20 = vsub.f32 %v428_v0, %v479_v18  ;;  %v1801_v21 = vsub.f32 %v430_v1, %v481_v19  ;;  %v1658_v18 = vmov 0.0   ;;  %v1883_v19 = vld [vmem:[%s420_s29] sm:$0x1] }
  0xad   : > { %v449_v22 = vpop.xlane.xlu0 %448  ;;  %v453_v23 = vpop.xlane.xlu1 %452  ;;  %1377 = vmatprep.mubr.msk.f32.mxu0 %vm1657_vm0, %v1658_v18  ;;  %1380 = vmatprep.subr.bf16.mxu1 %v1658_v18 }
  0xae   : > { %v480_v24 = vmul.f32 0.0078125, %v449_v22  ;;  %v511_v25 = vmul.f32 %v1799_v20, %v1799_v20  ;;  %v482_v26 = vmul.f32 0.0078125, %v453_v23  ;;  %v513_v29 = vmul.f32 %v1801_v21, %v1801_v21  ;;  %1396 = vmatprep.mubr.msk.bf16.mxu1 %vm1657_vm0, %v1658_v18  ;;  %v1527_v23 = vld [vmem:[%s2145_s4 + $0x8] sm:$0xff]  }
  0xaf   : > { %v739_v22 = vsel %vm738_vm1, %v1883_v19, 0.0 }
  0xb0   : > { %v1805_v27 = vsub.f32 %v429_v2, %v480_v24  ;;  %527 = vadd.xlane.f32.xlu0 %v511_v25  ;;  %v1807_v28 = vsub.f32 %v431_v3, %v482_v26  ;;  %v1528_v24 = vld [vmem:[%s2145_s4 + $0x10] sm:$0xff]   ;;  %v1529_v25 = vld [vmem:[%s2145_s4 + $0x18] sm:$0xff]   ;;  %v1530_v26 = vld [vmem:[%s2145_s4 + $0x20] sm:$0xff]  }
  0xb1   : > { %v455_v30 = vpop.xlane.xlu0 %454  ;;  %v457_v31 = vpop.xlane.xlu1 %456 }
  0xb2   : > { %v483_v32 = vmul.f32 0.0078125, %v455_v30  ;;  %v512_v33 = vmul.f32 %v1805_v27, %v1805_v27  ;;  %v484_v34 = vmul.f32 0.0078125, %v457_v31  ;;  %v514_v37 = vmul.f32 %v1807_v28, %v1807_v28  ;;  %v1532_v30 = vld [vmem:[%s2145_s4 + $0x30] sm:$0xff]  }
  0xb4   : > { %v1813_v35 = vsub.f32 %v432_v4, %v483_v32  ;;  %531 = vadd.xlane.f32.xlu0 %v513_v29  ;;  %529 = vadd.xlane.f32.xlu1 %v512_v33  ;;  %v1815_v36 = vsub.f32 %v433_v5, %v484_v34  ;;  %v1531_v29 = vld [vmem:[%s2145_s4 + $0x28] sm:$0xff]  }
  0xb5   : > { %v459_v38 = vpop.xlane.xlu0 %458  ;;  %v461_v39 = vpop.xlane.xlu1 %460 }
  0xb6   : > { %v485_v40 = vmul.f32 0.0078125, %v459_v38  ;;  %v515_v41 = vmul.f32 %v1813_v35, %v1813_v35  ;;  %v486_v42 = vmul.f32 0.0078125, %v461_v39  ;;  %v516_v45 = vmul.f32 %v1815_v36, %v1815_v36 }
  0xb8   : > { %v1821_v43 = vsub.f32 %v434_v6, %v485_v40  ;;  %533 = vadd.xlane.f32.xlu1 %v514_v37  ;;  %535 = vadd.xlane.f32.xlu0 %v515_v41  ;;  %v1823_v44 = vsub.f32 %v435_v7, %v486_v42 }
  0xb9   : > { %v463_v46 = vpop.xlane.xlu0 %462  ;;  %v465_v47 = vpop.xlane.xlu1 %464 }
  0xba   : > { %v487_v48 = vmul.f32 0.0078125, %v463_v46  ;;  %v517_v49 = vmul.f32 %v1821_v43, %v1821_v43  ;;  %v488_v50 = vmul.f32 0.0078125, %v465_v47  ;;  %v518_v53 = vmul.f32 %v1823_v44, %v1823_v44 }
  0xbc   : > { %v1829_v51 = vsub.f32 %v436_v8, %v487_v48  ;;  %537 = vadd.xlane.f32.xlu1 %v516_v45  ;;  %539 = vadd.xlane.f32.xlu0 %v517_v49  ;;  %v1831_v52 = vsub.f32 %v437_v9, %v488_v50 }
  0xbd   : > { %v467_v54 = vpop.xlane.xlu0 %466  ;;  %v469_v55 = vpop.xlane.xlu1 %468 }
  0xbe   : > { %v489_v56 = vmul.f32 0.0078125, %v467_v54  ;;  %v519_v57 = vmul.f32 %v1829_v51, %v1829_v51  ;;  %v490_v58 = vmul.f32 0.0078125, %v469_v55  ;;  %v520_v61 = vmul.f32 %v1831_v52, %v1831_v52 }
  0xc0   : > { %v1838_v59 = vsub.f32 %v1781_v10, %v489_v56  ;;  %541 = vadd.xlane.f32.xlu1 %v518_v53  ;;  %543 = vadd.xlane.f32.xlu0 %v519_v57  ;;  %v1841_v60 = vsub.f32 %v1783_v11, %v490_v58 }
  0xc1   : > { %v471_v62 = vpop.xlane.xlu0 %470  ;;  %v473_v63 = vpop.xlane.xlu1 %472 }
  0xc2   : > { %v491_v0 = vmul.f32 0.0078125, %v471_v62  ;;  %v521_v1 = vmul.f32 %v1838_v59, %v1838_v59  ;;  %v492_v2 = vmul.f32 0.0078125, %v473_v63  ;;  %v522_v5 = vmul.f32 %v1841_v60, %v1841_v60 }
  0xc4   : > { %v1848_v3 = vsub.f32 %v1787_v12, %v491_v0  ;;  %545 = vadd.xlane.f32.xlu1 %v520_v61  ;;  %547 = vadd.xlane.f32.xlu0 %v521_v1  ;;  %v1851_v4 = vsub.f32 %v1789_v13, %v492_v2  ;;  %v1915_v2 = vld [vmem:[%s2143_s2] ss:$0 sm:$0xff] }
  0xc5   : > { %v475_v6 = vpop.xlane.xlu0 %474  ;;  %v477_v7 = vpop.xlane.xlu1 %476 }
  0xc6   : > { %v493_v8 = vmul.f32 0.0078125, %v475_v6  ;;  %v523_v9 = vmul.f32 %v1848_v3, %v1848_v3  ;;  %v494_v10 = vmul.f32 0.0078125, %v477_v7  ;;  %v524_v13 = vmul.f32 %v1851_v4, %v1851_v4 }
  0xc8   : > { %v1858_v11 = vsub.f32 %v1793_v14, %v493_v8  ;;  %549 = vadd.xlane.f32.xlu1 %v522_v5  ;;  %551 = vadd.xlane.f32.xlu0 %v523_v9  ;;  %v1861_v12 = vsub.f32 %v1795_v15, %v494_v10  ;;  %v1656_v14 = vmov 0.0|0.0   ;;  %v1526_v15 = vld [vmem:[%s2145_s4] sm:$0xff]  }
  0xc9   : > { %1460 = vmatprep.subr.bf16.mxu0 %v1656_v14  ;;  %1381 = vmatpush3.bf16.msra.mxu1 %v1526_v15  ;;  %v1922_v15 = vld [vmem:[%s2144_s3] ss:$0 sm:$0xff] }
  0xca   : > { %v525_v16 = vmul.f32 %v1858_v11, %v1858_v11  ;;  %v526_v17 = vmul.f32 %v1861_v12, %v1861_v12  ;;  %1382 = vmatprep.subr.bf16.mxu1 %v1658_v18 }
  0xcc   : > { %553 = vadd.xlane.f32.xlu1 %v524_v13  ;;  %555 = vadd.xlane.f32.xlu0 %v525_v16 }
  0xcd   : > { %1383 = vmatpush3.bf16.msra.mxu1 %v1527_v23 }
  0xce   : > { %1384 = vmatprep.subr.bf16.mxu1 %v1658_v18 }
  0xd0   : > { %557 = vadd.xlane.f32.xlu1 %v526_v17  ;;  %740 = vadd.xlane.f32.xlu0 %v739_v22 }
  0xd1   : > { %1385 = vmatpush3.bf16.msra.mxu1 %v1528_v24 }
  0xd2   : > { %1386 = vmatprep.subr.bf16.mxu1 %v1658_v18 }
  0xd5   : > { %1387 = vmatpush3.bf16.msra.mxu1 %v1529_v25 }
  0xd6   : > { %1388 = vmatprep.subr.bf16.mxu1 %v1658_v18 }
  0xd9   : > { %1389 = vmatpush3.bf16.msra.mxu1 %v1530_v26 }
  0xda   : > { %1390 = vmatprep.subr.bf16.mxu1 %v1658_v18 }
  0xdd   : > { %1391 = vmatpush3.bf16.msra.mxu1 %v1531_v29 }
  0xde   : > { %1392 = vmatprep.subr.bf16.mxu1 %v1658_v18 }
  0xe1   : > { %1393 = vmatpush3.bf16.msra.mxu1 %v1532_v30 }
  0xe2   : > { %1394 = vmatprep.subr.bf16.mxu1 %v1658_v18 }
 0x13d   : > { %v528_v31 = vpop.xlane.xlu0 %527 }
 0x13e   : > { %v559_v32 = vmul.f32 0.0078125, %v528_v31 }
 0x140   : > { %v575_v33 = vadd.f32 1e-05, %v559_v32 }
 0x141   : > { %v530_v34 = vpop.xlane.xlu1 %529  ;;  %v532_v37 = vpop.xlane.xlu0 %531 }
 0x142   : > { %1558 = vrsqrt.f32 %v575_v33  ;;  %v560_v38 = vmul.f32 0.0078125, %v530_v34  ;;  %v561_v39 = vmul.f32 0.0078125, %v532_v37 }
 0x144   : > { %v576_v40 = vadd.f32 1e-05, %v560_v38  ;;  %v577_v41 = vadd.f32 1e-05, %v561_v39 }
 0x145   : > { %v534_v42 = vpop.xlane.xlu1 %533  ;;  %v536_v45 = vpop.xlane.xlu0 %535 }
 0x146   : > { %1560 = vrsqrt.f32 %v576_v40  ;;  %v562_v46 = vmul.f32 0.0078125, %v534_v42  ;;  %v563_v47 = vmul.f32 0.0078125, %v536_v45 }
 0x147   : > { %1562 = vrsqrt.f32 %v577_v41 }
 0x148   : > { %v578_v48 = vadd.f32 1e-05, %v562_v46  ;;  %v579_v49 = vadd.f32 1e-05, %v563_v47 }
 0x149   : > { %v538_v50 = vpop.xlane.xlu1 %537  ;;  %v540_v53 = vpop.xlane.xlu0 %539 }
 0x14a   : > { %1564 = vrsqrt.f32 %v578_v48  ;;  %v564_v54 = vmul.f32 0.0078125, %v538_v50  ;;  %v565_v55 = vmul.f32 0.0078125, %v540_v53 }
 0x14b   : > { %1566 = vrsqrt.f32 %v579_v49 }
 0x14c   : > { %v1559_v56 = vpop.eup %1558  ;;  %v580_v57 = vadd.f32 1e-05, %v564_v54  ;;  %v581_v58 = vadd.f32 1e-05, %v565_v55 }
 0x14d   : > { %v542_v61 = vpop.xlane.xlu1 %541  ;;  %v544_v62 = vpop.xlane.xlu0 %543  ;;  %v607_v63 = vmul.f32 %v1559_v56, %v1799_v20 }
 0x14e   : > { %1568 = vrsqrt.f32 %v580_v57  ;;  %v566_v0 = vmul.f32 0.0078125, %v542_v61  ;;  %v567_v1 = vmul.f32 0.0078125, %v544_v62 }
 0x14f   : > { %1570 = vrsqrt.f32 %v581_v58  ;;  %v629_v16 = vmul.f32 %v1915_v2, %v607_v63 }
 0x150   : > { %v1561_v5 = vpop.eup %1560  ;;  %v582_v6 = vadd.f32 1e-05, %v566_v0  ;;  %v583_v7 = vadd.f32 1e-05, %v567_v1 }
 0x151   : > { %v1563_v8 = vpop.eup %1562  ;;  %v546_v9 = vpop.xlane.xlu1 %545  ;;  %v608_v13 = vmul.f32 %v1561_v5, %v1805_v27  ;;  %v651_v31 = vadd.f32 %v1922_v15, %v629_v16 }
 0x152   : > { %v548_v10 = vpop.xlane.xlu0 %547  ;;  %1572 = vrsqrt.f32 %v582_v6  ;;  %v568_v20 = vmul.f32 0.0078125, %v546_v9  ;;  %v609_v22 = vmul.f32 %v1563_v8, %v1801_v21 }
 0x153   : > { %v569_v17 = vmul.f32 0.0078125, %v548_v10  ;;  %1574 = vrsqrt.f32 %v583_v7  ;;  %v630_v23 = vmul.f32 %v1915_v2, %v608_v13 }
 0x154   : > { %v1565_v24 = vpop.eup %1564  ;;  %v584_v25 = vadd.f32 1e-05, %v568_v20  ;;  %v631_v34 = vmul.f32 %v1915_v2, %v609_v22 }
 0x155   : > { %v585_v26 = vadd.f32 1e-05, %v569_v17  ;;  %v1567_v29 = vpop.eup %1566  ;;  %v550_v27 = vpop.xlane.xlu1 %549  ;;  %v652_v32 = vadd.f32 %v1922_v15, %v630_v23  ;;  %v610_v33 = vmul.f32 %v1565_v24, %v1807_v28 }
 0x156   : > { %v552_v30 = vpop.xlane.xlu0 %551  ;;  %1576 = vrsqrt.f32 %v584_v25  ;;  %v570_v37 = vmul.f32 0.0078125, %v550_v27  ;;  %v611_v40 = vmul.f32 %v1567_v29, %v1813_v35  ;;  %v653_v28 = vadd.f32 %v1922_v15, %v631_v34 }
 0x157   : > { %v571_v21 = vmul.f32 0.0078125, %v552_v30  ;;  %1578 = vrsqrt.f32 %v585_v26  ;;  %v1461_v38 = vpack.c.bf16 %v652_v32, %v651_v31  ;;  %v632_v39 = vmul.f32 %v1915_v2, %v610_v33 }
 0x158   : > { %v1569_v41 = vpop.eup %1568  ;;  %v586_v42 = vadd.f32 1e-05, %v570_v37  ;;  %v633_v53 = vmul.f32 %v1915_v2, %v611_v40 }
 0x159   : > { %v587_v45 = vadd.f32 1e-05, %v571_v21  ;;  %v1571_v46 = vpop.eup %1570  ;;  %v554_v47 = vpop.xlane.xlu1 %553  ;;  %1462 = vmatpush3.bf16.msra.mxu0 %v1461_v38  ;;  %v654_v49 = vadd.f32 %v1922_v15, %v632_v39  ;;  %v612_v50 = vmul.f32 %v1569_v41, %v1815_v36 }
 0x15a   : > { %v556_v48 = vpop.xlane.xlu0 %555  ;;  %1580 = vrsqrt.f32 %v586_v42  ;;  %v572_v54 = vmul.f32 0.0078125, %v554_v47  ;;  %1463 = vmatprep.subr.bf16.mxu0 %v1656_v14  ;;  %v613_v35 = vmul.f32 %v1571_v46, %v1821_v43  ;;  %v655_v36 = vadd.f32 %v1922_v15, %v633_v53  ;;  %v1539_v53 = vld [vmem:[%s2147_s6 + $0x28] sm:$0xff]  }
 0x15b   : > { %v573_v55 = vmul.f32 0.0078125, %v556_v48  ;;  %1582 = vrsqrt.f32 %v587_v45  ;;  %v1464_v56 = vpack.c.bf16 %v654_v49, %v653_v28  ;;  %v634_v57 = vmul.f32 %v1915_v2, %v612_v50  ;;  %v1538_v50 = vld [vmem:[%s2147_s6 + $0x20] sm:$0xff]  }
 0x15c   : > { %v1573_v58 = vpop.eup %1572  ;;  %v588_v61 = vadd.f32 1e-05, %v572_v54  ;;  %v635_v6 = vmul.f32 %v1915_v2, %v613_v35  ;;  %v1540_v54 = vld [vmem:[%s2147_s6 + $0x30] sm:$0xff]  }
 0x15d   : > { %v589_v62 = vadd.f32 1e-05, %v573_v55  ;;  %v1575_v63 = vpop.eup %1574  ;;  %v558_v0 = vpop.xlane.xlu1 %557  ;;  %1465 = vmatpush3.bf16.msra.mxu0 %v1464_v56  ;;  %v656_v1 = vadd.f32 %v1922_v15, %v634_v57  ;;  %v614_v5 = vmul.f32 %v1573_v58, %v1823_v44 }
 0x15e   : > { %1584 = vrsqrt.f32 %v588_v61  ;;  %v574_v43 = vmul.f32 0.0078125, %v558_v0  ;;  %1466 = vmatprep.subr.bf16.mxu0 %v1656_v14  ;;  %v615_v7 = vmul.f32 %v1575_v63, %v1829_v51  ;;  %v657_v20 = vadd.f32 %v1922_v15, %v635_v6  ;;  %v741_v55 = vpop.xlane.xlu0 %740  ;;  %v1541_v63 = vld [vmem:[%s2147_s6 + $0x38] sm:$0xff]   ;;  %v1542_v0 = vld [vmem:[%s2149_s8] sm:$0xff]  }
 0x15f   : > { %1586 = vrsqrt.f32 %v589_v62  ;;  %v1467_v8 = vpack.c.bf16 %v656_v1, %v655_v36  ;;  %v636_v9 = vmul.f32 %v1915_v2, %v614_v5  ;;  %v742_v35 = vmax.f32 %v741_v55, 1.0  ;;  %v1543_v36 = vld [vmem:[%s2149_s8 + $0x8] sm:$0xff]   ;;  %v1544_v1 = vld [vmem:[%s2149_s8 + $0x10] sm:$0xff]   ;;  %v1545_v5 = vld [vmem:[%s2149_s8 + $0x18] sm:$0xff]  }
 0x160   : > { %v1577_v10 = vpop.eup %1576  ;;  %v590_v13 = vadd.f32 1e-05, %v574_v43  ;;  %v637_v22 = vmul.f32 %v1915_v2, %v615_v7  ;;  %v1546_v6 = vld [vmem:[%s2149_s8 + $0x20] sm:$0xff]   ;;  %v1547_v43 = vld [vmem:[%s2149_s8 + $0x28] sm:$0xff]  }
 0x161   : > { %v1579_v16 = vpop.eup %1578  ;;  %1468 = vmatpush3.bf16.msra.mxu0 %v1467_v8  ;;  %v658_v44 = vadd.f32 %v1922_v15, %v636_v9  ;;  %v616_v17 = vmul.f32 %v1577_v10, %v1831_v52  ;;  %v762_v7 = vld [vmem:[%s2146_s5] sm:$0x1] }
 0x162   : > { %1588 = vrsqrt.f32 %v590_v13  ;;  %1469 = vmatprep.subr.bf16.mxu0 %v1656_v14  ;;  %v617_v51 = vmul.f32 %v1579_v16, %v1838_v59  ;;  %v659_v29 = vadd.f32 %v1922_v15, %v637_v22  ;;  %v1550_v22 = vld [vmem:[%s2151_s10] sm:$0xff]  }
 0x163   : > { %v1470_v23 = vpack.c.bf16 %v658_v44, %v657_v20  ;;  %v638_v24 = vmul.f32 %v1915_v2, %v616_v17  ;;  %1590 = vrcp.f32 %v742_v35  ;;  %v1548_v44 = vld [vmem:[%s2149_s8 + $0x30] sm:$0xff]   ;;  %v1549_v17 = vld [vmem:[%s2149_s8 + $0x38] sm:$0xff]  }
 0x164   : > { %v1581_v25 = vpop.eup %1580  ;;  %v639_v52 = vmul.f32 %v1915_v2, %v617_v51  ;;  %v1551_v51 = vld [vmem:[%s2151_s10 + $0x8] sm:$0xff]  }
 0x165   : > { %v1583_v26 = vpop.eup %1582  ;;  %1471 = vmatpush3.bf16.msra.mxu0 %v1470_v23  ;;  %v660_v27 = vadd.f32 %v1922_v15, %v638_v24  ;;  %v618_v30 = vmul.f32 %v1581_v25, %v1841_v60  ;;  %v1552_v23 = vld [vmem:[%s2151_s10 + $0x10] sm:$0xff]   ;;  %v1553_v24 = vld [vmem:[%s2151_s10 + $0x18] sm:$0xff]   ;;  %v1554_v25 = vld [vmem:[%s2151_s10 + $0x20] sm:$0xff]  }
 0x166   : > { %1472 = vmatprep.subr.bf16.mxu0 %v1656_v14  ;;  %v619_v31 = vmul.f32 %v1583_v26, %v1848_v3  ;;  %v661_v37 = vadd.f32 %v1922_v15, %v639_v52  ;;  %v1555_v26 = vld [vmem:[%s2151_s10 + $0x28] sm:$0xff]  }
 0x167   : > { %v1473_v32 = vpack.c.bf16 %v660_v27, %v659_v29  ;;  %v640_v59 = vmul.f32 %v1915_v2, %v618_v30  ;;  %v868_v29 = vld [vmem:[%s2148_s7] sm:$0x1] }
 0x168   : > { %v1585_v33 = vpop.eup %1584  ;;  %v641_v60 = vmul.f32 %v1915_v2, %v619_v31 }
 0x169   : > { %v1587_v34 = vpop.eup %1586  ;;  %1474 = vmatpush3.bf16.msra.mxu0 %v1473_v32  ;;  %v662_v21 = vadd.f32 %v1922_v15, %v640_v59  ;;  %v620_v38 = vmul.f32 %v1585_v33, %v1851_v4 }
 0x16a   : > { %1475 = vmatprep.subr.bf16.mxu0 %v1656_v14  ;;  %v621_v39 = vmul.f32 %v1587_v34, %v1858_v11  ;;  %v663_v42 = vadd.f32 %v1922_v15, %v641_v60  ;;  %v1556_v34 = vld [vmem:[%s2151_s10 + $0x30] sm:$0xff]  }
 0x16b   : > { %v1476_v40 = vpack.c.bf16 %v662_v21, %v661_v37  ;;  %v642_v3 = vmul.f32 %v1915_v2, %v620_v38  ;;  %v1557_v37 = vld [vmem:[%s2151_s10 + $0x38] sm:$0xff]   ;;  %v975_v21 = vld [vmem:[%s2150_s9] sm:$0x1] }
 0x16c   : > { %v1589_v41 = vpop.eup %1588  ;;  %v643_v47 = vmul.f32 %v1915_v2, %v621_v39 }
 0x16d   : > { %1477 = vmatpush3.bf16.msra.mxu0 %v1476_v40  ;;  %v664_v45 = vadd.f32 %v1922_v15, %v642_v3  ;;  %v622_v46 = vmul.f32 %v1589_v41, %v1861_v12  ;;  %v1533_v12 = vld [vmem:[%s2145_s4 + $0x38] sm:$0xff]   ;;  %v1591_v56 = vpop.eup %1590 }
 0x16e   : > { %1478 = vmatprep.subr.bf16.mxu0 %v1656_v14  ;;  %v665_v11 = vadd.f32 %v1922_v15, %v643_v47  ;;  %1395 = vmatpush3.bf16.msra.mxu1 %v1533_v12 }
 0x16f   : > { %v1479_v4 = vpack.c.bf16 %v664_v45, %v663_v42  ;;  %v644_v48 = vmul.f32 %v1915_v2, %v622_v46  ;;  %v1534_v2 = vld [vmem:[%s2147_s6] sm:$0xff]   ;;  %1420 = vmatprep.subr.bf16.mxu1 %v1658_v18 }
 0x171   : > { %1480 = vmatpush3.bf16.msra.mxu0 %v1479_v4  ;;  %v666_v28 = vadd.f32 %v1922_v15, %v644_v48  ;;  %v1537_v15 = vld [vmem:[%s2147_s6 + $0x18] sm:$0xff]  }
 0x172   : > { %1481 = vmatprep.subr.bf16.mxu0 %v1656_v14  ;;  %v1535_v14 = vld [vmem:[%s2147_s6 + $0x8] sm:$0xff]  }
 0x173   : > { %v1482_v49 = vpack.c.bf16 %v666_v28, %v665_v11 }
 0x175   : > { %1483 = vmatpush3.bf16.msra.mxu0 %v1482_v49 }
 0x176   : > { %1400 = vmatprep.subr.bf16.mxu0 %v1658_v18 }
 0x178   : > { %1378 = vmatmul.mubr.f32.vlgmr.msra.gmra.mrb[0].mxu0 %v1883_v19  ;;  %v1536_v19 = vld [vmem:[%s2147_s6 + $0x10] sm:$0xff]  }
 0x179   : > { %1416 = vmatprep.mubr.msk.bf16.mxu0 %vm1657_vm0, %v1658_v18  ;;  %1401 = vmatpush3.bf16.msra.mxu0 %v1534_v2 }
 0x17a   : > { %1402 = vmatprep.subr.bf16.mxu0 %v1658_v18 }
 0x17d   : > { %1403 = vmatpush3.bf16.msra.mxu0 %v1535_v14 }
 0x17e   : > { %1404 = vmatprep.subr.bf16.mxu0 %v1658_v18 }
 0x181   : > { %1405 = vmatpush3.bf16.msra.mxu0 %v1536_v19 }
 0x182   : > { %1406 = vmatprep.subr.bf16.mxu0 %v1658_v18 }
 0x185   : > { %1407 = vmatpush3.bf16.msra.mxu0 %v1537_v15 }
 0x186   : > { %1408 = vmatprep.subr.bf16.mxu0 %v1658_v18 }
 0x189   : > { %1409 = vmatpush3.bf16.msra.mxu0 %v1538_v50 }
 0x18a   : > { %1410 = vmatprep.subr.bf16.mxu0 %v1658_v18 }
 0x18d   : > { %1411 = vmatpush3.bf16.msra.mxu0 %v1539_v53 }
 0x18e   : > { %1412 = vmatprep.subr.bf16.mxu0 %v1658_v18 }
 0x191   : > { %1413 = vmatpush3.bf16.msra.mxu0 %v1540_v54 }
 0x192   : > { %1414 = vmatprep.subr.bf16.mxu0 %v1658_v18 }
 0x195   : > { %1415 = vmatpush3.bf16.msra.mxu0 %v1541_v63 }
 0x196   : > { %1440 = vmatprep.subr.bf16.mxu0 %v1658_v18 }
 0x24b   : > { %v734_v57 = vpop.f32.mrb[0].mxu0 }
 0x24c   : > { %v744_v58 = vmul.f32 %v1591_v56, %v734_v57  ;;  %v1379_v61 = vpop.f32.mrb[1].mxu0 }
 0x24e   : > { %v745_v62 = vpack.c.bf16 %v744_v58, %v744_v58 }
 0x250   : > { %1397 = vmatmul.mubr.bf16.vlgmr.msra.gmra.mrb[0].mxu1 %v745_v62 }
 0x251   : > { %1436 = vmatprep.mubr.msk.bf16.mxu1 %vm1657_vm0, %v1658_v18  ;;  %1421 = vmatpush3.bf16.msra.mxu1 %v1542_v0 }
 0x252   : > { %1422 = vmatprep.subr.bf16.mxu1 %v1658_v18 }
 0x255   : > { %1423 = vmatpush3.bf16.msra.mxu1 %v1543_v36 }
 0x256   : > { %1424 = vmatprep.subr.bf16.mxu1 %v1658_v18 }
 0x259   : > { %1425 = vmatpush3.bf16.msra.mxu1 %v1544_v1 }
 0x25a   : > { %1426 = vmatprep.subr.bf16.mxu1 %v1658_v18 }
 0x25d   : > { %1427 = vmatpush3.bf16.msra.mxu1 %v1545_v5 }
 0x25e   : > { %1428 = vmatprep.subr.bf16.mxu1 %v1658_v18 }
 0x261   : > { %1429 = vmatpush3.bf16.msra.mxu1 %v1546_v6 }
 0x262   : > { %1430 = vmatprep.subr.bf16.mxu1 %v1658_v18 }
 0x265   : > { %1431 = vmatpush3.bf16.msra.mxu1 %v1547_v43 }
 0x266   : > { %1432 = vmatprep.subr.bf16.mxu1 %v1658_v18 }
 0x269   : > { %1433 = vmatpush3.bf16.msra.mxu1 %v1548_v44 }
 0x26a   : > { %1434 = vmatprep.subr.bf16.mxu1 %v1658_v18 }
 0x26d   : > { %1435 = vmatpush3.bf16.msra.mxu1 %v1549_v17 }
 0x323   : > { %v845_v8 = vpop.f32.mrb[0].mxu1 }
 0x324   : > { %v846_v9 = vadd.f32 %v845_v8, %v762_v7  ;;  %v1398_v10 = vpop.f32.mrb[1].mxu1 }
 0x325   : > { %v848_v13 = vpop.f32.mrb[2].mxu1 }
 0x326   : > { %v851_v16 = vpack.c.bf16 %v846_v9, %v846_v9  ;;  %v1399_v20 = vpop.f32.mrb[3].mxu1 }
 0x328   : > { %1417 = vmatmul.mubr.bf16.vlgmr.msra.gmra.mrb[4].mxu0 %v851_v16 }
 0x329   : > { %1456 = vmatprep.mubr.msk.bf16.mxu0 %vm1657_vm0, %v1658_v18  ;;  %1441 = vmatpush3.bf16.msra.mxu0 %v1550_v22 }
 0x32a   : > { %1442 = vmatprep.subr.bf16.mxu0 %v1658_v18 }
 0x32d   : > { %1443 = vmatpush3.bf16.msra.mxu0 %v1551_v51 }
 0x32e   : > { %1444 = vmatprep.subr.bf16.mxu0 %v1658_v18 }
 0x331   : > { %1445 = vmatpush3.bf16.msra.mxu0 %v1552_v23 }
 0x332   : > { %1446 = vmatprep.subr.bf16.mxu0 %v1658_v18 }
 0x335   : > { %1447 = vmatpush3.bf16.msra.mxu0 %v1553_v24 }
 0x336   : > { %1448 = vmatprep.subr.bf16.mxu0 %v1658_v18 }
 0x339   : > { %1449 = vmatpush3.bf16.msra.mxu0 %v1554_v25 }
 0x33a   : > { %1450 = vmatprep.subr.bf16.mxu0 %v1658_v18 }
 0x33d   : > { %1451 = vmatpush3.bf16.msra.mxu0 %v1555_v26 }
 0x33e   : > { %1452 = vmatprep.subr.bf16.mxu0 %v1658_v18 }
 0x341   : > { %1453 = vmatpush3.bf16.msra.mxu0 %v1556_v34 }
 0x342   : > { %1454 = vmatprep.subr.bf16.mxu0 %v1658_v18  ;;  %v1082_v18 = vld [vmem:[%s2152_s11] sm:$0x1] }
 0x345   : > { %1455 = vmatpush3.bf16.msra.mxu0 %v1557_v37 }
 0x3fb   : > { %v951_v27 = vpop.f32.mrb[4].mxu0 }
 0x3fc   : > { %v952_v30 = vadd.f32 %v951_v27, %v868_v29  ;;  %v1418_v52 = vpop.f32.mrb[5].mxu0 }
 0x3fd   : > { %v954_v31 = vpop.f32.mrb[6].mxu0 }
 0x3fe   : > { %v957_v32 = vmax.f32 %v952_v30, 0.0  ;;  %v1419_v59 = vpop.f32.mrb[7].mxu0 }
 0x400   : > { %v958_v33 = vpack.c.bf16 %v957_v32, %v957_v32 }
 0x402   : > { %1437 = vmatmul.mubr.bf16.vlgmr.msra.gmra.mrb[4].mxu1 %v958_v33 }
 0x4d5   : > { %v1058_v38 = vpop.f32.mrb[4].mxu1 }
 0x4d6   : > { %v1059_v60 = vadd.f32 %v1058_v38, %v975_v21  ;;  %v1438_v39 = vpop.f32.mrb[5].mxu1 }
 0x4d7   : > { %v1061_v40 = vpop.f32.mrb[6].mxu1 }
 0x4d8   : > { %v1064_v3 = vmax.f32 %v1059_v60, 0.0  ;;  %v1439_v41 = vpop.f32.mrb[7].mxu1 }
 0x4da   : > { %v1065_v42 = vpack.c.bf16 %v1064_v3, %v1064_v3 }
 0x4dc   : > { %1457 = vmatmul.mubr.bf16.vlgmr.msra.gmra.mrb[8].mxu0 %v1065_v42 }
 0x5af   : > { %v1165_v45 = vpop.f32.mrb[8].mxu0 }
 0x5b0   : > { %v1166_v46 = vadd.f32 %v1165_v45, %v1082_v18  ;;  %v1458_v47 = vpop.f32.mrb[9].mxu0 }
 0x5b1   : > { %v1168_v4 = vpop.f32.mrb[10].mxu0 }
 0x5b2   : > { %1171 = vst [vmem:[%s417_s25] sm:$0x1] %v1166_v46  ;;  %v1459_v48 = vpop.f32.mrb[11].mxu0 }
 0x5b3   : > { %1605 = shalt.err (!%p1602_p4)
}
 0x5b4   : > { %s1606_s15 = scalar_lea.hbm %s2099_s16, 16  ;;  %s1610_s29 = scalar_lea.hbm %s2153_s12, 32 }
 0x5b5   : > { %p1607_p7 = scmp.ne.s32.totalorder %s2099_s16, %s1606_s15  ;;  %p1611_p10 = scmp.lt.u32.totalorder %s2099_s16, %s2153_s12 }
 0x5b6   : > { %p1612_p11 = scmp.lt.u32.totalorder %s1610_s29, %s1606_s15  ;;  %p1614_p13 = scmp.lt.u32.totalorder %s1606_s15, %s2099_s16 }
 0x5b7   : > { %p1608_p8 = pnand %p1607_p7, %p1763_p5 }
 0x5b8   : > { %p1613_p12 = por %p1612_p11, %p1611_p10 }
 0x5b9   : > { %p1609_p9 = pneg %p1608_p8 }
 0x5ba   : > { %p1615_p0 = por %p1614_p13, %p1613_p12 }
 0x5bc   : > { %p1616_p1 = pnand %p1615_p0, %p1609_p9 }
 0x5be   : > { %1619 = shalt.err (!%p1616_p1)
}
 0x5bf   : > { %1484 = dma.vmem_to_hbm [thread:$0]  (%p1763_p5), %s2101_s26, 16, %s2099_s16, %s1173_s17  }
 0x5c0 PF: > { %p1490_p2 = scmp.ge.s32.totalorder %s1654_s24, 2  ;;  %s1197_s19 = sand.u32 1, %s1642_s21  }
 0x5c1   : > { %s1198_s28 = scalar_lea.sflag [#allocation3], %s1197_s19 }
 0x5c2   : > { %p1487_p3 = pnand %p1490_p2, %p1767_p6 }
 0x5c4   : > { %1637 = dma.done.wait (!%p1487_p3), %s1198_s28, 16  }
 0x5c5   : > { %1639 = vsyncadd (!%p1487_p3), %s1198_s28, 4294967280  ;;  %p22_p4 = scmp.ge.s32.totalorder %s1750_s27, 4   ;;  %s2158_s21 = smov %s1646_s22 }
 0x5c6   : > { %s2159_s22 = smov %s1650_s23  ;;  %s2160_s23 = smov %s1761_s30 }
 0x5c7   : > { %s2161_s24 = smov %s1750_s27  ;;  %24 = sbr.rel (!%p22_p4) target bundleno = 5 (0x5), region = 106 }
 0x5ce   :  { %1202 = vsyncpa [#allocation3], 1 }
 0x5cf   :  { %1204 = vsyncpa [#allocation3 + $0x1], 1 }

// kernel: gpt2_encoder_forward.6
= control target key start
LH: loop header
LB: loop body
LE: loop exit
PB: predicated region body
PF: predicated region fallthrough
CT: control target
= control target key end

     0   :  { %s4529_s21 = smov 0   ;;  %s4531_s22 = smov 0   ;;  %s6051_s0 = inlined_call_operand.vmem [shape: f32[2,1,128], index: 0, kind: input, shape index: {}]   ;;  %s6052_s1 = inlined_call_operand.vmem [shape: f32[256,128], index: 1, kind: input, shape index: {}, may-alias: {1,12}]   ;;  %s6053_s2 = inlined_call_operand.vmem [shape: bf16[256,128], index: 2, kind: input, shape index: {}]   ;;  %s6054_s3 = inlined_call_operand.vmem [shape: bf16[256,256], index: 3, kind: input, shape index: {}]   ;;  %s6055_s4 = inlined_call_operand.vmem [shape: bf16[128,128], index: 4, kind: input, shape index: {}]   ;;  %s6056_s5 = inlined_call_operand.vmem [shape: f32[1,128], index: 5, kind: input, shape index: {}]   ;;  %s6057_s6 = inlined_call_operand.vmem [shape: f32[1,128], index: 6, kind: input, shape index: {}]   ;;  %s6058_s7 = inlined_call_operand.vmem [shape: f32[1,128], index: 7, kind: input, shape index: {}]   ;;  %s6059_s8 = inlined_call_operand.vmem [shape: bf16[128,512], index: 8, kind: input, shape index: {}]   ;;  %s6060_s9 = inlined_call_operand.vmem [shape: f32[1,512], index: 9, kind: input, shape index: {}]   ;;  %s6061_s10 = inlined_call_operand.vmem [shape: bf16[512,128], index: 10, kind: input, shape index: {}]   ;;  %s6062_s11 = inlined_call_operand.vmem [shape: f32[1,128], index: 11, kind: input, shape index: {}]   ;;  %s6063_s12 = inlined_call_operand.vmem [shape: f32[256,128], index: 12, kind: output, shape index: {}, may-alias: {1,12}]  }
   0x1   :  { %s4533_s23 = smov 0   ;;  %s4535_s24 = smov 0  }
   0x2   :  { %s4537_s25 = smov 0  }
   0x3 LB: > { %s31_s26 = sadd.s32 1, %s4450_s23  ;;  %s34_s27 = sadd.s32 1, %s4454_s24  ;;  %s4458_s25 = sphi %s4537_s25, %s22_s25   ;;  %s4454_s24 = sphi %s4535_s24, %s6177_s24   ;;  %s4450_s23 = sphi %s4533_s23, %s6176_s23   ;;  %s4446_s22 = sphi %s4531_s22, %s6175_s22   ;;  %s4442_s21 = sphi %s4529_s21, %s6174_s21  }
   0x4   : > { %p32_p0 = scmp.ge.s32.totalorder %s31_s26, 2  ;;  %p3459_p1 = scmp.ge.s32.totalorder %s4458_s25, 1 }
   0x5   : > { %p426_p2 = scmp.lt.s32.totalorder %s4458_s25, 5 }
   0x6   : > { %s6179_s26 = smov (%p32_p0, %s31_s26), 0  ;;  %s6181_s27 = smov (!%p32_p0, %s34_s27), %s4454_s24 }
   0x7   : > { %p427_p3 = pnand %p3459_p1, %p426_p2  ;;  %p36_p4 = scmp.ge.s32.totalorder %s6181_s27, 2 }
   0x9   : > { %s6183_s27 = smov (%p36_p4, %s6181_s27), 0  ;;  %430 = sbr.rel (%p427_p3) target bundleno = 3946 (0xf6a), region = 68 }
  0x10   : > { %s3466_s28 = sshll.u32 %s4446_s22, 4  ;;  %vm682_vm0 = vcmask 261120   ;;  %s3460_s29 = sshll.u32 %s4446_s22, 1  ;;  %v580_v20 = vlaneseq  ;;  %v4460_v26 = vmov 0  }
  0x11   : > { %p512_p5 = scmp.lt.s32.totalorder %s3466_s28, 31  ;;  %s492_s30 = sadd.s32 %s4442_s21, %s3460_s29 }
  0x12   : > { %s3461_s13 = sshll.u32 %s492_s30, 3  ;;  %p488_p7 = scmp.lt.s32.totalorder %s4446_s22, 1  ;;  %v4660_v22 = vshrl.u32 %v580_v20, 7  ;;  %v599_v29 = vand.u32 127, %v580_v20 }
  0x13   : > { %s6185_s28 = smov (!%p512_p5, %s3466_s28), 31  ;;  %p494_p6 = scmp.lt.s32.totalorder %s3461_s13, 31 }
  0x14   : > { %s3587_s14 = sshll.u32 %s6185_s28, 3  ;;  %s6189_s22 = smov (!%p488_p7, %s4446_s22), 1  ;;  %v583_v23 = vadd.s32 16, %v4660_v22  ;;  %v611_v24 = vsub.s32 0, %v4660_v22  ;;  %v584_v31 = vadd.s32 24, %v4660_v22  ;;  %v582_v33 = vadd.s32 8, %v4660_v22 }
  0x15   : > { %s4569_s17 = scalar_lea.vmem %s6054_s3, %s3587_s14  ;;  %s6187_s13 = smov (!%p494_p6, %s3461_s13), 31  ;;  %v587_v35 = vadd.s32 48, %v4660_v22  ;;  %v588_v37 = vadd.s32 56, %v4660_v22  ;;  %v585_v40 = vadd.s32 32, %v4660_v22  ;;  %v586_v45 = vadd.s32 40, %v4660_v22 }
  0x16   : > { %v4572_v0 = vld [vmem:[%s4569_s17] ss:$8 sps:$4 sm:$0xff]   ;;  %v4575_v1 = vld [vmem:[%s4569_s17 + $0x10] ss:$8 sps:$4 sm:$0xff]   ;;  %s3465_s18 = sshll.u32 %s6187_s13, 2  ;;  %s490_s14 = scalar_lea.vmem %s6051_s0, %s6189_s22 }
  0x17   : > { %4008 = vmatprep.subr.msk.bf16.mxu0 %vm682_vm0, %v4572_v0  ;;  %v696_v2 = vsel %vm682_vm0, %v4572_v0, 0  ;;  %v699_v3 = vsel %vm682_vm0, %v4575_v1, 0  ;;  %s4591_s28 = scalar_lea.vmem %s6053_s2, %s3465_s18  ;;  %v4594_v4 = vld [vmem:[%s4569_s17 + $0x20] ss:$8 sps:$4 sm:$0xff]   ;;  %v4606_v7 = vld [vmem:[%s4569_s17 + $0x30] ss:$8 sps:$4 sm:$0xff]  }
  0x18   : > { %3777 = vmatpush3.bf16.xpose.msra.mxu0 %v696_v2  ;;  %v4597_v5 = vld [vmem:[%s4591_s28] sm:$0xff]   ;;  %v702_v6 = vsel %vm682_vm0, %v4594_v4, 0  ;;  %v4614_v9 = vld [vmem:[%s4569_s17 + $0x50] ss:$8 sps:$4 sm:$0xff]   ;;  %v705_v11 = vsel %vm682_vm0, %v4606_v7, 0  ;;  %v4641_v17 = vld [vmem:[%s4591_s28 + $0x8] sm:$0xff]  }
  0x19   : > { %4009 = vmatprep.subr.msk.bf16.mxu0 %vm682_vm0, %v4575_v1  ;;  %3792 = vmatprep.mubr.msk.bf16.mxu0 %vm682_vm0, %v4597_v5  ;;  %v4611_v8 = vld [vmem:[%s4569_s17 + $0x40] ss:$8 sps:$4 sm:$0xff]   ;;  %v711_v13 = vsel %vm682_vm0, %v4614_v9, 0  ;;  %v4634_v15 = vld [vmem:[%s4569_s17 + $0x70] ss:$8 sps:$4 sm:$0xff]   ;;  %s3472_s15 = sshll.u32 %s4442_s21, 6 }
  0x1a   : > { %v4617_v10 = vld [vmem:[%s4569_s17 + $0x60] ss:$8 sps:$4 sm:$0xff]   ;;  %v708_v12 = vsel %vm682_vm0, %v4611_v8, 0  ;;  %v717_v16 = vsel %vm682_vm0, %v4634_v15, 0  ;;  %v4644_v18 = vld [vmem:[%s4591_s28 + $0x10] sm:$0xff]   ;;  %v4651_v19 = vld [vmem:[%s4591_s28 + $0x18] sm:$0xff]   ;;  %v589_v25 = vstv %s3472_s15 }
  0x1b   : > { %v714_v14 = vsel %vm682_vm0, %v4617_v10, 0  ;;  %v577_v21 = vld [vmem:[%s490_s14] sm:$0x1]  ;;  %v592_v28 = vadd.s32 %v589_v25, %v583_v23  ;;  %v590_v32 = vadd.s32 %v589_v25, %v4660_v22  ;;  %v593_v34 = vadd.s32 %v589_v25, %v584_v31  ;;  %s4461_s21 = smov 96   ;;  %v4772_v31 = vld [vmem:[%s4569_s17 + $0x44] ss:$8 sps:$4 sm:$0xff]  }
  0x1c   : > { %vm578_vm1 = vcmp.gt.f32.partialorder %v577_v21, 0.5  ;;  %v591_v36 = vadd.s32 %v589_v25, %v582_v33  ;;  %v596_v44 = vadd.s32 %v589_v25, %v587_v35  ;;  %v597_v51 = vadd.s32 %v589_v25, %v588_v37  ;;  %s4462_s22 = smov 64   ;;  %s4463_s16 = smov 32   ;;  %v4417_v20 = vld [vmem:[%s4569_s17 + $0x44] ss:$8 sps:$4 sm:$0xff]  }
  0x1d   : > { %v608_v27 = vsel %vm578_vm1, 1, %v4460_v26  ;;  %vm602_vm2 = vcmp.ge.s32.totalorder %v592_v28, %v599_v29  ;;  %vm600_vm4 = vcmp.ge.s32.totalorder %v590_v32, %v599_v29  ;;  %vm603_vm7 = vcmp.ge.s32.totalorder %v593_v34, %v599_v29  ;;  %v4756_v28 = vld [vmem:[%s4569_s17 + $0x14] ss:$8 sps:$4 sm:$0xff]  }
  0x1e   : > { %v612_v30 = vrot.slane %v608_v27, %v611_v24  ;;  %vm601_vm8 = vcmp.ge.s32.totalorder %v591_v36, %v599_v29  ;;  %v594_v55 = vadd.s32 %v589_v25, %v585_v40  ;;  %vm606_vm11 = vcmp.ge.s32.totalorder %v596_v44, %v599_v29  ;;  %v4753_v27 = vld [vmem:[%s4569_s17 + $0x4] ss:$8 sps:$4 sm:$0xff]   ;;  %v4777_v32 = vld [vmem:[%s4569_s17 + $0x54] ss:$8 sps:$4 sm:$0xff]  }
  0x1f   : > { %v595_v57 = vadd.s32 %v589_v25, %v586_v45  ;;  %vm607_vm12 = vcmp.ge.s32.totalorder %v597_v51, %v599_v29  ;;  %3800 = vmatprep.subr.bf16.mxu1 %v4753_v27  ;;  %v4796_v51 = vld [vmem:[%s4569_s17 + $0x64] ss:$8 sps:$4 sm:$0xff]  }
  0x20   : > { %3779 = vmatpush3.bf16.xpose.msra.mxu0 %v699_v3  ;;  %vm613_vm3 = vcmp.eq.s32.totalorder %v612_v30, 1  ;;  %vm604_vm14 = vcmp.ge.s32.totalorder %v594_v55, %v599_v29  ;;  %3801 = vmatpush3.bf16.msra.mxu1 %v4753_v27  ;;  %v4767_v30 = vld [vmem:[%s4569_s17 + $0x34] ss:$8 sps:$4 sm:$0xff]  }
  0x21   : > { %4010 = vmatprep.subr.msk.bf16.mxu0 %vm682_vm0, %v4594_v4  ;;  %vm4674_vm5 = vmand %vm602_vm2, %vm613_vm3  ;;  %vm605_vm15 = vcmp.ge.s32.totalorder %v595_v57, %v599_v29  ;;  %3802 = vmatprep.subr.bf16.mxu1 %v4756_v28  ;;  %v4762_v29 = vld [vmem:[%s4569_s17 + $0x24] ss:$8 sps:$4 sm:$0xff]  }
  0x22   : > { %vm4680_vm6 = vmand %vm600_vm4, %vm613_vm3 }
  0x23   : > { %vm4693_vm9 = vmand %vm603_vm7, %vm613_vm3 }
  0x24   : > { %vm4698_vm10 = vmand %vm601_vm8, %vm613_vm3  ;;  %3803 = vmatpush3.bf16.msra.mxu1 %v4756_v28 }
  0x25   : > { %vm4707_vm13 = vmand %vm606_vm11, %vm613_vm3  ;;  %3804 = vmatprep.subr.bf16.mxu1 %v4762_v29 }
  0x26   : > { %vm4712_vm1 = vmand %vm607_vm12, %vm613_vm3 }
  0x27   : > { %vm4721_vm2 = vmand %vm604_vm14, %vm613_vm3 }
  0x28   : > { %3781 = vmatpush3.bf16.xpose.msra.mxu0 %v702_v6  ;;  %vm4726_vm4 = vmand %vm605_vm15, %vm613_vm3  ;;  %3805 = vmatpush3.bf16.msra.mxu1 %v4762_v29  ;;  %vm1654_vm3 = vcmask 785920  }
  0x29   : > { %4011 = vmatprep.subr.msk.bf16.mxu0 %vm682_vm0, %v4606_v7  ;;  %3806 = vmatprep.subr.bf16.mxu1 %v4767_v30 }
  0x2c   : > { %3807 = vmatpush3.bf16.msra.mxu1 %v4767_v30 }
  0x2d   : > { %3808 = vmatprep.subr.bf16.mxu1 %v4772_v31 }
  0x30   : > { %3783 = vmatpush3.bf16.xpose.msra.mxu0 %v705_v11  ;;  %3809 = vmatpush3.bf16.msra.mxu1 %v4772_v31 }
  0x31   : > { %4012 = vmatprep.subr.msk.bf16.mxu0 %vm682_vm0, %v4611_v8  ;;  %3810 = vmatprep.subr.bf16.mxu1 %v4777_v32 }
  0x34   : > { %3811 = vmatpush3.bf16.msra.mxu1 %v4777_v32 }
  0x35   : > { %3812 = vmatprep.subr.bf16.mxu1 %v4796_v51 }
  0x38   : > { %3785 = vmatpush3.bf16.xpose.msra.mxu0 %v708_v12  ;;  %3813 = vmatpush3.bf16.msra.mxu1 %v4796_v51 }
  0x39   : > { %4013 = vmatprep.subr.msk.bf16.mxu0 %vm682_vm0, %v4614_v9 }
  0x40   : > { %3787 = vmatpush3.bf16.xpose.msra.mxu0 %v711_v13 }
  0x41   : > { %4014 = vmatprep.subr.msk.bf16.mxu0 %vm682_vm0, %v4617_v10 }
  0x48   : > { %3789 = vmatpush3.bf16.xpose.msra.mxu0 %v714_v14 }
  0x49   : > { %4015 = vmatprep.subr.msk.bf16.mxu0 %vm682_vm0, %v4634_v15 }
  0x50   : > { %3791 = vmatpush3.bf16.xpose.msra.mxu0 %v717_v16 }
  0x57   : > { %3793 = vmatmul.mubr.msk.bf16.vlgmr.msra.gmra.mrb[0].mxu0 %vm682_vm0, %v4641_v17 }
  0x58   : > { %3796 = vmatprep.mubr.msk.bf16.mxu0 %vm682_vm0, %v4644_v18 }
  0x5f   : > { %3797 = vmatmul.mubr.msk.bf16.gmra.mrb[4].mxu0 %vm682_vm0, %v4651_v19 }
 0x12a   : > { %v3794_v38 = vpop.f32.mrb[0].mxu0 }
 0x12b   : > { %v786_v41 = vmul.f32 0.17677669, %v3794_v38  ;;  %v753_v42 = vpop.f32.mrb[1].mxu0 }
 0x12c   : > { %v784_v46 = vmul.f32 0.17677669, %v753_v42  ;;  %v3795_v47 = vpop.f32.mrb[2].mxu0 }
 0x12d   : > { %v787_v48 = vmul.f32 0.17677669, %v3795_v47  ;;  %v756_v49 = vpop.f32.mrb[3].mxu0  ;;  %v4687_v50 = vsel %vm4674_vm5, %v786_v41, -1e+09 }
 0x12e   : > { %v785_v52 = vmul.f32 0.17677669, %v756_v49  ;;  %804 = vmax.xlane.f32.xlu1 %v4687_v50  ;;  %v792_v53 = vsel %vm4680_vm6, %v784_v46, -1e+09 }
 0x12f   : > { %800 = vmax.xlane.f32.xlu0 %v792_v53  ;;  %v795_v58 = vsel %vm4693_vm9, %v787_v48, -1e+09 }
 0x130   : > { %v793_v60 = vsel %vm4698_vm10, %v785_v52, -1e+09  ;;  %v4801_v52 = vld [vmem:[%s4569_s17 + $0x74] ss:$8 sps:$4 sm:$0xff]  }
 0x131   : > { %3814 = vmatprep.subr.bf16.mxu1 %v4801_v52 }
 0x132   : > { %v3798_v59 = vpop.f32.mrb[4].mxu0  ;;  %806 = vmax.xlane.f32.xlu1 %v795_v58  ;;  %3815 = vmatpush3.bf16.msra.mxu1 %v4801_v52 }
 0x133   : > { %v790_v62 = vmul.f32 0.17677669, %v3798_v59  ;;  %v769_v63 = vpop.f32.mrb[5].mxu0  ;;  %802 = vmax.xlane.f32.xlu0 %v793_v60 }
 0x134   : > { %v788_v2 = vmul.f32 0.17677669, %v769_v63  ;;  %v3799_v3 = vpop.f32.mrb[6].mxu0 }
 0x135   : > { %v791_v11 = vmul.f32 0.17677669, %v3799_v3  ;;  %v4718_v12 = vsel %vm4707_vm13, %v790_v62, -1e+09  ;;  %v772_v13 = vpop.f32.mrb[7].mxu0 }
 0x136   : > { %v789_v16 = vmul.f32 0.17677669, %v772_v13  ;;  %v4738_v23 = vsel %vm4721_vm2, %v788_v2, -1e+09 }
 0x137   : > { %812 = vmax.xlane.f32.xlu0 %v4718_v12  ;;  %v4733_v21 = vsel %vm4712_vm1, %v791_v11, -1e+09 }
 0x138   : > { %814 = vmax.xlane.f32.xlu1 %v4733_v21  ;;  %v4742_v25 = vsel %vm4726_vm4, %v789_v16, -1e+09 }
 0x13b   : > { %808 = vmax.xlane.f32.xlu0 %v4738_v23 }
 0x13c   : > { %810 = vmax.xlane.f32.xlu1 %v4742_v25 }
 0x14d   : > { %1007 = vrot.lane.b32.xlu1 %v4575_v1, %s4461_s21 }
 0x151   : > { %1009 = vrot.lane.b32.xlu1 %v4594_v4, %s4461_s21 }
 0x155   : > { %1011 = vrot.lane.b32.xlu1 %v4606_v7, %s4461_s21 }
 0x1bb   : > { %v805_v33 = vpop.xlane.xlu1 %804 }
 0x1bc   : > { %v818_v34 = vsub.f32 %v4687_v50, %v805_v33  ;;  %v801_v35 = vpop.xlane.xlu0 %800 }
 0x1bd   : > { %v816_v36 = vsub.f32 %v792_v53, %v801_v35 }
 0x1be   : > { %v828_v37 = vmul.f32 1.442695, %v818_v34 }
 0x1bf   : > { %v824_v38 = vmul.f32 1.442695, %v816_v36  ;;  %v807_v40 = vpop.xlane.xlu1 %806 }
 0x1c0   : > { %4192 = vpow2.f32 %v828_v37  ;;  %v819_v41 = vsub.f32 %v795_v58, %v807_v40  ;;  %v803_v42 = vpop.xlane.xlu0 %802 }
 0x1c1   : > { %v817_v44 = vsub.f32 %v793_v60, %v803_v42  ;;  %4194 = vpow2.f32 %v824_v38 }
 0x1c2   : > { %v830_v45 = vmul.f32 1.442695, %v819_v41 }
 0x1c3   : > { %v826_v46 = vmul.f32 1.442695, %v817_v44 }
 0x1c4   : > { %4196 = vpow2.f32 %v830_v45  ;;  %v813_v53 = vpop.xlane.xlu0 %812 }
 0x1c5   : > { %4198 = vpow2.f32 %v826_v46  ;;  %v815_v55 = vpop.xlane.xlu1 %814  ;;  %v822_v57 = vsub.f32 %v4718_v12, %v813_v53 }
 0x1c6   : > { %v823_v63 = vsub.f32 %v4733_v21, %v815_v55 }
 0x1c7   : > { %v836_v59 = vmul.f32 1.442695, %v822_v57 }
 0x1c8   : > { %v809_v58 = vpop.xlane.xlu0 %808  ;;  %v838_v11 = vmul.f32 1.442695, %v823_v63 }
 0x1c9   : > { %v820_v60 = vsub.f32 %v4738_v23, %v809_v58  ;;  %v811_v62 = vpop.xlane.xlu1 %810  ;;  %4200 = vpow2.f32 %v836_v59 }
 0x1ca   : > { %v4783_v47 = vpop.eup %4192  ;;  %v821_v3 = vsub.f32 %v4742_v25, %v811_v62 }
 0x1cb   : > { %844 = vadd.xlane.f32.xlu0 %v4783_v47  ;;  %v4786_v48 = vpop.eup %4194  ;;  %v832_v2 = vmul.f32 1.442695, %v820_v60 }
 0x1cc   : > { %v834_v13 = vmul.f32 1.442695, %v821_v3 }
 0x1cd   : > { %4202 = vpow2.f32 %v832_v2 }
 0x1ce   : > { %v4788_v49 = vpop.eup %4196  ;;  %4204 = vpow2.f32 %v838_v11 }
 0x1cf   : > { %846 = vadd.xlane.f32.xlu1 %v4788_v49  ;;  %840 = vadd.xlane.f32.xlu0 %v4786_v48  ;;  %v4792_v50 = vpop.eup %4198  ;;  %4206 = vpow2.f32 %v834_v13 }
 0x1d3   : > { %842 = vadd.xlane.f32.xlu1 %v4792_v50  ;;  %v4815_v16 = vpop.eup %4200 }
 0x1d7   : > { %v4818_v12 = vpop.eup %4202 }
 0x1d8   : > { %v4821_v23 = vpop.eup %4204 }
 0x1d9   : > { %v4823_v21 = vpop.eup %4206 }
 0x1e4   : > { %1015 = vrot.lane.b32.xlu1 %v4614_v9, %s4461_s21 }
 0x1e5   : > { %1005 = vrot.lane.b32.xlu0 %v4572_v0, %s4461_s21 }
 0x1e8   : > { %1017 = vrot.lane.b32.xlu1 %v4617_v10, %s4461_s21 }
 0x204   : > { %852 = vadd.xlane.f32.xlu0 %v4815_v16 }
 0x208   : > { %848 = vadd.xlane.f32.xlu0 %v4818_v12 }
 0x20c   : > { %850 = vadd.xlane.f32.xlu1 %v4823_v21  ;;  %854 = vadd.xlane.f32.xlu0 %v4821_v23 }
 0x21d   : > { %1019 = vrot.lane.b32.xlu1 %v4634_v15, %s4461_s21 }
 0x221   : > { %999 = vrot.lane.b32.xlu1 %v4641_v17, %s4461_s21 }
 0x222   : > { %1013 = vrot.lane.b32.xlu0 %v4611_v8, %s4461_s21 }
 0x225   : > { %1003 = vrot.lane.b32.xlu1 %v4651_v19, %s4461_s21 }
 0x226   : > { %997 = vrot.lane.b32.xlu0 %v4597_v5, %s4461_s21  ;;  %v1008_v5 = vpop.permute.xlu1 %1007 }
 0x227   : > { %v1037_v60 = vsel %vm682_vm0, %v1008_v5, 0 }
 0x229   : > { %1216 = vrot.lane.b32.xlu1 %v4756_v28, %s4461_s21 }
 0x22a   : > { %1001 = vrot.lane.b32.xlu0 %v4644_v18, %s4461_s21  ;;  %v1010_v25 = vpop.permute.xlu1 %1009 }
 0x22d   : > { %1220 = vrot.lane.b32.xlu1 %v4767_v30, %s4461_s21 }
 0x22e   : > { %1214 = vrot.lane.b32.xlu0 %v4753_v27, %s4461_s21  ;;  %v1012_v33 = vpop.permute.xlu1 %1011 }
 0x231   : > { %1224 = vrot.lane.b32.xlu1 %v4777_v32, %s4461_s21 }
 0x232   : > { %1218 = vrot.lane.b32.xlu0 %v4762_v29, %s4461_s21 }
 0x236   : > { %1222 = vrot.lane.b32.xlu0 %v4772_v31, %s4461_s21 }
 0x23a   : > { %1226 = vrot.lane.b32.xlu0 %v4796_v51, %s4461_s21 }
 0x258   : > { %v845_v34 = vpop.xlane.xlu0 %844 }
 0x25c   : > { %v847_v35 = vpop.xlane.xlu1 %846  ;;  %v841_v36 = vpop.xlane.xlu0 %840 }
 0x25d   : > { %4208 = vrcp.f32 %v847_v35 }
 0x25e   : > { %4210 = vrcp.f32 %v841_v36 }
 0x25f   : > { %4212 = vrcp.f32 %v845_v34 }
 0x260   : > { %v843_v37 = vpop.xlane.xlu1 %842  ;;  %v1006_v38 = vpop.permute.xlu0 %1005 }
 0x261   : > { %4214 = vrcp.f32 %v843_v37  ;;  %4016 = vmatprep.subr.msk.bf16.mxu1 %vm682_vm0, %v1006_v38  ;;  %v1034_v59 = vsel %vm682_vm0, %v1006_v38, 0 }
 0x267   : > { %v4209_v40 = vpop.eup %4208 }
 0x268   : > { %v4211_v41 = vpop.eup %4210  ;;  %v867_v45 = vmul.f32 %v4209_v40, %v4788_v49  ;;  %v1016_v49 = vpop.permute.xlu1 %1015 }
 0x269   : > { %v4213_v42 = vpop.eup %4212  ;;  %v864_v46 = vmul.f32 %v4211_v41, %v4786_v48  ;;  %v1040_v48 = vsel %vm682_vm0, %v1010_v25, 0  ;;  %v1049_v37 = vsel %vm682_vm0, %v1016_v49, 0 }
 0x26a   : > { %v866_v55 = vmul.f32 %v4213_v42, %v4783_v47  ;;  %v1043_v47 = vsel %vm682_vm0, %v1012_v33, 0 }
 0x26b   : > { %v4215_v44 = vpop.eup %4214 }
 0x26c   : > { %v865_v53 = vmul.f32 %v4215_v44, %v4792_v50  ;;  %v873_v58 = vpack.c.bf16 %v867_v45, %v866_v55  ;;  %v1018_v62 = vpop.permute.xlu1 %1017 }
 0x26e   : > { %v872_v57 = vpack.c.bf16 %v865_v53, %v864_v46 }
 0x270   : > { %3816 = vmatprep.mubr.bf16.mxu1 %v872_v57 }
 0x271   : > { %3817 = vmatmul.mubr.bf16.vlgmr.msra.gmra.mrb[0].mxu1 %v873_v58 }
 0x272   : > { %3825 = vmatpush3.bf16.xpose.msra.mxu1 %v1034_v59 }
 0x273   : > { %4017 = vmatprep.subr.msk.bf16.mxu1 %vm682_vm0, %v1008_v5 }
 0x27a   : > { %3827 = vmatpush3.bf16.xpose.msra.mxu1 %v1037_v60 }
 0x27b   : > { %4018 = vmatprep.subr.msk.bf16.mxu1 %vm682_vm0, %v1010_v25 }
 0x282   : > { %3829 = vmatpush3.bf16.xpose.msra.mxu1 %v1040_v48 }
 0x283   : > { %4019 = vmatprep.subr.msk.bf16.mxu1 %vm682_vm0, %v1012_v33 }
 0x28a   : > { %3831 = vmatpush3.bf16.xpose.msra.mxu1 %v1043_v47 }
 0x291   : > { %v853_v50 = vpop.xlane.xlu0 %852 }
 0x295   : > { %v849_v63 = vpop.xlane.xlu0 %848 }
 0x296   : > { %4216 = vrcp.f32 %v849_v63 }
 0x297   : > { %4218 = vrcp.f32 %v853_v50 }
 0x299   : > { %v851_v2 = vpop.xlane.xlu1 %850  ;;  %v855_v3 = vpop.xlane.xlu0 %854 }
 0x29a   : > { %4220 = vrcp.f32 %v851_v2 }
 0x29b   : > { %4222 = vrcp.f32 %v855_v3 }
 0x29d   : > { %v1014_v11 = vpop.permute.xlu0 %1013  ;;  %v1020_v45 = vpop.permute.xlu1 %1019 }
 0x29e   : > { %4020 = vmatprep.subr.msk.bf16.mxu1 %vm682_vm0, %v1014_v11  ;;  %v1046_v13 = vsel %vm682_vm0, %v1014_v11, 0 }
 0x29f   : > { %3833 = vmatpush3.bf16.xpose.msra.mxu1 %v1046_v13 }
 0x2a0   : > { %4021 = vmatprep.subr.msk.bf16.mxu1 %vm682_vm0, %v1016_v49  ;;  %v4217_v5 = vpop.eup %4216 }
 0x2a1   : > { %v4219_v25 = vpop.eup %4218  ;;  %v868_v35 = vmul.f32 %v4217_v5, %v4818_v12  ;;  %v998_v44 = vpop.permute.xlu0 %997  ;;  %v1052_v12 = vsel %vm682_vm0, %v1018_v62, 0 }
 0x2a2   : > { %v870_v38 = vmul.f32 %v4219_v25, %v4815_v16  ;;  %v1055_v16 = vsel %vm682_vm0, %v1020_v45, 0 }
 0x2a4   : > { %v4221_v33 = vpop.eup %4220 }
 0x2a5   : > { %v4223_v34 = vpop.eup %4222  ;;  %v869_v36 = vmul.f32 %v4221_v33, %v4823_v21  ;;  %v1002_v21 = vpop.permute.xlu0 %1001 }
 0x2a6   : > { %v871_v40 = vmul.f32 %v4223_v34, %v4821_v23  ;;  %v1000_v23 = vpop.permute.xlu1 %999 }
 0x2a7   : > { %3835 = vmatpush3.bf16.xpose.msra.mxu1 %v1049_v37  ;;  %v874_v41 = vpack.c.bf16 %v869_v36, %v868_v35 }
 0x2a8   : > { %4022 = vmatprep.subr.msk.bf16.mxu1 %vm682_vm0, %v1018_v62  ;;  %v875_v42 = vpack.c.bf16 %v871_v40, %v870_v38 }
 0x2a9   : > { %3820 = vmatprep.mubr.bf16.mxu1 %v874_v41  ;;  %v1215_v48 = vpop.permute.xlu0 %1214 }
 0x2aa   : > { %3821 = vmatmul.mubr.bf16.gmra.mrb[4].mxu1 %v875_v42  ;;  %v1004_v46 = vpop.permute.xlu1 %1003  ;;  %3848 = vmatprep.subr.bf16.mxu0 %v1215_v48 }
 0x2ab   : > { %3840 = vmatprep.mubr.msk.bf16.mxu1 %vm682_vm0, %v998_v44  ;;  %3849 = vmatpush3.bf16.msra.mxu0 %v1215_v48 }
 0x2ad   : > { %v1219_v49 = vpop.permute.xlu0 %1218 }
 0x2ae   : > { %v1217_v47 = vpop.permute.xlu1 %1216 }
 0x2af   : > { %3837 = vmatpush3.bf16.xpose.msra.mxu1 %v1052_v12  ;;  %3850 = vmatprep.subr.bf16.mxu0 %v1217_v47 }
 0x2b0   : > { %4023 = vmatprep.subr.msk.bf16.mxu1 %vm682_vm0, %v1020_v45  ;;  %3851 = vmatpush3.bf16.msra.mxu0 %v1217_v47 }
 0x2b1   : > { %3852 = vmatprep.subr.bf16.mxu0 %v1219_v49  ;;  %v1223_v62 = vpop.permute.xlu0 %1222 }
 0x2b2   : > { %v1221_v50 = vpop.permute.xlu1 %1220 }
 0x2b4   : > { %3853 = vmatpush3.bf16.msra.mxu0 %v1219_v49 }
 0x2b5   : > { %3854 = vmatprep.subr.bf16.mxu0 %v1221_v50  ;;  %v1227_v2 = vpop.permute.xlu0 %1226 }
 0x2b6   : > { %v1225_v63 = vpop.permute.xlu1 %1224 }
 0x2b7   : > { %3839 = vmatpush3.bf16.xpose.msra.mxu1 %v1055_v16 }
 0x2b8   : > { %3855 = vmatpush3.bf16.msra.mxu0 %v1221_v50 }
 0x2b9   : > { %3856 = vmatprep.subr.bf16.mxu0 %v1223_v62 }
 0x2bc   : > { %3857 = vmatpush3.bf16.msra.mxu0 %v1223_v62 }
 0x2bd   : > { %3858 = vmatprep.subr.bf16.mxu0 %v1225_v63 }
 0x2be   : > { %3841 = vmatmul.mubr.msk.bf16.vlgmr.msra.gmra.mrb[8].mxu1 %vm682_vm0, %v1000_v23 }
 0x2bf   : > { %3844 = vmatprep.mubr.msk.bf16.mxu1 %vm682_vm0, %v1002_v21 }
 0x2c0   : > { %3859 = vmatpush3.bf16.msra.mxu0 %v1225_v63 }
 0x2c1   : > { %3860 = vmatprep.subr.bf16.mxu0 %v1227_v2 }
 0x2c4   : > { %3861 = vmatpush3.bf16.msra.mxu0 %v1227_v2 }
 0x2c6   : > { %3845 = vmatmul.mubr.msk.bf16.gmra.mrb[12].mxu1 %vm682_vm0, %v1004_v46 }
 0x344   : > { %v3818_v53 = vpop.f32.mrb[0].mxu1 }
 0x345   : > { %v958_v55 = vpop.f32.mrb[1].mxu1 }
 0x346   : > { %v3819_v57 = vpop.f32.mrb[2].mxu1 }
 0x347   : > { %v990_v58 = vpack.c.bf16 %v3819_v57, %v3818_v53  ;;  %v961_v59 = vpop.f32.mrb[3].mxu1 }
 0x348   : > { %v989_v60 = vpack.c.bf16 %v961_v59, %v958_v55 }
 0x349   : > { %994 = vst.msk [vmem:[#allocation2 + $0x8] sm:$0xff] %vm682_vm0, %v990_v58 }
 0x34a   : > { %993 = vst.msk [vmem:[#allocation2] sm:$0xff] %vm682_vm0, %v989_v60 }
 0x37d   : > { %v3822_v3 = vpop.f32.mrb[4].mxu1 }
 0x37e   : > { %v974_v11 = vpop.f32.mrb[5].mxu1 }
 0x37f   : > { %v3823_v13 = vpop.f32.mrb[6].mxu1 }
 0x380   : > { %v992_v5 = vpack.c.bf16 %v3823_v13, %v3822_v3  ;;  %v977_v25 = vpop.f32.mrb[7].mxu1 }
 0x381   : > { %v991_v33 = vpack.c.bf16 %v977_v25, %v974_v11 }
 0x382   : > { %996 = vst.msk [vmem:[#allocation2 + $0x18] sm:$0xff] %vm682_vm0, %v992_v5 }
 0x383   : > { %995 = vst.msk [vmem:[#allocation2 + $0x10] sm:$0xff] %vm682_vm0, %v991_v33 }
 0x391   : > { %v3842_v34 = vpop.f32.mrb[8].mxu1 }
 0x392   : > { %v1124_v35 = vmul.f32 0.17677669, %v3842_v34  ;;  %v1091_v36 = vpop.f32.mrb[9].mxu1 }
 0x393   : > { %v3843_v37 = vpop.f32.mrb[10].mxu1  ;;  %v1122_v38 = vmul.f32 0.17677669, %v1091_v36 }
 0x394   : > { %v1094_v40 = vpop.f32.mrb[11].mxu1  ;;  %v1132_v41 = vsel %vm4674_vm5, %v1124_v35, -1e+09  ;;  %v1125_v45 = vmul.f32 0.17677669, %v3843_v37 }
 0x395   : > { %v1123_v42 = vmul.f32 0.17677669, %v1094_v40  ;;  %1142 = vmax.xlane.f32.xlu0 %v1132_v41  ;;  %v1130_v12 = vsel %vm4680_vm6, %v1122_v38, -1e+09 }
 0x396   : > { %v1133_v46 = vsel %vm4693_vm9, %v1125_v45, -1e+09 }
 0x397   : > { %v1131_v44 = vsel %vm4698_vm10, %v1123_v42, -1e+09 }
 0x398   : > { %1140 = vmax.xlane.f32.xlu1 %v1131_v44 }
 0x399   : > { %1138 = vmax.xlane.f32.xlu0 %v1130_v12  ;;  %v3846_v16 = vpop.f32.mrb[12].mxu1 }
 0x39a   : > { %v1107_v23 = vpop.f32.mrb[13].mxu1  ;;  %v1128_v59 = vmul.f32 0.17677669, %v3846_v16 }
 0x39b   : > { %v3847_v21 = vpop.f32.mrb[14].mxu1  ;;  %v1126_v47 = vmul.f32 0.17677669, %v1107_v23 }
 0x39c   : > { %v1110_v53 = vpop.f32.mrb[15].mxu1  ;;  %v1129_v55 = vmul.f32 0.17677669, %v3847_v21  ;;  %v1136_v48 = vsel %vm4707_vm13, %v1128_v59, -1e+09 }
 0x39d   : > { %1144 = vmax.xlane.f32.xlu0 %v1133_v46  ;;  %v1127_v58 = vmul.f32 0.17677669, %v1110_v53  ;;  %v1134_v49 = vsel %vm4721_vm2, %v1126_v47, -1e+09 }
 0x39e   : > { %v1137_v57 = vsel %vm4712_vm1, %v1129_v55, -1e+09 }
 0x39f   : > { %v1135_v60 = vsel %vm4726_vm4, %v1127_v58, -1e+09  ;;  %v4943_v58 = vld [vmem:[%s4591_s28] sm:$0xff]  }
 0x3a9   : > { %1228 = vrot.lane.b32.xlu1 %v4801_v52, %s4461_s21 }
 0x3b3   : > { %1336 = vrot.lane.b32.xlu0 %v4572_v0, %s4462_s22 }
 0x3cd   : > { %1152 = vmax.xlane.f32.xlu1 %v1137_v57 }
 0x3d1   : > { %1148 = vmax.xlane.f32.xlu1 %v1135_v60 }
 0x3d2   : > { %1150 = vmax.xlane.f32.xlu0 %v1136_v48 }
 0x3d6   : > { %1146 = vmax.xlane.f32.xlu0 %v1134_v49 }
 0x3e2   : > { %1338 = vrot.lane.b32.xlu1 %v4575_v1, %s4462_s22 }
 0x422   : > { %v1143_v0 = vpop.xlane.xlu0 %1142 }
 0x423   : > { %v1156_v50 = vsub.f32 %v1132_v41, %v1143_v0 }
 0x425   : > { %v1166_v62 = vmul.f32 1.442695, %v1156_v50  ;;  %v1141_v63 = vpop.xlane.xlu1 %1140 }
 0x426   : > { %v1155_v2 = vsub.f32 %v1131_v44, %v1141_v63  ;;  %v1139_v3 = vpop.xlane.xlu0 %1138 }
 0x427   : > { %4224 = vpow2.f32 %v1166_v62  ;;  %v1154_v11 = vsub.f32 %v1130_v12, %v1139_v3 }
 0x428   : > { %v1164_v13 = vmul.f32 1.442695, %v1155_v2 }
 0x429   : > { %v1162_v5 = vmul.f32 1.442695, %v1154_v11  ;;  %v1229_v25 = vpop.permute.xlu1 %1228 }
 0x42a   : > { %4226 = vpow2.f32 %v1164_v13  ;;  %3862 = vmatprep.subr.bf16.mxu0 %v1229_v25  ;;  %v1145_v33 = vpop.xlane.xlu0 %1144 }
 0x42b   : > { %4228 = vpow2.f32 %v1162_v5  ;;  %v1157_v34 = vsub.f32 %v1133_v46, %v1145_v33  ;;  %3863 = vmatpush3.bf16.msra.mxu0 %v1229_v25 }
 0x42d   : > { %v1168_v35 = vmul.f32 1.442695, %v1157_v34 }
 0x42e   : > { %v4907_v36 = vpop.permute.xlu0 %1336 }
 0x42f   : > { %4230 = vpow2.f32 %v1168_v35  ;;  %4024 = vmatprep.subr.msk.bf16.mxu0 %vm682_vm0, %v4907_v36  ;;  %v1365_v47 = vsel %vm682_vm0, %v4907_v36, 0 }
 0x431   : > { %v4911_v1 = vpop.eup %4224 }
 0x432   : > { %1182 = vadd.xlane.f32.xlu1 %v4911_v1 }
 0x434   : > { %v4227_v37 = vpop.eup %4226 }
 0x435   : > { %v4229_v38 = vpop.eup %4228  ;;  %1180 = vadd.xlane.f32.xlu0 %v4227_v37 }
 0x436   : > { %1178 = vadd.xlane.f32.xlu1 %v4229_v38 }
 0x439   : > { %v4231_v40 = vpop.eup %4230 }
 0x43a   : > { %1184 = vadd.xlane.f32.xlu1 %v4231_v40 }
 0x44b   : > { %1342 = vrot.lane.b32.xlu1 %v4606_v7, %s4462_s22  ;;  %1340 = vrot.lane.b32.xlu0 %v4594_v4, %s4462_s22 }
 0x44f   : > { %1346 = vrot.lane.b32.xlu1 %v4614_v9, %s4462_s22 }
 0x453   : > { %1348 = vrot.lane.b32.xlu1 %v4617_v10, %s4462_s22 }
 0x45a   : > { %v1153_v41 = vpop.xlane.xlu1 %1152 }
 0x45b   : > { %v1161_v16 = vsub.f32 %v1137_v57, %v1153_v41 }
 0x45d   : > { %v1176_v53 = vmul.f32 1.442695, %v1161_v16 }
 0x45e   : > { %v1149_v45 = vpop.xlane.xlu1 %1148 }
 0x45f   : > { %v1151_v42 = vpop.xlane.xlu0 %1150  ;;  %v1159_v21 = vsub.f32 %v1135_v60, %v1149_v45 }
 0x460   : > { %v1160_v44 = vsub.f32 %v1136_v48, %v1151_v42 }
 0x461   : > { %v1172_v55 = vmul.f32 1.442695, %v1159_v21 }
 0x462   : > { %v1174_v12 = vmul.f32 1.442695, %v1160_v44 }
 0x463   : > { %v1147_v23 = vpop.xlane.xlu0 %1146 }
 0x464   : > { %4232 = vpow2.f32 %v1174_v12  ;;  %v1158_v46 = vsub.f32 %v1134_v49, %v1147_v23 }
 0x466   : > { %v1170_v7 = vmul.f32 1.442695, %v1158_v46 }
 0x468   : > { %4234 = vpow2.f32 %v1170_v7 }
 0x469   : > { %4236 = vpow2.f32 %v1176_v53 }
 0x46a   : > { %4238 = vpow2.f32 %v1172_v55 }
 0x46e   : > { %v4922_v4 = vpop.eup %4232 }
 0x46f   : > { %1190 = vadd.xlane.f32.xlu0 %v4922_v4 }
 0x472   : > { %v4925_v9 = vpop.eup %4234 }
 0x473   : > { %1186 = vadd.xlane.f32.xlu0 %v4925_v9  ;;  %v4928_v10 = vpop.eup %4236 }
 0x474   : > { %v4930_v57 = vpop.eup %4238 }
 0x477   : > { %1188 = vadd.xlane.f32.xlu1 %v4930_v57  ;;  %1192 = vadd.xlane.f32.xlu0 %v4928_v10 }
 0x488   : > { %1350 = vrot.lane.b32.xlu1 %v4634_v15, %s4462_s22 }
 0x48c   : > { %1330 = vrot.lane.b32.xlu1 %v4641_v17, %s4462_s22 }
 0x48d   : > { %1344 = vrot.lane.b32.xlu0 %v4611_v8, %s4462_s22  ;;  %v1339_v8 = vpop.permute.xlu1 %1338 }
 0x48e   : > { %v1368_v49 = vsel %vm682_vm0, %v1339_v8, 0 }
 0x490   : > { %1334 = vrot.lane.b32.xlu1 %v4651_v19, %s4462_s22 }
 0x491   : > { %1328 = vrot.lane.b32.xlu0 %v4943_v58, %s4462_s22 }
 0x494   : > { %1547 = vrot.lane.b32.xlu1 %v4756_v28, %s4462_s22 }
 0x495   : > { %1332 = vrot.lane.b32.xlu0 %v4644_v18, %s4462_s22 }
 0x498   : > { %1551 = vrot.lane.b32.xlu1 %v4767_v30, %s4462_s22 }
 0x499   : > { %1545 = vrot.lane.b32.xlu0 %v4753_v27, %s4462_s22 }
 0x49c   : > { %1555 = vrot.lane.b32.xlu1 %v4777_v32, %s4462_s22 }
 0x49d   : > { %1549 = vrot.lane.b32.xlu0 %v4762_v29, %s4462_s22 }
 0x4a1   : > { %1553 = vrot.lane.b32.xlu0 %v4772_v31, %s4462_s22 }
 0x4a5   : > { %1557 = vrot.lane.b32.xlu0 %v4796_v51, %s4462_s22 }
 0x4bf   : > { %v1183_v15 = vpop.xlane.xlu1 %1182 }
 0x4c2   : > { %v1181_v17 = vpop.xlane.xlu0 %1180 }
 0x4c3   : > { %4240 = vrcp.f32 %v1181_v17  ;;  %v1179_v18 = vpop.xlane.xlu1 %1178 }
 0x4c4   : > { %4242 = vrcp.f32 %v1179_v18 }
 0x4c5   : > { %4244 = vrcp.f32 %v1183_v15 }
 0x4c6   : > { %v1341_v0 = vpop.permute.xlu0 %1340 }
 0x4c7   : > { %v1185_v19 = vpop.xlane.xlu1 %1184  ;;  %v1371_v50 = vsel %vm682_vm0, %v1341_v0, 0 }
 0x4c8   : > { %4246 = vrcp.f32 %v1185_v19 }
 0x4cb   : > { %v1343_v62 = vpop.permute.xlu1 %1342 }
 0x4cc   : > { %v1374_v63 = vsel %vm682_vm0, %v1343_v62, 0 }
 0x4cd   : > { %v4241_v27 = vpop.eup %4240 }
 0x4ce   : > { %v4243_v28 = vpop.eup %4242  ;;  %v1203_v30 = vmul.f32 %v4241_v27, %v4227_v37 }
 0x4cf   : > { %v1202_v32 = vmul.f32 %v4243_v28, %v4229_v38  ;;  %v4245_v29 = vpop.eup %4244  ;;  %v1347_v2 = vpop.permute.xlu1 %1346 }
 0x4d0   : > { %v1204_v31 = vmul.f32 %v4245_v29, %v4911_v1  ;;  %v1380_v41 = vsel %vm682_vm0, %v1347_v2, 0 }
 0x4d1   : > { %v1210_v59 = vpack.c.bf16 %v1203_v30, %v1202_v32 }
 0x4d2   : > { %v4247_v60 = vpop.eup %4246 }
 0x4d3   : > { %v1205_v48 = vmul.f32 %v4247_v60, %v4231_v40  ;;  %3864 = vmatprep.mubr.bf16.mxu0 %v1210_v59  ;;  %v1349_v11 = vpop.permute.xlu1 %1348 }
 0x4d4   : > { %v1383_v21 = vsel %vm682_vm0, %v1349_v11, 0 }
 0x4d5   : > { %v1211_v51 = vpack.c.bf16 %v1205_v48, %v1204_v31 }
 0x4d7   : > { %3865 = vmatmul.mubr.bf16.vlgmr.msra.gmra.mrb[8].mxu0 %v1211_v51 }
 0x4d8   : > { %3873 = vmatpush3.bf16.xpose.msra.mxu0 %v1365_v47 }
 0x4d9   : > { %4025 = vmatprep.subr.msk.bf16.mxu0 %vm682_vm0, %v1339_v8 }
 0x4e0   : > { %3875 = vmatpush3.bf16.xpose.msra.mxu0 %v1368_v49 }
 0x4e1   : > { %4026 = vmatprep.subr.msk.bf16.mxu0 %vm682_vm0, %v1341_v0 }
 0x4e8   : > { %3877 = vmatpush3.bf16.xpose.msra.mxu0 %v1371_v50 }
 0x4e9   : > { %4027 = vmatprep.subr.msk.bf16.mxu0 %vm682_vm0, %v1343_v62 }
 0x4f0   : > { %3879 = vmatpush3.bf16.xpose.msra.mxu0 %v1374_v63 }
 0x4fc   : > { %v1191_v3 = vpop.xlane.xlu0 %1190 }
 0x500   : > { %v1187_v13 = vpop.xlane.xlu0 %1186 }
 0x501   : > { %4248 = vrcp.f32 %v1187_v13 }
 0x502   : > { %4250 = vrcp.f32 %v1191_v3 }
 0x504   : > { %v1189_v5 = vpop.xlane.xlu1 %1188  ;;  %v1193_v25 = vpop.xlane.xlu0 %1192 }
 0x505   : > { %4252 = vrcp.f32 %v1189_v5 }
 0x506   : > { %4254 = vrcp.f32 %v1193_v25 }
 0x508   : > { %v1345_v33 = vpop.permute.xlu0 %1344  ;;  %v1351_v23 = vpop.permute.xlu1 %1350 }
 0x509   : > { %v1377_v34 = vsel %vm682_vm0, %v1345_v33, 0  ;;  %4028 = vmatprep.subr.msk.bf16.mxu0 %vm682_vm0, %v1345_v33  ;;  %v1386_v46 = vsel %vm682_vm0, %v1351_v23, 0 }
 0x50a   : > { %3881 = vmatpush3.bf16.xpose.msra.mxu0 %v1377_v34 }
 0x50b   : > { %4029 = vmatprep.subr.msk.bf16.mxu0 %vm682_vm0, %v1347_v2  ;;  %v4249_v35 = vpop.eup %4248 }
 0x50c   : > { %v4251_v36 = vpop.eup %4250  ;;  %v1206_v38 = vmul.f32 %v4249_v35, %v4925_v9  ;;  %v1329_v16 = vpop.permute.xlu0 %1328 }
 0x50d   : > { %v1208_v42 = vmul.f32 %v4251_v36, %v4922_v4  ;;  %v1331_v7 = vpop.permute.xlu1 %1330 }
 0x50f   : > { %v4253_v1 = vpop.eup %4252 }
 0x510   : > { %v4255_v37 = vpop.eup %4254  ;;  %v1207_v40 = vmul.f32 %v4253_v1, %v4930_v57  ;;  %v1333_v53 = vpop.permute.xlu0 %1332  ;;  %v4401_v1 = vld [vmem:[%s4569_s17] ss:$8 sps:$4 sm:$0xff]  }
 0x511   : > { %v1209_v44 = vmul.f32 %v4255_v37, %v4928_v10  ;;  %v1335_v55 = vpop.permute.xlu1 %1334 }
 0x512   : > { %3883 = vmatpush3.bf16.xpose.msra.mxu0 %v1380_v41  ;;  %v1212_v45 = vpack.c.bf16 %v1207_v40, %v1206_v38 }
 0x513   : > { %4030 = vmatprep.subr.msk.bf16.mxu0 %vm682_vm0, %v1349_v11  ;;  %v1213_v12 = vpack.c.bf16 %v1209_v44, %v1208_v42 }
 0x514   : > { %3868 = vmatprep.mubr.bf16.mxu0 %v1212_v45  ;;  %v1546_v17 = vpop.permute.xlu0 %1545 }
 0x515   : > { %3869 = vmatmul.mubr.bf16.gmra.mrb[12].mxu0 %v1213_v12  ;;  %3896 = vmatprep.subr.bf16.mxu1 %v1546_v17  ;;  %v1548_v18 = vpop.permute.xlu1 %1547  ;;  %v4402_v12 = vld [vmem:[%s4569_s17 + $0x10] ss:$8 sps:$4 sm:$0xff]  }
 0x516   : > { %3888 = vmatprep.mubr.msk.bf16.mxu0 %vm682_vm0, %v1329_v16  ;;  %3897 = vmatpush3.bf16.msra.mxu1 %v1546_v17 }
 0x517   : > { %3898 = vmatprep.subr.bf16.mxu1 %v1548_v18 }
 0x518   : > { %v1550_v19 = vpop.permute.xlu0 %1549 }
 0x519   : > { %v1552_v27 = vpop.permute.xlu1 %1551 }
 0x51a   : > { %3885 = vmatpush3.bf16.xpose.msra.mxu0 %v1383_v21  ;;  %3899 = vmatpush3.bf16.msra.mxu1 %v1548_v18 }
 0x51b   : > { %4031 = vmatprep.subr.msk.bf16.mxu0 %vm682_vm0, %v1351_v23  ;;  %3900 = vmatprep.subr.bf16.mxu1 %v1550_v19 }
 0x51c   : > { %v1554_v28 = vpop.permute.xlu0 %1553 }
 0x51d   : > { %v1556_v30 = vpop.permute.xlu1 %1555 }
 0x51e   : > { %3901 = vmatpush3.bf16.msra.mxu1 %v1550_v19 }
 0x51f   : > { %3902 = vmatprep.subr.bf16.mxu1 %v1552_v27 }
 0x520   : > { %v1558_v32 = vpop.permute.xlu0 %1557 }
 0x522   : > { %3887 = vmatpush3.bf16.xpose.msra.mxu0 %v1386_v46  ;;  %3903 = vmatpush3.bf16.msra.mxu1 %v1552_v27 }
 0x523   : > { %3904 = vmatprep.subr.bf16.mxu1 %v1554_v28 }
 0x526   : > { %3905 = vmatpush3.bf16.msra.mxu1 %v1554_v28 }
 0x527   : > { %3906 = vmatprep.subr.bf16.mxu1 %v1556_v30 }
 0x529   : > { %3889 = vmatmul.mubr.msk.bf16.vlgmr.msra.gmra.mrb[16].mxu0 %vm682_vm0, %v1331_v7 }
 0x52a   : > { %3892 = vmatprep.mubr.msk.bf16.mxu0 %vm682_vm0, %v1333_v53  ;;  %3907 = vmatpush3.bf16.msra.mxu1 %v1556_v30 }
 0x52b   : > { %3908 = vmatprep.subr.bf16.mxu1 %v1558_v32 }
 0x52e   : > { %3909 = vmatpush3.bf16.msra.mxu1 %v1558_v32 }
 0x531   : > { %3893 = vmatmul.mubr.msk.bf16.gmra.mrb[20].mxu0 %vm682_vm0, %v1335_v55 }
 0x5aa   : > { %v4988_v4 = vpop.f32.mrb[8].mxu0 }
 0x5ab   : > { %v4990_v9 = vpop.f32.mrb[9].mxu0 }
 0x5ac   : > { %v4992_v10 = vpop.f32.mrb[10].mxu0 }
 0x5ad   : > { %v1304_v57 = vpack.c.bf16 %v4992_v10, %v4988_v4  ;;  %v4996_v8 = vpop.f32.mrb[11].mxu0 }
 0x5ae   : > { %v1303_v15 = vpack.c.bf16 %v4996_v8, %v4990_v9 }
 0x5e8   : > { %v5000_v29 = vpop.f32.mrb[12].mxu0 }
 0x5e9   : > { %v5002_v59 = vpop.f32.mrb[13].mxu0 }
 0x5ea   : > { %v5004_v60 = vpop.f32.mrb[14].mxu0 }
 0x5eb   : > { %v1306_v31 = vpack.c.bf16 %v5004_v60, %v5000_v29  ;;  %v5008_v48 = vpop.f32.mrb[15].mxu0 }
 0x5ec   : > { %v1305_v51 = vpack.c.bf16 %v5008_v48, %v5002_v59 }
 0x5fc   : > { %v3890_v47 = vpop.f32.mrb[16].mxu0 }
 0x5fd   : > { %v1455_v49 = vmul.f32 0.17677669, %v3890_v47  ;;  %v1422_v0 = vpop.f32.mrb[17].mxu0 }
 0x5fe   : > { %v3891_v50 = vpop.f32.mrb[18].mxu0  ;;  %v1453_v62 = vmul.f32 0.17677669, %v1422_v0 }
 0x5ff   : > { %v1425_v63 = vpop.f32.mrb[19].mxu0  ;;  %v1463_v2 = vsel %vm4674_vm5, %v1455_v49, -1e+09  ;;  %v1456_v13 = vmul.f32 0.17677669, %v3891_v50 }
 0x600   : > { %v1454_v3 = vmul.f32 0.17677669, %v1425_v63  ;;  %1473 = vmax.xlane.f32.xlu0 %v1463_v2  ;;  %v1461_v5 = vsel %vm4680_vm6, %v1453_v62, -1e+09  ;;  %v4403_v62 = vld [vmem:[%s4569_s17 + $0x30] ss:$8 sps:$4 sm:$0xff]  }
 0x601   : > { %v1464_v35 = vsel %vm4693_vm9, %v1456_v13, -1e+09  ;;  %v4404_v63 = vld [vmem:[%s4569_s17 + $0x20] ss:$8 sps:$4 sm:$0xff]  }
 0x602   : > { %v1462_v11 = vsel %vm4698_vm10, %v1454_v3, -1e+09  ;;  %v4406_v3 = vld [vmem:[%s4569_s17 + $0x60] ss:$8 sps:$4 sm:$0xff]  }
 0x603   : > { %1471 = vmax.xlane.f32.xlu1 %v1462_v11 }
 0x604   : > { %1469 = vmax.xlane.f32.xlu0 %v1461_v5  ;;  %v3894_v25 = vpop.f32.mrb[20].mxu0 }
 0x605   : > { %v1438_v33 = vpop.f32.mrb[21].mxu0  ;;  %v1459_v41 = vmul.f32 0.17677669, %v3894_v25 }
 0x606   : > { %v3895_v34 = vpop.f32.mrb[22].mxu0  ;;  %v1457_v45 = vmul.f32 0.17677669, %v1438_v33 }
 0x607   : > { %v1441_v36 = vpop.f32.mrb[23].mxu0  ;;  %v1460_v37 = vmul.f32 0.17677669, %v3895_v34  ;;  %v1467_v44 = vsel %vm4707_vm13, %v1459_v41, -1e+09 }
 0x608   : > { %1475 = vmax.xlane.f32.xlu0 %v1464_v35  ;;  %v1458_v40 = vmul.f32 0.17677669, %v1441_v36 }
 0x609   : > { %v1468_v38 = vsel %vm4712_vm1, %v1460_v37, -1e+09 }
 0x60a   : > { %v1466_v42 = vsel %vm4726_vm4, %v1458_v40, -1e+09 }
 0x614   : > { %1559 = vrot.lane.b32.xlu1 %v4801_v52, %s4462_s22  ;;  %v1465_v52 = vsel %vm4721_vm2, %v1457_v45, -1e+09 }
 0x61e   : > { %1667 = vrot.lane.b32.xlu0 %v4401_v1, %s4463_s16 }
 0x638   : > { %1483 = vmax.xlane.f32.xlu1 %v1468_v38 }
 0x63c   : > { %1479 = vmax.xlane.f32.xlu1 %v1466_v42 }
 0x63d   : > { %1481 = vmax.xlane.f32.xlu0 %v1467_v44 }
 0x641   : > { %1477 = vmax.xlane.f32.xlu0 %v1465_v52 }
 0x64d   : > { %1669 = vrot.lane.b32.xlu1 %v4402_v12, %s4463_s16  ;;  %v4408_v12 = vld [vmem:[%s4591_s28 + $0x8] sm:$0xff]  }
 0x68d   : > { %v1474_v16 = vpop.xlane.xlu0 %1473 }
 0x68e   : > { %v1487_v23 = vsub.f32 %v1463_v2, %v1474_v16  ;;  %v4405_v2 = vld [vmem:[%s4569_s17 + $0x50] ss:$8 sps:$4 sm:$0xff]   ;;  %v4409_v16 = vld [vmem:[%s4569_s17 + $0x40] ss:$8 sps:$4 sm:$0xff]  }
 0x690   : > { %v1497_v21 = vmul.f32 1.442695, %v1487_v23  ;;  %v1472_v46 = vpop.xlane.xlu1 %1471  ;;  %v4410_v23 = vld [vmem:[%s4591_s28 + $0x18] sm:$0xff]  }
 0x691   : > { %v1486_v7 = vsub.f32 %v1462_v11, %v1472_v46  ;;  %v1470_v53 = vpop.xlane.xlu0 %1469  ;;  %v4412_v46 = vld [vmem:[%s4591_s28 + $0x10] sm:$0xff]  }
 0x692   : > { %4256 = vpow2.f32 %v1497_v21  ;;  %v1485_v55 = vsub.f32 %v1461_v5, %v1470_v53  ;;  %v4411_v21 = vld [vmem:[%s4569_s17 + $0x14] ss:$8 sps:$4 sm:$0xff]  }
 0x693   : > { %v1495_v17 = vmul.f32 1.442695, %v1486_v7  ;;  %v4413_v7 = vld [vmem:[%s4569_s17 + $0x4] ss:$8 sps:$4 sm:$0xff]  }
 0x694   : > { %v1493_v18 = vmul.f32 1.442695, %v1485_v55  ;;  %v1560_v19 = vpop.permute.xlu1 %1559 }
 0x695   : > { %4258 = vpow2.f32 %v1495_v17  ;;  %3910 = vmatprep.subr.bf16.mxu1 %v1560_v19  ;;  %v1476_v27 = vpop.xlane.xlu0 %1475 }
 0x696   : > { %4260 = vpow2.f32 %v1493_v18  ;;  %v1488_v28 = vsub.f32 %v1464_v35, %v1476_v27  ;;  %3911 = vmatpush3.bf16.msra.mxu1 %v1560_v19 }
 0x698   : > { %v1499_v30 = vmul.f32 1.442695, %v1488_v28 }
 0x699   : > { %v5034_v32 = vpop.permute.xlu0 %1667 }
 0x69a   : > { %4262 = vpow2.f32 %v1499_v30  ;;  %4032 = vmatprep.subr.msk.bf16.mxu1 %vm682_vm0, %v5034_v32 }
 0x69c   : > { %v5038_v47 = vpop.eup %4256 }
 0x69d   : > { %1513 = vadd.xlane.f32.xlu1 %v5038_v47 }
 0x69f   : > { %v5041_v49 = vpop.eup %4258 }
 0x6a0   : > { %v5043_v0 = vpop.eup %4260  ;;  %1511 = vadd.xlane.f32.xlu0 %v5041_v49 }
 0x6a1   : > { %1509 = vadd.xlane.f32.xlu1 %v5043_v0 }
 0x6a4   : > { %v5047_v50 = vpop.eup %4262 }
 0x6a5   : > { %1515 = vadd.xlane.f32.xlu1 %v5047_v50 }
 0x6b6   : > { %1673 = vrot.lane.b32.xlu1 %v4403_v62, %s4463_s16  ;;  %1671 = vrot.lane.b32.xlu0 %v4404_v63, %s4463_s16 }
 0x6ba   : > { %1677 = vrot.lane.b32.xlu1 %v4405_v2, %s4463_s16 }
 0x6be   : > { %1679 = vrot.lane.b32.xlu1 %v4406_v3, %s4463_s16 }
 0x6c5   : > { %v1484_v11 = vpop.xlane.xlu1 %1483 }
 0x6c6   : > { %v1492_v34 = vsub.f32 %v1468_v38, %v1484_v11 }
 0x6c8   : > { %v1507_v40 = vmul.f32 1.442695, %v1492_v34 }
 0x6c9   : > { %v1480_v25 = vpop.xlane.xlu1 %1479 }
 0x6ca   : > { %v1482_v13 = vpop.xlane.xlu0 %1481  ;;  %v1490_v36 = vsub.f32 %v1466_v42, %v1480_v25 }
 0x6cb   : > { %v1491_v5 = vsub.f32 %v1467_v44, %v1482_v13 }
 0x6cc   : > { %v1503_v41 = vmul.f32 1.442695, %v1490_v36 }
 0x6cd   : > { %v1505_v33 = vmul.f32 1.442695, %v1491_v5  ;;  %v1670_v53 = vpop.permute.xlu1 %1669  ;;  %v1696_v5 = vsel %vm682_vm0, %v5034_v32, 0 }
 0x6ce   : > { %v1478_v35 = vpop.xlane.xlu0 %1477 }
 0x6cf   : > { %4264 = vpow2.f32 %v1505_v33  ;;  %v1489_v1 = vsub.f32 %v1465_v52, %v1478_v35  ;;  %v4407_v52 = vld [vmem:[%s4569_s17 + $0x70] ss:$8 sps:$4 sm:$0xff]  }
 0x6d1   : > { %v1501_v37 = vmul.f32 1.442695, %v1489_v1 }
 0x6d3   : > { %4266 = vpow2.f32 %v1501_v37 }
 0x6d4   : > { %4268 = vpow2.f32 %v1507_v40 }
 0x6d5   : > { %4270 = vpow2.f32 %v1503_v41 }
 0x6d9   : > { %v5058_v45 = vpop.eup %4264 }
 0x6da   : > { %1521 = vadd.xlane.f32.xlu0 %v5058_v45 }
 0x6dd   : > { %v5061_v38 = vpop.eup %4266 }
 0x6de   : > { %1517 = vadd.xlane.f32.xlu0 %v5061_v38  ;;  %v5064_v42 = vpop.eup %4268 }
 0x6df   : > { %v5066_v44 = vpop.eup %4270 }
 0x6e2   : > { %1519 = vadd.xlane.f32.xlu1 %v5066_v44  ;;  %1523 = vadd.xlane.f32.xlu0 %v5064_v42 }
 0x6f3   : > { %1681 = vrot.lane.b32.xlu1 %v4407_v52, %s4463_s16 }
 0x6f7   : > { %1661 = vrot.lane.b32.xlu1 %v4408_v12, %s4463_s16 }
 0x6f8   : > { %1675 = vrot.lane.b32.xlu0 %v4409_v16, %s4463_s16 }
 0x6fb   : > { %1665 = vrot.lane.b32.xlu1 %v4410_v23, %s4463_s16 }
 0x6fc   : > { %1659 = vrot.lane.b32.xlu0 %v4943_v58, %s4463_s16 }
 0x6ff   : > { %1878 = vrot.lane.b32.xlu1 %v4411_v21, %s4463_s16 }
 0x700   : > { %1663 = vrot.lane.b32.xlu0 %v4412_v46, %s4463_s16 }
 0x704   : > { %1876 = vrot.lane.b32.xlu0 %v4413_v7, %s4463_s16 }
 0x72a   : > { %v1514_v55 = vpop.xlane.xlu1 %1513 }
 0x72d   : > { %v1512_v17 = vpop.xlane.xlu0 %1511 }
 0x72e   : > { %4272 = vrcp.f32 %v1512_v17  ;;  %v1510_v18 = vpop.xlane.xlu1 %1509 }
 0x72f   : > { %4274 = vrcp.f32 %v1510_v18 }
 0x730   : > { %4276 = vrcp.f32 %v1514_v55 }
 0x731   : > { %v1672_v25 = vpop.permute.xlu0 %1671 }
 0x732   : > { %v1516_v19 = vpop.xlane.xlu1 %1515 }
 0x733   : > { %4278 = vrcp.f32 %v1516_v19 }
 0x738   : > { %v4273_v27 = vpop.eup %4272 }
 0x739   : > { %v4275_v58 = vpop.eup %4274  ;;  %v1534_v28 = vmul.f32 %v4273_v27, %v5041_v49  ;;  %v1699_v49 = vsel %vm682_vm0, %v1670_v53, 0 }
 0x73a   : > { %v1533_v30 = vmul.f32 %v4275_v58, %v5043_v0  ;;  %v4277_v62 = vpop.eup %4276  ;;  %v1702_v0 = vsel %vm682_vm0, %v1672_v25, 0 }
 0x73b   : > { %v1535_v3 = vmul.f32 %v4277_v62, %v5038_v47  ;;  %v1674_v47 = vpop.permute.xlu1 %1673 }
 0x73c   : > { %v1541_v63 = vpack.c.bf16 %v1534_v28, %v1533_v30 }
 0x73d   : > { %v4279_v2 = vpop.eup %4278 }
 0x73e   : > { %v1536_v11 = vmul.f32 %v4279_v2, %v5047_v50  ;;  %3912 = vmatprep.mubr.bf16.mxu1 %v1541_v63  ;;  %v1705_v50 = vsel %vm682_vm0, %v1674_v47, 0 }
 0x73f   : > { %v1678_v32 = vpop.permute.xlu1 %1677 }
 0x740   : > { %v1542_v13 = vpack.c.bf16 %v1536_v11, %v1535_v3  ;;  %v1711_v46 = vsel %vm682_vm0, %v1678_v32, 0 }
 0x742   : > { %3913 = vmatmul.mubr.bf16.vlgmr.msra.gmra.mrb[16].mxu1 %v1542_v13 }
 0x743   : > { %3921 = vmatpush3.bf16.xpose.msra.mxu1 %v1696_v5  ;;  %v1680_v34 = vpop.permute.xlu1 %1679 }
 0x744   : > { %4033 = vmatprep.subr.msk.bf16.mxu1 %vm682_vm0, %v1670_v53 }
 0x74b   : > { %3923 = vmatpush3.bf16.xpose.msra.mxu1 %v1699_v49 }
 0x74c   : > { %4034 = vmatprep.subr.msk.bf16.mxu1 %vm682_vm0, %v1672_v25 }
 0x753   : > { %3925 = vmatpush3.bf16.xpose.msra.mxu1 %v1702_v0 }
 0x754   : > { %4035 = vmatprep.subr.msk.bf16.mxu1 %vm682_vm0, %v1674_v47 }
 0x75b   : > { %3927 = vmatpush3.bf16.xpose.msra.mxu1 %v1705_v50 }
 0x767   : > { %v1522_v33 = vpop.xlane.xlu0 %1521 }
 0x76b   : > { %v1518_v35 = vpop.xlane.xlu0 %1517 }
 0x76c   : > { %4280 = vrcp.f32 %v1518_v35 }
 0x76d   : > { %4282 = vrcp.f32 %v1522_v33 }
 0x76f   : > { %v1520_v36 = vpop.xlane.xlu1 %1519  ;;  %v1524_v1 = vpop.xlane.xlu0 %1523 }
 0x770   : > { %4284 = vrcp.f32 %v1520_v36 }
 0x771   : > { %4286 = vrcp.f32 %v1524_v1 }
 0x773   : > { %v1676_v37 = vpop.permute.xlu0 %1675  ;;  %v1682_v19 = vpop.permute.xlu1 %1681 }
 0x774   : > { %v1708_v40 = vsel %vm682_vm0, %v1676_v37, 0  ;;  %4036 = vmatprep.subr.msk.bf16.mxu1 %vm682_vm0, %v1676_v37 }
 0x775   : > { %3929 = vmatpush3.bf16.xpose.msra.mxu1 %v1708_v40 }
 0x776   : > { %4037 = vmatprep.subr.msk.bf16.mxu1 %vm682_vm0, %v1678_v32  ;;  %v4281_v41 = vpop.eup %4280 }
 0x777   : > { %v4283_v52 = vpop.eup %4282  ;;  %v1537_v23 = vmul.f32 %v4281_v41, %v5061_v38  ;;  %v1660_v18 = vpop.permute.xlu0 %1659  ;;  %v1714_v38 = vsel %vm682_vm0, %v1680_v34, 0 }
 0x778   : > { %v1539_v7 = vmul.f32 %v4283_v52, %v5058_v45  ;;  %v1717_v45 = vsel %vm682_vm0, %v1682_v19, 0 }
 0x77a   : > { %v4285_v12 = vpop.eup %4284 }
 0x77b   : > { %v4287_v16 = vpop.eup %4286  ;;  %v1538_v21 = vmul.f32 %v4285_v12, %v5066_v44  ;;  %v1664_v44 = vpop.permute.xlu0 %1663 }
 0x77c   : > { %v1540_v53 = vmul.f32 %v4287_v16, %v5064_v42  ;;  %v1662_v42 = vpop.permute.xlu1 %1661 }
 0x77d   : > { %3931 = vmatpush3.bf16.xpose.msra.mxu1 %v1711_v46  ;;  %v1543_v55 = vpack.c.bf16 %v1538_v21, %v1537_v23 }
 0x77e   : > { %4038 = vmatprep.subr.msk.bf16.mxu1 %vm682_vm0, %v1680_v34  ;;  %v1544_v17 = vpack.c.bf16 %v1540_v53, %v1539_v7  ;;  %v4414_v53 = vld [vmem:[%s4569_s17 + $0x24] ss:$8 sps:$4 sm:$0xff]  }
 0x77f   : > { %3916 = vmatprep.mubr.bf16.mxu1 %v1543_v55  ;;  %v1877_v3 = vpop.permute.xlu0 %1876  ;;  %v4415_v55 = vld [vmem:[%s4569_s17 + $0x54] ss:$8 sps:$4 sm:$0xff]  }
 0x780   : > { %3917 = vmatmul.mubr.bf16.gmra.mrb[20].mxu1 %v1544_v17  ;;  %v1666_v27 = vpop.permute.xlu1 %1665  ;;  %3944 = vmatprep.subr.bf16.mxu0 %v1877_v3 }
 0x781   : > { %3936 = vmatprep.mubr.msk.bf16.mxu1 %vm682_vm0, %v1660_v18  ;;  %3945 = vmatpush3.bf16.msra.mxu0 %v1877_v3 }
 0x784   : > { %v1879_v11 = vpop.permute.xlu1 %1878 }
 0x785   : > { %3933 = vmatpush3.bf16.xpose.msra.mxu1 %v1714_v38  ;;  %3946 = vmatprep.subr.bf16.mxu0 %v1879_v11 }
 0x786   : > { %4039 = vmatprep.subr.msk.bf16.mxu1 %vm682_vm0, %v1682_v19  ;;  %3947 = vmatpush3.bf16.msra.mxu0 %v1879_v11  ;;  %v4416_v19 = vld [vmem:[%s4569_s17 + $0x34] ss:$8 sps:$4 sm:$0xff]  }
 0x78d   : > { %3935 = vmatpush3.bf16.xpose.msra.mxu1 %v1717_v45 }
 0x794   : > { %3937 = vmatmul.mubr.msk.bf16.vlgmr.msra.gmra.mrb[24].mxu1 %vm682_vm0, %v1662_v42 }
 0x795   : > { %3940 = vmatprep.mubr.msk.bf16.mxu1 %vm682_vm0, %v1664_v44 }
 0x79c   : > { %3941 = vmatmul.mubr.msk.bf16.gmra.mrb[28].mxu1 %vm682_vm0, %v1666_v27  ;;  %vm1323_vm0 = vcmask 523520  }
 0x79d   : > { %2507 = vmatprep.mubr.bf16.mxu1 %v4460_v26 }
 0x815   : > { %v5115_v58 = vpop.f32.mrb[16].mxu1 }
 0x816   : > { %v5117_v28 = vpop.f32.mrb[17].mxu1 }
 0x817   : > { %v5119_v30 = vpop.f32.mrb[18].mxu1 }
 0x818   : > { %v1635_v62 = vpack.c.bf16 %v5119_v30, %v5115_v58  ;;  %v5123_v63 = vpop.f32.mrb[19].mxu1 }
 0x819   : > { %v1634_v2 = vpack.c.bf16 %v5123_v63, %v5117_v28 }
 0x853   : > { %v5127_v13 = vpop.f32.mrb[20].mxu1 }
 0x854   : > { %v5129_v5 = vpop.f32.mrb[21].mxu1 }
 0x855   : > { %v5131_v49 = vpop.f32.mrb[22].mxu1 }
 0x856   : > { %v1637_v25 = vpack.c.bf16 %v5131_v49, %v5127_v13  ;;  %v5135_v0 = vpop.f32.mrb[23].mxu1 }
 0x857   : > { %v1636_v47 = vpack.c.bf16 %v5135_v0, %v5129_v5 }
 0x867   : > { %v3938_v50 = vpop.f32.mrb[24].mxu1 }
 0x868   : > { %v1786_v32 = vmul.f32 0.17677669, %v3938_v50  ;;  %v1753_v33 = vpop.f32.mrb[25].mxu1 }
 0x869   : > { %v3939_v34 = vpop.f32.mrb[26].mxu1  ;;  %v1784_v35 = vmul.f32 0.17677669, %v1753_v33 }
 0x86a   : > { %v1756_v36 = vpop.f32.mrb[27].mxu1  ;;  %v1794_v1 = vsel %vm4674_vm5, %v1786_v32, -1e+09  ;;  %v1787_v41 = vmul.f32 0.17677669, %v3939_v34  ;;  %vm1985_vm5 = vcmask 1048320  }
 0x86b   : > { %v1785_v37 = vmul.f32 0.17677669, %v1756_v36  ;;  %1804 = vmax.xlane.f32.xlu0 %v1794_v1  ;;  %v1792_v52 = vsel %vm4680_vm6, %v1784_v35, -1e+09 }
 0x86c   : > { %v1795_v39 = vsel %vm4693_vm9, %v1787_v41, -1e+09 }
 0x86d   : > { %v1793_v40 = vsel %vm4698_vm10, %v1785_v37, -1e+09 }
 0x86e   : > { %1802 = vmax.xlane.f32.xlu1 %v1793_v40 }
 0x86f   : > { %1800 = vmax.xlane.f32.xlu0 %v1792_v52  ;;  %v3942_v12 = vpop.f32.mrb[28].mxu1 }
 0x870   : > { %v1769_v16 = vpop.f32.mrb[29].mxu1  ;;  %v1790_v54 = vmul.f32 0.17677669, %v3942_v12 }
 0x871   : > { %v3943_v23 = vpop.f32.mrb[30].mxu1  ;;  %v1788_v18 = vmul.f32 0.17677669, %v1769_v16 }
 0x872   : > { %v1791_v21 = vmul.f32 0.17677669, %v3943_v23  ;;  %v1772_v46 = vpop.f32.mrb[31].mxu1  ;;  %v1798_v17 = vsel %vm4707_vm13, %v1790_v54, -1e+09 }
 0x873   : > { %1806 = vmax.xlane.f32.xlu0 %v1795_v39  ;;  %v1789_v56 = vmul.f32 0.17677669, %v1772_v46  ;;  %v1796_v6 = vsel %vm4721_vm2, %v1788_v18, -1e+09 }
 0x874   : > { %v1799_v7 = vsel %vm4712_vm1, %v1791_v21, -1e+09 }
 0x875   : > { %1814 = vmax.xlane.f32.xlu1 %v1799_v7  ;;  %v1797_v43 = vsel %vm4726_vm4, %v1789_v56, -1e+09 }
 0x879   : > { %1810 = vmax.xlane.f32.xlu1 %v1797_v43 }
 0x889   : > { %1880 = vrot.lane.b32.xlu0 %v4414_v53, %s4463_s16 }
 0x88a   : > { %1886 = vrot.lane.b32.xlu1 %v4415_v55, %s4463_s16 }
 0x8a8   : > { %1812 = vmax.xlane.f32.xlu0 %v1798_v17 }
 0x8ac   : > { %1808 = vmax.xlane.f32.xlu0 %v1796_v6 }
 0x8c2   : > { %1882 = vrot.lane.b32.xlu0 %v4416_v19, %s4463_s16 }
 0x8c6   : > { %1884 = vrot.lane.b32.xlu0 %v4417_v20, %s4463_s16  ;;  %v4418_v20 = vld [vmem:[%s4569_s17 + $0x74] ss:$8 sps:$4 sm:$0xff]  }
 0x8f8   : > { %v1805_v38 = vpop.xlane.xlu0 %1804 }
 0x8f9   : > { %v1818_v45 = vsub.f32 %v1794_v1, %v1805_v38  ;;  %v4419_v38 = vld [vmem:[%s4569_s17 + $0x64] ss:$8 sps:$4 sm:$0xff]  }
 0x8fb   : > { %v1828_v42 = vmul.f32 1.442695, %v1818_v45  ;;  %v1803_v61 = vpop.xlane.xlu1 %1802 }
 0x8fc   : > { %v1801_v44 = vpop.xlane.xlu0 %1800  ;;  %v1817_v50 = vsub.f32 %v1793_v40, %v1803_v61 }
 0x8fd   : > { %4288 = vpow2.f32 %v1828_v42  ;;  %v1816_v27 = vsub.f32 %v1792_v52, %v1801_v44 }
 0x8fe   : > { %v1826_v34 = vmul.f32 1.442695, %v1817_v50 }
 0x8ff   : > { %v1824_v3 = vmul.f32 1.442695, %v1816_v27 }
 0x900   : > { %v1807_v11 = vpop.xlane.xlu0 %1806 }
 0x901   : > { %4290 = vpow2.f32 %v1824_v3  ;;  %v1819_v14 = vsub.f32 %v1795_v39, %v1807_v11 }
 0x902   : > { %v1815_v40 = vpop.xlane.xlu1 %1814 }
 0x903   : > { %v1830_v32 = vmul.f32 1.442695, %v1819_v14  ;;  %v1823_v41 = vsub.f32 %v1799_v7, %v1815_v40 }
 0x904   : > { %v1881_v33 = vpop.permute.xlu0 %1880 }
 0x905   : > { %4292 = vpow2.f32 %v1830_v32  ;;  %3948 = vmatprep.subr.bf16.mxu0 %v1881_v33  ;;  %v1838_v21 = vmul.f32 1.442695, %v1823_v41 }
 0x906   : > { %3949 = vmatpush3.bf16.msra.mxu0 %v1881_v33  ;;  %4294 = vpow2.f32 %v1826_v34  ;;  %v1811_v16 = vpop.xlane.xlu1 %1810 }
 0x907   : > { %v5163_v35 = vpop.eup %4288  ;;  %v1821_v46 = vsub.f32 %v1797_v43, %v1811_v16 }
 0x908   : > { %1844 = vadd.xlane.f32.xlu1 %v5163_v35 }
 0x909   : > { %v1834_v54 = vmul.f32 1.442695, %v1821_v46  ;;  %v4106_v46 = vld [vmem:[%s6055_s4 + $0x10] sm:$0xff]  }
 0x90a   : > { %v1887_v19 = vpop.permute.xlu1 %1886 }
 0x90b   : > { %v4291_v36 = vpop.eup %4290 }
 0x90c   : > { %1840 = vadd.xlane.f32.xlu1 %v4291_v36 }
 0x90f   : > { %v5166_v1 = vpop.eup %4292 }
 0x910   : > { %1846 = vadd.xlane.f32.xlu1 %v5166_v1  ;;  %v4295_v37 = vpop.eup %4294 }
 0x914   : > { %1842 = vadd.xlane.f32.xlu1 %v4295_v37 }
 0x935   : > { %v1813_v52 = vpop.xlane.xlu0 %1812 }
 0x936   : > { %v1822_v12 = vsub.f32 %v1798_v17, %v1813_v52 }
 0x938   : > { %v1836_v23 = vmul.f32 1.442695, %v1822_v12 }
 0x939   : > { %v1809_v39 = vpop.xlane.xlu0 %1808 }
 0x93a   : > { %4296 = vpow2.f32 %v1836_v23  ;;  %v1820_v56 = vsub.f32 %v1796_v6, %v1809_v39  ;;  %v4105_v39 = vld [vmem:[%s6055_s4 + $0x8] sm:$0xff]  }
 0x93b   : > { %4298 = vpow2.f32 %v1838_v21  ;;  %v4104_v21 = vld [vmem:[%s6055_s4] sm:$0xff]  }
 0x93c   : > { %v1832_v53 = vmul.f32 1.442695, %v1820_v56  ;;  %v4107_v56 = vld [vmem:[%s6055_s4 + $0x18] sm:$0xff]  }
 0x93d   : > { %v1883_v55 = vpop.permute.xlu0 %1882 }
 0x93e   : > { %4300 = vpow2.f32 %v1832_v53  ;;  %3950 = vmatprep.subr.bf16.mxu0 %v1883_v55  ;;  %v4108_v53 = vld [vmem:[%s6055_s4 + $0x20] sm:$0xff]  }
 0x93f   : > { %3951 = vmatpush3.bf16.msra.mxu0 %v1883_v55  ;;  %4302 = vpow2.f32 %v1834_v54  ;;  %v4109_v55 = vld [vmem:[%s6055_s4 + $0x28] sm:$0xff]   ;;  %v4110_v54 = vld [vmem:[%s6055_s4 + $0x30] sm:$0xff]  }
 0x941   : > { %v1885_v18 = vpop.permute.xlu0 %1884 }
 0x942   : > { %3952 = vmatprep.subr.bf16.mxu0 %v1885_v18 }
 0x943   : > { %3953 = vmatpush3.bf16.msra.mxu0 %v1885_v18  ;;  %v4111_v18 = vld [vmem:[%s6055_s4 + $0x38] sm:$0xff]  }
 0x944   : > { %v5169_v7 = vpop.eup %4296  ;;  %3954 = vmatprep.subr.bf16.mxu0 %v1887_v19 }
 0x945   : > { %1852 = vadd.xlane.f32.xlu0 %v5169_v7  ;;  %v5172_v43 = vpop.eup %4298 }
 0x947   : > { %3955 = vmatpush3.bf16.msra.mxu0 %v1887_v19 }
 0x948   : > { %v4301_v17 = vpop.eup %4300 }
 0x949   : > { %1854 = vadd.xlane.f32.xlu0 %v5172_v43  ;;  %1848 = vadd.xlane.f32.xlu1 %v4301_v17  ;;  %v4303_v6 = vpop.eup %4302 }
 0x94d   : > { %1850 = vadd.xlane.f32.xlu0 %v4303_v6 }
 0x95a   : > { %1890 = vrot.lane.b32.xlu1 %v4418_v20, %s4463_s16 }
 0x95e   : > { %1311 = vrot.lane.b32.xlu1 %v1303_v15, %s4463_s16 }
 0x962   : > { %1313 = vrot.lane.b32.xlu1 %v1304_v57, %s4463_s16 }
 0x963   : > { %1888 = vrot.lane.b32.xlu0 %v4419_v38, %s4463_s16 }
 0x966   : > { %1644 = vrot.lane.b32.xlu1 %v1635_v62, %s4462_s22 }
 0x967   : > { %1642 = vrot.lane.b32.xlu0 %v1634_v2, %s4462_s22 }
 0x995   : > { %v1845_v9 = vpop.xlane.xlu1 %1844 }
 0x999   : > { %v1841_v8 = vpop.xlane.xlu1 %1840 }
 0x99a   : > { %4304 = vrcp.f32 %v1841_v8 }
 0x99d   : > { %v1847_v15 = vpop.xlane.xlu1 %1846 }
 0x9a1   : > { %v1843_v45 = vpop.xlane.xlu1 %1842 }
 0x9a2   : > { %4306 = vrcp.f32 %v1843_v45 }
 0x9a3   : > { %4308 = vrcp.f32 %v1847_v15 }
 0x9a4   : > { %v4305_v4 = vpop.eup %4304  ;;  %4310 = vrcp.f32 %v1845_v9 }
 0x9a5   : > { %v1864_v57 = vmul.f32 %v4305_v4, %v4291_v36 }
 0x9ac   : > { %v4307_v10 = vpop.eup %4306 }
 0x9ad   : > { %v1865_v42 = vmul.f32 %v4307_v10, %v4295_v37  ;;  %v4309_v63 = vpop.eup %4308  ;;  %v3509_v10 = vld [vmem:[%s6056_s5] ss:$0 sm:$0xff] }
 0x9ae   : > { %v4311_v3 = vpop.eup %4310  ;;  %v1867_v11 = vmul.f32 %v4309_v63, %v5166_v1 }
 0x9af   : > { %v1872_v44 = vpack.c.bf16 %v1865_v42, %v1864_v57  ;;  %v1866_v33 = vmul.f32 %v4311_v3, %v5163_v35 }
 0x9b1   : > { %3960 = vmatprep.mubr.bf16.mxu0 %v1872_v44  ;;  %v1873_v36 = vpack.c.bf16 %v1867_v11, %v1866_v33 }
 0x9d2   : > { %v1853_v27 = vpop.xlane.xlu0 %1852 }
 0x9d6   : > { %v1849_v58 = vpop.xlane.xlu1 %1848  ;;  %v1855_v30 = vpop.xlane.xlu0 %1854 }
 0x9d7   : > { %4312 = vrcp.f32 %v1849_v58 }
 0x9da   : > { %v1891_v28 = vpop.permute.xlu1 %1890  ;;  %v1851_v62 = vpop.xlane.xlu0 %1850 }
 0x9db   : > { %4314 = vrcp.f32 %v1851_v62 }
 0x9dc   : > { %4316 = vrcp.f32 %v1855_v30 }
 0x9dd   : > { %4318 = vrcp.f32 %v1853_v27 }
 0x9de   : > { %v1312_v2 = vpop.permute.xlu1 %1311  ;;  %v1889_v61 = vpop.permute.xlu0 %1888 }
 0x9df   : > { %1324 = vst.msk [vmem:[#allocation2] sm:$0xff] %vm1323_vm0, %v1312_v2  ;;  %3956 = vmatprep.subr.bf16.mxu0 %v1889_v61 }
 0x9e0   : > { %3957 = vmatpush3.bf16.msra.mxu0 %v1889_v61 }
 0x9e1   : > { %3958 = vmatprep.subr.bf16.mxu0 %v1891_v28  ;;  %v4313_v32 = vpop.eup %4312 }
 0x9e2   : > { %v1314_v50 = vpop.permute.xlu1 %1313  ;;  %v1643_v14 = vpop.permute.xlu0 %1642  ;;  %v1868_v41 = vmul.f32 %v4313_v32, %v4301_v17 }
 0x9e3   : > { %1325 = vst.msk [vmem:[#allocation2 + $0x8] sm:$0xff] %vm1323_vm0, %v1314_v50 }
 0x9e4   : > { %1655 = vst.msk [vmem:[#allocation2] sm:$0xff] %vm1654_vm3, %v1643_v14  ;;  %3959 = vmatpush3.bf16.msra.mxu0 %v1891_v28 }
 0x9e5   : > { %v4315_v34 = vpop.eup %4314  ;;  %3968 = vmatprep.subr.bf16.mxu0 %v4104_v21 }
 0x9e6   : > { %v4317_v37 = vpop.eup %4316  ;;  %v1645_v40 = vpop.permute.xlu1 %1644  ;;  %v1869_v52 = vmul.f32 %v4315_v34, %v4303_v6 }
 0x9e7   : > { %1656 = vst.msk [vmem:[#allocation2 + $0x8] sm:$0xff] %vm1654_vm3, %v1645_v40  ;;  %3961 = vmatmul.mubr.bf16.vlgmr.msra.gmra.mrb[24].mxu0 %v1873_v36  ;;  %v4319_v1 = vpop.eup %4318  ;;  %v1871_v16 = vmul.f32 %v4317_v37, %v5172_v43 }
 0x9e8   : > { %v1874_v12 = vpack.c.bf16 %v1869_v52, %v1868_v41  ;;  %v1870_v35 = vmul.f32 %v4319_v1, %v5169_v7  ;;  %3969 = vmatpush3.bf16.msra.mxu0 %v4104_v21 }
 0x9e9   : > { %3970 = vmatprep.subr.bf16.mxu0 %v4105_v39 }
 0x9ea   : > { %3964 = vmatprep.mubr.bf16.mxu0 %v1874_v12  ;;  %v1875_v23 = vpack.c.bf16 %v1871_v16, %v1870_v35 }
 0x9ec   : > { %3971 = vmatpush3.bf16.msra.mxu0 %v4105_v39 }
 0x9ed   : > { %3972 = vmatprep.subr.bf16.mxu0 %v4106_v46 }
 0x9ef   : > { %3965 = vmatmul.mubr.bf16.gmra.mrb[28].mxu0 %v1875_v23 }
 0x9f0   : > { %3973 = vmatpush3.bf16.msra.mxu0 %v4106_v46 }
 0x9f1   : > { %3974 = vmatprep.subr.bf16.mxu0 %v4107_v56 }
 0x9f4   : > { %3975 = vmatpush3.bf16.msra.mxu0 %v4107_v56 }
 0x9f5   : > { %3976 = vmatprep.subr.bf16.mxu0 %v4108_v53 }
 0x9f8   : > { %3977 = vmatpush3.bf16.msra.mxu0 %v4108_v53  ;;  %v4112_v53 = vld [vmem:[%s6059_s8] ss:$16 sps:$4 sm:$0xff]  }
 0x9f9   : > { %3978 = vmatprep.subr.bf16.mxu0 %v4109_v55 }
 0x9fc   : > { %3979 = vmatpush3.bf16.msra.mxu0 %v4109_v55  ;;  %v4114_v55 = vld [vmem:[%s6059_s8 + $0x4] ss:$16 sps:$4 sm:$0xff]  }
 0x9fd   : > { %3980 = vmatprep.subr.bf16.mxu0 %v4110_v54  ;;  %2475 = vmatprep.subr.bf16.mxu1 %v4114_v55  ;;  %v4142_v55 = vld [vmem:[%s6059_s8 + $0xa0] ss:$16 sps:$4 sm:$0xff]  }
 0x9fe   : > { %2476 = vmatpush1.bf16.msra.mxu1 %v4112_v53  ;;  %v4147_v53 = vld [vmem:[%s6059_s8 + $0xac] ss:$16 sps:$4 sm:$0xff]  }
 0xa00   : > { %3981 = vmatpush3.bf16.msra.mxu0 %v4110_v54  ;;  %v4115_v54 = vld [vmem:[%s6059_s8 + $0x8] ss:$16 sps:$4 sm:$0xff]  }
 0xa01   : > { %3982 = vmatprep.subr.bf16.mxu0 %v4111_v18 }
 0xa04   : > { %3983 = vmatpush3.bf16.msra.mxu0 %v4111_v18  ;;  %v4117_v18 = vld [vmem:[%s6059_s8 + $0xc] ss:$16 sps:$4 sm:$0xff]  }
 0xa05   : > { %2548 = vmatprep.subr.bf16.mxu0 %v4117_v18  ;;  %v4150_v18 = vld [vmem:[%s6059_s8 + $0xc4] ss:$16 sps:$4 sm:$0xff]  }
 0xaba   : > { %v3962_v19 = vpop.f32.mrb[24].mxu0 }
 0xabb   : > { %v1934_v7 = vpop.f32.mrb[25].mxu0 }
 0xabc   : > { %v3963_v43 = vpop.f32.mrb[26].mxu0 }
 0xabd   : > { %v1966_v17 = vpack.c.bf16 %v3963_v43, %v3962_v19  ;;  %v1937_v6 = vpop.f32.mrb[27].mxu0  ;;  %v4120_v19 = vld [vmem:[%s6059_s8 + $0x24] ss:$16 sps:$4 sm:$0xff]   ;;  %v4118_v43 = vld [vmem:[%s6059_s8 + $0x20] ss:$16 sps:$4 sm:$0xff]  }
 0xabe   : > { %v1965_v20 = vpack.c.bf16 %v1937_v6, %v1934_v7  ;;  %v4123_v7 = vld [vmem:[%s6059_s8 + $0x2c] ss:$16 sps:$4 sm:$0xff]   ;;  %2477 = vmatprep.subr.bf16.mxu1 %v4120_v19 }
 0xabf   : > { %1975 = vrot.lane.b32.xlu1 %v1966_v17, %s4461_s21  ;;  %v4121_v17 = vld [vmem:[%s6059_s8 + $0x28] ss:$16 sps:$4 sm:$0xff]   ;;  %2478 = vmatpush1.bf16.msra.mxu1 %v4118_v43  ;;  %v4153_v19 = vld [vmem:[%s6059_s8 + $0xcc] ss:$16 sps:$4 sm:$0xff]  }
 0xac0   : > { %1973 = vrot.lane.b32.xlu0 %v1965_v20, %s4461_s21  ;;  %v4151_v43 = vld [vmem:[%s6059_s8 + $0xc8] ss:$16 sps:$4 sm:$0xff]  }
 0xac2   : > { %v3966_v38 = vpop.f32.mrb[28].mxu0 }
 0xac3   : > { %1317 = vrot.lane.b32.xlu1 %v1306_v31, %s4463_s16  ;;  %v1950_v9 = vpop.f32.mrb[29].mxu0 }
 0xac4   : > { %1315 = vrot.lane.b32.xlu0 %v1305_v51, %s4463_s16  ;;  %v3967_v8 = vpop.f32.mrb[30].mxu0 }
 0xac5   : > { %v1968_v15 = vpack.c.bf16 %v3967_v8, %v3966_v38  ;;  %v1953_v45 = vpop.f32.mrb[31].mxu0 }
 0xac6   : > { %v1967_v4 = vpack.c.bf16 %v1953_v45, %v1950_v9 }
 0xac7   : > { %1648 = vrot.lane.b32.xlu1 %v1637_v25, %s4462_s22 }
 0xac8   : > { %1646 = vrot.lane.b32.xlu0 %v1636_v47, %s4462_s22 }
 0xacb   : > { %1979 = vrot.lane.b32.xlu1 %v1968_v15, %s4461_s21 }
 0xacc   : > { %1977 = vrot.lane.b32.xlu0 %v1967_v4, %s4461_s21  ;;  %s3462_s21 = sshll.u32 %s6187_s13, 3 }
 0xacd   : > { %s5262_s14 = scalar_lea.vmem %s6052_s1, %s3462_s21  ;;  %s6011_s22 = scalar_lea.vmem %s6063_s12, %s3462_s21 }
 0xace   : > { %v529_v42 = vld [vmem:[%s5262_s14] sm:$0xff]  ;;  %v530_v30 = vld [vmem:[%s5262_s14 + $0x8] sm:$0xff]  ;;  %v531_v61 = vld [vmem:[%s5262_s14 + $0x10] sm:$0xff] }
 0xacf   : > { %v532_v14 = vld [vmem:[%s5262_s14 + $0x18] sm:$0xff]  ;;  %v533_v34 = vld [vmem:[%s5262_s14 + $0x20] sm:$0xff]  ;;  %v534_v41 = vld [vmem:[%s5262_s14 + $0x28] sm:$0xff] }
 0xad0   : > { %v535_v35 = vld [vmem:[%s5262_s14 + $0x30] sm:$0xff]  ;;  %v536_v39 = vld [vmem:[%s5262_s14 + $0x38] sm:$0xff] }
 0xb31   : > { %v1976_v29 = vpop.permute.xlu1 %1975 }
 0xb32   : > { %1987 = vst.msk [vmem:[#allocation2 + $0x8] sm:$0xff] %vm1985_vm5, %v1976_v29  ;;  %v1974_v59 = vpop.permute.xlu0 %1973 }
 0xb33   : > { %1986 = vst.msk [vmem:[#allocation2] sm:$0xff] %vm1985_vm5, %v1974_v59 }
 0xb35   : > { %v1318_v60 = vpop.permute.xlu1 %1317 }
 0xb36   : > { %1327 = vst.msk [vmem:[#allocation2 + $0x18] sm:$0xff] %vm1323_vm0, %v1318_v60  ;;  %v1316_v31 = vpop.permute.xlu0 %1315 }
 0xb37   : > { %1326 = vst.msk [vmem:[#allocation2 + $0x10] sm:$0xff] %vm1323_vm0, %v1316_v31 }
 0xb39   : > { %v1649_v48 = vpop.permute.xlu1 %1648  ;;  %v1991_v5 = vld [vmem:[#allocation2 + $0x8] sm:$0xff] }
 0xb3a   : > { %1658 = vst.msk [vmem:[#allocation2 + $0x18] sm:$0xff] %vm1654_vm3, %v1649_v48  ;;  %v1647_v51 = vpop.permute.xlu0 %1646  ;;  %v1990_v13 = vld [vmem:[#allocation2] sm:$0xff] }
 0xb3b   : > { %1657 = vst.msk [vmem:[#allocation2 + $0x10] sm:$0xff] %vm1654_vm3, %v1647_v51  ;;  %3984 = vmatprep.mubr.bf16.mxu0 %v1990_v13 }
 0xb3c   : > { %3985 = vmatmul.mubr.bf16.vlgmr.msra.gmra.mrb[32].mxu0 %v1991_v5 }
 0xb3d   : > { %v1980_v49 = vpop.permute.xlu1 %1979  ;;  %2549 = vmatpush1.bf16.msra.mxu0 %v4115_v54  ;;  %v4145_v54 = vld [vmem:[%s6059_s8 + $0xa8] ss:$16 sps:$4 sm:$0xff]  }
 0xb3e   : > { %1989 = vst.msk [vmem:[#allocation2 + $0x18] sm:$0xff] %vm1985_vm5, %v1980_v49  ;;  %v1978_v25 = vpop.permute.xlu0 %1977  ;;  %2550 = vmatprep.subr.bf16.mxu0 %v4123_v7  ;;  %v4148_v7 = vld [vmem:[%s6059_s8 + $0xc0] ss:$16 sps:$4 sm:$0xff]  }
 0xb3f   : > { %1988 = vst.msk [vmem:[#allocation2 + $0x10] sm:$0xff] %vm1985_vm5, %v1978_v25 }
 0xb41   : > { %2551 = vmatpush1.bf16.msra.mxu0 %v4121_v17  ;;  %v4156_v17 = vld [vmem:[%s6059_s8 + $0xe4] ss:$16 sps:$4 sm:$0xff]  }
 0xb45   : > { %v1993_v47 = vld [vmem:[#allocation2 + $0x18] sm:$0xff] }
 0xb46   : > { %v1992_v0 = vld [vmem:[#allocation2 + $0x10] sm:$0xff] }
 0xb47   : > { %3988 = vmatprep.mubr.bf16.mxu0 %v1992_v0 }
 0xb48   : > { %3989 = vmatmul.mubr.bf16.gmra.mrb[36].mxu0 %v1993_v47 }
 0xb49   : > { %2580 = vmatprep.mubr.bf16.mxu0 %v4460_v26 }
 0xc0f   : > { %v3986_v57 = vpop.f32.mrb[32].mxu0 }
 0xc10   : > { %v2099_v44 = vpop.f32.mrb[33].mxu0  ;;  %v2108_v62 = vadd.f32 %v3986_v57, %v3509_v10 }
 0xc11   : > { %v2100_v27 = vadd.f32 %v3509_v10, %v2099_v44  ;;  %v3987_v58 = vpop.f32.mrb[34].mxu0 }
 0xc12   : > { %v2102_v28 = vpop.f32.mrb[35].mxu0  ;;  %v5275_v11 = vadd.f32 %v2108_v62, %v531_v61  ;;  %v2111_v50 = vadd.f32 %v3987_v58, %v3509_v10 }
 0xc13   : > { %v5269_v63 = vadd.f32 %v2100_v27, %v529_v42  ;;  %v2103_v2 = vadd.f32 %v3509_v10, %v2102_v28 }
 0xc14   : > { %6111 = vst [vmem:[#allocation5_spill] sm:$0xff] %v5275_v11  ;;  %v5280_v32 = vadd.f32 %v2111_v50, %v532_v14  ;;  %v4126_v50 = vld [vmem:[%s6059_s8 + $0x44] ss:$16 sps:$4 sm:$0xff]   ;;  %v4129_v14 = vld [vmem:[%s6059_s8 + $0x4c] ss:$16 sps:$4 sm:$0xff]  }
 0xc15   : > { %6109 = vst [vmem:[#allocation3_spill] sm:$0xff] %v5269_v63  ;;  %v5272_v3 = vadd.f32 %v2103_v2, %v530_v30  ;;  %2140 = vadd.xlane.f32.xlu0 %v5269_v63  ;;  %2479 = vmatprep.subr.bf16.mxu1 %v4126_v50 }
 0xc16   : > { %6112 = vst [vmem:[#allocation6_spill] sm:$0xff] %v5280_v32  ;;  %2552 = vmatprep.subr.bf16.mxu0 %v4129_v14 }
 0xc17   : > { %6110 = vst [vmem:[#allocation4_spill] sm:$0xff] %v5272_v3  ;;  %2142 = vadd.xlane.f32.xlu1 %v5272_v3 }
 0xc19   : > { %2144 = vadd.xlane.f32.xlu0 %v5275_v11 }
 0xc1b   : > { %v3990_v33 = vpop.f32.mrb[36].mxu0 }
 0xc1c   : > { %v2115_v36 = vpop.f32.mrb[37].mxu0  ;;  %v2124_v1 = vadd.f32 %v3990_v33, %v3509_v10  ;;  %v4124_v33 = vld [vmem:[%s6059_s8 + $0x40] ss:$16 sps:$4 sm:$0xff]  }
 0xc1d   : > { %v2116_v37 = vadd.f32 %v3509_v10, %v2115_v36  ;;  %2146 = vadd.xlane.f32.xlu0 %v5280_v32  ;;  %v3991_v40 = vpop.f32.mrb[38].mxu0  ;;  %2480 = vmatpush1.bf16.msra.mxu1 %v4124_v33 }
 0xc1e   : > { %v2118_v52 = vpop.f32.mrb[39].mxu0  ;;  %v2127_v23 = vadd.f32 %v3991_v40, %v3509_v10  ;;  %v5292_v46 = vadd.f32 %v2124_v1, %v535_v35  ;;  %v4135_v40 = vld [vmem:[%s6059_s8 + $0x6c] ss:$16 sps:$4 sm:$0xff]   ;;  %v4138_v1 = vld [vmem:[%s6059_s8 + $0x84] ss:$16 sps:$4 sm:$0xff]  }
 0xc1f   : > { %v5285_v12 = vadd.f32 %v2116_v37, %v533_v34  ;;  %v2119_v16 = vadd.f32 %v3509_v10, %v2118_v52  ;;  %v4127_v34 = vld [vmem:[%s6059_s8 + $0x48] ss:$16 sps:$4 sm:$0xff]   ;;  %v4132_v37 = vld [vmem:[%s6059_s8 + $0x64] ss:$16 sps:$4 sm:$0xff]   ;;  %v4136_v35 = vld [vmem:[%s6059_s8 + $0x80] ss:$16 sps:$4 sm:$0xff]  }
 0xc20   : > { %6115 = vst [vmem:[#allocation9_spill] sm:$0xff] %v5292_v46  ;;  %v5295_v56 = vadd.f32 %v2127_v23, %v536_v39  ;;  %2553 = vmatpush1.bf16.msra.mxu0 %v4127_v34  ;;  %v4133_v52 = vld [vmem:[%s6059_s8 + $0x68] ss:$16 sps:$4 sm:$0xff]   ;;  %2481 = vmatprep.subr.bf16.mxu1 %v4132_v37  ;;  %v4144_v39 = vld [vmem:[%s6059_s8 + $0xa4] ss:$16 sps:$4 sm:$0xff]  }
 0xc21   : > { %6113 = vst [vmem:[#allocation7_spill] sm:$0xff] %v5285_v12  ;;  %v5288_v21 = vadd.f32 %v2119_v16, %v534_v41  ;;  %2148 = vadd.xlane.f32.xlu0 %v5285_v12  ;;  %v4130_v41 = vld [vmem:[%s6059_s8 + $0x60] ss:$16 sps:$4 sm:$0xff]   ;;  %2554 = vmatprep.subr.bf16.mxu0 %v4135_v40  ;;  %v4141_v16 = vld [vmem:[%s6059_s8 + $0x8c] ss:$16 sps:$4 sm:$0xff]  }
 0xc22   : > { %6116 = vst [vmem:[#allocation10_spill] sm:$0xff] %v5295_v56  ;;  %2482 = vmatpush1.bf16.msra.mxu1 %v4130_v41  ;;  %v4139_v23 = vld [vmem:[%s6059_s8 + $0x88] ss:$16 sps:$4 sm:$0xff]  }
 0xc23   : > { %6114 = vst [vmem:[#allocation8_spill] sm:$0xff] %v5288_v21  ;;  %2150 = vadd.xlane.f32.xlu1 %v5288_v21  ;;  %2483 = vmatprep.subr.bf16.mxu1 %v4138_v1  ;;  %v3519_v1 = vld [vmem:[%s6058_s7] ss:$0 sm:$0xff] }
 0xc24   : > { %2555 = vmatpush1.bf16.msra.mxu0 %v4133_v52 }
 0xc25   : > { %2152 = vadd.xlane.f32.xlu0 %v5292_v46  ;;  %2556 = vmatprep.subr.bf16.mxu0 %v4141_v16 }
 0xc26   : > { %2484 = vmatpush1.bf16.msra.mxu1 %v4136_v35 }
 0xc27   : > { %2154 = vadd.xlane.f32.xlu1 %v5295_v56  ;;  %2485 = vmatprep.subr.bf16.mxu1 %v4144_v39 }
 0xc28   : > { %2557 = vmatpush1.bf16.msra.mxu0 %v4139_v23 }
 0xc29   : > { %2558 = vmatprep.subr.bf16.mxu0 %v4147_v53 }
 0xc2a   : > { %2486 = vmatpush1.bf16.msra.mxu1 %v4142_v55 }
 0xc2b   : > { %2487 = vmatprep.subr.bf16.mxu1 %v4150_v18 }
 0xc2c   : > { %2559 = vmatpush1.bf16.msra.mxu0 %v4145_v54 }
 0xc2d   : > { %2560 = vmatprep.subr.bf16.mxu0 %v4153_v19 }
 0xc2e   : > { %2488 = vmatpush1.bf16.msra.mxu1 %v4148_v7 }
 0xc2f   : > { %2489 = vmatprep.subr.bf16.mxu1 %v4156_v17 }
 0xc30   : > { %2561 = vmatpush1.bf16.msra.mxu0 %v4151_v43 }
 0xca2   : > { %v2141_v6 = vpop.xlane.xlu0 %2140 }
 0xca3   : > { %v2157_v20 = vmul.f32 0.0078125, %v2141_v6  ;;  %v4159_v6 = vld [vmem:[%s6059_s8 + $0xec] ss:$16 sps:$4 sm:$0xff]  }
 0xca4   : > { %v2143_v38 = vpop.xlane.xlu1 %2142  ;;  %2562 = vmatprep.subr.bf16.mxu0 %v4159_v6 }
 0xca5   : > { %v5324_v9 = vsub.f32 %v5269_v63, %v2157_v20  ;;  %v2158_v8 = vmul.f32 0.0078125, %v2143_v38  ;;  %v4154_v20 = vld [vmem:[%s6059_s8 + $0xe0] ss:$16 sps:$4 sm:$0xff]   ;;  %v4157_v38 = vld [vmem:[%s6059_s8 + $0xe8] ss:$16 sps:$4 sm:$0xff]  }
 0xca6   : > { %v2145_v15 = vpop.xlane.xlu0 %2144  ;;  %2490 = vmatpush1.bf16.msra.mxu1 %v4154_v20  ;;  %2563 = vmatpush1.bf16.msra.mxu0 %v4157_v38 }
 0xca7   : > { %v5327_v45 = vsub.f32 %v5272_v3, %v2158_v8  ;;  %v2159_v4 = vmul.f32 0.0078125, %v2145_v15  ;;  %v2173_v29 = vmul.f32 %v5324_v9, %v5324_v9 }
 0xca9   : > { %v5332_v59 = vsub.f32 %v5275_v11, %v2159_v4  ;;  %2181 = vadd.xlane.f32.xlu0 %v2173_v29  ;;  %v2174_v60 = vmul.f32 %v5327_v45, %v5327_v45 }
 0xcaa   : > { %v2147_v31 = vpop.xlane.xlu0 %2146 }
 0xcab   : > { %v2160_v48 = vmul.f32 0.0078125, %v2147_v31  ;;  %2183 = vadd.xlane.f32.xlu1 %v2174_v60  ;;  %v2175_v51 = vmul.f32 %v5332_v59, %v5332_v59 }
 0xcad   : > { %v5339_v13 = vsub.f32 %v5280_v32, %v2160_v48  ;;  %2185 = vadd.xlane.f32.xlu0 %v2175_v51 }
 0xcae   : > { %v2149_v5 = vpop.xlane.xlu0 %2148 }
 0xcaf   : > { %v2161_v49 = vmul.f32 0.0078125, %v2149_v5  ;;  %v2176_v25 = vmul.f32 %v5339_v13, %v5339_v13 }
 0xcb0   : > { %v2151_v0 = vpop.xlane.xlu1 %2150 }
 0xcb1   : > { %v5344_v47 = vsub.f32 %v5285_v12, %v2161_v49  ;;  %v2162_v10 = vmul.f32 0.0078125, %v2151_v0  ;;  %2187 = vadd.xlane.f32.xlu1 %v2176_v25 }
 0xcb2   : > { %v2153_v57 = vpop.xlane.xlu0 %2152 }
 0xcb3   : > { %v5347_v42 = vsub.f32 %v5288_v21, %v2162_v10  ;;  %v2163_v44 = vmul.f32 0.0078125, %v2153_v57  ;;  %v2177_v27 = vmul.f32 %v5344_v47, %v5344_v47 }
 0xcb4   : > { %v2155_v58 = vpop.xlane.xlu1 %2154 }
 0xcb5   : > { %v5352_v30 = vsub.f32 %v5292_v46, %v2163_v44  ;;  %v2164_v28 = vmul.f32 0.0078125, %v2155_v58  ;;  %2189 = vadd.xlane.f32.xlu0 %v2177_v27  ;;  %v2178_v62 = vmul.f32 %v5347_v42, %v5347_v42  ;;  %v3518_v58 = vld [vmem:[%s6057_s6] ss:$0 sm:$0xff] }
 0xcb7   : > { %v5357_v2 = vsub.f32 %v5295_v56, %v2164_v28  ;;  %2191 = vadd.xlane.f32.xlu1 %v2178_v62  ;;  %v2179_v61 = vmul.f32 %v5352_v30, %v5352_v30 }
 0xcb9   : > { %2193 = vadd.xlane.f32.xlu0 %v2179_v61  ;;  %v2180_v36 = vmul.f32 %v5357_v2, %v5357_v2 }
 0xcbb   : > { %2195 = vadd.xlane.f32.xlu1 %v2180_v36 }
 0xd36   : > { %v2182_v8 = vpop.xlane.xlu0 %2181 }
 0xd37   : > { %v2197_v15 = vmul.f32 0.0078125, %v2182_v8 }
 0xd38   : > { %v2184_v4 = vpop.xlane.xlu1 %2183 }
 0xd39   : > { %v2205_v29 = vadd.f32 1e-05, %v2197_v15  ;;  %v2198_v60 = vmul.f32 0.0078125, %v2184_v4 }
 0xd3a   : > { %v2186_v31 = vpop.xlane.xlu0 %2185 }
 0xd3b   : > { %4320 = vrsqrt.f32 %v2205_v29  ;;  %v2206_v48 = vadd.f32 1e-05, %v2198_v60  ;;  %v2199_v51 = vmul.f32 0.0078125, %v2186_v31 }
 0xd3d   : > { %4322 = vrsqrt.f32 %v2206_v48  ;;  %v2207_v5 = vadd.f32 1e-05, %v2199_v51 }
 0xd3e   : > { %v2188_v49 = vpop.xlane.xlu1 %2187 }
 0xd3f   : > { %4324 = vrsqrt.f32 %v2207_v5  ;;  %v2200_v25 = vmul.f32 0.0078125, %v2188_v49 }
 0xd41   : > { %v2208_v0 = vadd.f32 1e-05, %v2200_v25 }
 0xd42   : > { %v2190_v10 = vpop.xlane.xlu0 %2189 }
 0xd43   : > { %4326 = vrsqrt.f32 %v2208_v0  ;;  %v2201_v57 = vmul.f32 0.0078125, %v2190_v10  ;;  %v4161_v0 = vld [vmem:[%s6061_s10] sm:$0xff]   ;;  %v4164_v10 = vld [vmem:[%s6061_s10 + $0x48] sm:$0xff]  }
 0xd44   : > { %v2192_v44 = vpop.xlane.xlu1 %2191 }
 0xd45   : > { %v4321_v27 = vpop.eup %4320  ;;  %v2209_v28 = vadd.f32 1e-05, %v2201_v57  ;;  %v2202_v62 = vmul.f32 0.0078125, %v2192_v44  ;;  %v5476_v57 = vld [vmem:[%s6061_s10 + $0xc8] sm:$0xff]  }
 0xd46   : > { %v2221_v61 = vmul.f32 %v4321_v27, %v5324_v9  ;;  %v2194_v50 = vpop.xlane.xlu0 %2193  ;;  %6118 = vst [vmem:[#allocation12_spill] sm:$0xff] %v5476_v57  ;;  %v4165_v44 = vld [vmem:[%s6061_s10 + $0x8] sm:$0xff]  }
 0xd47   : > { %v4323_v14 = vpop.eup %4322  ;;  %4328 = vrsqrt.f32 %v2209_v28  ;;  %v2210_v33 = vadd.f32 1e-05, %v2202_v62  ;;  %v2203_v34 = vmul.f32 0.0078125, %v2194_v50  ;;  %v5484_v27 = vld [vmem:[%s6061_s10 + $0x88] sm:$0xff]   ;;  %v5494_v28 = vld [vmem:[%s6061_s10 + $0xd0] sm:$0xff]   ;;  %v4172_v50 = vld [vmem:[%s6061_s10 + $0x58] sm:$0xff]  }
 0xd48   : > { %v2235_v36 = vmul.f32 %v3518_v58, %v2221_v61  ;;  %v2222_v37 = vmul.f32 %v4323_v14, %v5327_v45  ;;  %v2196_v40 = vpop.xlane.xlu1 %2195  ;;  %6119 = vst [vmem:[#allocation13_spill] sm:$0xff] %v5484_v27  ;;  %6120 = vst [vmem:[#allocation14_spill] sm:$0xff] %v5494_v28  ;;  %v4169_v62 = vld [vmem:[%s6061_s10 + $0x10] sm:$0xff]   ;;  %v5512_v14 = vld [vmem:[%s6061_s10 + $0xd8] sm:$0xff]  }
 0xd49   : > { %v4325_v41 = vpop.eup %4324  ;;  %4330 = vrsqrt.f32 %v2210_v33  ;;  %v2204_v52 = vmul.f32 0.0078125, %v2196_v40  ;;  %v2211_v35 = vadd.f32 1e-05, %v2203_v34  ;;  %v5503_v61 = vld [vmem:[%s6061_s10 + $0x90] sm:$0xff]   ;;  %6122 = vst [vmem:[#allocation16_spill] sm:$0xff] %v5512_v14  ;;  %v4173_v33 = vld [vmem:[%s6061_s10 + $0x18] sm:$0xff]  }
 0xd4a   : > { %v2236_v16 = vmul.f32 %v3518_v58, %v2222_v37  ;;  %v2249_v9 = vadd.f32 %v3519_v1, %v2235_v36  ;;  %v2223_v53 = vmul.f32 %v4325_v41, %v5332_v59  ;;  %6121 = vst [vmem:[#allocation15_spill] sm:$0xff] %v5503_v61  ;;  %v5520_v34 = vld [vmem:[%s6061_s10 + $0x98] sm:$0xff]   ;;  %v4176_v36 = vld [vmem:[%s6061_s10 + $0x60] sm:$0xff]  }
 0xd4b   : > { %v2212_v23 = vadd.f32 1e-05, %v2204_v52  ;;  %6123 = vst [vmem:[#allocation17_spill] sm:$0xff] %v5520_v34  ;;  %v5530_v37 = vld [vmem:[%s6061_s10 + $0xe0] sm:$0xff]   ;;  %v4180_v52 = vld [vmem:[%s6061_s10 + $0x68] sm:$0xff]  }
 0xd4c   : > { %v2250_v39 = vadd.f32 %v3519_v1, %v2236_v16  ;;  %v2237_v18 = vmul.f32 %v3518_v58, %v2223_v53  ;;  %6124 = vst [vmem:[#allocation18_spill] sm:$0xff] %v5530_v37  ;;  %v4177_v40 = vld [vmem:[%s6061_s10 + $0x20] sm:$0xff]   ;;  %v4181_v16 = vld [vmem:[%s6061_s10 + $0x28] sm:$0xff]   ;;  %v5575_v53 = vld [vmem:[%s6061_s10 + $0xb0] sm:$0xff]  }
 0xd4d   : > { %v4327_v55 = vpop.eup %4326  ;;  %4332 = vrsqrt.f32 %v2212_v23  ;;  %v5538_v41 = vld [vmem:[%s6061_s10 + $0xa0] sm:$0xff]   ;;  %v4184_v23 = vld [vmem:[%s6061_s10 + $0x70] sm:$0xff]   ;;  %6129 = vst [vmem:[#allocation23_spill] sm:$0xff] %v5575_v53 }
 0xd4e   : > { %v2257_v54 = vpack.c.bf16 %v2250_v39, %v2249_v9  ;;  %v2224_v45 = vmul.f32 %v4327_v55, %v5339_v13  ;;  %4334 = vrsqrt.f32 %v2211_v35  ;;  %v2251_v6 = vadd.f32 %v3519_v1, %v2237_v18  ;;  %6125 = vst [vmem:[#allocation19_spill] sm:$0xff] %v5538_v41  ;;  %v5556_v35 = vld [vmem:[%s6061_s10 + $0xa8] sm:$0xff]   ;;  %v5566_v9 = vld [vmem:[%s6061_s10 + $0xf0] sm:$0xff]   ;;  %v4188_v55 = vld [vmem:[%s6061_s10 + $0x78] sm:$0xff]  }
 0xd4f   : > { %6127 = vst [vmem:[#allocation21_spill] sm:$0xff] %v5556_v35  ;;  %6128 = vst [vmem:[#allocation22_spill] sm:$0xff] %v5566_v9  ;;  %v4185_v39 = vld [vmem:[%s6061_s10 + $0x30] sm:$0xff]   ;;  %v5592_v18 = vld [vmem:[%s6061_s10 + $0xb8] sm:$0xff]  }
 0xd50   : > { %2508 = vmatmul.mubr.bf16.vlgmr.msra.gmra.mrb[32].mxu1 %v2257_v54  ;;  %2581 = vmatmul.mubr.bf16.vlgmr.msra.gmra.mrb[40].mxu0 %v2257_v54  ;;  %v2238_v19 = vmul.f32 %v3518_v58, %v2224_v45  ;;  %v5584_v54 = vld [vmem:[%s6061_s10 + $0xf8] sm:$0xff]   ;;  %6131 = vst [vmem:[#allocation25_spill] sm:$0xff] %v5592_v18 }
 0xd51   : > { %v4329_v7 = vpop.eup %4328  ;;  %2517 = vmatprep.mubr.bf16.mxu1 %v4460_v26  ;;  %2590 = vmatprep.mubr.bf16.mxu0 %v4460_v26  ;;  %6130 = vst [vmem:[#allocation24_spill] sm:$0xff] %v5584_v54  ;;  %v4189_v45 = vld [vmem:[%s6061_s10 + $0x38] sm:$0xff]  }
 0xd52   : > { %v2252_v43 = vadd.f32 %v3519_v1, %v2238_v19  ;;  %v2225_v59 = vmul.f32 %v4329_v7, %v5344_v47  ;;  %v2305_v19 = vsub.s32 2, %v4660_v22  ;;  %v2293_v7 = vld [vmem:[%s6060_s9] sm:$0xf] }
 0xd53   : > { %v4331_v17 = vpop.eup %4330 }
 0xd54   : > { %v2226_v20 = vmul.f32 %v4331_v17, %v5347_v42  ;;  %v2258_v38 = vpack.c.bf16 %v2252_v43, %v2251_v6  ;;  %v2239_v15 = vmul.f32 %v3518_v58, %v2225_v59  ;;  %v2301_v43 = vsub.s32 1, %v4660_v22 }
 0xd55   : > { %v2309_v17 = vsub.s32 3, %v4660_v22  ;;  %v5604_v6 = vrot.slane %v2293_v7, %v611_v24  ;;  %v5606_v59 = vrot.slane %v2293_v7, %v2305_v19 }
 0xd56   : > { %v2240_v8 = vmul.f32 %v3518_v58, %v2226_v20  ;;  %v2253_v31 = vadd.f32 %v3519_v1, %v2239_v15  ;;  %v5608_v20 = vrot.slane %v2293_v7, %v2301_v43 }
 0xd57   : > { %v4333_v13 = vpop.eup %4332 }
 0xd58   : > { %2518 = vmatmul.mubr.bf16.gmra.mrb[36].mxu1 %v2258_v38  ;;  %2591 = vmatmul.mubr.bf16.gmra.mrb[44].mxu0 %v2258_v38  ;;  %v4335_v4 = vpop.eup %4334  ;;  %v2254_v29 = vadd.f32 %v3519_v1, %v2240_v8  ;;  %v2228_v60 = vmul.f32 %v4333_v13, %v5357_v2  ;;  %v4160_v2 = vld [vmem:[%s6061_s10 + $0x40] sm:$0xff]   ;;  %v5610_v38 = vrot.slane %v2293_v7, %v2309_v17 }
 0xd59   : > { %2527 = vmatprep.mubr.bf16.mxu1 %v4460_v26  ;;  %2600 = vmatprep.mubr.bf16.mxu0 %v4460_v26  ;;  %v2227_v48 = vmul.f32 %v4335_v4, %v5352_v30  ;;  %v4162_v30 = vld [vmem:[%s6061_s10 + $0xc0] sm:$0xff]  }
 0xd5a   : > { %v2259_v47 = vpack.c.bf16 %v2254_v29, %v2253_v31  ;;  %v2242_v51 = vmul.f32 %v3518_v58, %v2228_v60  ;;  %3696 = vmatprep.subr.bf16.mxu1 %v4160_v2  ;;  %3736 = vmatprep.subr.bf16.mxu0 %v4162_v30 }
 0xd5b   : > { %v2241_v42 = vmul.f32 %v3518_v58, %v2227_v48  ;;  %3697 = vmatpush3.bf16.msra.mxu1 %v4161_v0  ;;  %v4168_v58 = vld [vmem:[%s6061_s10 + $0x50] sm:$0xff]  }
 0xd5c   : > { %v2256_v5 = vadd.f32 %v3519_v1, %v2242_v51  ;;  %3698 = vmatprep.subr.bf16.mxu1 %v4164_v10 }
 0xd5d   : > { %v2255_v49 = vadd.f32 %v3519_v1, %v2241_v42  ;;  %v5548_v1 = vld [vmem:[%s6061_s10 + $0xe8] sm:$0xff]  }
 0xd5e   : > { %6126 = vst [vmem:[#allocation20_spill] sm:$0xff] %v5548_v1 }
 0xd5f   : > { %v2260_v25 = vpack.c.bf16 %v2256_v5, %v2255_v49  ;;  %3699 = vmatpush3.bf16.msra.mxu1 %v4165_v44 }
 0xd60   : > { %2528 = vmatmul.mubr.bf16.gmra.mrb[40].mxu1 %v2259_v47  ;;  %2601 = vmatmul.mubr.bf16.gmra.mrb[48].mxu0 %v2259_v47 }
 0xd61   : > { %2537 = vmatprep.mubr.bf16.mxu1 %v4460_v26  ;;  %2610 = vmatprep.mubr.bf16.mxu0 %v4460_v26  ;;  %v5467_v26 = vld [vmem:[%s6061_s10 + $0x80] sm:$0xff]  }
 0xd62   : > { %6117 = vst [vmem:[#allocation11_spill] sm:$0xff] %v5467_v26  ;;  %3737 = vmatpush3.bf16.msra.mxu0 %v5467_v26  ;;  %3700 = vmatprep.subr.bf16.mxu1 %v4168_v58 }
 0xd63   : > { %3738 = vmatprep.subr.bf16.mxu0 %v5476_v57  ;;  %3701 = vmatpush3.bf16.msra.mxu1 %v4169_v62 }
 0xd64   : > { %3702 = vmatprep.subr.bf16.mxu1 %v4172_v50 }
 0xd66   : > { %3739 = vmatpush3.bf16.msra.mxu0 %v5484_v27 }
 0xd67   : > { %3740 = vmatprep.subr.bf16.mxu0 %v5494_v28  ;;  %3703 = vmatpush3.bf16.msra.mxu1 %v4173_v33 }
 0xd68   : > { %2538 = vmatmul.mubr.bf16.gmra.mrb[44].mxu1 %v2260_v25  ;;  %2611 = vmatmul.mubr.bf16.gmra.mrb[52].mxu0 %v2260_v25 }
 0xd69   : > { %3704 = vmatprep.subr.bf16.mxu1 %v4176_v36 }
 0xd6a   : > { %3741 = vmatpush3.bf16.msra.mxu0 %v5503_v61 }
 0xd6b   : > { %3742 = vmatprep.subr.bf16.mxu0 %v5512_v14  ;;  %3705 = vmatpush3.bf16.msra.mxu1 %v4177_v40 }
 0xd6c   : > { %3706 = vmatprep.subr.bf16.mxu1 %v4180_v52 }
 0xd6e   : > { %3743 = vmatpush3.bf16.msra.mxu0 %v5520_v34 }
 0xd6f   : > { %3744 = vmatprep.subr.bf16.mxu0 %v5530_v37  ;;  %3707 = vmatpush3.bf16.msra.mxu1 %v4181_v16 }
 0xd70   : > { %3708 = vmatprep.subr.bf16.mxu1 %v4184_v23 }
 0xd72   : > { %3745 = vmatpush3.bf16.msra.mxu0 %v5538_v41 }
 0xd73   : > { %3746 = vmatprep.subr.bf16.mxu0 %v5548_v1  ;;  %3709 = vmatpush3.bf16.msra.mxu1 %v4185_v39 }
 0xd74   : > { %3710 = vmatprep.subr.bf16.mxu1 %v4188_v55 }
 0xd76   : > { %3747 = vmatpush3.bf16.msra.mxu0 %v5556_v35 }
 0xd77   : > { %3748 = vmatprep.subr.bf16.mxu0 %v5566_v9  ;;  %3711 = vmatpush3.bf16.msra.mxu1 %v4189_v45 }
 0xd78   : > { %3992 = vmatprep.subr.bf16.mxu1 %v4162_v30 }
 0xd7a   : > { %3749 = vmatpush3.bf16.msra.mxu0 %v5575_v53 }
 0xd7b   : > { %3750 = vmatprep.subr.bf16.mxu0 %v5584_v54 }
 0xd7e   : > { %3751 = vmatpush3.bf16.msra.mxu0 %v5592_v18 }
 0xe23   : > { %v2509_v8 = vpop.f32.mrb[32].mxu1  ;;  %v2582_v13 = vpop.f32.mrb[40].mxu0 }
 0xe24   : > { %v2510_v15 = vadd.f32 %v2509_v8, %v5604_v6  ;;  %v2583_v4 = vadd.f32 %v2582_v13, %v5606_v59  ;;  %v2511_v29 = vpop.f32.mrb[33].mxu1  ;;  %v2584_v60 = vpop.f32.mrb[41].mxu0 }
 0xe25   : > { %v5615_v31 = vadd.f32 %v2511_v29, %v5608_v20  ;;  %v5618_v22 = vadd.f32 %v2584_v60, %v5610_v38  ;;  %v2513_v24 = vpop.f32.mrb[34].mxu1  ;;  %v2586_v48 = vpop.f32.mrb[42].mxu0 }
 0xe26   : > { %v2653_v47 = vmul.f32 0.044715, %v2510_v15  ;;  %v2655_v51 = vmul.f32 0.044715, %v2583_v4  ;;  %v2514_v49 = vadd.f32 %v2513_v24, %v5604_v6  ;;  %v2587_v25 = vadd.f32 %v2586_v48, %v5606_v59  ;;  %v2515_v2 = vpop.f32.mrb[35].mxu1  ;;  %v2588_v30 = vpop.f32.mrb[43].mxu0 }
 0xe27   : > { %v2654_v42 = vmul.f32 0.044715, %v5615_v31  ;;  %v2656_v5 = vmul.f32 0.044715, %v5618_v22  ;;  %v5625_v44 = vadd.f32 %v2515_v2, %v5608_v20  ;;  %v5628_v58 = vadd.f32 %v2588_v30, %v5610_v38 }
 0xe28   : > { %v2685_v0 = vmul.f32 %v2653_v47, %v2510_v15  ;;  %v2687_v10 = vmul.f32 %v2655_v51, %v2583_v4  ;;  %v2657_v62 = vmul.f32 0.044715, %v2514_v49  ;;  %v2659_v36 = vmul.f32 0.044715, %v2587_v25 }
 0xe29   : > { %v2686_v40 = vmul.f32 %v2654_v42, %v5615_v31  ;;  %v2688_v52 = vmul.f32 %v2656_v5, %v5618_v22  ;;  %v2658_v23 = vmul.f32 0.044715, %v5625_v44  ;;  %v2660_v43 = vmul.f32 0.044715, %v5628_v58 }
 0xe2a   : > { %v2717_v50 = vmul.f32 %v2685_v0, %v2510_v15  ;;  %v2719_v33 = vmul.f32 %v2687_v10, %v2583_v4  ;;  %v2689_v16 = vmul.f32 %v2657_v62, %v2514_v49  ;;  %v2691_v7 = vmul.f32 %v2659_v36, %v2587_v25 }
 0xe2b   : > { %v2519_v39 = vpop.f32.mrb[36].mxu1  ;;  %v2592_v55 = vpop.f32.mrb[44].mxu0  ;;  %v2690_v29 = vmul.f32 %v2658_v23, %v5625_v44  ;;  %v5641_v51 = vmul.f32 0.5, %v2510_v15  ;;  %v5643_v5 = vmul.f32 0.5, %v2583_v4  ;;  %v5645_v10 = vmul.f32 0.5, %v2514_v49 }
 0xe2c   : > { %v2749_v45 = vadd.f32 %v2717_v50, %v2510_v15  ;;  %v2751_v19 = vadd.f32 %v2719_v33, %v2583_v4  ;;  %v2521_v17 = vpop.f32.mrb[37].mxu1  ;;  %v2594_v8 = vpop.f32.mrb[45].mxu0  ;;  %v2721_v13 = vmul.f32 %v2689_v16, %v2514_v49  ;;  %v5636_v60 = vadd.f32 %v2519_v39, %v5604_v6 }
 0xe2d   : > { %v5639_v24 = vadd.f32 %v2592_v55, %v5606_v59  ;;  %v2523_v48 = vpop.f32.mrb[38].mxu1  ;;  %v2596_v47 = vpop.f32.mrb[46].mxu0  ;;  %v2723_v2 = vmul.f32 %v2691_v7, %v2587_v25  ;;  %v5647_v50 = vmul.f32 0.5, %v2587_v25  ;;  %v5651_v36 = vmul.f32 %v2686_v40, %v5615_v31 }
 0xe2e   : > { %v2781_v42 = vmul.f32 0.7978846, %v2749_v45  ;;  %v2525_v30 = vpop.f32.mrb[39].mxu1  ;;  %v2598_v0 = vpop.f32.mrb[47].mxu0  ;;  %v2753_v62 = vadd.f32 %v2721_v13, %v2514_v49  ;;  %v2661_v33 = vmul.f32 0.044715, %v5636_v60  ;;  %v5655_v23 = vadd.f32 %v2521_v17, %v5608_v20 }
 0xe2f   : > { %6132 = vst [vmem:[#allocation26_spill] sm:$0xff] %v5639_v24  ;;  %v2755_v16 = vadd.f32 %v2723_v2, %v2587_v25  ;;  %v2663_v15 = vmul.f32 0.044715, %v5639_v24  ;;  %v2783_v4 = vmul.f32 0.7978846, %v2751_v19  ;;  %v5658_v39 = vmul.f32 %v2688_v52, %v5618_v22 }
 0xe30   : > { %v5661_v55 = vmul.f32 %v2690_v29, %v5625_v44  ;;  %v2692_v49 = vmul.f32 %v2660_v43, %v5628_v58  ;;  %4336 = vtanh.f32 %v2781_v42  ;;  %v2662_v45 = vmul.f32 0.044715, %v5655_v23 }
 0xe31   : > { %v5666_v40 = vadd.f32 %v2594_v8, %v5610_v38  ;;  %v5669_v25 = vadd.f32 %v2523_v48, %v5604_v6  ;;  %v2785_v7 = vmul.f32 0.7978846, %v2753_v62  ;;  %v2787_v17 = vmul.f32 0.7978846, %v2755_v16 }
 0xe32   : > { %v2693_v19 = vmul.f32 %v2661_v33, %v5636_v60  ;;  %v5673_v52 = vadd.f32 %v2596_v47, %v5606_v59  ;;  %v2695_v43 = vmul.f32 %v2663_v15, %v5639_v24  ;;  %v2694_v42 = vmul.f32 %v2662_v45, %v5655_v23 }
 0xe33   : > { %v2529_v13 = vpop.f32.mrb[40].mxu1  ;;  %v2602_v29 = vpop.f32.mrb[48].mxu0  ;;  %v2664_v2 = vmul.f32 0.044715, %v5666_v40  ;;  %v2665_v8 = vmul.f32 0.044715, %v5669_v25  ;;  %v5681_v16 = vadd.f32 %v2525_v30, %v5608_v20  ;;  %v5684_v47 = vadd.f32 %v2598_v0, %v5610_v38 }
 0xe34   : > { %6133 = vst [vmem:[#allocation27_spill] sm:$0xff] %v5673_v52  ;;  %v2531_v56 = vpop.f32.mrb[41].mxu1  ;;  %v2604_v48 = vpop.f32.mrb[49].mxu0  ;;  %v2667_v62 = vmul.f32 0.044715, %v5673_v52  ;;  %v5687_v33 = vadd.f32 %v2529_v13, %v5604_v6  ;;  %4338 = vtanh.f32 %v2783_v4  ;;  %v5690_v45 = vmul.f32 %v2692_v49, %v5628_v58 }
 0xe35   : > { %v2533_v15 = vpop.f32.mrb[42].mxu1  ;;  %v2606_v46 = vpop.f32.mrb[50].mxu0  ;;  %v2696_v21 = vmul.f32 %v2664_v2, %v5666_v40  ;;  %v2603_v12 = vadd.f32 %v2602_v29, %v5606_v59  ;;  %4340 = vtanh.f32 %v2785_v7  ;;  %v2697_v30 = vmul.f32 %v2665_v8, %v5669_v25 }
 0xe36   : > { %6134 = vst [vmem:[#allocation28_spill] sm:$0xff] %v5687_v33  ;;  %v2535_v32 = vpop.f32.mrb[43].mxu1  ;;  %v2608_v11 = vpop.f32.mrb[51].mxu0  ;;  %v2666_v0 = vmul.f32 0.044715, %v5681_v16  ;;  %v5698_v3 = vmul.f32 %v2693_v19, %v5636_v60  ;;  %v5701_v4 = vmul.f32 %v2695_v43, %v5639_v24  ;;  %4342 = vtanh.f32 %v2787_v17 }
 0xe37   : > { %v2668_v13 = vmul.f32 0.044715, %v5684_v47  ;;  %v2669_v49 = vmul.f32 0.044715, %v5687_v33  ;;  %v2671_v2 = vmul.f32 0.044715, %v2603_v12  ;;  %v5705_v29 = vmul.f32 %v2694_v42, %v5655_v23 }
 0xe38   : > { %6135 = vst [vmem:[#allocation29_spill] sm:$0xff] %v5701_v4  ;;  %v5708_v7 = vmul.f32 %v2696_v21, %v5666_v40  ;;  %v2699_v8 = vmul.f32 %v2667_v62, %v5673_v52  ;;  %v5712_v18 = vadd.f32 %v2531_v56, %v5608_v20  ;;  %v5715_v19 = vadd.f32 %v2604_v48, %v5610_v38 }
 0xe39   : > { %v2703_v63 = vmul.f32 %v2671_v2, %v2603_v12  ;;  %v5718_v43 = vadd.f32 %v2533_v15, %v5604_v6  ;;  %v5721_v17 = vmul.f32 %v2697_v30, %v5669_v25  ;;  %v2698_v42 = vmul.f32 %v2666_v0, %v5681_v16 }
 0xe3a   : > { %v2700_v21 = vmul.f32 %v2668_v13, %v5684_v47  ;;  %v2607_v54 = vadd.f32 %v2606_v46, %v5606_v59  ;;  %v5726_v53 = vpop.eup %4336  ;;  %v2701_v56 = vmul.f32 %v2669_v49, %v5687_v33  ;;  %v2670_v9 = vmul.f32 0.044715, %v5712_v18 }
 0xe3b   : > { %v2539_v62 = vpop.f32.mrb[44].mxu1  ;;  %v2612_v2 = vpop.f32.mrb[52].mxu0  ;;  %v2735_v48 = vmul.f32 %v2703_v63, %v2603_v12  ;;  %v2672_v15 = vmul.f32 0.044715, %v5715_v19  ;;  %v2673_v30 = vmul.f32 0.044715, %v5718_v43  ;;  %v5733_v0 = vadd.f32 %v2535_v32, %v5608_v20 }
 0xe3c   : > { %v2675_v35 = vmul.f32 0.044715, %v2607_v54  ;;  %v5736_v13 = vadd.f32 %v2608_v11, %v5610_v38  ;;  %v2541_v46 = vpop.f32.mrb[45].mxu1  ;;  %v2614_v1 = vpop.f32.mrb[53].mxu0  ;;  %v5739_v41 = vmul.f32 %v2699_v8, %v5673_v52  ;;  %v5741_v49 = vmul.f32 0.5, %v2603_v12 }
 0xe3d   : > { %v2767_v63 = vadd.f32 %v2735_v48, %v2603_v12  ;;  %v2702_v37 = vmul.f32 %v2670_v9, %v5712_v18  ;;  %v2543_v34 = vpop.f32.mrb[46].mxu1  ;;  %v2616_v14 = vpop.f32.mrb[54].mxu0  ;;  %v2674_v28 = vmul.f32 0.044715, %v5733_v0  ;;  %v5747_v11 = vadd.f32 %v2539_v62, %v5604_v6 }
 0xe3e   : > { %6136 = vst [vmem:[#allocation30_spill] sm:$0xff] %v5739_v41  ;;  %6137 = vst [vmem:[#allocation31_spill] sm:$0xff] %v5741_v49  ;;  %v2707_v61 = vmul.f32 %v2675_v35, %v2607_v54  ;;  %v2676_v32 = vmul.f32 0.044715, %v5736_v13  ;;  %v2545_v27 = vpop.f32.mrb[47].mxu1  ;;  %v2618_v57 = vpop.f32.mrb[55].mxu0  ;;  %v5750_v8 = vmul.f32 %v2698_v42, %v5681_v16  ;;  %v5753_v12 = vmul.f32 %v2700_v21, %v5684_v47 }
 0xe3f   : > { %v4339_v26 = vpop.eup %4338  ;;  %v5756_v9 = vmul.f32 %v2701_v56, %v5687_v33  ;;  %v5758_v35 = vmul.f32 0.5, %v2607_v54  ;;  %v2704_v49 = vmul.f32 %v2672_v15, %v5715_v19  ;;  %v2705_v62 = vmul.f32 %v2673_v30, %v5718_v43 }
 0xe40   : > { %v4341_v48 = vpop.eup %4340  ;;  %v2739_v41 = vmul.f32 %v2707_v61, %v2607_v54  ;;  %v2677_v52 = vmul.f32 0.044715, %v5747_v11  ;;  %v2799_v4 = vmul.f32 0.7978846, %v2767_v63  ;;  %v5764_v42 = vadd.f32 %v2612_v2, %v5606_v59 }
 0xe41   : > { %6138 = vst [vmem:[#allocation32_spill] sm:$0xff] %v5756_v9  ;;  %6139 = vst [vmem:[#allocation33_spill] sm:$0xff] %v5758_v35  ;;  %v5767_v21 = vadd.f32 %v2541_v46, %v5608_v20  ;;  %v5770_v56 = vadd.f32 %v2614_v1, %v5610_v38  ;;  %v4343_v9 = vpop.eup %4342  ;;  %v5773_v35 = vmul.f32 %v2702_v37, %v5712_v18 }
 0xe42   : > { %v2771_v15 = vadd.f32 %v2739_v41, %v2607_v54  ;;  %v2706_v30 = vmul.f32 %v2674_v28, %v5733_v0  ;;  %v2708_v61 = vmul.f32 %v2676_v32, %v5736_v13  ;;  %v2679_v63 = vmul.f32 0.044715, %v5764_v42 }
 0xe43   : > { %6140 = vst [vmem:[#allocation34_spill] sm:$0xff] %v5773_v35  ;;  %v2678_v2 = vmul.f32 0.044715, %v5767_v21  ;;  %v2680_v33 = vmul.f32 0.044715, %v5770_v56  ;;  %v5781_v46 = vadd.f32 %v2543_v34, %v5604_v6  ;;  %v2709_v24 = vmul.f32 %v2677_v52, %v5747_v11 }
 0xe44   : > { %v2803_v1 = vmul.f32 0.7978846, %v2771_v15  ;;  %v5785_v37 = vadd.f32 %v2616_v14, %v5606_v59  ;;  %v5788_v41 = vadd.f32 %v2545_v27, %v5608_v20  ;;  %v2711_v28 = vmul.f32 %v2679_v63, %v5764_v42 }
 0xe45   : > { %v2710_v54 = vmul.f32 %v2678_v2, %v5767_v21  ;;  %v2712_v32 = vmul.f32 %v2680_v33, %v5770_v56  ;;  %v2681_v35 = vmul.f32 0.044715, %v5781_v46  ;;  %v5795_v34 = vmul.f32 %v2704_v49, %v5715_v19 }
 0xe46   : > { %v2683_v6 = vmul.f32 0.044715, %v5785_v37  ;;  %v2682_v52 = vmul.f32 0.044715, %v5788_v41  ;;  %v5800_v14 = vadd.f32 %v2618_v57, %v5610_v38  ;;  %4344 = vtanh.f32 %v2799_v4 }
 0xe47   : > { %v5803_v27 = vmul.f32 %v2705_v62, %v5718_v43  ;;  %v5806_v59 = vmul.f32 %v2706_v30, %v5733_v0  ;;  %v2713_v20 = vmul.f32 %v2681_v35, %v5781_v46  ;;  %4346 = vtanh.f32 %v2803_v1 }
 0xe48   : > { %v5810_v33 = vmul.f32 %v2708_v61, %v5736_v13  ;;  %v5813_v49 = vmul.f32 %v2709_v24, %v5747_v11  ;;  %v5816_v15 = vmul.f32 %v2711_v28, %v5764_v42  ;;  %v5819_v57 = vmul.f32 %v2710_v54, %v5767_v21 }
 0xe49   : > { %v5822_v38 = vmul.f32 %v2712_v32, %v5770_v56  ;;  %v2750_v4 = vadd.f32 %v5651_v36, %v5615_v31  ;;  %v2754_v35 = vadd.f32 %v5661_v55, %v5625_v44  ;;  %v2715_v62 = vmul.f32 %v2683_v6, %v5785_v37 }
 0xe4a   : > { %v2714_v24 = vmul.f32 %v2682_v52, %v5788_v41  ;;  %v2684_v30 = vmul.f32 0.044715, %v5800_v14  ;;  %v5832_v61 = vmul.f32 0.5, %v5615_v31  ;;  %v5835_v63 = vmul.f32 %v2713_v20, %v5781_v46 }
 0xe4b   : > { %v2782_v2 = vmul.f32 0.7978846, %v2750_v4  ;;  %v2786_v1 = vmul.f32 0.7978846, %v2754_v35  ;;  %v2752_v36 = vadd.f32 %v5658_v39, %v5618_v22  ;;  %v5840_v28 = vmul.f32 0.5, %v5625_v44 }
 0xe4c   : > { %v2756_v55 = vadd.f32 %v5690_v45, %v5628_v58  ;;  %v2845_v54 = vadd.f32 1.0, %v5726_v53  ;;  %v2849_v32 = vadd.f32 1.0, %v4341_v48  ;;  %v2847_v6 = vadd.f32 1.0, %v4339_v26 }
 0xe4d   : > { %4348 = vtanh.f32 %v2782_v2  ;;  %v2784_v31 = vmul.f32 0.7978846, %v2752_v36  ;;  %v2851_v52 = vadd.f32 1.0, %v4343_v9  ;;  %v2716_v44 = vmul.f32 %v2684_v30, %v5800_v14 }
 0xe4e   : > { %4350 = vtanh.f32 %v2786_v1  ;;  %v2788_v20 = vmul.f32 0.7978846, %v2756_v55  ;;  %v5846_v4 = vmul.f32 %v2845_v54, %v5641_v51  ;;  %v5849_v39 = vmul.f32 %v2849_v32, %v5645_v10 }
 0xe4f   : > { %4352 = vtanh.f32 %v2784_v31  ;;  %v5853_v45 = vmul.f32 %v2847_v6, %v5643_v5  ;;  %v5856_v53 = vmul.f32 %v2851_v52, %v5647_v50  ;;  %v5859_v26 = vmul.f32 %v2715_v62, %v5785_v37  ;;  %v6142_v6 = vld [vmem:[#allocation29_spill] sm:$0xff] }
 0xe50   : > { %4354 = vtanh.f32 %v2788_v20  ;;  %v2909_v51 = vpack.c.bf16 %v5849_v39, %v5846_v4  ;;  %v2758_v10 = vadd.f32 %v5705_v29, %v5655_v23  ;;  %v5865_v9 = vpop.eup %4344  ;;  %v5868_v48 = vmul.f32 %v2714_v24, %v5788_v41  ;;  %v6144_v20 = vld [vmem:[#allocation30_spill] sm:$0xff]  ;;  %v6150_v4 = vld [vmem:[#allocation12_spill] sm:$0xff] }
 0xe51   : > { %v2624_v5 = vmul.f32 0.5, %v5618_v22  ;;  %v2762_v35 = vadd.f32 %v5750_v8, %v5681_v16  ;;  %v5875_v62 = vpop.eup %4346  ;;  %v2628_v30 = vmul.f32 0.5, %v5628_v58  ;;  %v2760_v29 = vadd.f32 %v5708_v7, %v5666_v40 }
 0xe52   : > { %v2790_v2 = vmul.f32 0.7978846, %v2758_v10  ;;  %v2764_v24 = vadd.f32 %v5753_v12, %v5684_v47  ;;  %v5883_v1 = vmul.f32 %v2716_v44, %v5800_v14  ;;  %v2757_v36 = vadd.f32 %v5698_v3, %v5636_v60  ;;  %v6141_v3 = vld [vmem:[#allocation26_spill] sm:$0xff] }
 0xe53   : > { %v2794_v22 = vmul.f32 0.7978846, %v2762_v35  ;;  %v2761_v8 = vadd.f32 %v5721_v17, %v5669_v25  ;;  %v5890_v55 = vmul.f32 0.5, %v5655_v23  ;;  %v2792_v58 = vmul.f32 0.7978846, %v2760_v29  ;;  %v6143_v17 = vld [vmem:[#allocation27_spill] sm:$0xff] }
 0xe54   : > { %4356 = vtanh.f32 %v2790_v2  ;;  %v2796_v54 = vmul.f32 0.7978846, %v2764_v24  ;;  %v5893_v7 = vmul.f32 0.5, %v5681_v16  ;;  %v2789_v12 = vmul.f32 0.7978846, %v2757_v36  ;;  %v6145_v16 = vld [vmem:[#allocation34_spill] sm:$0xff] }
 0xe55   : > { %4358 = vtanh.f32 %v2794_v22  ;;  %v2793_v32 = vmul.f32 0.7978846, %v2761_v8  ;;  %v5896_v31 = vmul.f32 0.5, %v5666_v40  ;;  %v2759_v52 = vadd.f32 %v6142_v6, %v6141_v3 }
 0xe56   : > { %4360 = vtanh.f32 %v2792_v58  ;;  %v2763_v23 = vadd.f32 %v6144_v20, %v6143_v17  ;;  %v5903_v10 = vmul.f32 0.5, %v5684_v47  ;;  %v2766_v35 = vadd.f32 %v6145_v16, %v5712_v18 }
 0xe57   : > { %v4349_v44 = vpop.eup %4348  ;;  %4362 = vtanh.f32 %v2796_v54  ;;  %v2770_v2 = vadd.f32 %v5806_v59, %v5733_v0  ;;  %v2791_v24 = vmul.f32 0.7978846, %v2759_v52  ;;  %v2629_v54 = vmul.f32 0.5, %v5636_v60 }
 0xe58   : > { %v4351_v40 = vpop.eup %4350  ;;  %v2846_v29 = vadd.f32 1.0, %v4349_v44  ;;  %4364 = vtanh.f32 %v2789_v12  ;;  %v2795_v22 = vmul.f32 0.7978846, %v2763_v23  ;;  %v2798_v58 = vmul.f32 0.7978846, %v2766_v35  ;;  %v6147_v23 = vld [vmem:[#allocation32_spill] sm:$0xff] }
 0xe59   : > { %v4353_v36 = vpop.eup %4352  ;;  %v2850_v8 = vadd.f32 1.0, %v4351_v40  ;;  %4366 = vtanh.f32 %v2793_v32  ;;  %v2802_v6 = vmul.f32 0.7978846, %v2770_v2  ;;  %v5911_v50 = vmul.f32 0.5, %v5669_v25  ;;  %v6146_v32 = vld [vmem:[#allocation28_spill] sm:$0xff] }
 0xe5a   : > { %v4355_v20 = vpop.eup %4354  ;;  %v2848_v47 = vadd.f32 1.0, %v4353_v36  ;;  %4368 = vtanh.f32 %v2791_v24  ;;  %v2878_v59 = vmul.f32 %v2846_v29, %v5832_v61  ;;  %v5916_v52 = vmul.f32 0.5, %v6141_v3 }
 0xe5b   : > { %v2882_v44 = vmul.f32 %v2850_v8, %v5840_v28  ;;  %v2852_v12 = vadd.f32 1.0, %v4355_v20  ;;  %4370 = vtanh.f32 %v2795_v22  ;;  %v2765_v16 = vadd.f32 %v6147_v23, %v6146_v32 }
 0xe5c   : > { %4372 = vtanh.f32 %v2798_v58  ;;  %v2769_v60 = vadd.f32 %v5803_v27, %v5718_v43  ;;  %v2880_v25 = vmul.f32 %v2848_v47, %v2624_v5  ;;  %v2635_v61 = vmul.f32 0.5, %v6143_v17 }
 0xe5d   : > { %v2910_v35 = vpack.c.bf16 %v2882_v44, %v2878_v59  ;;  %v2884_v2 = vmul.f32 %v2852_v12, %v2628_v30  ;;  %4374 = vtanh.f32 %v2802_v6  ;;  %v2797_v28 = vmul.f32 0.7978846, %v2765_v16  ;;  %v6148_v6 = vld [vmem:[#allocation11_spill] sm:$0xff] }
 0xe5e   : > { %v4357_v40 = vpop.eup %4356  ;;  %v2801_v29 = vmul.f32 0.7978846, %v2769_v60  ;;  %v2774_v3 = vadd.f32 %v5819_v57, %v5767_v21  ;;  %v5926_v8 = vmul.f32 0.5, %v5712_v18  ;;  %v2778_v27 = vadd.f32 %v5868_v48, %v5788_v41 }
 0xe5f   : > { %v4359_v24 = vpop.eup %4358  ;;  %3213 = vmatprep.mubr.bf16.mxu1 %v2910_v35  ;;  %v2912_v22 = vpack.c.bf16 %v2884_v2, %v2880_v25  ;;  %v2854_v36 = vadd.f32 1.0, %v4357_v40  ;;  %v2642_v17 = vmul.f32 0.5, %v5733_v0  ;;  %4376 = vtanh.f32 %v2797_v28  ;;  %v6151_v25 = vld [vmem:[#allocation13_spill] sm:$0xff] }
 0xe60   : > { %v4361_v5 = vpop.eup %4360  ;;  %3214 = vmatmul.mubr.bf16.vlgmr.msra.gmra.mrb[48].mxu1 %v2909_v51  ;;  %v2858_v30 = vadd.f32 1.0, %v4359_v24  ;;  %v2806_v57 = vmul.f32 0.7978846, %v2774_v3  ;;  %4378 = vtanh.f32 %v2801_v29  ;;  %v2810_v47 = vmul.f32 0.7978846, %v2778_v27  ;;  %v6152_v29 = vld [vmem:[#allocation14_spill] sm:$0xff] }
 0xe61   : > { %v4363_v58 = vpop.eup %4362  ;;  %3278 = vmatprep.mubr.bf16.mxu0 %v2912_v22  ;;  %4000 = vmatpush3.bf16.msra.mxu1 %v6148_v6  ;;  %v2886_v18 = vmul.f32 %v2854_v36, %v5890_v55  ;;  %v2856_v20 = vadd.f32 1.0, %v4361_v5  ;;  %v6149_v59 = vpack.c.bf16 %v5856_v53, %v5853_v45  ;;  %v2773_v51 = vadd.f32 %v5813_v49, %v5747_v11 }
 0xe62   : > { %v4365_v48 = vpop.eup %4364  ;;  %3993 = vmatprep.subr.bf16.mxu1 %v6150_v4  ;;  %v2890_v0 = vmul.f32 %v2858_v30, %v5893_v7  ;;  %v2860_v39 = vadd.f32 1.0, %v4363_v58  ;;  %4380 = vtanh.f32 %v2806_v57  ;;  %v2777_v23 = vadd.f32 %v5835_v63, %v5781_v46  ;;  %v6153_v57 = vld [vmem:[#allocation15_spill] sm:$0xff] }
 0xe63   : > { %3279 = vmatmul.mubr.bf16.vlgmr.msra.gmra.mrb[56].mxu0 %v6149_v59  ;;  %v4367_v44 = vpop.eup %4366  ;;  %v2888_v55 = vmul.f32 %v2856_v20, %v5896_v31  ;;  %v2853_v12 = vadd.f32 1.0, %v4365_v48  ;;  %4382 = vtanh.f32 %v2810_v47  ;;  %v2805_v35 = vmul.f32 0.7978846, %v2773_v51  ;;  %v6154_v20 = vld [vmem:[#allocation16_spill] sm:$0xff] }
 0xe64   : > { %v4369_v16 = vpop.eup %4368  ;;  %v2914_v45 = vpack.c.bf16 %v2890_v0, %v2886_v18  ;;  %v2892_v53 = vmul.f32 %v2860_v39, %v5903_v10  ;;  %v2857_v60 = vadd.f32 1.0, %v4367_v44  ;;  %v2637_v49 = vmul.f32 0.5, %v6146_v32 }
 0xe65   : > { %v4371_v7 = vpop.eup %4370  ;;  %4001 = vmatpush3.bf16.msra.mxu1 %v6151_v25  ;;  %v2885_v2 = vmul.f32 %v2853_v12, %v2629_v54  ;;  %v2855_v40 = vadd.f32 1.0, %v4369_v16  ;;  %v2809_v28 = vmul.f32 0.7978846, %v2777_v23  ;;  %4384 = vtanh.f32 %v2805_v35  ;;  %v6158_v16 = vld [vmem:[#allocation18_spill] sm:$0xff] }
 0xe66   : > { %v4373_v31 = vpop.eup %4372  ;;  %3221 = vmatprep.mubr.bf16.mxu1 %v2914_v45  ;;  %3994 = vmatprep.subr.bf16.mxu1 %v6152_v29  ;;  %v2916_v3 = vpack.c.bf16 %v2892_v53, %v2888_v55  ;;  %v2889_v63 = vmul.f32 %v2857_v60, %v5911_v50  ;;  %v2859_v24 = vadd.f32 1.0, %v4371_v7  ;;  %v2641_v27 = vmul.f32 0.5, %v5718_v43  ;;  %v6159_v29 = vld [vmem:[#allocation19_spill] sm:$0xff] }
 0xe67   : > { %v4375_v10 = vpop.eup %4374  ;;  %v2887_v22 = vmul.f32 %v2855_v40, %v5916_v52  ;;  %v2862_v36 = vadd.f32 1.0, %v4373_v31  ;;  %4386 = vtanh.f32 %v2809_v28  ;;  %v2768_v30 = vadd.f32 %v5795_v34, %v5715_v19 }
 0xe68   : > { %3286 = vmatprep.mubr.bf16.mxu0 %v2916_v3  ;;  %v2913_v54 = vpack.c.bf16 %v2889_v63, %v2885_v2  ;;  %v2891_v32 = vmul.f32 %v2859_v24, %v2635_v61  ;;  %v2866_v5 = vadd.f32 1.0, %v4375_v10  ;;  %v2646_v50 = vmul.f32 0.5, %v5767_v21  ;;  %v6155_v21 = vld [vmem:[#allocation31_spill] sm:$0xff] }
 0xe69   : > { %4002 = vmatpush3.bf16.msra.mxu1 %v6153_v57  ;;  %v2772_v58 = vadd.f32 %v5810_v33, %v5736_v13  ;;  %v2863_v52 = vadd.f32 1.0, %v5865_v9  ;;  %v2867_v6 = vadd.f32 1.0, %v5875_v62  ;;  %v4377_v43 = vpop.eup %4376  ;;  %v2894_v61 = vmul.f32 %v2862_v36, %v5926_v8  ;;  %v6156_v33 = vld [vmem:[#allocation33_spill] sm:$0xff] }
 0xe6a   : > { %3222 = vmatmul.mubr.bf16.gmra.mrb[52].mxu1 %v2913_v54  ;;  %v2915_v18 = vpack.c.bf16 %v2891_v32, %v2887_v22  ;;  %3995 = vmatprep.subr.bf16.mxu1 %v6154_v20  ;;  %v2898_v47 = vmul.f32 %v2866_v5, %v2642_v17  ;;  %v2800_v34 = vmul.f32 0.7978846, %v2768_v30  ;;  %v4379_v48 = vpop.eup %4378  ;;  %v2861_v59 = vadd.f32 1.0, %v4377_v43  ;;  %v6157_v8 = vld [vmem:[#allocation17_spill] sm:$0xff] }
 0xe6b   : > { %v2804_v4 = vmul.f32 0.7978846, %v2772_v58  ;;  %v5964_v0 = vmul.f32 %v2863_v52, %v6155_v21  ;;  %v5967_v39 = vmul.f32 %v2867_v6, %v6156_v33  ;;  %v2865_v51 = vadd.f32 1.0, %v4379_v48  ;;  %v6163_v52 = vld [vmem:[#allocation23_spill] sm:$0xff] }
 0xe6c   : > { %v4381_v9 = vpop.eup %4380  ;;  %3287 = vmatmul.mubr.bf16.gmra.mrb[60].mxu0 %v2915_v18  ;;  %v2918_v62 = vpack.c.bf16 %v2898_v47, %v2894_v61  ;;  %v2650_v44 = vmul.f32 0.5, %v5788_v41  ;;  %4388 = vtanh.f32 %v2800_v34  ;;  %v2893_v17 = vmul.f32 %v2861_v59, %v2637_v49  ;;  %v6164_v18 = vld [vmem:[#allocation24_spill] sm:$0xff]  ;;  %v6165_v34 = vld [vmem:[#allocation25_spill] sm:$0xff] }
 0xe6d   : > { %v4383_v55 = vpop.eup %4382  ;;  %4003 = vmatpush3.bf16.msra.mxu1 %v6157_v8  ;;  %v2870_v12 = vadd.f32 1.0, %v4381_v9  ;;  %4390 = vtanh.f32 %v2804_v4  ;;  %v2919_v23 = vpack.c.bf16 %v5967_v39, %v5964_v0  ;;  %v2897_v45 = vmul.f32 %v2865_v51, %v2641_v27 }
 0xe6e   : > { %3229 = vmatprep.mubr.bf16.mxu1 %v2918_v62  ;;  %3996 = vmatprep.subr.bf16.mxu1 %v6158_v16  ;;  %v2874_v53 = vadd.f32 1.0, %v4383_v55  ;;  %v2776_v60 = vadd.f32 %v5822_v38, %v5770_v56  ;;  %v2780_v41 = vadd.f32 %v5883_v1, %v5800_v14  ;;  %v2775_v7 = vadd.f32 %v5816_v15, %v5764_v42  ;;  %v6160_v1 = vld [vmem:[#allocation20_spill] sm:$0xff] }
 0xe6f   : > { %v2902_v35 = vmul.f32 %v2870_v12, %v2646_v50  ;;  %v4385_v25 = vpop.eup %4384  ;;  %v2917_v2 = vpack.c.bf16 %v2897_v45, %v2893_v17  ;;  %v2645_v3 = vmul.f32 0.5, %v5747_v11  ;;  %v2779_v38 = vadd.f32 %v5859_v26, %v5785_v37  ;;  %v6161_v11 = vld [vmem:[#allocation21_spill] sm:$0xff]  ;;  %v6162_v26 = vld [vmem:[#allocation22_spill] sm:$0xff] }
 0xe70   : > { %v2906_v40 = vmul.f32 %v2874_v53, %v2650_v44  ;;  %v2808_v49 = vmul.f32 0.7978846, %v2776_v60  ;;  %v2812_v28 = vmul.f32 0.7978846, %v2780_v41  ;;  %v2869_v63 = vadd.f32 1.0, %v4385_v25 }
 0xe71   : > { %v4387_v31 = vpop.eup %4386  ;;  %4004 = vmatpush3.bf16.msra.mxu1 %v6159_v29  ;;  %v2807_v24 = vmul.f32 0.7978846, %v2775_v7  ;;  %v2649_v15 = vmul.f32 0.5, %v5781_v46  ;;  %v2811_v36 = vmul.f32 0.7978846, %v2779_v38  ;;  %v2640_v50 = vmul.f32 0.5, %v5715_v19 }
 0xe72   : > { %3230 = vmatmul.mubr.bf16.gmra.mrb[56].mxu1 %v2917_v2  ;;  %3997 = vmatprep.subr.bf16.mxu1 %v6160_v1  ;;  %v2922_v10 = vpack.c.bf16 %v2906_v40, %v2902_v35  ;;  %v2873_v22 = vadd.f32 1.0, %v4387_v31  ;;  %4392 = vtanh.f32 %v2808_v49  ;;  %v2901_v27 = vmul.f32 %v2869_v63, %v2645_v3  ;;  %v6166_v2 = vld [vmem:[#allocation3_spill] sm:$0xff]  ;;  %v6167_v31 = vld [vmem:[#allocation4_spill] sm:$0xff] }
 0xe73   : > { %4394 = vtanh.f32 %v2812_v28  ;;  %v2644_v46 = vmul.f32 0.5, %v5736_v13  ;;  %v2648_v19 = vmul.f32 0.5, %v5770_v56  ;;  %v2652_v13 = vmul.f32 0.5, %v5800_v14 }
 0xe74   : > { %3237 = vmatprep.mubr.bf16.mxu1 %v2922_v10  ;;  %v2905_v54 = vmul.f32 %v2873_v22, %v2649_v15  ;;  %4396 = vtanh.f32 %v2807_v24  ;;  %v2647_v33 = vmul.f32 0.5, %v5764_v42  ;;  %v2651_v44 = vmul.f32 0.5, %v5785_v37 }
 0xe75   : > { %4005 = vmatpush3.bf16.msra.mxu1 %v6161_v11  ;;  %4398 = vtanh.f32 %v2811_v36 }
 0xe76   : > { %v4389_v32 = vpop.eup %4388  ;;  %3998 = vmatprep.subr.bf16.mxu1 %v6162_v26  ;;  %v2921_v5 = vpack.c.bf16 %v2905_v54, %v2901_v27 }
 0xe77   : > { %v4391_v30 = vpop.eup %4390  ;;  %v2864_v57 = vadd.f32 1.0, %v4389_v32 }
 0xe78   : > { %v2868_v58 = vadd.f32 1.0, %v4391_v30 }
 0xe79   : > { %4006 = vmatpush3.bf16.msra.mxu1 %v6163_v52  ;;  %v2896_v6 = vmul.f32 %v2864_v57, %v2640_v50  ;;  %v6169_v52 = vld [vmem:[#allocation6_spill] sm:$0xff] }
 0xe7a   : > { %3238 = vmatmul.mubr.bf16.gmra.mrb[60].mxu1 %v2921_v5  ;;  %v2900_v43 = vmul.f32 %v2868_v58, %v2644_v46  ;;  %3999 = vmatprep.subr.bf16.mxu1 %v6164_v18  ;;  %v6168_v5 = vld [vmem:[#allocation5_spill] sm:$0xff] }
 0xe7c   : > { %v4393_v20 = vpop.eup %4392  ;;  %v2920_v61 = vpack.c.bf16 %v2900_v43, %v2896_v6 }
 0xe7d   : > { %v4395_v47 = vpop.eup %4394  ;;  %4007 = vmatpush3.bf16.msra.mxu1 %v6165_v34  ;;  %v2872_v48 = vadd.f32 1.0, %v4393_v20 }
 0xe7e   : > { %v4397_v59 = vpop.eup %4396  ;;  %3294 = vmatprep.mubr.bf16.mxu1 %v2920_v61  ;;  %v2876_v4 = vadd.f32 1.0, %v4395_v47 }
 0xe7f   : > { %v4399_v21 = vpop.eup %4398  ;;  %v2871_v9 = vadd.f32 1.0, %v4397_v59  ;;  %v2904_v62 = vmul.f32 %v2872_v48, %v2648_v19 }
 0xe80   : > { %v2908_v51 = vmul.f32 %v2876_v4, %v2652_v13  ;;  %v2875_v55 = vadd.f32 1.0, %v4399_v21 }
 0xe81   : > { %v2903_v17 = vmul.f32 %v2871_v9, %v2647_v33 }
 0xe82   : > { %3295 = vmatmul.mubr.bf16.vlgmr.msra.gmra.mrb[64].mxu1 %v2919_v23  ;;  %v2924_v8 = vpack.c.bf16 %v2908_v51, %v2904_v62  ;;  %v2907_v12 = vmul.f32 %v2875_v55, %v2651_v44  ;;  %v6003_v23 = vld [vmem:[%s6062_s11] ss:$0 sm:$0xff] }
 0xe84   : > { %3302 = vmatprep.mubr.bf16.mxu1 %v2924_v8  ;;  %v2923_v56 = vpack.c.bf16 %v2907_v12, %v2903_v17  ;;  %v6170_v8 = vld [vmem:[#allocation7_spill] sm:$0xff] }
 0xe8a   : > { %3303 = vmatmul.mubr.bf16.gmra.mrb[68].mxu1 %v2923_v56 }
 0xf33   : > { %v3712_v14 = vpop.f32.mrb[48].mxu1 }
 0xf34   : > { %v3713_v16 = vpop.f32.mrb[49].mxu1 }
 0xf35   : > { %v3714_v45 = vadd.f32 %v3713_v16, %v3712_v14  ;;  %v3715_v53 = vpop.f32.mrb[50].mxu1  ;;  %v6171_v14 = vld [vmem:[#allocation8_spill] sm:$0xff] }
 0xf36   : > { %v3752_v42 = vpop.f32.mrb[56].mxu0  ;;  %v3716_v41 = vpop.f32.mrb[51].mxu1 }
 0xf37   : > { %v3753_v60 = vpop.f32.mrb[57].mxu0  ;;  %v3717_v7 = vadd.f32 %v3716_v41, %v3715_v53 }
 0xf38   : > { %v3754_v37 = vadd.f32 %v3753_v60, %v3752_v42  ;;  %v3755_v35 = vpop.f32.mrb[58].mxu0 }
 0xf39   : > { %v3756_v25 = vpop.f32.mrb[59].mxu0 }
 0xf3a   : > { %v3281_v0 = vadd.f32 %v3754_v37, %v3714_v45  ;;  %v3757_v39 = vadd.f32 %v3756_v25, %v3755_v35  ;;  %v6172_v25 = vld [vmem:[#allocation9_spill] sm:$0xff] }
 0xf3c   : > { %v3311_v40 = vadd.f32 %v3281_v0, %v6166_v2  ;;  %v3284_v49 = vadd.f32 %v3757_v39, %v3717_v7 }
 0xf3d   : > { %v3718_v3 = vpop.f32.mrb[52].mxu1 }
 0xf3e   : > { %v3326_v28 = vadd.f32 %v6003_v23, %v3311_v40  ;;  %v3312_v29 = vadd.f32 %v3284_v49, %v6167_v31  ;;  %v3719_v63 = vpop.f32.mrb[53].mxu1  ;;  %v6173_v40 = vld [vmem:[#allocation10_spill] sm:$0xff] }
 0xf3f   : > { %v3758_v24 = vpop.f32.mrb[60].mxu0  ;;  %v3720_v1 = vadd.f32 %v3719_v63, %v3718_v3  ;;  %v3721_v10 = vpop.f32.mrb[54].mxu1 }
 0xf40   : > { %3334 = vst [vmem:[%s6011_s22] sm:$0xff] %v3326_v28  ;;  %v3327_v38 = vadd.f32 %v6003_v23, %v3312_v29  ;;  %v3759_v15 = vpop.f32.mrb[61].mxu0  ;;  %v3722_v22 = vpop.f32.mrb[55].mxu1 }
 0xf41   : > { %v3760_v36 = vadd.f32 %v3759_v15, %v3758_v24  ;;  %v3761_v27 = vpop.f32.mrb[62].mxu0  ;;  %v3723_v54 = vadd.f32 %v3722_v22, %v3721_v10 }
 0xf42   : > { %3335 = vst [vmem:[%s6011_s22 + $0x8] sm:$0xff] %v3327_v38  ;;  %v3762_v11 = vpop.f32.mrb[63].mxu0 }
 0xf43   : > { %v3289_v32 = vadd.f32 %v3760_v36, %v3720_v1  ;;  %v3763_v26 = vadd.f32 %v3762_v11, %v3761_v27 }
 0xf45   : > { %v3313_v30 = vadd.f32 %v3289_v32, %v6168_v5  ;;  %v3292_v57 = vadd.f32 %v3763_v26, %v3723_v54  ;;  %v3724_v50 = vpop.f32.mrb[56].mxu1 }
 0xf46   : > { %v3725_v46 = vpop.f32.mrb[57].mxu1 }
 0xf47   : > { %v3328_v58 = vadd.f32 %v6003_v23, %v3313_v30  ;;  %v3314_v6 = vadd.f32 %v3292_v57, %v6169_v52  ;;  %v3726_v43 = vadd.f32 %v3725_v46, %v3724_v50  ;;  %v3727_v18 = vpop.f32.mrb[58].mxu1 }
 0xf48   : > { %v3728_v20 = vpop.f32.mrb[59].mxu1 }
 0xf49   : > { %3336 = vst [vmem:[%s6011_s22 + $0x10] sm:$0xff] %v3328_v58  ;;  %v3329_v61 = vadd.f32 %v6003_v23, %v3314_v6  ;;  %v3729_v47 = vadd.f32 %v3728_v20, %v3727_v18 }
 0xf4b   : > { %3337 = vst [vmem:[%s6011_s22 + $0x18] sm:$0xff] %v3329_v61 }
 0xf4d   : > { %v3730_v34 = vpop.f32.mrb[60].mxu1 }
 0xf4e   : > { %v3731_v48 = vpop.f32.mrb[61].mxu1 }
 0xf4f   : > { %v3732_v59 = vadd.f32 %v3731_v48, %v3730_v34  ;;  %v3733_v19 = vpop.f32.mrb[62].mxu1 }
 0xf50   : > { %v3734_v13 = vpop.f32.mrb[63].mxu1 }
 0xf51   : > { %v3735_v4 = vadd.f32 %v3734_v13, %v3733_v19 }
 0xf55   : > { %v3764_v21 = vpop.f32.mrb[64].mxu1 }
 0xf56   : > { %v3765_v33 = vpop.f32.mrb[65].mxu1 }
 0xf57   : > { %v3766_v9 = vadd.f32 %v3765_v33, %v3764_v21  ;;  %v3767_v62 = vpop.f32.mrb[66].mxu1 }
 0xf58   : > { %v3768_v51 = vpop.f32.mrb[67].mxu1 }
 0xf59   : > { %v3297_v44 = vadd.f32 %v3766_v9, %v3726_v43  ;;  %v3769_v55 = vadd.f32 %v3768_v51, %v3767_v62 }
 0xf5b   : > { %v3315_v17 = vadd.f32 %v3297_v44, %v6170_v8  ;;  %v3300_v12 = vadd.f32 %v3769_v55, %v3729_v47 }
 0xf5d   : > { %v3330_v56 = vadd.f32 %v6003_v23, %v3315_v17  ;;  %v3316_v16 = vadd.f32 %v3300_v12, %v6171_v14  ;;  %v3770_v42 = vpop.f32.mrb[68].mxu1 }
 0xf5e   : > { %v3771_v45 = vpop.f32.mrb[69].mxu1 }
 0xf5f   : > { %3338 = vst [vmem:[%s6011_s22 + $0x20] sm:$0xff] %v3330_v56  ;;  %v3331_v53 = vadd.f32 %v6003_v23, %v3316_v16  ;;  %v3772_v60 = vadd.f32 %v3771_v45, %v3770_v42  ;;  %v3773_v41 = vpop.f32.mrb[70].mxu1 }
 0xf60   : > { %v3774_v37 = vpop.f32.mrb[71].mxu1 }
 0xf61   : > { %3339 = vst [vmem:[%s6011_s22 + $0x28] sm:$0xff] %v3331_v53  ;;  %v3305_v35 = vadd.f32 %v3772_v60, %v3732_v59  ;;  %v3775_v7 = vadd.f32 %v3774_v37, %v3773_v41 }
 0xf63   : > { %v3317_v0 = vadd.f32 %v3305_v35, %v6172_v25  ;;  %v3308_v39 = vadd.f32 %v3775_v7, %v3735_v4 }
 0xf65   : > { %v3332_v2 = vadd.f32 %v6003_v23, %v3317_v0  ;;  %v3318_v49 = vadd.f32 %v3308_v39, %v6173_v40 }
 0xf67   : > { %3340 = vst [vmem:[%s6011_s22 + $0x30] sm:$0xff] %v3332_v2  ;;  %v3333_v28 = vadd.f32 %v6003_v23, %v3318_v49 }
 0xf69   : > { %3341 = vst [vmem:[%s6011_s22 + $0x38] sm:$0xff] %v3333_v28 }
 0xf6a PF: > { %s22_s25 = sadd.s32 1, %s4458_s25   ;;  %s6174_s21 = smov %s4450_s23 }
 0xf6b   : > { %p19_p8 = scmp.ge.s32.totalorder %s22_s25, 6   ;;  %s6175_s22 = smov %s4454_s24 }
 0xf6c   : > { %s6176_s23 = smov %s6179_s26  ;;  %s6177_s24 = smov %s6183_s27 }
 0xf6d   :  { %21 = sbr.rel (!%p19_p8) target bundleno = 3 (0x3), region = 107 }

// kernel: gpt2_encoder_forward.5
= control target key start
LH: loop header
LB: loop body
LE: loop exit
PB: predicated region body
PF: predicated region fallthrough
CT: control target
= control target key end

     0   :  { %s1139_s21 = smov 0   ;;  %s1338_s0 = inlined_call_operand.vmem [shape: f32[256,128], index: 0, kind: input, shape index: {}]   ;;  %s1339_s1 = inlined_call_operand.vmem [shape: f32[1,128], index: 1, kind: input, shape index: {}]   ;;  %s1340_s2 = inlined_call_operand.vmem [shape: f32[1,128], index: 2, kind: input, shape index: {}]   ;;  %s1341_s3 = inlined_call_operand.vmem [shape: bf16[128,384], index: 3, kind: input, shape index: {}]   ;;  %s1342_s4 = inlined_call_operand.vmem [shape: f32[1,384], index: 4, kind: input, shape index: {}]   ;;  %s1343_s5 = inlined_call_operand.vmem [shape: bf16[256,128], index: 5, kind: output, shape index: {0}]   ;;  %s1344_s6 = inlined_call_operand.vmem [shape: bf16[256,256], index: 6, kind: output, shape index: {1}]  }
   0x1 LB: > { %s906_s22 = sadd.s32 4294967295, %s1101_s21   ;;  %p910_p0 = scmp.ge.s32.totalorder %s1101_s21, 1  ;;  %s1101_s21 = sphi %s1139_s21, %s17_s21  }
   0x2   : > { %p216_p1 = scmp.lt.s32.totalorder %s1101_s21, 5 }
   0x4   : > { %p217_p2 = pnand %p910_p0, %p216_p1 }
   0x5   : > { %s911_s23 = sshll.u32 (!%p217_p2), %s906_s22, 3  ;;  %v1047_v8 = vld [vmem:[%s1341_s3 + $0x4] ss:$12 sps:$4 sm:$0xff] (!%p217_p2)   ;;  %v1049_v9 = vld [vmem:[%s1341_s3] ss:$12 sps:$4 sm:$0xff] (!%p217_p2)   ;;  %v1103_v63 = vmov (!%p217_p2), 0  }
   0x6   : > { %220 = sbr.rel (%p217_p2) target bundleno = 578 (0x242), region = 40  ;;  %p253_p3 = scmp.lt.s32.totalorder (!%p217_p2), %s911_s23, 31  ;;  %v1050_v10 = vld [vmem:[%s1341_s3 + $0x1c] ss:$12 sps:$4 sm:$0xff] (!%p217_p2)   ;;  %580 = vmatprep.subr.bf16.mxu0 (!%p217_p2), %v1047_v8  ;;  %v1053_v44 = vld [vmem:[%s1341_s3 + $0x18] ss:$12 sps:$4 sm:$0xff] (!%p217_p2)   ;;  %612 = vmatprep.mubr.bf16.mxu0 (!%p217_p2), %v1103_v63 }
   0x7   : > { %v1052_v11 = vld [vmem:[%s1341_s3 + $0x8] ss:$12 sps:$4 sm:$0xff] (!%p217_p2)   ;;  %581 = vmatpush1.bf16.msra.mxu0 (!%p217_p2), %v1049_v9  ;;  %v1056_v46 = vld [vmem:[%s1341_s3 + $0x20] ss:$12 sps:$4 sm:$0xff] (!%p217_p2)   ;;  %v1057_v47 = vld [vmem:[%s1341_s3 + $0x30] ss:$12 sps:$4 sm:$0xff] (!%p217_p2)  }
   0x8   : > { %1014 = vmatprep.subr.bf16.mxu1 (!%p217_p2), %v1052_v11  ;;  %582 = vmatprep.subr.bf16.mxu0 (!%p217_p2), %v1050_v10  ;;  %v1054_v45 = vld [vmem:[%s1341_s3 + $0x34] ss:$12 sps:$4 sm:$0xff] (!%p217_p2)   ;;  %v1058_v48 = vld [vmem:[%s1341_s3 + $0x4c] ss:$12 sps:$4 sm:$0xff] (!%p217_p2)   ;;  %v1062_v51 = vld [vmem:[%s1341_s3 + $0x64] ss:$12 sps:$4 sm:$0xff] (!%p217_p2)  }
   0x9   : > { %1015 = vmatpush3.bf16.msra.mxu1 (!%p217_p2), %v1052_v11  ;;  %v1060_v49 = vld [vmem:[%s1341_s3 + $0x38] ss:$12 sps:$4 sm:$0xff] (!%p217_p2)   ;;  %v1061_v50 = vld [vmem:[%s1341_s3 + $0x48] ss:$12 sps:$4 sm:$0xff] (!%p217_p2)   ;;  %v1064_v52 = vld [vmem:[%s1341_s3 + $0x50] ss:$12 sps:$4 sm:$0xff] (!%p217_p2)  }
   0xa   : > { %1016 = vmatprep.subr.bf16.mxu1 (!%p217_p2), %v1056_v46  ;;  %v1065_v53 = vld [vmem:[%s1341_s3 + $0x60] ss:$12 sps:$4 sm:$0xff] (!%p217_p2)   ;;  %v1066_v54 = vld [vmem:[%s1341_s3 + $0x7c] ss:$12 sps:$4 sm:$0xff] (!%p217_p2)   ;;  %v1069_v56 = vld [vmem:[%s1341_s3 + $0x78] ss:$12 sps:$4 sm:$0xff] (!%p217_p2)  }
   0xb   : > { %583 = vmatpush1.bf16.msra.mxu0 (!%p217_p2), %v1053_v44  ;;  %v1068_v55 = vld [vmem:[%s1341_s3 + $0x68] ss:$12 sps:$4 sm:$0xff] (!%p217_p2)   ;;  %v1072_v58 = vld [vmem:[%s1341_s3 + $0x80] ss:$12 sps:$4 sm:$0xff] (!%p217_p2)   ;;  %v1073_v59 = vld [vmem:[%s1341_s3 + $0x90] ss:$12 sps:$4 sm:$0xff] (!%p217_p2)  }
   0xc   : > { %584 = vmatprep.subr.bf16.mxu0 (!%p217_p2), %v1054_v45  ;;  %v1070_v57 = vld [vmem:[%s1341_s3 + $0x94] ss:$12 sps:$4 sm:$0xff] (!%p217_p2)   ;;  %v1074_v60 = vld [vmem:[%s1341_s3 + $0xac] ss:$12 sps:$4 sm:$0xff] (!%p217_p2)  }
   0xd   : > { %s1346_s23 = smov (!%p253_p3, %s911_s23), 31  ;;  %1017 = vmatpush3.bf16.msra.mxu1 %v1056_v46  ;;  %v1076_v61 = vld [vmem:[%s1341_s3 + $0x98] ss:$12 sps:$4 sm:$0xff]   ;;  %v1077_v62 = vld [vmem:[%s1341_s3 + $0xa8] ss:$12 sps:$4 sm:$0xff]  }
   0xe   : > { %s912_s24 = sshll.u32 %s1346_s23, 3  ;;  %1018 = vmatprep.subr.bf16.mxu1 %v1060_v49  ;;  %s914_s16 = sshll.u32 %s1346_s23, 2 }
   0xf   : > { %s256_s27 = scalar_lea.vmem %s1338_s0, %s912_s24  ;;  %585 = vmatpush1.bf16.msra.mxu0 %v1057_v47  ;;  %s1292_s19 = scalar_lea.vmem %s1343_s5, %s914_s16 }
  0x10   : > { %v272_v0 = vld [vmem:[%s256_s27] sm:$0xff]  ;;  %v274_v1 = vld [vmem:[%s256_s27 + $0x10] sm:$0xff]  ;;  %v273_v2 = vld [vmem:[%s256_s27 + $0x8] sm:$0xff]  ;;  %586 = vmatprep.subr.bf16.mxu0 %v1058_v48  ;;  %s1301_s25 = scalar_lea.vmem %s1344_s6, %s912_s24 }
  0x11   : > { %282 = vadd.xlane.f32.xlu0 %v272_v0  ;;  %286 = vadd.xlane.f32.xlu1 %v274_v1  ;;  %v275_v3 = vld [vmem:[%s256_s27 + $0x18] sm:$0xff]  ;;  %v276_v4 = vld [vmem:[%s256_s27 + $0x20] sm:$0xff]  ;;  %v277_v5 = vld [vmem:[%s256_s27 + $0x28] sm:$0xff] }
  0x12   : > { %v278_v6 = vld [vmem:[%s256_s27 + $0x30] sm:$0xff]  ;;  %v279_v7 = vld [vmem:[%s256_s27 + $0x38] sm:$0xff]  ;;  %1019 = vmatpush3.bf16.msra.mxu1 %v1060_v49 }
  0x13   : > { %587 = vmatpush1.bf16.msra.mxu0 %v1061_v50  ;;  %1020 = vmatprep.subr.bf16.mxu1 %v1064_v52 }
  0x14   : > { %588 = vmatprep.subr.bf16.mxu0 %v1062_v51 }
  0x15   : > { %284 = vadd.xlane.f32.xlu0 %v273_v2  ;;  %288 = vadd.xlane.f32.xlu1 %v275_v3 }
  0x16   : > { %1021 = vmatpush3.bf16.msra.mxu1 %v1064_v52 }
  0x17   : > { %589 = vmatpush1.bf16.msra.mxu0 %v1065_v53  ;;  %1022 = vmatprep.subr.bf16.mxu1 %v1068_v55 }
  0x18   : > { %590 = vmatprep.subr.bf16.mxu0 %v1066_v54 }
  0x19   : > { %290 = vadd.xlane.f32.xlu0 %v276_v4  ;;  %292 = vadd.xlane.f32.xlu1 %v277_v5 }
  0x1a   : > { %1023 = vmatpush3.bf16.msra.mxu1 %v1068_v55 }
  0x1b   : > { %591 = vmatpush1.bf16.msra.mxu0 %v1069_v56  ;;  %1024 = vmatprep.subr.bf16.mxu1 %v1072_v58 }
  0x1c   : > { %592 = vmatprep.subr.bf16.mxu0 %v1070_v57 }
  0x1d   : > { %294 = vadd.xlane.f32.xlu0 %v278_v6  ;;  %296 = vadd.xlane.f32.xlu1 %v279_v7 }
  0x1e   : > { %1025 = vmatpush3.bf16.msra.mxu1 %v1072_v58 }
  0x1f   : > { %593 = vmatpush1.bf16.msra.mxu0 %v1073_v59  ;;  %1026 = vmatprep.subr.bf16.mxu1 %v1076_v61 }
  0x20   : > { %594 = vmatprep.subr.bf16.mxu0 %v1074_v60 }
  0x22   : > { %1027 = vmatpush3.bf16.msra.mxu1 %v1076_v61 }
  0x23   : > { %595 = vmatpush1.bf16.msra.mxu0 %v1077_v62 }
  0x9e   : > { %v283_v12 = vpop.xlane.xlu0 %282  ;;  %v287_v13 = vpop.xlane.xlu1 %286 }
  0x9f   : > { %v299_v14 = vmul.f32 0.0078125, %v283_v12  ;;  %v301_v15 = vmul.f32 0.0078125, %v287_v13 }
  0xa1   : > { %v1167_v16 = vsub.f32 %v272_v0, %v299_v14  ;;  %v1169_v17 = vsub.f32 %v274_v1, %v301_v15  ;;  %v1078_v0 = vld [vmem:[%s1341_s3 + $0xb0] ss:$12 sps:$4 sm:$0xff]  }
  0xa2   : > { %v285_v18 = vpop.xlane.xlu0 %284  ;;  %v289_v19 = vpop.xlane.xlu1 %288  ;;  %1028 = vmatprep.subr.bf16.mxu1 %v1078_v0 }
  0xa3   : > { %v300_v20 = vmul.f32 0.0078125, %v285_v18  ;;  %v315_v21 = vmul.f32 %v1167_v16, %v1167_v16  ;;  %v302_v22 = vmul.f32 0.0078125, %v289_v19  ;;  %v317_v25 = vmul.f32 %v1169_v17, %v1169_v17  ;;  %1029 = vmatpush3.bf16.msra.mxu1 %v1078_v0 }
  0xa5   : > { %v1173_v23 = vsub.f32 %v273_v2, %v300_v20  ;;  %323 = vadd.xlane.f32.xlu0 %v315_v21  ;;  %v1175_v24 = vsub.f32 %v275_v3, %v302_v22 }
  0xa6   : > { %v291_v26 = vpop.xlane.xlu0 %290  ;;  %v293_v27 = vpop.xlane.xlu1 %292 }
  0xa7   : > { %v303_v28 = vmul.f32 0.0078125, %v291_v26  ;;  %v316_v29 = vmul.f32 %v1173_v23, %v1173_v23  ;;  %v304_v30 = vmul.f32 0.0078125, %v293_v27  ;;  %v318_v33 = vmul.f32 %v1175_v24, %v1175_v24 }
  0xa9   : > { %v1181_v31 = vsub.f32 %v276_v4, %v303_v28  ;;  %327 = vadd.xlane.f32.xlu0 %v317_v25  ;;  %325 = vadd.xlane.f32.xlu1 %v316_v29  ;;  %v1183_v32 = vsub.f32 %v277_v5, %v304_v30  ;;  %v918_v30 = vld [vmem:[%s1339_s1] ss:$0 sm:$0xff] }
  0xaa   : > { %v295_v34 = vpop.xlane.xlu0 %294  ;;  %v297_v35 = vpop.xlane.xlu1 %296 }
  0xab   : > { %v305_v36 = vmul.f32 0.0078125, %v295_v34  ;;  %v319_v37 = vmul.f32 %v1181_v31, %v1181_v31  ;;  %v306_v38 = vmul.f32 0.0078125, %v297_v35  ;;  %v320_v41 = vmul.f32 %v1183_v32, %v1183_v32 }
  0xad   : > { %v1189_v39 = vsub.f32 %v278_v6, %v305_v36  ;;  %329 = vadd.xlane.f32.xlu1 %v318_v33  ;;  %331 = vadd.xlane.f32.xlu0 %v319_v37  ;;  %v1191_v40 = vsub.f32 %v279_v7, %v306_v38  ;;  %v919_v38 = vld [vmem:[%s1340_s2] ss:$0 sm:$0xff] }
  0xaf   : > { %v321_v42 = vmul.f32 %v1189_v39, %v1189_v39  ;;  %v322_v43 = vmul.f32 %v1191_v40, %v1191_v40 }
  0xb1   : > { %333 = vadd.xlane.f32.xlu1 %v320_v41  ;;  %335 = vadd.xlane.f32.xlu0 %v321_v42 }
  0xb5   : > { %337 = vadd.xlane.f32.xlu1 %v322_v43 }
 0x132   : > { %v324_v1 = vpop.xlane.xlu0 %323 }
 0x133   : > { %v339_v2 = vmul.f32 0.0078125, %v324_v1 }
 0x135   : > { %v347_v3 = vadd.f32 1e-05, %v339_v2 }
 0x136   : > { %v326_v4 = vpop.xlane.xlu1 %325  ;;  %v328_v5 = vpop.xlane.xlu0 %327 }
 0x137   : > { %1079 = vrsqrt.f32 %v347_v3  ;;  %v340_v6 = vmul.f32 0.0078125, %v326_v4  ;;  %v341_v7 = vmul.f32 0.0078125, %v328_v5 }
 0x139   : > { %v348_v8 = vadd.f32 1e-05, %v340_v6  ;;  %v349_v9 = vadd.f32 1e-05, %v341_v7 }
 0x13a   : > { %v330_v10 = vpop.xlane.xlu1 %329  ;;  %v332_v11 = vpop.xlane.xlu0 %331 }
 0x13b   : > { %1081 = vrsqrt.f32 %v348_v8  ;;  %v342_v12 = vmul.f32 0.0078125, %v330_v10  ;;  %v343_v13 = vmul.f32 0.0078125, %v332_v11 }
 0x13c   : > { %1083 = vrsqrt.f32 %v349_v9 }
 0x13d   : > { %v350_v14 = vadd.f32 1e-05, %v342_v12  ;;  %v351_v15 = vadd.f32 1e-05, %v343_v13 }
 0x13e   : > { %v334_v18 = vpop.xlane.xlu1 %333  ;;  %v336_v19 = vpop.xlane.xlu0 %335 }
 0x13f   : > { %1085 = vrsqrt.f32 %v350_v14  ;;  %v344_v20 = vmul.f32 0.0078125, %v334_v18  ;;  %v345_v21 = vmul.f32 0.0078125, %v336_v19 }
 0x140   : > { %1087 = vrsqrt.f32 %v351_v15 }
 0x141   : > { %v1080_v22 = vpop.eup %1079  ;;  %v352_v25 = vadd.f32 1e-05, %v344_v20  ;;  %v353_v26 = vadd.f32 1e-05, %v345_v21 }
 0x142   : > { %v338_v27 = vpop.xlane.xlu1 %337  ;;  %v363_v28 = vmul.f32 %v1080_v22, %v1167_v16 }
 0x143   : > { %1089 = vrsqrt.f32 %v352_v25  ;;  %v346_v29 = vmul.f32 0.0078125, %v338_v27 }
 0x144   : > { %1091 = vrsqrt.f32 %v353_v26  ;;  %v377_v37 = vmul.f32 %v918_v30, %v363_v28 }
 0x145   : > { %v1082_v33 = vpop.eup %1081  ;;  %v354_v34 = vadd.f32 1e-05, %v346_v29 }
 0x146   : > { %v1084_v35 = vpop.eup %1083  ;;  %v364_v36 = vmul.f32 %v1082_v33, %v1173_v23  ;;  %v391_v45 = vadd.f32 %v919_v38, %v377_v37 }
 0x147   : > { %1093 = vrsqrt.f32 %v354_v34  ;;  %v365_v16 = vmul.f32 %v1084_v35, %v1169_v17 }
 0x148   : > { %v378_v41 = vmul.f32 %v918_v30, %v364_v36 }
 0x149   : > { %v1086_v42 = vpop.eup %1085  ;;  %v379_v43 = vmul.f32 %v918_v30, %v365_v16 }
 0x14a   : > { %v1088_v44 = vpop.eup %1087  ;;  %v392_v46 = vadd.f32 %v919_v38, %v378_v41  ;;  %v366_v47 = vmul.f32 %v1086_v42, %v1175_v24 }
 0x14b   : > { %v367_v48 = vmul.f32 %v1088_v44, %v1181_v31  ;;  %v393_v51 = vadd.f32 %v919_v38, %v379_v43 }
 0x14c   : > { %v399_v49 = vpack.c.bf16 %v392_v46, %v391_v45  ;;  %v380_v23 = vmul.f32 %v918_v30, %v366_v47 }
 0x14d   : > { %v1090_v50 = vpop.eup %1089  ;;  %v381_v54 = vmul.f32 %v918_v30, %v367_v48 }
 0x14e   : > { %v1092_v52 = vpop.eup %1091  ;;  %613 = vmatmul.mubr.bf16.vlgmr.msra.gmra.mrb[0].mxu0 %v399_v49  ;;  %1030 = vmatprep.mubr.bf16.mxu1 %v399_v49  ;;  %v394_v53 = vadd.f32 %v919_v38, %v380_v23  ;;  %v368_v17 = vmul.f32 %v1090_v50, %v1183_v32 }
 0x14f   : > { %622 = vmatprep.mubr.bf16.mxu0 %v1103_v63  ;;  %v369_v55 = vmul.f32 %v1092_v52, %v1189_v39  ;;  %v395_v31 = vadd.f32 %v919_v38, %v381_v54  ;;  %v437_v39 = vlaneseq }
 0x150   : > { %v400_v56 = vpack.c.bf16 %v394_v53, %v393_v51  ;;  %v382_v57 = vmul.f32 %v918_v30, %v368_v17 }
 0x151   : > { %v1094_v24 = vpop.eup %1093  ;;  %v383_v60 = vmul.f32 %v918_v30, %v369_v55  ;;  %v438_v2 = vshrl.u32 %v437_v39, 7 }
 0x152   : > { %1031 = vmatmul.mubr.bf16.vlgmr.msra.gmra.mrb[0].mxu1 %v400_v56  ;;  %v396_v58 = vadd.f32 %v919_v38, %v382_v57  ;;  %v370_v59 = vmul.f32 %v1094_v24, %v1191_v40  ;;  %v435_v40 = vld [vmem:[%s1342_s4] sm:$0x7] }
 0x153   : > { %v397_v0 = vadd.f32 %v919_v38, %v383_v60  ;;  %v439_v3 = vsub.s32 0, %v438_v2  ;;  %v443_v4 = vsub.s32 1, %v438_v2  ;;  %v447_v5 = vsub.s32 2, %v438_v2 }
 0x154   : > { %v401_v61 = vpack.c.bf16 %v396_v58, %v395_v31  ;;  %v384_v62 = vmul.f32 %v918_v30, %v370_v59 }
 0x155   : > { %v1280_v6 = vrot.slane %v435_v40, %v439_v3  ;;  %v1283_v9 = vrot.slane %v435_v40, %v443_v4 }
 0x156   : > { %623 = vmatmul.mubr.bf16.gmra.mrb[4].mxu0 %v400_v56  ;;  %1034 = vmatprep.mubr.bf16.mxu1 %v401_v61  ;;  %v398_v32 = vadd.f32 %v919_v38, %v384_v62 }
 0x157   : > { %632 = vmatprep.mubr.bf16.mxu0 %v1103_v63 }
 0x158   : > { %v402_v1 = vpack.c.bf16 %v398_v32, %v397_v0 }
 0x15a   : > { %1035 = vmatmul.mubr.bf16.gmra.mrb[4].mxu1 %v402_v1 }
 0x15e   : > { %633 = vmatmul.mubr.bf16.gmra.mrb[8].mxu0 %v401_v61 }
 0x15f   : > { %642 = vmatprep.mubr.bf16.mxu0 %v1103_v63  ;;  %v1285_v63 = vrot.slane %v435_v40, %v447_v5 }
 0x166   : > { %643 = vmatmul.mubr.bf16.gmra.mrb[12].mxu0 %v402_v1 }
 0x221   : > { %v614_v7 = vpop.f32.mrb[0].mxu0 }
 0x222   : > { %v616_v8 = vpop.f32.mrb[1].mxu0  ;;  %v615_v11 = vadd.f32 %v614_v7, %v1280_v6 }
 0x223   : > { %v618_v10 = vpop.f32.mrb[2].mxu0  ;;  %v617_v19 = vadd.f32 %v616_v8, %v1283_v9 }
 0x224   : > { %v619_v12 = vadd.f32 %v618_v10, %v1280_v6  ;;  %v620_v13 = vpop.f32.mrb[3].mxu0 }
 0x225   : > { %v1032_v14 = vpop.f32.mrb[0].mxu1  ;;  %v621_v25 = vadd.f32 %v620_v13, %v1283_v9 }
 0x226   : > { %v982_v15 = vpack.c.bf16 %v619_v12, %v615_v11  ;;  %v687_v18 = vpop.f32.mrb[1].mxu1  ;;  %v696_v30 = vadd.f32 %v1032_v14, %v1285_v63 }
 0x227   : > { %v688_v20 = vadd.f32 %v687_v18, %v1285_v63  ;;  %v1033_v21 = vpop.f32.mrb[2].mxu1 }
 0x228   : > { %983 = vst [vmem:[%s1292_s19] sm:$0xff] %v982_v15   ;;  %v690_v22 = vpop.f32.mrb[3].mxu1  ;;  %v699_v16 = vadd.f32 %v1033_v21, %v1285_v63 }
 0x229   : > { %v971_v26 = vpack.c.bf16 %v688_v20, %v617_v19  ;;  %v691_v27 = vadd.f32 %v690_v22, %v1285_v63  ;;  %v624_v28 = vpop.f32.mrb[4].mxu0 }
 0x22a   : > { %v626_v29 = vpop.f32.mrb[5].mxu0  ;;  %v625_v36 = vadd.f32 %v624_v28, %v1280_v6 }
 0x22b   : > { %806 = vst [vmem:[%s1301_s25] sm:$0xff] %v971_v26  ;;  %v972_v33 = vpack.c.bf16 %v691_v27, %v621_v25  ;;  %v627_v34 = vadd.f32 %v626_v29, %v1283_v9  ;;  %v628_v35 = vpop.f32.mrb[6].mxu0 }
 0x22c   : > { %v629_v37 = vadd.f32 %v628_v35, %v1280_v6  ;;  %v630_v38 = vpop.f32.mrb[7].mxu0 }
 0x22d   : > { %807 = vst [vmem:[%s1301_s25 + $0x8] sm:$0xff] %v972_v33  ;;  %v973_v41 = vpack.c.bf16 %v696_v30, %v627_v34  ;;  %v631_v42 = vadd.f32 %v630_v38, %v1283_v9  ;;  %v1036_v43 = vpop.f32.mrb[4].mxu1 }
 0x22e   : > { %v987_v44 = vpack.c.bf16 %v629_v37, %v625_v36  ;;  %v703_v45 = vpop.f32.mrb[5].mxu1  ;;  %v712_v60 = vadd.f32 %v1036_v43, %v1285_v63 }
 0x22f   : > { %808 = vst [vmem:[%s1301_s25 + $0x10] sm:$0xff] %v973_v41  ;;  %v974_v46 = vpack.c.bf16 %v699_v16, %v631_v42  ;;  %v1037_v47 = vpop.f32.mrb[6].mxu1  ;;  %v704_v50 = vadd.f32 %v703_v45, %v1285_v63 }
 0x230   : > { %999 = vst [vmem:[%s1292_s19 + $0x8] sm:$0xff] %v987_v44   ;;  %v706_v48 = vpop.f32.mrb[7].mxu1  ;;  %v715_v39 = vadd.f32 %v1037_v47, %v1285_v63 }
 0x231   : > { %809 = vst [vmem:[%s1301_s25 + $0x18] sm:$0xff] %v974_v46  ;;  %v634_v49 = vpop.f32.mrb[8].mxu0  ;;  %v707_v55 = vadd.f32 %v706_v48, %v1285_v63 }
 0x232   : > { %v636_v23 = vpop.f32.mrb[9].mxu0  ;;  %v635_v53 = vadd.f32 %v634_v49, %v1280_v6 }
 0x233   : > { %v637_v51 = vadd.f32 %v636_v23, %v1283_v9  ;;  %v638_v52 = vpop.f32.mrb[10].mxu0 }
 0x234   : > { %v639_v17 = vadd.f32 %v638_v52, %v1280_v6  ;;  %v640_v54 = vpop.f32.mrb[11].mxu0 }
 0x235   : > { %v975_v56 = vpack.c.bf16 %v704_v50, %v637_v51  ;;  %v641_v57 = vadd.f32 %v640_v54, %v1283_v9 }
 0x236   : > { %v992_v24 = vpack.c.bf16 %v639_v17, %v635_v53 }
 0x237   : > { %810 = vst [vmem:[%s1301_s25 + $0x20] sm:$0xff] %v975_v56  ;;  %v976_v31 = vpack.c.bf16 %v707_v55, %v641_v57 }
 0x238   : > { %1000 = vst [vmem:[%s1292_s19 + $0x10] sm:$0xff] %v992_v24  }
 0x239   : > { %811 = vst [vmem:[%s1301_s25 + $0x28] sm:$0xff] %v976_v31  ;;  %v644_v58 = vpop.f32.mrb[12].mxu0 }
 0x23a   : > { %v646_v59 = vpop.f32.mrb[13].mxu0  ;;  %v645_v0 = vadd.f32 %v644_v58, %v1280_v6 }
 0x23b   : > { %v647_v61 = vadd.f32 %v646_v59, %v1283_v9  ;;  %v648_v62 = vpop.f32.mrb[14].mxu0 }
 0x23c   : > { %v649_v32 = vadd.f32 %v648_v62, %v1280_v6  ;;  %v650_v1 = vpop.f32.mrb[15].mxu0 }
 0x23d   : > { %v977_v2 = vpack.c.bf16 %v712_v60, %v647_v61  ;;  %v651_v3 = vadd.f32 %v650_v1, %v1283_v9 }
 0x23e   : > { %v997_v40 = vpack.c.bf16 %v649_v32, %v645_v0 }
 0x23f   : > { %812 = vst [vmem:[%s1301_s25 + $0x30] sm:$0xff] %v977_v2  ;;  %v978_v4 = vpack.c.bf16 %v715_v39, %v651_v3 }
 0x240   : > { %1001 = vst [vmem:[%s1292_s19 + $0x18] sm:$0xff] %v997_v40  }
 0x241   : > { %813 = vst [vmem:[%s1301_s25 + $0x38] sm:$0xff] %v978_v4 }
 0x242 PF: > { %s17_s21 = sadd.s32 1, %s1101_s21  }
 0x243   : > { %p14_p4 = scmp.ge.s32.totalorder %s17_s21, 6  }
 0x245   :  { %16 = sbr.rel (!%p14_p4) target bundleno = 1 (0x1), region = 82 }

// kernel: gpt2_encoder_forward.9
= control target key start
LH: loop header
LB: loop body
LE: loop exit
PB: predicated region body
PF: predicated region fallthrough
CT: control target
= control target key end

     0   :  { %s2141_s0 = inlined_call_operand.vmem [shape: f32[2,1,128], index: 0, kind: input, shape index: {}]   ;;  %s2142_s1 = inlined_call_operand.vmem [shape: f32[256,128], index: 1, kind: input, shape index: {}]   ;;  %s2143_s2 = inlined_call_operand.vmem [shape: f32[1,128], index: 2, kind: input, shape index: {}]   ;;  %s2144_s3 = inlined_call_operand.vmem [shape: f32[1,128], index: 3, kind: input, shape index: {}]   ;;  %s2145_s4 = inlined_call_operand.vmem [shape: bf16[128,128], index: 4, kind: input, shape index: {}]   ;;  %s2146_s5 = inlined_call_operand.vmem [shape: f32[1,128], index: 5, kind: input, shape index: {}]   ;;  %s2147_s6 = inlined_call_operand.vmem [shape: bf16[128,128], index: 6, kind: input, shape index: {}]   ;;  %s2148_s7 = inlined_call_operand.vmem [shape: f32[1,128], index: 7, kind: input, shape index: {}]   ;;  %s2149_s8 = inlined_call_operand.vmem [shape: bf16[128,128], index: 8, kind: input, shape index: {}]   ;;  %s2150_s9 = inlined_call_operand.vmem [shape: f32[1,128], index: 9, kind: input, shape index: {}]   ;;  %s2151_s10 = inlined_call_operand.vmem [shape: bf16[128,128], index: 10, kind: input, shape index: {}]   ;;  %s2152_s11 = inlined_call_operand.vmem [shape: f32[1,128], index: 11, kind: input, shape index: {}]   ;;  %s2153_s12 = inlined_call_operand.hbm [shape: f32[2,1,128], index: 12, kind: output, shape index: {}]  }
   0x1   :  { %2154 = sst [smem:[#allocation5_spill]] %s2141_s0 }
   0x2   :  { %17 = vsyncpa [#allocation3], 0 }
   0x3   :  { %19 = vsyncpa [#allocation3 + $0x1], 0  ;;  %s1725_s21 = smov 0   ;;  %s1727_s22 = smov 0  }
   0x4   :  { %s1729_s23 = smov 0   ;;  %s1731_s24 = smov 0  }
   0x5 LB: > { %s1746_s25 = sadd.s32 4294967295, %s1654_s24   ;;  %s1249_s26 = sadd.s32 4294967294, %s1654_s24   ;;  %s1654_s24 = sphi %s1731_s24, %s2161_s24   ;;  %s1650_s23 = sphi %s1729_s23, %s2160_s23   ;;  %s1646_s22 = sphi %s1727_s22, %s2159_s22   ;;  %s1642_s21 = sphi %s1725_s21, %s2158_s21  }
   0x6   : > { %s1750_s27 = sadd.s32 1, %s1654_s24   ;;  %s294_s28 = sadd.s32 1, %s1650_s23 }
   0x7   : > { %s291_s29 = ssub.s32 %s1654_s24, %s1750_s27  ;;  %p304_p0 = scmp.ne.s32.totalorder %s1650_s23, %s1646_s22 }
   0x8   : > { %p292_p1 = scmp.eq.s32.totalorder %s291_s29, 0  ;;  %p305_p2 = scmp.eq.s32.totalorder %s1746_s25, 1 }
   0x9   : > { %p310_p3 = scmp.ne.s32.totalorder %s1646_s22, %s1642_s21  ;;  %p311_p4 = scmp.eq.s32.totalorder %s1249_s26, 1 }
   0xa   : > { %s1761_s30 = scalar_select %p292_p1, %s1650_s23, %s294_s28  }
   0xb   : > { %p1763_p5 = por %p305_p2, %p304_p0  ;;  %p1767_p6 = por %p311_p4, %p310_p3 }
   0xc   : > { %p1252_p7 = scmp.ge.s32.totalorder %s1654_s24, 1  ;;  %p374_p8 = scmp.lt.s32.totalorder %s1654_s24, 3 }
   0xe   : > { %p375_p9 = pnand %p1252_p7, %p374_p8 }
   0xf   : > { %s1774_s15 = sshll.u32 (!%p375_p9), %s1746_s25, 4  ;;  %p418_p11 = scmp.lt.s32.totalorder (!%p375_p9), %s1746_s25, 1  ;;  %vm1657_vm0 = vmmov (!%p375_p9), 0   ;;  %vm738_vm1 = vcmask (!%p375_p9), 1040384  }
  0x10   : > { %378 = sbr.rel (%p375_p9) target bundleno = 1472 (0x5c0), region = 68  ;;  %p422_p10 = scmp.lt.s32.totalorder (!%p375_p9), %s1774_s15, 31 }
  0x11   : > { %s2157_s0 = sld [smem:[#allocation5_spill]] (!%p375_p9)  ;;  %s416_s18 = sand.u32 (!%p375_p9), 1, %s1646_s22  }
  0x17   : > { %s423_s16 = scalar_select %p422_p10, %s1774_s15, 31 }
  0x18   : > { %s2163_s25 = smov (!%p418_p11, %s1746_s25), 1 }
  0x19   : > { %s1254_s17 = sshll.u32 %s423_s16, 3  ;;  %s420_s29 = scalar_lea.vmem %s2157_s0, %s2163_s25 }
  0x1a   : > { %s425_s20 = scalar_lea.vmem %s2142_s1, %s1254_s17  ;;  %s417_s25 = scalar_lea.vmem [#allocation2], %s416_s18 }
  0x1b   : > { %v428_v0 = vld [vmem:[%s425_s20] sm:$0xff]  ;;  %v430_v1 = vld [vmem:[%s425_s20 + $0x10] sm:$0xff]  ;;  %v429_v2 = vld [vmem:[%s425_s20 + $0x8] sm:$0xff]  ;;  %s1185_s26 = sshll.u32 %s417_s25, 4  ;;  %s2099_s16 = scalar_lea.hbm %s2153_s12, %s1774_s15  ;;  %s2101_s26 = int_to_ptr.vmem [resolvable:$true] %s1185_s26 }
  0x1c   : > { %446 = vadd.xlane.f32.xlu0 %v428_v0  ;;  %450 = vadd.xlane.f32.xlu1 %v430_v1  ;;  %v431_v3 = vld [vmem:[%s425_s20 + $0x18] sm:$0xff]  ;;  %v432_v4 = vld [vmem:[%s425_s20 + $0x20] sm:$0xff]  ;;  %v433_v5 = vld [vmem:[%s425_s20 + $0x28] sm:$0xff]  ;;  %s1173_s17 = scalar_lea.sflag [#allocation3], %s416_s18  ;;  %s1592_s19 = scalar_lea.vmem %s2101_s26, 16 }
  0x1d   : > { %v434_v6 = vld [vmem:[%s425_s20 + $0x30] sm:$0xff]  ;;  %v435_v7 = vld [vmem:[%s425_s20 + $0x38] sm:$0xff]  ;;  %v436_v8 = vld [vmem:[%s425_s20 + $0x40] sm:$0xff]  ;;  %p1593_p12 = scmp.ne.s32.totalorder %s2101_s26, %s1592_s19 }
  0x1e   : > { %v437_v9 = vld [vmem:[%s425_s20 + $0x48] sm:$0xff]  ;;  %v1781_v10 = vld [vmem:[%s425_s20 + $0x50] sm:$0xff]  ;;  %v1783_v11 = vld [vmem:[%s425_s20 + $0x58] sm:$0xff] }
  0x1f   : > { %v1787_v12 = vld [vmem:[%s425_s20 + $0x60] sm:$0xff]  ;;  %v1789_v13 = vld [vmem:[%s425_s20 + $0x68] sm:$0xff]  ;;  %v1793_v14 = vld [vmem:[%s425_s20 + $0x70] sm:$0xff]  ;;  %p1594_p13 = pnand %p1593_p12, %p1763_p5 }
  0x20   : > { %448 = vadd.xlane.f32.xlu0 %v429_v2  ;;  %452 = vadd.xlane.f32.xlu1 %v431_v3  ;;  %v1795_v15 = vld [vmem:[%s425_s20 + $0x78] sm:$0xff]  ;;  %s1659_s20 = smov [#allocation2]  }
  0x21   : > { %p1595_p0 = pneg %p1594_p13  ;;  %s1596_s0 = sshll.u32 %s1659_s20, 4  ;;  %s1597_s0 = int_to_ptr.vmem [resolvable:$false] %s1596_s0 }
  0x22   : > { %s1598_s28 = scalar_lea.vmem %s1597_s0, 32  ;;  %p1599_p1 = scmp.lt.s32.totalorder %s2101_s26, %s1597_s0 }
  0x23   : > { %p1600_p2 = scmp.lt.s32.totalorder %s1598_s28, %s1592_s19 }
  0x24   : > { %454 = vadd.xlane.f32.xlu0 %v432_v4  ;;  %456 = vadd.xlane.f32.xlu1 %v433_v5 }
  0x25   : > { %p1601_p3 = por %p1600_p2, %p1599_p1 }
  0x27   : > { %p1602_p4 = pnand %p1601_p3, %p1595_p0 }
  0x28   : > { %458 = vadd.xlane.f32.xlu0 %v434_v6  ;;  %460 = vadd.xlane.f32.xlu1 %v435_v7 }
  0x2c   : > { %462 = vadd.xlane.f32.xlu0 %v436_v8  ;;  %464 = vadd.xlane.f32.xlu1 %v437_v9 }
  0x30   : > { %466 = vadd.xlane.f32.xlu0 %v1781_v10  ;;  %468 = vadd.xlane.f32.xlu1 %v1783_v11 }
  0x34   : > { %470 = vadd.xlane.f32.xlu0 %v1787_v12  ;;  %472 = vadd.xlane.f32.xlu1 %v1789_v13 }
  0x38   : > { %474 = vadd.xlane.f32.xlu0 %v1793_v14  ;;  %476 = vadd.xlane.f32.xlu1 %v1795_v15 }
  0xa9   : > { %v447_v16 = vpop.xlane.xlu0 %446  ;;  %v451_v17 = vpop.xlane.xlu1 %450 }
  0xaa   : > { %v479_v18 = vmul.f32 0.0078125, %v447_v16  ;;  %v481_v19 = vmul.f32 0.0078125, %v451_v17 }
  0xac   : > { %v1799_v20 = vsub.f32 %v428_v0, %v479_v18  ;;  %v1801_v21 = vsub.f32 %v430_v1, %v481_v19  ;;  %v1658_v18 = vmov 0.0   ;;  %v1883_v19 = vld [vmem:[%s420_s29] sm:$0x1] }
  0xad   : > { %v449_v22 = vpop.xlane.xlu0 %448  ;;  %v453_v23 = vpop.xlane.xlu1 %452  ;;  %1377 = vmatprep.mubr.msk.f32.mxu0 %vm1657_vm0, %v1658_v18  ;;  %1380 = vmatprep.subr.bf16.mxu1 %v1658_v18 }
  0xae   : > { %v480_v24 = vmul.f32 0.0078125, %v449_v22  ;;  %v511_v25 = vmul.f32 %v1799_v20, %v1799_v20  ;;  %v482_v26 = vmul.f32 0.0078125, %v453_v23  ;;  %v513_v29 = vmul.f32 %v1801_v21, %v1801_v21  ;;  %1396 = vmatprep.mubr.msk.bf16.mxu1 %vm1657_vm0, %v1658_v18  ;;  %v1527_v23 = vld [vmem:[%s2145_s4 + $0x8] sm:$0xff]  }
  0xaf   : > { %v739_v22 = vsel %vm738_vm1, %v1883_v19, 0.0 }
  0xb0   : > { %v1805_v27 = vsub.f32 %v429_v2, %v480_v24  ;;  %527 = vadd.xlane.f32.xlu0 %v511_v25  ;;  %v1807_v28 = vsub.f32 %v431_v3, %v482_v26  ;;  %v1528_v24 = vld [vmem:[%s2145_s4 + $0x10] sm:$0xff]   ;;  %v1529_v25 = vld [vmem:[%s2145_s4 + $0x18] sm:$0xff]   ;;  %v1530_v26 = vld [vmem:[%s2145_s4 + $0x20] sm:$0xff]  }
  0xb1   : > { %v455_v30 = vpop.xlane.xlu0 %454  ;;  %v457_v31 = vpop.xlane.xlu1 %456 }
  0xb2   : > { %v483_v32 = vmul.f32 0.0078125, %v455_v30  ;;  %v512_v33 = vmul.f32 %v1805_v27, %v1805_v27  ;;  %v484_v34 = vmul.f32 0.0078125, %v457_v31  ;;  %v514_v37 = vmul.f32 %v1807_v28, %v1807_v28  ;;  %v1532_v30 = vld [vmem:[%s2145_s4 + $0x30] sm:$0xff]  }
  0xb4   : > { %v1813_v35 = vsub.f32 %v432_v4, %v483_v32  ;;  %531 = vadd.xlane.f32.xlu0 %v513_v29  ;;  %529 = vadd.xlane.f32.xlu1 %v512_v33  ;;  %v1815_v36 = vsub.f32 %v433_v5, %v484_v34  ;;  %v1531_v29 = vld [vmem:[%s2145_s4 + $0x28] sm:$0xff]  }
  0xb5   : > { %v459_v38 = vpop.xlane.xlu0 %458  ;;  %v461_v39 = vpop.xlane.xlu1 %460 }
  0xb6   : > { %v485_v40 = vmul.f32 0.0078125, %v459_v38  ;;  %v515_v41 = vmul.f32 %v1813_v35, %v1813_v35  ;;  %v486_v42 = vmul.f32 0.0078125, %v461_v39  ;;  %v516_v45 = vmul.f32 %v1815_v36, %v1815_v36 }
  0xb8   : > { %v1821_v43 = vsub.f32 %v434_v6, %v485_v40  ;;  %533 = vadd.xlane.f32.xlu1 %v514_v37  ;;  %535 = vadd.xlane.f32.xlu0 %v515_v41  ;;  %v1823_v44 = vsub.f32 %v435_v7, %v486_v42 }
  0xb9   : > { %v463_v46 = vpop.xlane.xlu0 %462  ;;  %v465_v47 = vpop.xlane.xlu1 %464 }
  0xba   : > { %v487_v48 = vmul.f32 0.0078125, %v463_v46  ;;  %v517_v49 = vmul.f32 %v1821_v43, %v1821_v43  ;;  %v488_v50 = vmul.f32 0.0078125, %v465_v47  ;;  %v518_v53 = vmul.f32 %v1823_v44, %v1823_v44 }
  0xbc   : > { %v1829_v51 = vsub.f32 %v436_v8, %v487_v48  ;;  %537 = vadd.xlane.f32.xlu1 %v516_v45  ;;  %539 = vadd.xlane.f32.xlu0 %v517_v49  ;;  %v1831_v52 = vsub.f32 %v437_v9, %v488_v50 }
  0xbd   : > { %v467_v54 = vpop.xlane.xlu0 %466  ;;  %v469_v55 = vpop.xlane.xlu1 %468 }
  0xbe   : > { %v489_v56 = vmul.f32 0.0078125, %v467_v54  ;;  %v519_v57 = vmul.f32 %v1829_v51, %v1829_v51  ;;  %v490_v58 = vmul.f32 0.0078125, %v469_v55  ;;  %v520_v61 = vmul.f32 %v1831_v52, %v1831_v52 }
  0xc0   : > { %v1838_v59 = vsub.f32 %v1781_v10, %v489_v56  ;;  %541 = vadd.xlane.f32.xlu1 %v518_v53  ;;  %543 = vadd.xlane.f32.xlu0 %v519_v57  ;;  %v1841_v60 = vsub.f32 %v1783_v11, %v490_v58 }
  0xc1   : > { %v471_v62 = vpop.xlane.xlu0 %470  ;;  %v473_v63 = vpop.xlane.xlu1 %472 }
  0xc2   : > { %v491_v0 = vmul.f32 0.0078125, %v471_v62  ;;  %v521_v1 = vmul.f32 %v1838_v59, %v1838_v59  ;;  %v492_v2 = vmul.f32 0.0078125, %v473_v63  ;;  %v522_v5 = vmul.f32 %v1841_v60, %v1841_v60 }
  0xc4   : > { %v1848_v3 = vsub.f32 %v1787_v12, %v491_v0  ;;  %545 = vadd.xlane.f32.xlu1 %v520_v61  ;;  %547 = vadd.xlane.f32.xlu0 %v521_v1  ;;  %v1851_v4 = vsub.f32 %v1789_v13, %v492_v2  ;;  %v1915_v2 = vld [vmem:[%s2143_s2] ss:$0 sm:$0xff] }
  0xc5   : > { %v475_v6 = vpop.xlane.xlu0 %474  ;;  %v477_v7 = vpop.xlane.xlu1 %476 }
  0xc6   : > { %v493_v8 = vmul.f32 0.0078125, %v475_v6  ;;  %v523_v9 = vmul.f32 %v1848_v3, %v1848_v3  ;;  %v494_v10 = vmul.f32 0.0078125, %v477_v7  ;;  %v524_v13 = vmul.f32 %v1851_v4, %v1851_v4 }
  0xc8   : > { %v1858_v11 = vsub.f32 %v1793_v14, %v493_v8  ;;  %549 = vadd.xlane.f32.xlu1 %v522_v5  ;;  %551 = vadd.xlane.f32.xlu0 %v523_v9  ;;  %v1861_v12 = vsub.f32 %v1795_v15, %v494_v10  ;;  %v1656_v14 = vmov 0.0|0.0   ;;  %v1526_v15 = vld [vmem:[%s2145_s4] sm:$0xff]  }
  0xc9   : > { %1460 = vmatprep.subr.bf16.mxu0 %v1656_v14  ;;  %1381 = vmatpush3.bf16.msra.mxu1 %v1526_v15  ;;  %v1922_v15 = vld [vmem:[%s2144_s3] ss:$0 sm:$0xff] }
  0xca   : > { %v525_v16 = vmul.f32 %v1858_v11, %v1858_v11  ;;  %v526_v17 = vmul.f32 %v1861_v12, %v1861_v12  ;;  %1382 = vmatprep.subr.bf16.mxu1 %v1658_v18 }
  0xcc   : > { %553 = vadd.xlane.f32.xlu1 %v524_v13  ;;  %555 = vadd.xlane.f32.xlu0 %v525_v16 }
  0xcd   : > { %1383 = vmatpush3.bf16.msra.mxu1 %v1527_v23 }
  0xce   : > { %1384 = vmatprep.subr.bf16.mxu1 %v1658_v18 }
  0xd0   : > { %557 = vadd.xlane.f32.xlu1 %v526_v17  ;;  %740 = vadd.xlane.f32.xlu0 %v739_v22 }
  0xd1   : > { %1385 = vmatpush3.bf16.msra.mxu1 %v1528_v24 }
  0xd2   : > { %1386 = vmatprep.subr.bf16.mxu1 %v1658_v18 }
  0xd5   : > { %1387 = vmatpush3.bf16.msra.mxu1 %v1529_v25 }
  0xd6   : > { %1388 = vmatprep.subr.bf16.mxu1 %v1658_v18 }
  0xd9   : > { %1389 = vmatpush3.bf16.msra.mxu1 %v1530_v26 }
  0xda   : > { %1390 = vmatprep.subr.bf16.mxu1 %v1658_v18 }
  0xdd   : > { %1391 = vmatpush3.bf16.msra.mxu1 %v1531_v29 }
  0xde   : > { %1392 = vmatprep.subr.bf16.mxu1 %v1658_v18 }
  0xe1   : > { %1393 = vmatpush3.bf16.msra.mxu1 %v1532_v30 }
  0xe2   : > { %1394 = vmatprep.subr.bf16.mxu1 %v1658_v18 }
 0x13d   : > { %v528_v31 = vpop.xlane.xlu0 %527 }
 0x13e   : > { %v559_v32 = vmul.f32 0.0078125, %v528_v31 }
 0x140   : > { %v575_v33 = vadd.f32 1e-05, %v559_v32 }
 0x141   : > { %v530_v34 = vpop.xlane.xlu1 %529  ;;  %v532_v37 = vpop.xlane.xlu0 %531 }
 0x142   : > { %1558 = vrsqrt.f32 %v575_v33  ;;  %v560_v38 = vmul.f32 0.0078125, %v530_v34  ;;  %v561_v39 = vmul.f32 0.0078125, %v532_v37 }
 0x144   : > { %v576_v40 = vadd.f32 1e-05, %v560_v38  ;;  %v577_v41 = vadd.f32 1e-05, %v561_v39 }
 0x145   : > { %v534_v42 = vpop.xlane.xlu1 %533  ;;  %v536_v45 = vpop.xlane.xlu0 %535 }
 0x146   : > { %1560 = vrsqrt.f32 %v576_v40  ;;  %v562_v46 = vmul.f32 0.0078125, %v534_v42  ;;  %v563_v47 = vmul.f32 0.0078125, %v536_v45 }
 0x147   : > { %1562 = vrsqrt.f32 %v577_v41 }
 0x148   : > { %v578_v48 = vadd.f32 1e-05, %v562_v46  ;;  %v579_v49 = vadd.f32 1e-05, %v563_v47 }
 0x149   : > { %v538_v50 = vpop.xlane.xlu1 %537  ;;  %v540_v53 = vpop.xlane.xlu0 %539 }
 0x14a   : > { %1564 = vrsqrt.f32 %v578_v48  ;;  %v564_v54 = vmul.f32 0.0078125, %v538_v50  ;;  %v565_v55 = vmul.f32 0.0078125, %v540_v53 }
 0x14b   : > { %1566 = vrsqrt.f32 %v579_v49 }
 0x14c   : > { %v1559_v56 = vpop.eup %1558  ;;  %v580_v57 = vadd.f32 1e-05, %v564_v54  ;;  %v581_v58 = vadd.f32 1e-05, %v565_v55 }
 0x14d   : > { %v542_v61 = vpop.xlane.xlu1 %541  ;;  %v544_v62 = vpop.xlane.xlu0 %543  ;;  %v607_v63 = vmul.f32 %v1559_v56, %v1799_v20 }
 0x14e   : > { %1568 = vrsqrt.f32 %v580_v57  ;;  %v566_v0 = vmul.f32 0.0078125, %v542_v61  ;;  %v567_v1 = vmul.f32 0.0078125, %v544_v62 }
 0x14f   : > { %1570 = vrsqrt.f32 %v581_v58  ;;  %v629_v16 = vmul.f32 %v1915_v2, %v607_v63 }
 0x150   : > { %v1561_v5 = vpop.eup %1560  ;;  %v582_v6 = vadd.f32 1e-05, %v566_v0  ;;  %v583_v7 = vadd.f32 1e-05, %v567_v1 }
 0x151   : > { %v1563_v8 = vpop.eup %1562  ;;  %v546_v9 = vpop.xlane.xlu1 %545  ;;  %v608_v13 = vmul.f32 %v1561_v5, %v1805_v27  ;;  %v651_v31 = vadd.f32 %v1922_v15, %v629_v16 }
 0x152   : > { %v548_v10 = vpop.xlane.xlu0 %547  ;;  %1572 = vrsqrt.f32 %v582_v6  ;;  %v568_v20 = vmul.f32 0.0078125, %v546_v9  ;;  %v609_v22 = vmul.f32 %v1563_v8, %v1801_v21 }
 0x153   : > { %v569_v17 = vmul.f32 0.0078125, %v548_v10  ;;  %1574 = vrsqrt.f32 %v583_v7  ;;  %v630_v23 = vmul.f32 %v1915_v2, %v608_v13 }
 0x154   : > { %v1565_v24 = vpop.eup %1564  ;;  %v584_v25 = vadd.f32 1e-05, %v568_v20  ;;  %v631_v34 = vmul.f32 %v1915_v2, %v609_v22 }
 0x155   : > { %v585_v26 = vadd.f32 1e-05, %v569_v17  ;;  %v1567_v29 = vpop.eup %1566  ;;  %v550_v27 = vpop.xlane.xlu1 %549  ;;  %v652_v32 = vadd.f32 %v1922_v15, %v630_v23  ;;  %v610_v33 = vmul.f32 %v1565_v24, %v1807_v28 }
 0x156   : > { %v552_v30 = vpop.xlane.xlu0 %551  ;;  %1576 = vrsqrt.f32 %v584_v25  ;;  %v570_v37 = vmul.f32 0.0078125, %v550_v27  ;;  %v611_v40 = vmul.f32 %v1567_v29, %v1813_v35  ;;  %v653_v28 = vadd.f32 %v1922_v15, %v631_v34 }
 0x157   : > { %v571_v21 = vmul.f32 0.0078125, %v552_v30  ;;  %1578 = vrsqrt.f32 %v585_v26  ;;  %v1461_v38 = vpack.c.bf16 %v652_v32, %v651_v31  ;;  %v632_v39 = vmul.f32 %v1915_v2, %v610_v33 }
 0x158   : > { %v1569_v41 = vpop.eup %1568  ;;  %v586_v42 = vadd.f32 1e-05, %v570_v37  ;;  %v633_v53 = vmul.f32 %v1915_v2, %v611_v40 }
 0x159   : > { %v587_v45 = vadd.f32 1e-05, %v571_v21  ;;  %v1571_v46 = vpop.eup %1570  ;;  %v554_v47 = vpop.xlane.xlu1 %553  ;;  %1462 = vmatpush3.bf16.msra.mxu0 %v1461_v38  ;;  %v654_v49 = vadd.f32 %v1922_v15, %v632_v39  ;;  %v612_v50 = vmul.f32 %v1569_v41, %v1815_v36 }
 0x15a   : > { %v556_v48 = vpop.xlane.xlu0 %555  ;;  %1580 = vrsqrt.f32 %v586_v42  ;;  %v572_v54 = vmul.f32 0.0078125, %v554_v47  ;;  %1463 = vmatprep.subr.bf16.mxu0 %v1656_v14  ;;  %v613_v35 = vmul.f32 %v1571_v46, %v1821_v43  ;;  %v655_v36 = vadd.f32 %v1922_v15, %v633_v53  ;;  %v1539_v53 = vld [vmem:[%s2147_s6 + $0x28] sm:$0xff]  }
 0x15b   : > { %v573_v55 = vmul.f32 0.0078125, %v556_v48  ;;  %1582 = vrsqrt.f32 %v587_v45  ;;  %v1464_v56 = vpack.c.bf16 %v654_v49, %v653_v28  ;;  %v634_v57 = vmul.f32 %v1915_v2, %v612_v50  ;;  %v1538_v50 = vld [vmem:[%s2147_s6 + $0x20] sm:$0xff]  }
 0x15c   : > { %v1573_v58 = vpop.eup %1572  ;;  %v588_v61 = vadd.f32 1e-05, %v572_v54  ;;  %v635_v6 = vmul.f32 %v1915_v2, %v613_v35  ;;  %v1540_v54 = vld [vmem:[%s2147_s6 + $0x30] sm:$0xff]  }
 0x15d   : > { %v589_v62 = vadd.f32 1e-05, %v573_v55  ;;  %v1575_v63 = vpop.eup %1574  ;;  %v558_v0 = vpop.xlane.xlu1 %557  ;;  %1465 = vmatpush3.bf16.msra.mxu0 %v1464_v56  ;;  %v656_v1 = vadd.f32 %v1922_v15, %v634_v57  ;;  %v614_v5 = vmul.f32 %v1573_v58, %v1823_v44 }
 0x15e   : > { %1584 = vrsqrt.f32 %v588_v61  ;;  %v574_v43 = vmul.f32 0.0078125, %v558_v0  ;;  %1466 = vmatprep.subr.bf16.mxu0 %v1656_v14  ;;  %v615_v7 = vmul.f32 %v1575_v63, %v1829_v51  ;;  %v657_v20 = vadd.f32 %v1922_v15, %v635_v6  ;;  %v741_v55 = vpop.xlane.xlu0 %740  ;;  %v1541_v63 = vld [vmem:[%s2147_s6 + $0x38] sm:$0xff]   ;;  %v1542_v0 = vld [vmem:[%s2149_s8] sm:$0xff]  }
 0x15f   : > { %1586 = vrsqrt.f32 %v589_v62  ;;  %v1467_v8 = vpack.c.bf16 %v656_v1, %v655_v36  ;;  %v636_v9 = vmul.f32 %v1915_v2, %v614_v5  ;;  %v742_v35 = vmax.f32 %v741_v55, 1.0  ;;  %v1543_v36 = vld [vmem:[%s2149_s8 + $0x8] sm:$0xff]   ;;  %v1544_v1 = vld [vmem:[%s2149_s8 + $0x10] sm:$0xff]   ;;  %v1545_v5 = vld [vmem:[%s2149_s8 + $0x18] sm:$0xff]  }
 0x160   : > { %v1577_v10 = vpop.eup %1576  ;;  %v590_v13 = vadd.f32 1e-05, %v574_v43  ;;  %v637_v22 = vmul.f32 %v1915_v2, %v615_v7  ;;  %v1546_v6 = vld [vmem:[%s2149_s8 + $0x20] sm:$0xff]   ;;  %v1547_v43 = vld [vmem:[%s2149_s8 + $0x28] sm:$0xff]  }
 0x161   : > { %v1579_v16 = vpop.eup %1578  ;;  %1468 = vmatpush3.bf16.msra.mxu0 %v1467_v8  ;;  %v658_v44 = vadd.f32 %v1922_v15, %v636_v9  ;;  %v616_v17 = vmul.f32 %v1577_v10, %v1831_v52  ;;  %v762_v7 = vld [vmem:[%s2146_s5] sm:$0x1] }
 0x162   : > { %1588 = vrsqrt.f32 %v590_v13  ;;  %1469 = vmatprep.subr.bf16.mxu0 %v1656_v14  ;;  %v617_v51 = vmul.f32 %v1579_v16, %v1838_v59  ;;  %v659_v29 = vadd.f32 %v1922_v15, %v637_v22  ;;  %v1550_v22 = vld [vmem:[%s2151_s10] sm:$0xff]  }
 0x163   : > { %v1470_v23 = vpack.c.bf16 %v658_v44, %v657_v20  ;;  %v638_v24 = vmul.f32 %v1915_v2, %v616_v17  ;;  %1590 = vrcp.f32 %v742_v35  ;;  %v1548_v44 = vld [vmem:[%s2149_s8 + $0x30] sm:$0xff]   ;;  %v1549_v17 = vld [vmem:[%s2149_s8 + $0x38] sm:$0xff]  }
 0x164   : > { %v1581_v25 = vpop.eup %1580  ;;  %v639_v52 = vmul.f32 %v1915_v2, %v617_v51  ;;  %v1551_v51 = vld [vmem:[%s2151_s10 + $0x8] sm:$0xff]  }
 0x165   : > { %v1583_v26 = vpop.eup %1582  ;;  %1471 = vmatpush3.bf16.msra.mxu0 %v1470_v23  ;;  %v660_v27 = vadd.f32 %v1922_v15, %v638_v24  ;;  %v618_v30 = vmul.f32 %v1581_v25, %v1841_v60  ;;  %v1552_v23 = vld [vmem:[%s2151_s10 + $0x10] sm:$0xff]   ;;  %v1553_v24 = vld [vmem:[%s2151_s10 + $0x18] sm:$0xff]   ;;  %v1554_v25 = vld [vmem:[%s2151_s10 + $0x20] sm:$0xff]  }
 0x166   : > { %1472 = vmatprep.subr.bf16.mxu0 %v1656_v14  ;;  %v619_v31 = vmul.f32 %v1583_v26, %v1848_v3  ;;  %v661_v37 = vadd.f32 %v1922_v15, %v639_v52  ;;  %v1555_v26 = vld [vmem:[%s2151_s10 + $0x28] sm:$0xff]  }
 0x167   : > { %v1473_v32 = vpack.c.bf16 %v660_v27, %v659_v29  ;;  %v640_v59 = vmul.f32 %v1915_v2, %v618_v30  ;;  %v868_v29 = vld [vmem:[%s2148_s7] sm:$0x1] }
 0x168   : > { %v1585_v33 = vpop.eup %1584  ;;  %v641_v60 = vmul.f32 %v1915_v2, %v619_v31 }
 0x169   : > { %v1587_v34 = vpop.eup %1586  ;;  %1474 = vmatpush3.bf16.msra.mxu0 %v1473_v32  ;;  %v662_v21 = vadd.f32 %v1922_v15, %v640_v59  ;;  %v620_v38 = vmul.f32 %v1585_v33, %v1851_v4 }
 0x16a   : > { %1475 = vmatprep.subr.bf16.mxu0 %v1656_v14  ;;  %v621_v39 = vmul.f32 %v1587_v34, %v1858_v11  ;;  %v663_v42 = vadd.f32 %v1922_v15, %v641_v60  ;;  %v1556_v34 = vld [vmem:[%s2151_s10 + $0x30] sm:$0xff]  }
 0x16b   : > { %v1476_v40 = vpack.c.bf16 %v662_v21, %v661_v37  ;;  %v642_v3 = vmul.f32 %v1915_v2, %v620_v38  ;;  %v1557_v37 = vld [vmem:[%s2151_s10 + $0x38] sm:$0xff]   ;;  %v975_v21 = vld [vmem:[%s2150_s9] sm:$0x1] }
 0x16c   : > { %v1589_v41 = vpop.eup %1588  ;;  %v643_v47 = vmul.f32 %v1915_v2, %v621_v39 }
 0x16d   : > { %1477 = vmatpush3.bf16.msra.mxu0 %v1476_v40  ;;  %v664_v45 = vadd.f32 %v1922_v15, %v642_v3  ;;  %v622_v46 = vmul.f32 %v1589_v41, %v1861_v12  ;;  %v1533_v12 = vld [vmem:[%s2145_s4 + $0x38] sm:$0xff]   ;;  %v1591_v56 = vpop.eup %1590 }
 0x16e   : > { %1478 = vmatprep.subr.bf16.mxu0 %v1656_v14  ;;  %v665_v11 = vadd.f32 %v1922_v15, %v643_v47  ;;  %1395 = vmatpush3.bf16.msra.mxu1 %v1533_v12 }
 0x16f   : > { %v1479_v4 = vpack.c.bf16 %v664_v45, %v663_v42  ;;  %v644_v48 = vmul.f32 %v1915_v2, %v622_v46  ;;  %v1534_v2 = vld [vmem:[%s2147_s6] sm:$0xff]   ;;  %1420 = vmatprep.subr.bf16.mxu1 %v1658_v18 }
 0x171   : > { %1480 = vmatpush3.bf16.msra.mxu0 %v1479_v4  ;;  %v666_v28 = vadd.f32 %v1922_v15, %v644_v48  ;;  %v1537_v15 = vld [vmem:[%s2147_s6 + $0x18] sm:$0xff]  }
 0x172   : > { %1481 = vmatprep.subr.bf16.mxu0 %v1656_v14  ;;  %v1535_v14 = vld [vmem:[%s2147_s6 + $0x8] sm:$0xff]  }
 0x173   : > { %v1482_v49 = vpack.c.bf16 %v666_v28, %v665_v11 }
 0x175   : > { %1483 = vmatpush3.bf16.msra.mxu0 %v1482_v49 }
 0x176   : > { %1400 = vmatprep.subr.bf16.mxu0 %v1658_v18 }
 0x178   : > { %1378 = vmatmul.mubr.f32.vlgmr.msra.gmra.mrb[0].mxu0 %v1883_v19  ;;  %v1536_v19 = vld [vmem:[%s2147_s6 + $0x10] sm:$0xff]  }
 0x179   : > { %1416 = vmatprep.mubr.msk.bf16.mxu0 %vm1657_vm0, %v1658_v18  ;;  %1401 = vmatpush3.bf16.msra.mxu0 %v1534_v2 }
 0x17a   : > { %1402 = vmatprep.subr.bf16.mxu0 %v1658_v18 }
 0x17d   : > { %1403 = vmatpush3.bf16.msra.mxu0 %v1535_v14 }
 0x17e   : > { %1404 = vmatprep.subr.bf16.mxu0 %v1658_v18 }
 0x181   : > { %1405 = vmatpush3.bf16.msra.mxu0 %v1536_v19 }
 0x182   : > { %1406 = vmatprep.subr.bf16.mxu0 %v1658_v18 }
 0x185   : > { %1407 = vmatpush3.bf16.msra.mxu0 %v1537_v15 }
 0x186   : > { %1408 = vmatprep.subr.bf16.mxu0 %v1658_v18 }
 0x189   : > { %1409 = vmatpush3.bf16.msra.mxu0 %v1538_v50 }
 0x18a   : > { %1410 = vmatprep.subr.bf16.mxu0 %v1658_v18 }
 0x18d   : > { %1411 = vmatpush3.bf16.msra.mxu0 %v1539_v53 }
 0x18e   : > { %1412 = vmatprep.subr.bf16.mxu0 %v1658_v18 }
 0x191   : > { %1413 = vmatpush3.bf16.msra.mxu0 %v1540_v54 }
 0x192   : > { %1414 = vmatprep.subr.bf16.mxu0 %v1658_v18 }
 0x195   : > { %1415 = vmatpush3.bf16.msra.mxu0 %v1541_v63 }
 0x196   : > { %1440 = vmatprep.subr.bf16.mxu0 %v1658_v18 }
 0x24b   : > { %v734_v57 = vpop.f32.mrb[0].mxu0 }
 0x24c   : > { %v744_v58 = vmul.f32 %v1591_v56, %v734_v57  ;;  %v1379_v61 = vpop.f32.mrb[1].mxu0 }
 0x24e   : > { %v745_v62 = vpack.c.bf16 %v744_v58, %v744_v58 }
 0x250   : > { %1397 = vmatmul.mubr.bf16.vlgmr.msra.gmra.mrb[0].mxu1 %v745_v62 }
 0x251   : > { %1436 = vmatprep.mubr.msk.bf16.mxu1 %vm1657_vm0, %v1658_v18  ;;  %1421 = vmatpush3.bf16.msra.mxu1 %v1542_v0 }
 0x252   : > { %1422 = vmatprep.subr.bf16.mxu1 %v1658_v18 }
 0x255   : > { %1423 = vmatpush3.bf16.msra.mxu1 %v1543_v36 }
 0x256   : > { %1424 = vmatprep.subr.bf16.mxu1 %v1658_v18 }
 0x259   : > { %1425 = vmatpush3.bf16.msra.mxu1 %v1544_v1 }
 0x25a   : > { %1426 = vmatprep.subr.bf16.mxu1 %v1658_v18 }
 0x25d   : > { %1427 = vmatpush3.bf16.msra.mxu1 %v1545_v5 }
 0x25e   : > { %1428 = vmatprep.subr.bf16.mxu1 %v1658_v18 }
 0x261   : > { %1429 = vmatpush3.bf16.msra.mxu1 %v1546_v6 }
 0x262   : > { %1430 = vmatprep.subr.bf16.mxu1 %v1658_v18 }
 0x265   : > { %1431 = vmatpush3.bf16.msra.mxu1 %v1547_v43 }
 0x266   : > { %1432 = vmatprep.subr.bf16.mxu1 %v1658_v18 }
 0x269   : > { %1433 = vmatpush3.bf16.msra.mxu1 %v1548_v44 }
 0x26a   : > { %1434 = vmatprep.subr.bf16.mxu1 %v1658_v18 }
 0x26d   : > { %1435 = vmatpush3.bf16.msra.mxu1 %v1549_v17 }
 0x323   : > { %v845_v8 = vpop.f32.mrb[0].mxu1 }
 0x324   : > { %v846_v9 = vadd.f32 %v845_v8, %v762_v7  ;;  %v1398_v10 = vpop.f32.mrb[1].mxu1 }
 0x325   : > { %v848_v13 = vpop.f32.mrb[2].mxu1 }
 0x326   : > { %v851_v16 = vpack.c.bf16 %v846_v9, %v846_v9  ;;  %v1399_v20 = vpop.f32.mrb[3].mxu1 }
 0x328   : > { %1417 = vmatmul.mubr.bf16.vlgmr.msra.gmra.mrb[4].mxu0 %v851_v16 }
 0x329   : > { %1456 = vmatprep.mubr.msk.bf16.mxu0 %vm1657_vm0, %v1658_v18  ;;  %1441 = vmatpush3.bf16.msra.mxu0 %v1550_v22 }
 0x32a   : > { %1442 = vmatprep.subr.bf16.mxu0 %v1658_v18 }
 0x32d   : > { %1443 = vmatpush3.bf16.msra.mxu0 %v1551_v51 }
 0x32e   : > { %1444 = vmatprep.subr.bf16.mxu0 %v1658_v18 }
 0x331   : > { %1445 = vmatpush3.bf16.msra.mxu0 %v1552_v23 }
 0x332   : > { %1446 = vmatprep.subr.bf16.mxu0 %v1658_v18 }
 0x335   : > { %1447 = vmatpush3.bf16.msra.mxu0 %v1553_v24 }
 0x336   : > { %1448 = vmatprep.subr.bf16.mxu0 %v1658_v18 }
 0x339   : > { %1449 = vmatpush3.bf16.msra.mxu0 %v1554_v25 }
 0x33a   : > { %1450 = vmatprep.subr.bf16.mxu0 %v1658_v18 }
 0x33d   : > { %1451 = vmatpush3.bf16.msra.mxu0 %v1555_v26 }
 0x33e   : > { %1452 = vmatprep.subr.bf16.mxu0 %v1658_v18 }
 0x341   : > { %1453 = vmatpush3.bf16.msra.mxu0 %v1556_v34 }
 0x342   : > { %1454 = vmatprep.subr.bf16.mxu0 %v1658_v18  ;;  %v1082_v18 = vld [vmem:[%s2152_s11] sm:$0x1] }
 0x345   : > { %1455 = vmatpush3.bf16.msra.mxu0 %v1557_v37 }
 0x3fb   : > { %v951_v27 = vpop.f32.mrb[4].mxu0 }
 0x3fc   : > { %v952_v30 = vadd.f32 %v951_v27, %v868_v29  ;;  %v1418_v52 = vpop.f32.mrb[5].mxu0 }
 0x3fd   : > { %v954_v31 = vpop.f32.mrb[6].mxu0 }
 0x3fe   : > { %v957_v32 = vmax.f32 %v952_v30, 0.0  ;;  %v1419_v59 = vpop.f32.mrb[7].mxu0 }
 0x400   : > { %v958_v33 = vpack.c.bf16 %v957_v32, %v957_v32 }
 0x402   : > { %1437 = vmatmul.mubr.bf16.vlgmr.msra.gmra.mrb[4].mxu1 %v958_v33 }
 0x4d5   : > { %v1058_v38 = vpop.f32.mrb[4].mxu1 }
 0x4d6   : > { %v1059_v60 = vadd.f32 %v1058_v38, %v975_v21  ;;  %v1438_v39 = vpop.f32.mrb[5].mxu1 }
 0x4d7   : > { %v1061_v40 = vpop.f32.mrb[6].mxu1 }
 0x4d8   : > { %v1064_v3 = vmax.f32 %v1059_v60, 0.0  ;;  %v1439_v41 = vpop.f32.mrb[7].mxu1 }
 0x4da   : > { %v1065_v42 = vpack.c.bf16 %v1064_v3, %v1064_v3 }
 0x4dc   : > { %1457 = vmatmul.mubr.bf16.vlgmr.msra.gmra.mrb[8].mxu0 %v1065_v42 }
 0x5af   : > { %v1165_v45 = vpop.f32.mrb[8].mxu0 }
 0x5b0   : > { %v1166_v46 = vadd.f32 %v1165_v45, %v1082_v18  ;;  %v1458_v47 = vpop.f32.mrb[9].mxu0 }
 0x5b1   : > { %v1168_v4 = vpop.f32.mrb[10].mxu0 }
 0x5b2   : > { %1171 = vst [vmem:[%s417_s25] sm:$0x1] %v1166_v46  ;;  %v1459_v48 = vpop.f32.mrb[11].mxu0 }
 0x5b3   : > { %1605 = shalt.err (!%p1602_p4)
}
 0x5b4   : > { %s1606_s15 = scalar_lea.hbm %s2099_s16, 16  ;;  %s1610_s29 = scalar_lea.hbm %s2153_s12, 32 }
 0x5b5   : > { %p1607_p7 = scmp.ne.s32.totalorder %s2099_s16, %s1606_s15  ;;  %p1611_p10 = scmp.lt.u32.totalorder %s2099_s16, %s2153_s12 }
 0x5b6   : > { %p1612_p11 = scmp.lt.u32.totalorder %s1610_s29, %s1606_s15  ;;  %p1614_p13 = scmp.lt.u32.totalorder %s1606_s15, %s2099_s16 }
 0x5b7   : > { %p1608_p8 = pnand %p1607_p7, %p1763_p5 }
 0x5b8   : > { %p1613_p12 = por %p1612_p11, %p1611_p10 }
 0x5b9   : > { %p1609_p9 = pneg %p1608_p8 }
 0x5ba   : > { %p1615_p0 = por %p1614_p13, %p1613_p12 }
 0x5bc   : > { %p1616_p1 = pnand %p1615_p0, %p1609_p9 }
 0x5be   : > { %1619 = shalt.err (!%p1616_p1)
}
 0x5bf   : > { %1484 = dma.vmem_to_hbm [thread:$0]  (%p1763_p5), %s2101_s26, 16, %s2099_s16, %s1173_s17  }
 0x5c0 PF: > { %p1490_p2 = scmp.ge.s32.totalorder %s1654_s24, 2  ;;  %s1197_s19 = sand.u32 1, %s1642_s21  }
 0x5c1   : > { %s1198_s28 = scalar_lea.sflag [#allocation3], %s1197_s19 }
 0x5c2   : > { %p1487_p3 = pnand %p1490_p2, %p1767_p6 }
 0x5c4   : > { %1637 = dma.done.wait (!%p1487_p3), %s1198_s28, 16  }
 0x5c5   : > { %1639 = vsyncadd (!%p1487_p3), %s1198_s28, 4294967280  ;;  %p22_p4 = scmp.ge.s32.totalorder %s1750_s27, 4   ;;  %s2158_s21 = smov %s1646_s22 }
 0x5c6   : > { %s2159_s22 = smov %s1650_s23  ;;  %s2160_s23 = smov %s1761_s30 }
 0x5c7   : > { %s2161_s24 = smov %s1750_s27  ;;  %24 = sbr.rel (!%p22_p4) target bundleno = 5 (0x5), region = 106 }
 0x5ce   :  { %1202 = vsyncpa [#allocation3], 1 }
 0x5cf   :  { %1204 = vsyncpa [#allocation3 + $0x1], 1 }

// kernel: gpt2_encoder_forward.6
= control target key start
LH: loop header
LB: loop body
LE: loop exit
PB: predicated region body
PF: predicated region fallthrough
CT: control target
= control target key end

     0   :  { %s4529_s21 = smov 0   ;;  %s4531_s22 = smov 0   ;;  %s6051_s0 = inlined_call_operand.vmem [shape: f32[2,1,128], index: 0, kind: input, shape index: {}]   ;;  %s6052_s1 = inlined_call_operand.vmem [shape: f32[256,128], index: 1, kind: input, shape index: {}, may-alias: {1,12}]   ;;  %s6053_s2 = inlined_call_operand.vmem [shape: bf16[256,128], index: 2, kind: input, shape index: {}]   ;;  %s6054_s3 = inlined_call_operand.vmem [shape: bf16[256,256], index: 3, kind: input, shape index: {}]   ;;  %s6055_s4 = inlined_call_operand.vmem [shape: bf16[128,128], index: 4, kind: input, shape index: {}]   ;;  %s6056_s5 = inlined_call_operand.vmem [shape: f32[1,128], index: 5, kind: input, shape index: {}]   ;;  %s6057_s6 = inlined_call_operand.vmem [shape: f32[1,128], index: 6, kind: input, shape index: {}]   ;;  %s6058_s7 = inlined_call_operand.vmem [shape: f32[1,128], index: 7, kind: input, shape index: {}]   ;;  %s6059_s8 = inlined_call_operand.vmem [shape: bf16[128,512], index: 8, kind: input, shape index: {}]   ;;  %s6060_s9 = inlined_call_operand.vmem [shape: f32[1,512], index: 9, kind: input, shape index: {}]   ;;  %s6061_s10 = inlined_call_operand.vmem [shape: bf16[512,128], index: 10, kind: input, shape index: {}]   ;;  %s6062_s11 = inlined_call_operand.vmem [shape: f32[1,128], index: 11, kind: input, shape index: {}]   ;;  %s6063_s12 = inlined_call_operand.vmem [shape: f32[256,128], index: 12, kind: output, shape index: {}, may-alias: {1,12}]  }
   0x1   :  { %s4533_s23 = smov 0   ;;  %s4535_s24 = smov 0  }
   0x2   :  { %s4537_s25 = smov 0  }
   0x3 LB: > { %s31_s26 = sadd.s32 1, %s4450_s23  ;;  %s34_s27 = sadd.s32 1, %s4454_s24  ;;  %s4458_s25 = sphi %s4537_s25, %s22_s25   ;;  %s4454_s24 = sphi %s4535_s24, %s6177_s24   ;;  %s4450_s23 = sphi %s4533_s23, %s6176_s23   ;;  %s4446_s22 = sphi %s4531_s22, %s6175_s22   ;;  %s4442_s21 = sphi %s4529_s21, %s6174_s21  }
   0x4   : > { %p32_p0 = scmp.ge.s32.totalorder %s31_s26, 2  ;;  %p3459_p1 = scmp.ge.s32.totalorder %s4458_s25, 1 }
   0x5   : > { %p426_p2 = scmp.lt.s32.totalorder %s4458_s25, 5 }
   0x6   : > { %s6179_s26 = smov (%p32_p0, %s31_s26), 0  ;;  %s6181_s27 = smov (!%p32_p0, %s34_s27), %s4454_s24 }
   0x7   : > { %p427_p3 = pnand %p3459_p1, %p426_p2  ;;  %p36_p4 = scmp.ge.s32.totalorder %s6181_s27, 2 }
   0x9   : > { %s6183_s27 = smov (%p36_p4, %s6181_s27), 0  ;;  %430 = sbr.rel (%p427_p3) target bundleno = 3946 (0xf6a), region = 68 }
  0x10   : > { %s3466_s28 = sshll.u32 %s4446_s22, 4  ;;  %vm682_vm0 = vcmask 261120   ;;  %s3460_s29 = sshll.u32 %s4446_s22, 1  ;;  %v580_v20 = vlaneseq  ;;  %v4460_v26 = vmov 0  }
  0x11   : > { %p512_p5 = scmp.lt.s32.totalorder %s3466_s28, 31  ;;  %s492_s30 = sadd.s32 %s4442_s21, %s3460_s29 }
  0x12   : > { %s3461_s13 = sshll.u32 %s492_s30, 3  ;;  %p488_p7 = scmp.lt.s32.totalorder %s4446_s22, 1  ;;  %v4660_v22 = vshrl.u32 %v580_v20, 7  ;;  %v599_v29 = vand.u32 127, %v580_v20 }
  0x13   : > { %s6185_s28 = smov (!%p512_p5, %s3466_s28), 31  ;;  %p494_p6 = scmp.lt.s32.totalorder %s3461_s13, 31 }
  0x14   : > { %s3587_s14 = sshll.u32 %s6185_s28, 3  ;;  %s6189_s22 = smov (!%p488_p7, %s4446_s22), 1  ;;  %v583_v23 = vadd.s32 16, %v4660_v22  ;;  %v611_v24 = vsub.s32 0, %v4660_v22  ;;  %v584_v31 = vadd.s32 24, %v4660_v22  ;;  %v582_v33 = vadd.s32 8, %v4660_v22 }
  0x15   : > { %s4569_s17 = scalar_lea.vmem %s6054_s3, %s3587_s14  ;;  %s6187_s13 = smov (!%p494_p6, %s3461_s13), 31  ;;  %v587_v35 = vadd.s32 48, %v4660_v22  ;;  %v588_v37 = vadd.s32 56, %v4660_v22  ;;  %v585_v40 = vadd.s32 32, %v4660_v22  ;;  %v586_v45 = vadd.s32 40, %v4660_v22 }
  0x16   : > { %v4572_v0 = vld [vmem:[%s4569_s17] ss:$8 sps:$4 sm:$0xff]   ;;  %v4575_v1 = vld [vmem:[%s4569_s17 + $0x10] ss:$8 sps:$4 sm:$0xff]   ;;  %s3465_s18 = sshll.u32 %s6187_s13, 2  ;;  %s490_s14 = scalar_lea.vmem %s6051_s0, %s6189_s22 }
  0x17   : > { %4008 = vmatprep.subr.msk.bf16.mxu0 %vm682_vm0, %v4572_v0  ;;  %v696_v2 = vsel %vm682_vm0, %v4572_v0, 0  ;;  %v699_v3 = vsel %vm682_vm0, %v4575_v1, 0  ;;  %s4591_s28 = scalar_lea.vmem %s6053_s2, %s3465_s18  ;;  %v4594_v4 = vld [vmem:[%s4569_s17 + $0x20] ss:$8 sps:$4 sm:$0xff]   ;;  %v4606_v7 = vld [vmem:[%s4569_s17 + $0x30] ss:$8 sps:$4 sm:$0xff]  }
  0x18   : > { %3777 = vmatpush3.bf16.xpose.msra.mxu0 %v696_v2  ;;  %v4597_v5 = vld [vmem:[%s4591_s28] sm:$0xff]   ;;  %v702_v6 = vsel %vm682_vm0, %v4594_v4, 0  ;;  %v4614_v9 = vld [vmem:[%s4569_s17 + $0x50] ss:$8 sps:$4 sm:$0xff]   ;;  %v705_v11 = vsel %vm682_vm0, %v4606_v7, 0  ;;  %v4641_v17 = vld [vmem:[%s4591_s28 + $0x8] sm:$0xff]  }
  0x19   : > { %4009 = vmatprep.subr.msk.bf16.mxu0 %vm682_vm0, %v4575_v1  ;;  %3792 = vmatprep.mubr.msk.bf16.mxu0 %vm682_vm0, %v4597_v5  ;;  %v4611_v8 = vld [vmem:[%s4569_s17 + $0x40] ss:$8 sps:$4 sm:$0xff]   ;;  %v711_v13 = vsel %vm682_vm0, %v4614_v9, 0  ;;  %v4634_v15 = vld [vmem:[%s4569_s17 + $0x70] ss:$8 sps:$4 sm:$0xff]   ;;  %s3472_s15 = sshll.u32 %s4442_s21, 6 }
  0x1a   : > { %v4617_v10 = vld [vmem:[%s4569_s17 + $0x60] ss:$8 sps:$4 sm:$0xff]   ;;  %v708_v12 = vsel %vm682_vm0, %v4611_v8, 0  ;;  %v717_v16 = vsel %vm682_vm0, %v4634_v15, 0  ;;  %v4644_v18 = vld [vmem:[%s4591_s28 + $0x10] sm:$0xff]   ;;  %v4651_v19 = vld [vmem:[%s4591_s28 + $0x18] sm:$0xff]   ;;  %v589_v25 = vstv %s3472_s15 }
  0x1b   : > { %v714_v14 = vsel %vm682_vm0, %v4617_v10, 0  ;;  %v577_v21 = vld [vmem:[%s490_s14] sm:$0x1]  ;;  %v592_v28 = vadd.s32 %v589_v25, %v583_v23  ;;  %v590_v32 = vadd.s32 %v589_v25, %v4660_v22  ;;  %v593_v34 = vadd.s32 %v589_v25, %v584_v31  ;;  %s4461_s21 = smov 96   ;;  %v4772_v31 = vld [vmem:[%s4569_s17 + $0x44] ss:$8 sps:$4 sm:$0xff]  }
  0x1c   : > { %vm578_vm1 = vcmp.gt.f32.partialorder %v577_v21, 0.5  ;;  %v591_v36 = vadd.s32 %v589_v25, %v582_v33  ;;  %v596_v44 = vadd.s32 %v589_v25, %v587_v35  ;;  %v597_v51 = vadd.s32 %v589_v25, %v588_v37  ;;  %s4462_s22 = smov 64   ;;  %s4463_s16 = smov 32   ;;  %v4417_v20 = vld [vmem:[%s4569_s17 + $0x44] ss:$8 sps:$4 sm:$0xff]  }
  0x1d   : > { %v608_v27 = vsel %vm578_vm1, 1, %v4460_v26  ;;  %vm602_vm2 = vcmp.ge.s32.totalorder %v592_v28, %v599_v29  ;;  %vm600_vm4 = vcmp.ge.s32.totalorder %v590_v32, %v599_v29  ;;  %vm603_vm7 = vcmp.ge.s32.totalorder %v593_v34, %v599_v29  ;;  %v4756_v28 = vld [vmem:[%s4569_s17 + $0x14] ss:$8 sps:$4 sm:$0xff]  }
  0x1e   : > { %v612_v30 = vrot.slane %v608_v27, %v611_v24  ;;  %vm601_vm8 = vcmp.ge.s32.totalorder %v591_v36, %v599_v29  ;;  %v594_v55 = vadd.s32 %v589_v25, %v585_v40  ;;  %vm606_vm11 = vcmp.ge.s32.totalorder %v596_v44, %v599_v29  ;;  %v4753_v27 = vld [vmem:[%s4569_s17 + $0x4] ss:$8 sps:$4 sm:$0xff]   ;;  %v4777_v32 = vld [vmem:[%s4569_s17 + $0x54] ss:$8 sps:$4 sm:$0xff]  }
  0x1f   : > { %v595_v57 = vadd.s32 %v589_v25, %v586_v45  ;;  %vm607_vm12 = vcmp.ge.s32.totalorder %v597_v51, %v599_v29  ;;  %3800 = vmatprep.subr.bf16.mxu1 %v4753_v27  ;;  %v4796_v51 = vld [vmem:[%s4569_s17 + $0x64] ss:$8 sps:$4 sm:$0xff]  }
  0x20   : > { %3779 = vmatpush3.bf16.xpose.msra.mxu0 %v699_v3  ;;  %vm613_vm3 = vcmp.eq.s32.totalorder %v612_v30, 1  ;;  %vm604_vm14 = vcmp.ge.s32.totalorder %v594_v55, %v599_v29  ;;  %3801 = vmatpush3.bf16.msra.mxu1 %v4753_v27  ;;  %v4767_v30 = vld [vmem:[%s4569_s17 + $0x34] ss:$8 sps:$4 sm:$0xff]  }
  0x21   : > { %4010 = vmatprep.subr.msk.bf16.mxu0 %vm682_vm0, %v4594_v4  ;;  %vm4674_vm5 = vmand %vm602_vm2, %vm613_vm3  ;;  %vm605_vm15 = vcmp.ge.s32.totalorder %v595_v57, %v599_v29  ;;  %3802 = vmatprep.subr.bf16.mxu1 %v4756_v28  ;;  %v4762_v29 = vld [vmem:[%s4569_s17 + $0x24] ss:$8 sps:$4 sm:$0xff]  }
  0x22   : > { %vm4680_vm6 = vmand %vm600_vm4, %vm613_vm3 }
  0x23   : > { %vm4693_vm9 = vmand %vm603_vm7, %vm613_vm3 }
  0x24   : > { %vm4698_vm10 = vmand %vm601_vm8, %vm613_vm3  ;;  %3803 = vmatpush3.bf16.msra.mxu1 %v4756_v28 }
  0x25   : > { %vm4707_vm13 = vmand %vm606_vm11, %vm613_vm3  ;;  %3804 = vmatprep.subr.bf16.mxu1 %v4762_v29 }
  0x26   : > { %vm4712_vm1 = vmand %vm607_vm12, %vm613_vm3 }
  0x27   : > { %vm4721_vm2 = vmand %vm604_vm14, %vm613_vm3 }
  0x28   : > { %3781 = vmatpush3.bf16.xpose.msra.mxu0 %v702_v6  ;;  %vm4726_vm4 = vmand %vm605_vm15, %vm613_vm3  ;;  %3805 = vmatpush3.bf16.msra.mxu1 %v4762_v29  ;;  %vm1654_vm3 = vcmask 785920  }
  0x29   : > { %4011 = vmatprep.subr.msk.bf16.mxu0 %vm682_vm0, %v4606_v7  ;;  %3806 = vmatprep.subr.bf16.mxu1 %v4767_v30 }
  0x2c   : > { %3807 = vmatpush3.bf16.msra.mxu1 %v4767_v30 }
  0x2d   : > { %3808 = vmatprep.subr.bf16.mxu1 %v4772_v31 }
  0x30   : > { %3783 = vmatpush3.bf16.xpose.msra.mxu0 %v705_v11  ;;  %3809 = vmatpush3.bf16.msra.mxu1 %v4772_v31 }
  0x31   : > { %4012 = vmatprep.subr.msk.bf16.mxu0 %vm682_vm0, %v4611_v8  ;;  %3810 = vmatprep.subr.bf16.mxu1 %v4777_v32 }
  0x34   : > { %3811 = vmatpush3.bf16.msra.mxu1 %v4777_v32 }
  0x35   : > { %3812 = vmatprep.subr.bf16.mxu1 %v4796_v51 }
  0x38   : > { %3785 = vmatpush3.bf16.xpose.msra.mxu0 %v708_v12  ;;  %3813 = vmatpush3.bf16.msra.mxu1 %v4796_v51 }
  0x39   : > { %4013 = vmatprep.subr.msk.bf16.mxu0 %vm682_vm0, %v4614_v9 }
  0x40   : > { %3787 = vmatpush3.bf16.xpose.msra.mxu0 %v711_v13 }
  0x41   : > { %4014 = vmatprep.subr.msk.bf16.mxu0 %vm682_vm0, %v4617_v10 }
  0x48   : > { %3789 = vmatpush3.bf16.xpose.msra.mxu0 %v714_v14 }
  0x49   : > { %4015 = vmatprep.subr.msk.bf16.mxu0 %vm682_vm0, %v4634_v15 }
  0x50   : > { %3791 = vmatpush3.bf16.xpose.msra.mxu0 %v717_v16 }
  0x57   : > { %3793 = vmatmul.mubr.msk.bf16.vlgmr.msra.gmra.mrb[0].mxu0 %vm682_vm0, %v4641_v17 }
  0x58   : > { %3796 = vmatprep.mubr.msk.bf16.mxu0 %vm682_vm0, %v4644_v18 }
  0x5f   : > { %3797 = vmatmul.mubr.msk.bf16.gmra.mrb[4].mxu0 %vm682_vm0, %v4651_v19 }
 0x12a   : > { %v3794_v38 = vpop.f32.mrb[0].mxu0 }
 0x12b   : > { %v786_v41 = vmul.f32 0.17677669, %v3794_v38  ;;  %v753_v42 = vpop.f32.mrb[1].mxu0 }
 0x12c   : > { %v784_v46 = vmul.f32 0.17677669, %v753_v42  ;;  %v3795_v47 = vpop.f32.mrb[2].mxu0 }
 0x12d   : > { %v787_v48 = vmul.f32 0.17677669, %v3795_v47  ;;  %v756_v49 = vpop.f32.mrb[3].mxu0  ;;  %v4687_v50 = vsel %vm4674_vm5, %v786_v41, -1e+09 }
 0x12e   : > { %v785_v52 = vmul.f32 0.17677669, %v756_v49  ;;  %804 = vmax.xlane.f32.xlu1 %v4687_v50  ;;  %v792_v53 = vsel %vm4680_vm6, %v784_v46, -1e+09 }
 0x12f   : > { %800 = vmax.xlane.f32.xlu0 %v792_v53  ;;  %v795_v58 = vsel %vm4693_vm9, %v787_v48, -1e+09 }
 0x130   : > { %v793_v60 = vsel %vm4698_vm10, %v785_v52, -1e+09  ;;  %v4801_v52 = vld [vmem:[%s4569_s17 + $0x74] ss:$8 sps:$4 sm:$0xff]  }
 0x131   : > { %3814 = vmatprep.subr.bf16.mxu1 %v4801_v52 }
 0x132   : > { %v3798_v59 = vpop.f32.mrb[4].mxu0  ;;  %806 = vmax.xlane.f32.xlu1 %v795_v58  ;;  %3815 = vmatpush3.bf16.msra.mxu1 %v4801_v52 }
 0x133   : > { %v790_v62 = vmul.f32 0.17677669, %v3798_v59  ;;  %v769_v63 = vpop.f32.mrb[5].mxu0  ;;  %802 = vmax.xlane.f32.xlu0 %v793_v60 }
 0x134   : > { %v788_v2 = vmul.f32 0.17677669, %v769_v63  ;;  %v3799_v3 = vpop.f32.mrb[6].mxu0 }
 0x135   : > { %v791_v11 = vmul.f32 0.17677669, %v3799_v3  ;;  %v4718_v12 = vsel %vm4707_vm13, %v790_v62, -1e+09  ;;  %v772_v13 = vpop.f32.mrb[7].mxu0 }
 0x136   : > { %v789_v16 = vmul.f32 0.17677669, %v772_v13  ;;  %v4738_v23 = vsel %vm4721_vm2, %v788_v2, -1e+09 }
 0x137   : > { %812 = vmax.xlane.f32.xlu0 %v4718_v12  ;;  %v4733_v21 = vsel %vm4712_vm1, %v791_v11, -1e+09 }
 0x138   : > { %814 = vmax.xlane.f32.xlu1 %v4733_v21  ;;  %v4742_v25 = vsel %vm4726_vm4, %v789_v16, -1e+09 }
 0x13b   : > { %808 = vmax.xlane.f32.xlu0 %v4738_v23 }
 0x13c   : > { %810 = vmax.xlane.f32.xlu1 %v4742_v25 }
 0x14d   : > { %1007 = vrot.lane.b32.xlu1 %v4575_v1, %s4461_s21 }
 0x151   : > { %1009 = vrot.lane.b32.xlu1 %v4594_v4, %s4461_s21 }
 0x155   : > { %1011 = vrot.lane.b32.xlu1 %v4606_v7, %s4461_s21 }
 0x1bb   : > { %v805_v33 = vpop.xlane.xlu1 %804 }
 0x1bc   : > { %v818_v34 = vsub.f32 %v4687_v50, %v805_v33  ;;  %v801_v35 = vpop.xlane.xlu0 %800 }
 0x1bd   : > { %v816_v36 = vsub.f32 %v792_v53, %v801_v35 }
 0x1be   : > { %v828_v37 = vmul.f32 1.442695, %v818_v34 }
 0x1bf   : > { %v824_v38 = vmul.f32 1.442695, %v816_v36  ;;  %v807_v40 = vpop.xlane.xlu1 %806 }
 0x1c0   : > { %4192 = vpow2.f32 %v828_v37  ;;  %v819_v41 = vsub.f32 %v795_v58, %v807_v40  ;;  %v803_v42 = vpop.xlane.xlu0 %802 }
 0x1c1   : > { %v817_v44 = vsub.f32 %v793_v60, %v803_v42  ;;  %4194 = vpow2.f32 %v824_v38 }
 0x1c2   : > { %v830_v45 = vmul.f32 1.442695, %v819_v41 }
 0x1c3   : > { %v826_v46 = vmul.f32 1.442695, %v817_v44 }
 0x1c4   : > { %4196 = vpow2.f32 %v830_v45  ;;  %v813_v53 = vpop.xlane.xlu0 %812 }
 0x1c5   : > { %4198 = vpow2.f32 %v826_v46  ;;  %v815_v55 = vpop.xlane.xlu1 %814  ;;  %v822_v57 = vsub.f32 %v4718_v12, %v813_v53 }
 0x1c6   : > { %v823_v63 = vsub.f32 %v4733_v21, %v815_v55 }
 0x1c7   : > { %v836_v59 = vmul.f32 1.442695, %v822_v57 }
 0x1c8   : > { %v809_v58 = vpop.xlane.xlu0 %808  ;;  %v838_v11 = vmul.f32 1.442695, %v823_v63 }
 0x1c9   : > { %v820_v60 = vsub.f32 %v4738_v23, %v809_v58  ;;  %v811_v62 = vpop.xlane.xlu1 %810  ;;  %4200 = vpow2.f32 %v836_v59 }
 0x1ca   : > { %v4783_v47 = vpop.eup %4192  ;;  %v821_v3 = vsub.f32 %v4742_v25, %v811_v62 }
 0x1cb   : > { %844 = vadd.xlane.f32.xlu0 %v4783_v47  ;;  %v4786_v48 = vpop.eup %4194  ;;  %v832_v2 = vmul.f32 1.442695, %v820_v60 }
 0x1cc   : > { %v834_v13 = vmul.f32 1.442695, %v821_v3 }
 0x1cd   : > { %4202 = vpow2.f32 %v832_v2 }
 0x1ce   : > { %v4788_v49 = vpop.eup %4196  ;;  %4204 = vpow2.f32 %v838_v11 }
 0x1cf   : > { %846 = vadd.xlane.f32.xlu1 %v4788_v49  ;;  %840 = vadd.xlane.f32.xlu0 %v4786_v48  ;;  %v4792_v50 = vpop.eup %4198  ;;  %4206 = vpow2.f32 %v834_v13 }
 0x1d3   : > { %842 = vadd.xlane.f32.xlu1 %v4792_v50  ;;  %v4815_v16 = vpop.eup %4200 }
 0x1d7   : > { %v4818_v12 = vpop.eup %4202 }
 0x1d8   : > { %v4821_v23 = vpop.eup %4204 }
 0x1d9   : > { %v4823_v21 = vpop.eup %4206 }
 0x1e4   : > { %1015 = vrot.lane.b32.xlu1 %v4614_v9, %s4461_s21 }
 0x1e5   : > { %1005 = vrot.lane.b32.xlu0 %v4572_v0, %s4461_s21 }
 0x1e8   : > { %1017 = vrot.lane.b32.xlu1 %v4617_v10, %s4461_s21 }
 0x204   : > { %852 = vadd.xlane.f32.xlu0 %v4815_v16 }
 0x208   : > { %848 = vadd.xlane.f32.xlu0 %v4818_v12 }
 0x20c   : > { %850 = vadd.xlane.f32.xlu1 %v4823_v21  ;;  %854 = vadd.xlane.f32.xlu0 %v4821_v23 }
 0x21d   : > { %1019 = vrot.lane.b32.xlu1 %v4634_v15, %s4461_s21 }
 0x221   : > { %999 = vrot.lane.b32.xlu1 %v4641_v17, %s4461_s21 }
 0x222   : > { %1013 = vrot.lane.b32.xlu0 %v4611_v8, %s4461_s21 }
 0x225   : > { %1003 = vrot.lane.b32.xlu1 %v4651_v19, %s4461_s21 }
 0x226   : > { %997 = vrot.lane.b32.xlu0 %v4597_v5, %s4461_s21  ;;  %v1008_v5 = vpop.permute.xlu1 %1007 }
 0x227   : > { %v1037_v60 = vsel %vm682_vm0, %v1008_v5, 0 }
 0x229   : > { %1216 = vrot.lane.b32.xlu1 %v4756_v28, %s4461_s21 }
 0x22a   : > { %1001 = vrot.lane.b32.xlu0 %v4644_v18, %s4461_s21  ;;  %v1010_v25 = vpop.permute.xlu1 %1009 }
 0x22d   : > { %1220 = vrot.lane.b32.xlu1 %v4767_v30, %s4461_s21 }
 0x22e   : > { %1214 = vrot.lane.b32.xlu0 %v4753_v27, %s4461_s21  ;;  %v1012_v33 = vpop.permute.xlu1 %1011 }
 0x231   : > { %1224 = vrot.lane.b32.xlu1 %v4777_v32, %s4461_s21 }
 0x232   : > { %1218 = vrot.lane.b32.xlu0 %v4762_v29, %s4461_s21 }
 0x236   : > { %1222 = vrot.lane.b32.xlu0 %v4772_v31, %s4461_s21 }
 0x23a   : > { %1226 = vrot.lane.b32.xlu0 %v4796_v51, %s4461_s21 }
 0x258   : > { %v845_v34 = vpop.xlane.xlu0 %844 }
 0x25c   : > { %v847_v35 = vpop.xlane.xlu1 %846  ;;  %v841_v36 = vpop.xlane.xlu0 %840 }
 0x25d   : > { %4208 = vrcp.f32 %v847_v35 }
 0x25e   : > { %4210 = vrcp.f32 %v841_v36 }
 0x25f   : > { %4212 = vrcp.f32 %v845_v34 }
 0x260   : > { %v843_v37 = vpop.xlane.xlu1 %842  ;;  %v1006_v38 = vpop.permute.xlu0 %1005 }
 0x261   : > { %4214 = vrcp.f32 %v843_v37  ;;  %4016 = vmatprep.subr.msk.bf16.mxu1 %vm682_vm0, %v1006_v38  ;;  %v1034_v59 = vsel %vm682_vm0, %v1006_v38, 0 }
 0x267   : > { %v4209_v40 = vpop.eup %4208 }
 0x268   : > { %v4211_v41 = vpop.eup %4210  ;;  %v867_v45 = vmul.f32 %v4209_v40, %v4788_v49  ;;  %v1016_v49 = vpop.permute.xlu1 %1015 }
 0x269   : > { %v4213_v42 = vpop.eup %4212  ;;  %v864_v46 = vmul.f32 %v4211_v41, %v4786_v48  ;;  %v1040_v48 = vsel %vm682_vm0, %v1010_v25, 0  ;;  %v1049_v37 = vsel %vm682_vm0, %v1016_v49, 0 }
 0x26a   : > { %v866_v55 = vmul.f32 %v4213_v42, %v4783_v47  ;;  %v1043_v47 = vsel %vm682_vm0, %v1012_v33, 0 }
 0x26b   : > { %v4215_v44 = vpop.eup %4214 }
 0x26c   : > { %v865_v53 = vmul.f32 %v4215_v44, %v4792_v50  ;;  %v873_v58 = vpack.c.bf16 %v867_v45, %v866_v55  ;;  %v1018_v62 = vpop.permute.xlu1 %1017 }
 0x26e   : > { %v872_v57 = vpack.c.bf16 %v865_v53, %v864_v46 }
 0x270   : > { %3816 = vmatprep.mubr.bf16.mxu1 %v872_v57 }
 0x271   : > { %3817 = vmatmul.mubr.bf16.vlgmr.msra.gmra.mrb[0].mxu1 %v873_v58 }
 0x272   : > { %3825 = vmatpush3.bf16.xpose.msra.mxu1 %v1034_v59 }
 0x273   : > { %4017 = vmatprep.subr.msk.bf16.mxu1 %vm682_vm0, %v1008_v5 }
 0x27a   : > { %3827 = vmatpush3.bf16.xpose.msra.mxu1 %v1037_v60 }
 0x27b   : > { %4018 = vmatprep.subr.msk.bf16.mxu1 %vm682_vm0, %v1010_v25 }
 0x282   : > { %3829 = vmatpush3.bf16.xpose.msra.mxu1 %v1040_v48 }
 0x283   : > { %4019 = vmatprep.subr.msk.bf16.mxu1 %vm682_vm0, %v1012_v33 }
 0x28a   : > { %3831 = vmatpush3.bf16.xpose.msra.mxu1 %v1043_v47 }
 0x291   : > { %v853_v50 = vpop.xlane.xlu0 %852 }
 0x295   : > { %v849_v63 = vpop.xlane.xlu0 %848 }
 0x296   : > { %4216 = vrcp.f32 %v849_v63 }
 0x297   : > { %4218 = vrcp.f32 %v853_v50 }
 0x299   : > { %v851_v2 = vpop.xlane.xlu1 %850  ;;  %v855_v3 = vpop.xlane.xlu0 %854 }
 0x29a   : > { %4220 = vrcp.f32 %v851_v2 }
 0x29b   : > { %4222 = vrcp.f32 %v855_v3 }
 0x29d   : > { %v1014_v11 = vpop.permute.xlu0 %1013  ;;  %v1020_v45 = vpop.permute.xlu1 %1019 }
 0x29e   : > { %4020 = vmatprep.subr.msk.bf16.mxu1 %vm682_vm0, %v1014_v11  ;;  %v1046_v13 = vsel %vm682_vm0, %v1014_v11, 0 }
 0x29f   : > { %3833 = vmatpush3.bf16.xpose.msra.mxu1 %v1046_v13 }
 0x2a0   : > { %4021 = vmatprep.subr.msk.bf16.mxu1 %vm682_vm0, %v1016_v49  ;;  %v4217_v5 = vpop.eup %4216 }
 0x2a1   : > { %v4219_v25 = vpop.eup %4218  ;;  %v868_v35 = vmul.f32 %v4217_v5, %v4818_v12  ;;  %v998_v44 = vpop.permute.xlu0 %997  ;;  %v1052_v12 = vsel %vm682_vm0, %v1018_v62, 0 }
 0x2a2   : > { %v870_v38 = vmul.f32 %v4219_v25, %v4815_v16  ;;  %v1055_v16 = vsel %vm682_vm0, %v1020_v45, 0 }
 0x2a4   : > { %v4221_v33 = vpop.eup %4220 }
 0x2a5   : > { %v4223_v34 = vpop.eup %4222  ;;  %v869_v36 = vmul.f32 %v4221_v33, %v4823_v21  ;;  %v1002_v21 = vpop.permute.xlu0 %1001 }
 0x2a6   : > { %v871_v40 = vmul.f32 %v4223_v34, %v4821_v23  ;;  %v1000_v23 = vpop.permute.xlu1 %999 }
 0x2a7   : > { %3835 = vmatpush3.bf16.xpose.msra.mxu1 %v1049_v37  ;;  %v874_v41 = vpack.c.bf16 %v869_v36, %v868_v35 }
 0x2a8   : > { %4022 = vmatprep.subr.msk.bf16.mxu1 %vm682_vm0, %v1018_v62  ;;  %v875_v42 = vpack.c.bf16 %v871_v40, %v870_v38 }
 0x2a9   : > { %3820 = vmatprep.mubr.bf16.mxu1 %v874_v41  ;;  %v1215_v48 = vpop.permute.xlu0 %1214 }
 0x2aa   : > { %3821 = vmatmul.mubr.bf16.gmra.mrb[4].mxu1 %v875_v42  ;;  %v1004_v46 = vpop.permute.xlu1 %1003  ;;  %3848 = vmatprep.subr.bf16.mxu0 %v1215_v48 }
 0x2ab   : > { %3840 = vmatprep.mubr.msk.bf16.mxu1 %vm682_vm0, %v998_v44  ;;  %3849 = vmatpush3.bf16.msra.mxu0 %v1215_v48 }
 0x2ad   : > { %v1219_v49 = vpop.permute.xlu0 %1218 }
 0x2ae   : > { %v1217_v47 = vpop.permute.xlu1 %1216 }
 0x2af   : > { %3837 = vmatpush3.bf16.xpose.msra.mxu1 %v1052_v12  ;;  %3850 = vmatprep.subr.bf16.mxu0 %v1217_v47 }
 0x2b0   : > { %4023 = vmatprep.subr.msk.bf16.mxu1 %vm682_vm0, %v1020_v45  ;;  %3851 = vmatpush3.bf16.msra.mxu0 %v1217_v47 }
 0x2b1   : > { %3852 = vmatprep.subr.bf16.mxu0 %v1219_v49  ;;  %v1223_v62 = vpop.permute.xlu0 %1222 }
 0x2b2   : > { %v1221_v50 = vpop.permute.xlu1 %1220 }
 0x2b4   : > { %3853 = vmatpush3.bf16.msra.mxu0 %v1219_v49 }
 0x2b5   : > { %3854 = vmatprep.subr.bf16.mxu0 %v1221_v50  ;;  %v1227_v2 = vpop.permute.xlu0 %1226 }
 0x2b6   : > { %v1225_v63 = vpop.permute.xlu1 %1224 }
 0x2b7   : > { %3839 = vmatpush3.bf16.xpose.msra.mxu1 %v1055_v16 }
 0x2b8   : > { %3855 = vmatpush3.bf16.msra.mxu0 %v1221_v50 }
 0x2b9   : > { %3856 = vmatprep.subr.bf16.mxu0 %v1223_v62 }
 0x2bc   : > { %3857 = vmatpush3.bf16.msra.mxu0 %v1223_v62 }
 0x2bd   : > { %3858 = vmatprep.subr.bf16.mxu0 %v1225_v63 }
 0x2be   : > { %3841 = vmatmul.mubr.msk.bf16.vlgmr.msra.gmra.mrb[8].mxu1 %vm682_vm0, %v1000_v23 }
 0x2bf   : > { %3844 = vmatprep.mubr.msk.bf16.mxu1 %vm682_vm0, %v1002_v21 }
 0x2c0   : > { %3859 = vmatpush3.bf16.msra.mxu0 %v1225_v63 }
 0x2c1   : > { %3860 = vmatprep.subr.bf16.mxu0 %v1227_v2 }
 0x2c4   : > { %3861 = vmatpush3.bf16.msra.mxu0 %v1227_v2 }
 0x2c6   : > { %3845 = vmatmul.mubr.msk.bf16.gmra.mrb[12].mxu1 %vm682_vm0, %v1004_v46 }
 0x344   : > { %v3818_v53 = vpop.f32.mrb[0].mxu1 }
 0x345   : > { %v958_v55 = vpop.f32.mrb[1].mxu1 }
 0x346   : > { %v3819_v57 = vpop.f32.mrb[2].mxu1 }
 0x347   : > { %v990_v58 = vpack.c.bf16 %v3819_v57, %v3818_v53  ;;  %v961_v59 = vpop.f32.mrb[3].mxu1 }
 0x348   : > { %v989_v60 = vpack.c.bf16 %v961_v59, %v958_v55 }
 0x349   : > { %994 = vst.msk [vmem:[#allocation2 + $0x8] sm:$0xff] %vm682_vm0, %v990_v58 }
 0x34a   : > { %993 = vst.msk [vmem:[#allocation2] sm:$0xff] %vm682_vm0, %v989_v60 }
 0x37d   : > { %v3822_v3 = vpop.f32.mrb[4].mxu1 }
 0x37e   : > { %v974_v11 = vpop.f32.mrb[5].mxu1 }
 0x37f   : > { %v3823_v13 = vpop.f32.mrb[6].mxu1 }
 0x380   : > { %v992_v5 = vpack.c.bf16 %v3823_v13, %v3822_v3  ;;  %v977_v25 = vpop.f32.mrb[7].mxu1 }
 0x381   : > { %v991_v33 = vpack.c.bf16 %v977_v25, %v974_v11 }
 0x382   : > { %996 = vst.msk [vmem:[#allocation2 + $0x18] sm:$0xff] %vm682_vm0, %v992_v5 }
 0x383   : > { %995 = vst.msk [vmem:[#allocation2 + $0x10] sm:$0xff] %vm682_vm0, %v991_v33 }
 0x391   : > { %v3842_v34 = vpop.f32.mrb[8].mxu1 }
 0x392   : > { %v1124_v35 = vmul.f32 0.17677669, %v3842_v34  ;;  %v1091_v36 = vpop.f32.mrb[9].mxu1 }
 0x393   : > { %v3843_v37 = vpop.f32.mrb[10].mxu1  ;;  %v1122_v38 = vmul.f32 0.17677669, %v1091_v36 }
 0x394   : > { %v1094_v40 = vpop.f32.mrb[11].mxu1  ;;  %v1132_v41 = vsel %vm4674_vm5, %v1124_v35, -1e+09  ;;  %v1125_v45 = vmul.f32 0.17677669, %v3843_v37 }
 0x395   : > { %v1123_v42 = vmul.f32 0.17677669, %v1094_v40  ;;  %1142 = vmax.xlane.f32.xlu0 %v1132_v41  ;;  %v1130_v12 = vsel %vm4680_vm6, %v1122_v38, -1e+09 }
 0x396   : > { %v1133_v46 = vsel %vm4693_vm9, %v1125_v45, -1e+09 }
 0x397   : > { %v1131_v44 = vsel %vm4698_vm10, %v1123_v42, -1e+09 }
 0x398   : > { %1140 = vmax.xlane.f32.xlu1 %v1131_v44 }
 0x399   : > { %1138 = vmax.xlane.f32.xlu0 %v1130_v12  ;;  %v3846_v16 = vpop.f32.mrb[12].mxu1 }
 0x39a   : > { %v1107_v23 = vpop.f32.mrb[13].mxu1  ;;  %v1128_v59 = vmul.f32 0.17677669, %v3846_v16 }
 0x39b   : > { %v3847_v21 = vpop.f32.mrb[14].mxu1  ;;  %v1126_v47 = vmul.f32 0.17677669, %v1107_v23 }
 0x39c   : > { %v1110_v53 = vpop.f32.mrb[15].mxu1  ;;  %v1129_v55 = vmul.f32 0.17677669, %v3847_v21  ;;  %v1136_v48 = vsel %vm4707_vm13, %v1128_v59, -1e+09 }
 0x39d   : > { %1144 = vmax.xlane.f32.xlu0 %v1133_v46  ;;  %v1127_v58 = vmul.f32 0.17677669, %v1110_v53  ;;  %v1134_v49 = vsel %vm4721_vm2, %v1126_v47, -1e+09 }
 0x39e   : > { %v1137_v57 = vsel %vm4712_vm1, %v1129_v55, -1e+09 }
 0x39f   : > { %v1135_v60 = vsel %vm4726_vm4, %v1127_v58, -1e+09  ;;  %v4943_v58 = vld [vmem:[%s4591_s28] sm:$0xff]  }
 0x3a9   : > { %1228 = vrot.lane.b32.xlu1 %v4801_v52, %s4461_s21 }
 0x3b3   : > { %1336 = vrot.lane.b32.xlu0 %v4572_v0, %s4462_s22 }
 0x3cd   : > { %1152 = vmax.xlane.f32.xlu1 %v1137_v57 }
 0x3d1   : > { %1148 = vmax.xlane.f32.xlu1 %v1135_v60 }
 0x3d2   : > { %1150 = vmax.xlane.f32.xlu0 %v1136_v48 }
 0x3d6   : > { %1146 = vmax.xlane.f32.xlu0 %v1134_v49 }
 0x3e2   : > { %1338 = vrot.lane.b32.xlu1 %v4575_v1, %s4462_s22 }
 0x422   : > { %v1143_v0 = vpop.xlane.xlu0 %1142 }
 0x423   : > { %v1156_v50 = vsub.f32 %v1132_v41, %v1143_v0 }
 0x425   : > { %v1166_v62 = vmul.f32 1.442695, %v1156_v50  ;;  %v1141_v63 = vpop.xlane.xlu1 %1140 }
 0x426   : > { %v1155_v2 = vsub.f32 %v1131_v44, %v1141_v63  ;;  %v1139_v3 = vpop.xlane.xlu0 %1138 }
 0x427   : > { %4224 = vpow2.f32 %v1166_v62  ;;  %v1154_v11 = vsub.f32 %v1130_v12, %v1139_v3 }
 0x428   : > { %v1164_v13 = vmul.f32 1.442695, %v1155_v2 }
 0x429   : > { %v1162_v5 = vmul.f32 1.442695, %v1154_v11  ;;  %v1229_v25 = vpop.permute.xlu1 %1228 }
 0x42a   : > { %4226 = vpow2.f32 %v1164_v13  ;;  %3862 = vmatprep.subr.bf16.mxu0 %v1229_v25  ;;  %v1145_v33 = vpop.xlane.xlu0 %1144 }
 0x42b   : > { %4228 = vpow2.f32 %v1162_v5  ;;  %v1157_v34 = vsub.f32 %v1133_v46, %v1145_v33  ;;  %3863 = vmatpush3.bf16.msra.mxu0 %v1229_v25 }
 0x42d   : > { %v1168_v35 = vmul.f32 1.442695, %v1157_v34 }
 0x42e   : > { %v4907_v36 = vpop.permute.xlu0 %1336 }
 0x42f   : > { %4230 = vpow2.f32 %v1168_v35  ;;  %4024 = vmatprep.subr.msk.bf16.mxu0 %vm682_vm0, %v4907_v36  ;;  %v1365_v47 = vsel %vm682_vm0, %v4907_v36, 0 }
 0x431   : > { %v4911_v1 = vpop.eup %4224 }
 0x432   : > { %1182 = vadd.xlane.f32.xlu1 %v4911_v1 }
 0x434   : > { %v4227_v37 = vpop.eup %4226 }
 0x435   : > { %v4229_v38 = vpop.eup %4228  ;;  %1180 = vadd.xlane.f32.xlu0 %v4227_v37 }
 0x436   : > { %1178 = vadd.xlane.f32.xlu1 %v4229_v38 }
 0x439   : > { %v4231_v40 = vpop.eup %4230 }
 0x43a   : > { %1184 = vadd.xlane.f32.xlu1 %v4231_v40 }
 0x44b   : > { %1342 = vrot.lane.b32.xlu1 %v4606_v7, %s4462_s22  ;;  %1340 = vrot.lane.b32.xlu0 %v4594_v4, %s4462_s22 }
 0x44f   : > { %1346 = vrot.lane.b32.xlu1 %v4614_v9, %s4462_s22 }
 0x453   : > { %1348 = vrot.lane.b32.xlu1 %v4617_v10, %s4462_s22 }
 0x45a   : > { %v1153_v41 = vpop.xlane.xlu1 %1152 }
 0x45b   : > { %v1161_v16 = vsub.f32 %v1137_v57, %v1153_v41 }
 0x45d   : > { %v1176_v53 = vmul.f32 1.442695, %v1161_v16 }
 0x45e   : > { %v1149_v45 = vpop.xlane.xlu1 %1148 }
 0x45f   : > { %v1151_v42 = vpop.xlane.xlu0 %1150  ;;  %v1159_v21 = vsub.f32 %v1135_v60, %v1149_v45 }
 0x460   : > { %v1160_v44 = vsub.f32 %v1136_v48, %v1151_v42 }
 0x461   : > { %v1172_v55 = vmul.f32 1.442695, %v1159_v21 }
 0x462   : > { %v1174_v12 = vmul.f32 1.442695, %v1160_v44 }
 0x463   : > { %v1147_v23 = vpop.xlane.xlu0 %1146 }
 0x464   : > { %4232 = vpow2.f32 %v1174_v12  ;;  %v1158_v46 = vsub.f32 %v1134_v49, %v1147_v23 }
 0x466   : > { %v1170_v7 = vmul.f32 1.442695, %v1158_v46 }
 0x468   : > { %4234 = vpow2.f32 %v1170_v7 }
 0x469   : > { %4236 = vpow2.f32 %v1176_v53 }
 0x46a   : > { %4238 = vpow2.f32 %v1172_v55 }
 0x46e   : > { %v4922_v4 = vpop.eup %4232 }
 0x46f   : > { %1190 = vadd.xlane.f32.xlu0 %v4922_v4 }
 0x472   : > { %v4925_v9 = vpop.eup %4234 }
 0x473   : > { %1186 = vadd.xlane.f32.xlu0 %v4925_v9  ;;  %v4928_v10 = vpop.eup %4236 }
 0x474   : > { %v4930_v57 = vpop.eup %4238 }
 0x477   : > { %1188 = vadd.xlane.f32.xlu1 %v4930_v57  ;;  %1192 = vadd.xlane.f32.xlu0 %v4928_v10 }
 0x488   : > { %1350 = vrot.lane.b32.xlu1 %v4634_v15, %s4462_s22 }
 0x48c   : > { %1330 = vrot.lane.b32.xlu1 %v4641_v17, %s4462_s22 }
 0x48d   : > { %1344 = vrot.lane.b32.xlu0 %v4611_v8, %s4462_s22  ;;  %v1339_v8 = vpop.permute.xlu1 %1338 }
 0x48e   : > { %v1368_v49 = vsel %vm682_vm0, %v1339_v8, 0 }
 0x490   : > { %1334 = vrot.lane.b32.xlu1 %v4651_v19, %s4462_s22 }
 0x491   : > { %1328 = vrot.lane.b32.xlu0 %v4943_v58, %s4462_s22 }
 0x494   : > { %1547 = vrot.lane.b32.xlu1 %v4756_v28, %s4462_s22 }
 0x495   : > { %1332 = vrot.lane.b32.xlu0 %v4644_v18, %s4462_s22 }
 0x498   : > { %1551 = vrot.lane.b32.xlu1 %v4767_v30, %s4462_s22 }
 0x499   : > { %1545 = vrot.lane.b32.xlu0 %v4753_v27, %s4462_s22 }
 0x49c   : > { %1555 = vrot.lane.b32.xlu1 %v4777_v32, %s4462_s22 }
 0x49d   : > { %1549 = vrot.lane.b32.xlu0 %v4762_v29, %s4462_s22 }
 0x4a1   : > { %1553 = vrot.lane.b32.xlu0 %v4772_v31, %s4462_s22 }
 0x4a5   : > { %1557 = vrot.lane.b32.xlu0 %v4796_v51, %s4462_s22 }
 0x4bf   : > { %v1183_v15 = vpop.xlane.xlu1 %1182 }
 0x4c2   : > { %v1181_v17 = vpop.xlane.xlu0 %1180 }
 0x4c3   : > { %4240 = vrcp.f32 %v1181_v17  ;;  %v1179_v18 = vpop.xlane.xlu1 %1178 }
 0x4c4   : > { %4242 = vrcp.f32 %v1179_v18 }
 0x4c5   : > { %4244 = vrcp.f32 %v1183_v15 }
 0x4c6   : > { %v1341_v0 = vpop.permute.xlu0 %1340 }
 0x4c7   : > { %v1185_v19 = vpop.xlane.xlu1 %1184  ;;  %v1371_v50 = vsel %vm682_vm0, %v1341_v0, 0 }
 0x4c8   : > { %4246 = vrcp.f32 %v1185_v19 }
 0x4cb   : > { %v1343_v62 = vpop.permute.xlu1 %1342 }
 0x4cc   : > { %v1374_v63 = vsel %vm682_vm0, %v1343_v62, 0 }
 0x4cd   : > { %v4241_v27 = vpop.eup %4240 }
 0x4ce   : > { %v4243_v28 = vpop.eup %4242  ;;  %v1203_v30 = vmul.f32 %v4241_v27, %v4227_v37 }
 0x4cf   : > { %v1202_v32 = vmul.f32 %v4243_v28, %v4229_v38  ;;  %v4245_v29 = vpop.eup %4244  ;;  %v1347_v2 = vpop.permute.xlu1 %1346 }
 0x4d0   : > { %v1204_v31 = vmul.f32 %v4245_v29, %v4911_v1  ;;  %v1380_v41 = vsel %vm682_vm0, %v1347_v2, 0 }
 0x4d1   : > { %v1210_v59 = vpack.c.bf16 %v1203_v30, %v1202_v32 }
 0x4d2   : > { %v4247_v60 = vpop.eup %4246 }
 0x4d3   : > { %v1205_v48 = vmul.f32 %v4247_v60, %v4231_v40  ;;  %3864 = vmatprep.mubr.bf16.mxu0 %v1210_v59  ;;  %v1349_v11 = vpop.permute.xlu1 %1348 }
 0x4d4   : > { %v1383_v21 = vsel %vm682_vm0, %v1349_v11, 0 }
 0x4d5   : > { %v1211_v51 = vpack.c.bf16 %v1205_v48, %v1204_v31 }
 0x4d7   : > { %3865 = vmatmul.mubr.bf16.vlgmr.msra.gmra.mrb[8].mxu0 %v1211_v51 }
 0x4d8   : > { %3873 = vmatpush3.bf16.xpose.msra.mxu0 %v1365_v47 }
 0x4d9   : > { %4025 = vmatprep.subr.msk.bf16.mxu0 %vm682_vm0, %v1339_v8 }
 0x4e0   : > { %3875 = vmatpush3.bf16.xpose.msra.mxu0 %v1368_v49 }
 0x4e1   : > { %4026 = vmatprep.subr.msk.bf16.mxu0 %vm682_vm0, %v1341_v0 }
 0x4e8   : > { %3877 = vmatpush3.bf16.xpose.msra.mxu0 %v1371_v50 }
 0x4e9   : > { %4027 = vmatprep.subr.msk.bf16.mxu0 %vm682_vm0, %v1343_v62 }
 0x4f0   : > { %3879 = vmatpush3.bf16.xpose.msra.mxu0 %v1374_v63 }
 0x4fc   : > { %v1191_v3 = vpop.xlane.xlu0 %1190 }
 0x500   : > { %v1187_v13 = vpop.xlane.xlu0 %1186 }
 0x501   : > { %4248 = vrcp.f32 %v1187_v13 }
 0x502   : > { %4250 = vrcp.f32 %v1191_v3 }
 0x504   : > { %v1189_v5 = vpop.xlane.xlu1 %1188  ;;  %v1193_v25 = vpop.xlane.xlu0 %1192 }
 0x505   : > { %4252 = vrcp.f32 %v1189_v5 }
 0x506   : > { %4254 = vrcp.f32 %v1193_v25 }
 0x508   : > { %v1345_v33 = vpop.permute.xlu0 %1344  ;;  %v1351_v23 = vpop.permute.xlu1 %1350 }
 0x509   : > { %v1377_v34 = vsel %vm682_vm0, %v1345_v33, 0  ;;  %4028 = vmatprep.subr.msk.bf16.mxu0 %vm682_vm0, %v1345_v33  ;;  %v1386_v46 = vsel %vm682_vm0, %v1351_v23, 0 }
 0x50a   : > { %3881 = vmatpush3.bf16.xpose.msra.mxu0 %v1377_v34 }
 0x50b   : > { %4029 = vmatprep.subr.msk.bf16.mxu0 %vm682_vm0, %v1347_v2  ;;  %v4249_v35 = vpop.eup %4248 }
 0x50c   : > { %v4251_v36 = vpop.eup %4250  ;;  %v1206_v38 = vmul.f32 %v4249_v35, %v4925_v9  ;;  %v1329_v16 = vpop.permute.xlu0 %1328 }
 0x50d   : > { %v1208_v42 = vmul.f32 %v4251_v36, %v4922_v4  ;;  %v1331_v7 = vpop.permute.xlu1 %1330 }
 0x50f   : > { %v4253_v1 = vpop.eup %4252 }
 0x510   : > { %v4255_v37 = vpop.eup %4254  ;;  %v1207_v40 = vmul.f32 %v4253_v1, %v4930_v57  ;;  %v1333_v53 = vpop.permute.xlu0 %1332  ;;  %v4401_v1 = vld [vmem:[%s4569_s17] ss:$8 sps:$4 sm:$0xff]  }
 0x511   : > { %v1209_v44 = vmul.f32 %v4255_v37, %v4928_v10  ;;  %v1335_v55 = vpop.permute.xlu1 %1334 }
 0x512   : > { %3883 = vmatpush3.bf16.xpose.msra.mxu0 %v1380_v41  ;;  %v1212_v45 = vpack.c.bf16 %v1207_v40, %v1206_v38 }
 0x513   : > { %4030 = vmatprep.subr.msk.bf16.mxu0 %vm682_vm0, %v1349_v11  ;;  %v1213_v12 = vpack.c.bf16 %v1209_v44, %v1208_v42 }
 0x514   : > { %3868 = vmatprep.mubr.bf16.mxu0 %v1212_v45  ;;  %v1546_v17 = vpop.permute.xlu0 %1545 }
 0x515   : > { %3869 = vmatmul.mubr.bf16.gmra.mrb[12].mxu0 %v1213_v12  ;;  %3896 = vmatprep.subr.bf16.mxu1 %v1546_v17  ;;  %v1548_v18 = vpop.permute.xlu1 %1547  ;;  %v4402_v12 = vld [vmem:[%s4569_s17 + $0x10] ss:$8 sps:$4 sm:$0xff]  }
 0x516   : > { %3888 = vmatprep.mubr.msk.bf16.mxu0 %vm682_vm0, %v1329_v16  ;;  %3897 = vmatpush3.bf16.msra.mxu1 %v1546_v17 }
 0x517   : > { %3898 = vmatprep.subr.bf16.mxu1 %v1548_v18 }
 0x518   : > { %v1550_v19 = vpop.permute.xlu0 %1549 }
 0x519   : > { %v1552_v27 = vpop.permute.xlu1 %1551 }
 0x51a   : > { %3885 = vmatpush3.bf16.xpose.msra.mxu0 %v1383_v21  ;;  %3899 = vmatpush3.bf16.msra.mxu1 %v1548_v18 }
 0x51b   : > { %4031 = vmatprep.subr.msk.bf16.mxu0 %vm682_vm0, %v1351_v23  ;;  %3900 = vmatprep.subr.bf16.mxu1 %v1550_v19 }
 0x51c   : > { %v1554_v28 = vpop.permute.xlu0 %1553 }
 0x51d   : > { %v1556_v30 = vpop.permute.xlu1 %1555 }
 0x51e   : > { %3901 = vmatpush3.bf16.msra.mxu1 %v1550_v19 }
 0x51f   : > { %3902 = vmatprep.subr.bf16.mxu1 %v1552_v27 }
 0x520   : > { %v1558_v32 = vpop.permute.xlu0 %1557 }
 0x522   : > { %3887 = vmatpush3.bf16.xpose.msra.mxu0 %v1386_v46  ;;  %3903 = vmatpush3.bf16.msra.mxu1 %v1552_v27 }
 0x523   : > { %3904 = vmatprep.subr.bf16.mxu1 %v1554_v28 }
 0x526   : > { %3905 = vmatpush3.bf16.msra.mxu1 %v1554_v28 }
 0x527   : > { %3906 = vmatprep.subr.bf16.mxu1 %v1556_v30 }
 0x529   : > { %3889 = vmatmul.mubr.msk.bf16.vlgmr.msra.gmra.mrb[16].mxu0 %vm682_vm0, %v1331_v7 }
 0x52a   : > { %3892 = vmatprep.mubr.msk.bf16.mxu0 %vm682_vm0, %v1333_v53  ;;  %3907 = vmatpush3.bf16.msra.mxu1 %v1556_v30 }
 0x52b   : > { %3908 = vmatprep.subr.bf16.mxu1 %v1558_v32 }
 0x52e   : > { %3909 = vmatpush3.bf16.msra.mxu1 %v1558_v32 }
 0x531   : > { %3893 = vmatmul.mubr.msk.bf16.gmra.mrb[20].mxu0 %vm682_vm0, %v1335_v55 }
 0x5aa   : > { %v4988_v4 = vpop.f32.mrb[8].mxu0 }
 0x5ab   : > { %v4990_v9 = vpop.f32.mrb[9].mxu0 }
 0x5ac   : > { %v4992_v10 = vpop.f32.mrb[10].mxu0 }
 0x5ad   : > { %v1304_v57 = vpack.c.bf16 %v4992_v10, %v4988_v4  ;;  %v4996_v8 = vpop.f32.mrb[11].mxu0 }
 0x5ae   : > { %v1303_v15 = vpack.c.bf16 %v4996_v8, %v4990_v9 }
 0x5e8   : > { %v5000_v29 = vpop.f32.mrb[12].mxu0 }
 0x5e9   : > { %v5002_v59 = vpop.f32.mrb[13].mxu0 }
 0x5ea   : > { %v5004_v60 = vpop.f32.mrb[14].mxu0 }
 0x5eb   : > { %v1306_v31 = vpack.c.bf16 %v5004_v60, %v5000_v29  ;;  %v5008_v48 = vpop.f32.mrb[15].mxu0 }
 0x5ec   : > { %v1305_v51 = vpack.c.bf16 %v5008_v48, %v5002_v59 }
 0x5fc   : > { %v3890_v47 = vpop.f32.mrb[16].mxu0 }
 0x5fd   : > { %v1455_v49 = vmul.f32 0.17677669, %v3890_v47  ;;  %v1422_v0 = vpop.f32.mrb[17].mxu0 }
 0x5fe   : > { %v3891_v50 = vpop.f32.mrb[18].mxu0  ;;  %v1453_v62 = vmul.f32 0.17677669, %v1422_v0 }
 0x5ff   : > { %v1425_v63 = vpop.f32.mrb[19].mxu0  ;;  %v1463_v2 = vsel %vm4674_vm5, %v1455_v49, -1e+09  ;;  %v1456_v13 = vmul.f32 0.17677669, %v3891_v50 }
 0x600   : > { %v1454_v3 = vmul.f32 0.17677669, %v1425_v63  ;;  %1473 = vmax.xlane.f32.xlu0 %v1463_v2  ;;  %v1461_v5 = vsel %vm4680_vm6, %v1453_v62, -1e+09  ;;  %v4403_v62 = vld [vmem:[%s4569_s17 + $0x30] ss:$8 sps:$4 sm:$0xff]  }
 0x601   : > { %v1464_v35 = vsel %vm4693_vm9, %v1456_v13, -1e+09  ;;  %v4404_v63 = vld [vmem:[%s4569_s17 + $0x20] ss:$8 sps:$4 sm:$0xff]  }
 0x602   : > { %v1462_v11 = vsel %vm4698_vm10, %v1454_v3, -1e+09  ;;  %v4406_v3 = vld [vmem:[%s4569_s17 + $0x60] ss:$8 sps:$4 sm:$0xff]  }
 0x603   : > { %1471 = vmax.xlane.f32.xlu1 %v1462_v11 }
 0x604   : > { %1469 = vmax.xlane.f32.xlu0 %v1461_v5  ;;  %v3894_v25 = vpop.f32.mrb[20].mxu0 }
 0x605   : > { %v1438_v33 = vpop.f32.mrb[21].mxu0  ;;  %v1459_v41 = vmul.f32 0.17677669, %v3894_v25 }
 0x606   : > { %v3895_v34 = vpop.f32.mrb[22].mxu0  ;;  %v1457_v45 = vmul.f32 0.17677669, %v1438_v33 }
 0x607   : > { %v1441_v36 = vpop.f32.mrb[23].mxu0  ;;  %v1460_v37 = vmul.f32 0.17677669, %v3895_v34  ;;  %v1467_v44 = vsel %vm4707_vm13, %v1459_v41, -1e+09 }
 0x608   : > { %1475 = vmax.xlane.f32.xlu0 %v1464_v35  ;;  %v1458_v40 = vmul.f32 0.17677669, %v1441_v36 }
 0x609   : > { %v1468_v38 = vsel %vm4712_vm1, %v1460_v37, -1e+09 }
 0x60a   : > { %v1466_v42 = vsel %vm4726_vm4, %v1458_v40, -1e+09 }
 0x614   : > { %1559 = vrot.lane.b32.xlu1 %v4801_v52, %s4462_s22  ;;  %v1465_v52 = vsel %vm4721_vm2, %v1457_v45, -1e+09 }
 0x61e   : > { %1667 = vrot.lane.b32.xlu0 %v4401_v1, %s4463_s16 }
 0x638   : > { %1483 = vmax.xlane.f32.xlu1 %v1468_v38 }
 0x63c   : > { %1479 = vmax.xlane.f32.xlu1 %v1466_v42 }
 0x63d   : > { %1481 = vmax.xlane.f32.xlu0 %v1467_v44 }
 0x641   : > { %1477 = vmax.xlane.f32.xlu0 %v1465_v52 }
 0x64d   : > { %1669 = vrot.lane.b32.xlu1 %v4402_v12, %s4463_s16  ;;  %v4408_v12 = vld [vmem:[%s4591_s28 + $0x8] sm:$0xff]  }
 0x68d   : > { %v1474_v16 = vpop.xlane.xlu0 %1473 }
 0x68e   : > { %v1487_v23 = vsub.f32 %v1463_v2, %v1474_v16  ;;  %v4405_v2 = vld [vmem:[%s4569_s17 + $0x50] ss:$8 sps:$4 sm:$0xff]   ;;  %v4409_v16 = vld [vmem:[%s4569_s17 + $0x40] ss:$8 sps:$4 sm:$0xff]  }
 0x690   : > { %v1497_v21 = vmul.f32 1.442695, %v1487_v23  ;;  %v1472_v46 = vpop.xlane.xlu1 %1471  ;;  %v4410_v23 = vld [vmem:[%s4591_s28 + $0x18] sm:$0xff]  }
 0x691   : > { %v1486_v7 = vsub.f32 %v1462_v11, %v1472_v46  ;;  %v1470_v53 = vpop.xlane.xlu0 %1469  ;;  %v4412_v46 = vld [vmem:[%s4591_s28 + $0x10] sm:$0xff]  }
 0x692   : > { %4256 = vpow2.f32 %v1497_v21  ;;  %v1485_v55 = vsub.f32 %v1461_v5, %v1470_v53  ;;  %v4411_v21 = vld [vmem:[%s4569_s17 + $0x14] ss:$8 sps:$4 sm:$0xff]  }
 0x693   : > { %v1495_v17 = vmul.f32 1.442695, %v1486_v7  ;;  %v4413_v7 = vld [vmem:[%s4569_s17 + $0x4] ss:$8 sps:$4 sm:$0xff]  }
 0x694   : > { %v1493_v18 = vmul.f32 1.442695, %v1485_v55  ;;  %v1560_v19 = vpop.permute.xlu1 %1559 }
 0x695   : > { %4258 = vpow2.f32 %v1495_v17  ;;  %3910 = vmatprep.subr.bf16.mxu1 %v1560_v19  ;;  %v1476_v27 = vpop.xlane.xlu0 %1475 }
 0x696   : > { %4260 = vpow2.f32 %v1493_v18  ;;  %v1488_v28 = vsub.f32 %v1464_v35, %v1476_v27  ;;  %3911 = vmatpush3.bf16.msra.mxu1 %v1560_v19 }
 0x698   : > { %v1499_v30 = vmul.f32 1.442695, %v1488_v28 }
 0x699   : > { %v5034_v32 = vpop.permute.xlu0 %1667 }
 0x69a   : > { %4262 = vpow2.f32 %v1499_v30  ;;  %4032 = vmatprep.subr.msk.bf16.mxu1 %vm682_vm0, %v5034_v32 }
 0x69c   : > { %v5038_v47 = vpop.eup %4256 }
 0x69d   : > { %1513 = vadd.xlane.f32.xlu1 %v5038_v47 }
 0x69f   : > { %v5041_v49 = vpop.eup %4258 }
 0x6a0   : > { %v5043_v0 = vpop.eup %4260  ;;  %1511 = vadd.xlane.f32.xlu0 %v5041_v49 }
 0x6a1   : > { %1509 = vadd.xlane.f32.xlu1 %v5043_v0 }
 0x6a4   : > { %v5047_v50 = vpop.eup %4262 }
 0x6a5   : > { %1515 = vadd.xlane.f32.xlu1 %v5047_v50 }
 0x6b6   : > { %1673 = vrot.lane.b32.xlu1 %v4403_v62, %s4463_s16  ;;  %1671 = vrot.lane.b32.xlu0 %v4404_v63, %s4463_s16 }
 0x6ba   : > { %1677 = vrot.lane.b32.xlu1 %v4405_v2, %s4463_s16 }
 0x6be   : > { %1679 = vrot.lane.b32.xlu1 %v4406_v3, %s4463_s16 }
 0x6c5   : > { %v1484_v11 = vpop.xlane.xlu1 %1483 }
 0x6c6   : > { %v1492_v34 = vsub.f32 %v1468_v38, %v1484_v11 }
 0x6c8   : > { %v1507_v40 = vmul.f32 1.442695, %v1492_v34 }
 0x6c9   : > { %v1480_v25 = vpop.xlane.xlu1 %1479 }
 0x6ca   : > { %v1482_v13 = vpop.xlane.xlu0 %1481  ;;  %v1490_v36 = vsub.f32 %v1466_v42, %v1480_v25 }
 0x6cb   : > { %v1491_v5 = vsub.f32 %v1467_v44, %v1482_v13 }
 0x6cc   : > { %v1503_v41 = vmul.f32 1.442695, %v1490_v36 }
 0x6cd   : > { %v1505_v33 = vmul.f32 1.442695, %v1491_v5  ;;  %v1670_v53 = vpop.permute.xlu1 %1669  ;;  %v1696_v5 = vsel %vm682_vm0, %v5034_v32, 0 }
 0x6ce   : > { %v1478_v35 = vpop.xlane.xlu0 %1477 }
 0x6cf   : > { %4264 = vpow2.f32 %v1505_v33  ;;  %v1489_v1 = vsub.f32 %v1465_v52, %v1478_v35  ;;  %v4407_v52 = vld [vmem:[%s4569_s17 + $0x70] ss:$8 sps:$4 sm:$0xff]  }
 0x6d1   : > { %v1501_v37 = vmul.f32 1.442695, %v1489_v1 }
 0x6d3   : > { %4266 = vpow2.f32 %v1501_v37 }
 0x6d4   : > { %4268 = vpow2.f32 %v1507_v40 }
 0x6d5   : > { %4270 = vpow2.f32 %v1503_v41 }
 0x6d9   : > { %v5058_v45 = vpop.eup %4264 }
 0x6da   : > { %1521 = vadd.xlane.f32.xlu0 %v5058_v45 }
 0x6dd   : > { %v5061_v38 = vpop.eup %4266 }
 0x6de   : > { %1517 = vadd.xlane.f32.xlu0 %v5061_v38  ;;  %v5064_v42 = vpop.eup %4268 }
 0x6df   : > { %v5066_v44 = vpop.eup %4270 }
 0x6e2   : > { %1519 = vadd.xlane.f32.xlu1 %v5066_v44  ;;  %1523 = vadd.xlane.f32.xlu0 %v5064_v42 }
 0x6f3   : > { %1681 = vrot.lane.b32.xlu1 %v4407_v52, %s4463_s16 }
 0x6f7   : > { %1661 = vrot.lane.b32.xlu1 %v4408_v12, %s4463_s16 }
 0x6f8   : > { %1675 = vrot.lane.b32.xlu0 %v4409_v16, %s4463_s16 }
 0x6fb   : > { %1665 = vrot.lane.b32.xlu1 %v4410_v23, %s4463_s16 }
 0x6fc   : > { %1659 = vrot.lane.b32.xlu0 %v4943_v58, %s4463_s16 }
 0x6ff   : > { %1878 = vrot.lane.b32.xlu1 %v4411_v21, %s4463_s16 }
 0x700   : > { %1663 = vrot.lane.b32.xlu0 %v4412_v46, %s4463_s16 }
 0x704   : > { %1876 = vrot.lane.b32.xlu0 %v4413_v7, %s4463_s16 }
 0x72a   : > { %v1514_v55 = vpop.xlane.xlu1 %1513 }
 0x72d   : > { %v1512_v17 = vpop.xlane.xlu0 %1511 }
 0x72e   : > { %4272 = vrcp.f32 %v1512_v17  ;;  %v1510_v18 = vpop.xlane.xlu1 %1509 }
 0x72f   : > { %4274 = vrcp.f32 %v1510_v18 }
 0x730   : > { %4276 = vrcp.f32 %v1514_v55 }
 0x731   : > { %v1672_v25 = vpop.permute.xlu0 %1671 }
 0x732   : > { %v1516_v19 = vpop.xlane.xlu1 %1515 }
 0x733   : > { %4278 = vrcp.f32 %v1516_v19 }
 0x738   : > { %v4273_v27 = vpop.eup %4272 }
 0x739   : > { %v4275_v58 = vpop.eup %4274  ;;  %v1534_v28 = vmul.f32 %v4273_v27, %v5041_v49  ;;  %v1699_v49 = vsel %vm682_vm0, %v1670_v53, 0 }
 0x73a   : > { %v1533_v30 = vmul.f32 %v4275_v58, %v5043_v0  ;;  %v4277_v62 = vpop.eup %4276  ;;  %v1702_v0 = vsel %vm682_vm0, %v1672_v25, 0 }
 0x73b   : > { %v1535_v3 = vmul.f32 %v4277_v62, %v5038_v47  ;;  %v1674_v47 = vpop.permute.xlu1 %1673 }
 0x73c   : > { %v1541_v63 = vpack.c.bf16 %v1534_v28, %v1533_v30 }
 0x73d   : > { %v4279_v2 = vpop.eup %4278 }
 0x73e   : > { %v1536_v11 = vmul.f32 %v4279_v2, %v5047_v50  ;;  %3912 = vmatprep.mubr.bf16.mxu1 %v1541_v63  ;;  %v1705_v50 = vsel %vm682_vm0, %v1674_v47, 0 }
 0x73f   : > { %v1678_v32 = vpop.permute.xlu1 %1677 }
 0x740   : > { %v1542_v13 = vpack.c.bf16 %v1536_v11, %v1535_v3  ;;  %v1711_v46 = vsel %vm682_vm0, %v1678_v32, 0 }
 0x742   : > { %3913 = vmatmul.mubr.bf16.vlgmr.msra.gmra.mrb[16].mxu1 %v1542_v13 }
 0x743   : > { %3921 = vmatpush3.bf16.xpose.msra.mxu1 %v1696_v5  ;;  %v1680_v34 = vpop.permute.xlu1 %1679 }
 0x744   : > { %4033 = vmatprep.subr.msk.bf16.mxu1 %vm682_vm0, %v1670_v53 }
 0x74b   : > { %3923 = vmatpush3.bf16.xpose.msra.mxu1 %v1699_v49 }
 0x74c   : > { %4034 = vmatprep.subr.msk.bf16.mxu1 %vm682_vm0, %v1672_v25 }
 0x753   : > { %3925 = vmatpush3.bf16.xpose.msra.mxu1 %v1702_v0 }
 0x754   : > { %4035 = vmatprep.subr.msk.bf16.mxu1 %vm682_vm0, %v1674_v47 }
 0x75b   : > { %3927 = vmatpush3.bf16.xpose.msra.mxu1 %v1705_v50 }
 0x767   : > { %v1522_v33 = vpop.xlane.xlu0 %1521 }
 0x76b   : > { %v1518_v35 = vpop.xlane.xlu0 %1517 }
 0x76c   : > { %4280 = vrcp.f32 %v1518_v35 }
 0x76d   : > { %4282 = vrcp.f32 %v1522_v33 }
 0x76f   : > { %v1520_v36 = vpop.xlane.xlu1 %1519  ;;  %v1524_v1 = vpop.xlane.xlu0 %1523 }
 0x770   : > { %4284 = vrcp.f32 %v1520_v36 }
 0x771   : > { %4286 = vrcp.f32 %v1524_v1 }
 0x773   : > { %v1676_v37 = vpop.permute.xlu0 %1675  ;;  %v1682_v19 = vpop.permute.xlu1 %1681 }
 0x774   : > { %v1708_v40 = vsel %vm682_vm0, %v1676_v37, 0  ;;  %4036 = vmatprep.subr.msk.bf16.mxu1 %vm682_vm0, %v1676_v37 }
 0x775   : > { %3929 = vmatpush3.bf16.xpose.msra.mxu1 %v1708_v40 }
 0x776   : > { %4037 = vmatprep.subr.msk.bf16.mxu1 %vm682_vm0, %v1678_v32  ;;  %v4281_v41 = vpop.eup %4280 }
 0x777   : > { %v4283_v52 = vpop.eup %4282  ;;  %v1537_v23 = vmul.f32 %v4281_v41, %v5061_v38  ;;  %v1660_v18 = vpop.permute.xlu0 %1659  ;;  %v1714_v38 = vsel %vm682_vm0, %v1680_v34, 0 }
 0x778   : > { %v1539_v7 = vmul.f32 %v4283_v52, %v5058_v45  ;;  %v1717_v45 = vsel %vm682_vm0, %v1682_v19, 0 }
 0x77a   : > { %v4285_v12 = vpop.eup %4284 }
 0x77b   : > { %v4287_v16 = vpop.eup %4286  ;;  %v1538_v21 = vmul.f32 %v4285_v12, %v5066_v44  ;;  %v1664_v44 = vpop.permute.xlu0 %1663 }
 0x77c   : > { %v1540_v53 = vmul.f32 %v4287_v16, %v5064_v42  ;;  %v1662_v42 = vpop.permute.xlu1 %1661 }
 0x77d   : > { %3931 = vmatpush3.bf16.xpose.msra.mxu1 %v1711_v46  ;;  %v1543_v55 = vpack.c.bf16 %v1538_v21, %v1537_v23 }
 0x77e   : > { %4038 = vmatprep.subr.msk.bf16.mxu1 %vm682_vm0, %v1680_v34  ;;  %v1544_v17 = vpack.c.bf16 %v1540_v53, %v1539_v7  ;;  %v4414_v53 = vld [vmem:[%s4569_s17 + $0x24] ss:$8 sps:$4 sm:$0xff]  }
 0x77f   : > { %3916 = vmatprep.mubr.bf16.mxu1 %v1543_v55  ;;  %v1877_v3 = vpop.permute.xlu0 %1876  ;;  %v4415_v55 = vld [vmem:[%s4569_s17 + $0x54] ss:$8 sps:$4 sm:$0xff]  }
 0x780   : > { %3917 = vmatmul.mubr.bf16.gmra.mrb[20].mxu1 %v1544_v17  ;;  %v1666_v27 = vpop.permute.xlu1 %1665  ;;  %3944 = vmatprep.subr.bf16.mxu0 %v1877_v3 }
 0x781   : > { %3936 = vmatprep.mubr.msk.bf16.mxu1 %vm682_vm0, %v1660_v18  ;;  %3945 = vmatpush3.bf16.msra.mxu0 %v1877_v3 }
 0x784   : > { %v1879_v11 = vpop.permute.xlu1 %1878 }
 0x785   : > { %3933 = vmatpush3.bf16.xpose.msra.mxu1 %v1714_v38  ;;  %3946 = vmatprep.subr.bf16.mxu0 %v1879_v11 }
 0x786   : > { %4039 = vmatprep.subr.msk.bf16.mxu1 %vm682_vm0, %v1682_v19  ;;  %3947 = vmatpush3.bf16.msra.mxu0 %v1879_v11  ;;  %v4416_v19 = vld [vmem:[%s4569_s17 + $0x34] ss:$8 sps:$4 sm:$0xff]  }
 0x78d   : > { %3935 = vmatpush3.bf16.xpose.msra.mxu1 %v1717_v45 }
 0x794   : > { %3937 = vmatmul.mubr.msk.bf16.vlgmr.msra.gmra.mrb[24].mxu1 %vm682_vm0, %v1662_v42 }
 0x795   : > { %3940 = vmatprep.mubr.msk.bf16.mxu1 %vm682_vm0, %v1664_v44 }
 0x79c   : > { %3941 = vmatmul.mubr.msk.bf16.gmra.mrb[28].mxu1 %vm682_vm0, %v1666_v27  ;;  %vm1323_vm0 = vcmask 523520  }
 0x79d   : > { %2507 = vmatprep.mubr.bf16.mxu1 %v4460_v26 }
 0x815   : > { %v5115_v58 = vpop.f32.mrb[16].mxu1 }
 0x816   : > { %v5117_v28 = vpop.f32.mrb[17].mxu1 }
 0x817   : > { %v5119_v30 = vpop.f32.mrb[18].mxu1 }
 0x818   : > { %v1635_v62 = vpack.c.bf16 %v5119_v30, %v5115_v58  ;;  %v5123_v63 = vpop.f32.mrb[19].mxu1 }
 0x819   : > { %v1634_v2 = vpack.c.bf16 %v5123_v63, %v5117_v28 }
 0x853   : > { %v5127_v13 = vpop.f32.mrb[20].mxu1 }
 0x854   : > { %v5129_v5 = vpop.f32.mrb[21].mxu1 }
 0x855   : > { %v5131_v49 = vpop.f32.mrb[22].mxu1 }
 0x856   : > { %v1637_v25 = vpack.c.bf16 %v5131_v49, %v5127_v13  ;;  %v5135_v0 = vpop.f32.mrb[23].mxu1 }
 0x857   : > { %v1636_v47 = vpack.c.bf16 %v5135_v0, %v5129_v5 }
 0x867   : > { %v3938_v50 = vpop.f32.mrb[24].mxu1 }
 0x868   : > { %v1786_v32 = vmul.f32 0.17677669, %v3938_v50  ;;  %v1753_v33 = vpop.f32.mrb[25].mxu1 }
 0x869   : > { %v3939_v34 = vpop.f32.mrb[26].mxu1  ;;  %v1784_v35 = vmul.f32 0.17677669, %v1753_v33 }
 0x86a   : > { %v1756_v36 = vpop.f32.mrb[27].mxu1  ;;  %v1794_v1 = vsel %vm4674_vm5, %v1786_v32, -1e+09  ;;  %v1787_v41 = vmul.f32 0.17677669, %v3939_v34  ;;  %vm1985_vm5 = vcmask 1048320  }
 0x86b   : > { %v1785_v37 = vmul.f32 0.17677669, %v1756_v36  ;;  %1804 = vmax.xlane.f32.xlu0 %v1794_v1  ;;  %v1792_v52 = vsel %vm4680_vm6, %v1784_v35, -1e+09 }
 0x86c   : > { %v1795_v39 = vsel %vm4693_vm9, %v1787_v41, -1e+09 }
 0x86d   : > { %v1793_v40 = vsel %vm4698_vm10, %v1785_v37, -1e+09 }
 0x86e   : > { %1802 = vmax.xlane.f32.xlu1 %v1793_v40 }
 0x86f   : > { %1800 = vmax.xlane.f32.xlu0 %v1792_v52  ;;  %v3942_v12 = vpop.f32.mrb[28].mxu1 }
 0x870   : > { %v1769_v16 = vpop.f32.mrb[29].mxu1  ;;  %v1790_v54 = vmul.f32 0.17677669, %v3942_v12 }
 0x871   : > { %v3943_v23 = vpop.f32.mrb[30].mxu1  ;;  %v1788_v18 = vmul.f32 0.17677669, %v1769_v16 }
 0x872   : > { %v1791_v21 = vmul.f32 0.17677669, %v3943_v23  ;;  %v1772_v46 = vpop.f32.mrb[31].mxu1  ;;  %v1798_v17 = vsel %vm4707_vm13, %v1790_v54, -1e+09 }
 0x873   : > { %1806 = vmax.xlane.f32.xlu0 %v1795_v39  ;;  %v1789_v56 = vmul.f32 0.17677669, %v1772_v46  ;;  %v1796_v6 = vsel %vm4721_vm2, %v1788_v18, -1e+09 }
 0x874   : > { %v1799_v7 = vsel %vm4712_vm1, %v1791_v21, -1e+09 }
 0x875   : > { %1814 = vmax.xlane.f32.xlu1 %v1799_v7  ;;  %v1797_v43 = vsel %vm4726_vm4, %v1789_v56, -1e+09 }
 0x879   : > { %1810 = vmax.xlane.f32.xlu1 %v1797_v43 }
 0x889   : > { %1880 = vrot.lane.b32.xlu0 %v4414_v53, %s4463_s16 }
 0x88a   : > { %1886 = vrot.lane.b32.xlu1 %v4415_v55, %s4463_s16 }
 0x8a8   : > { %1812 = vmax.xlane.f32.xlu0 %v1798_v17 }
 0x8ac   : > { %1808 = vmax.xlane.f32.xlu0 %v1796_v6 }
 0x8c2   : > { %1882 = vrot.lane.b32.xlu0 %v4416_v19, %s4463_s16 }
 0x8c6   : > { %1884 = vrot.lane.b32.xlu0 %v4417_v20, %s4463_s16  ;;  %v4418_v20 = vld [vmem:[%s4569_s17 + $0x74] ss:$8 sps:$4 sm:$0xff]  }
 0x8f8   : > { %v1805_v38 = vpop.xlane.xlu0 %1804 }
 0x8f9   : > { %v1818_v45 = vsub.f32 %v1794_v1, %v1805_v38  ;;  %v4419_v38 = vld [vmem:[%s4569_s17 + $0x64] ss:$8 sps:$4 sm:$0xff]  }
 0x8fb   : > { %v1828_v42 = vmul.f32 1.442695, %v1818_v45  ;;  %v1803_v61 = vpop.xlane.xlu1 %1802 }
 0x8fc   : > { %v1801_v44 = vpop.xlane.xlu0 %1800  ;;  %v1817_v50 = vsub.f32 %v1793_v40, %v1803_v61 }
 0x8fd   : > { %4288 = vpow2.f32 %v1828_v42  ;;  %v1816_v27 = vsub.f32 %v1792_v52, %v1801_v44 }
 0x8fe   : > { %v1826_v34 = vmul.f32 1.442695, %v1817_v50 }
 0x8ff   : > { %v1824_v3 = vmul.f32 1.442695, %v1816_v27 }
 0x900   : > { %v1807_v11 = vpop.xlane.xlu0 %1806 }
 0x901   : > { %4290 = vpow2.f32 %v1824_v3  ;;  %v1819_v14 = vsub.f32 %v1795_v39, %v1807_v11 }
 0x902   : > { %v1815_v40 = vpop.xlane.xlu1 %1814 }
 0x903   : > { %v1830_v32 = vmul.f32 1.442695, %v1819_v14  ;;  %v1823_v41 = vsub.f32 %v1799_v7, %v1815_v40 }
 0x904   : > { %v1881_v33 = vpop.permute.xlu0 %1880 }
 0x905   : > { %4292 = vpow2.f32 %v1830_v32  ;;  %3948 = vmatprep.subr.bf16.mxu0 %v1881_v33  ;;  %v1838_v21 = vmul.f32 1.442695, %v1823_v41 }
 0x906   : > { %3949 = vmatpush3.bf16.msra.mxu0 %v1881_v33  ;;  %4294 = vpow2.f32 %v1826_v34  ;;  %v1811_v16 = vpop.xlane.xlu1 %1810 }
 0x907   : > { %v5163_v35 = vpop.eup %4288  ;;  %v1821_v46 = vsub.f32 %v1797_v43, %v1811_v16 }
 0x908   : > { %1844 = vadd.xlane.f32.xlu1 %v5163_v35 }
 0x909   : > { %v1834_v54 = vmul.f32 1.442695, %v1821_v46  ;;  %v4106_v46 = vld [vmem:[%s6055_s4 + $0x10] sm:$0xff]  }
 0x90a   : > { %v1887_v19 = vpop.permute.xlu1 %1886 }
 0x90b   : > { %v4291_v36 = vpop.eup %4290 }
 0x90c   : > { %1840 = vadd.xlane.f32.xlu1 %v4291_v36 }
 0x90f   : > { %v5166_v1 = vpop.eup %4292 }
 0x910   : > { %1846 = vadd.xlane.f32.xlu1 %v5166_v1  ;;  %v4295_v37 = vpop.eup %4294 }
 0x914   : > { %1842 = vadd.xlane.f32.xlu1 %v4295_v37 }
 0x935   : > { %v1813_v52 = vpop.xlane.xlu0 %1812 }
 0x936   : > { %v1822_v12 = vsub.f32 %v1798_v17, %v1813_v52 }
 0x938   : > { %v1836_v23 = vmul.f32 1.442695, %v1822_v12 }
 0x939   : > { %v1809_v39 = vpop.xlane.xlu0 %1808 }
 0x93a   : > { %4296 = vpow2.f32 %v1836_v23  ;;  %v1820_v56 = vsub.f32 %v1796_v6, %v1809_v39  ;;  %v4105_v39 = vld [vmem:[%s6055_s4 + $0x8] sm:$0xff]  }
 0x93b   : > { %4298 = vpow2.f32 %v1838_v21  ;;  %v4104_v21 = vld [vmem:[%s6055_s4] sm:$0xff]  }
 0x93c   : > { %v1832_v53 = vmul.f32 1.442695, %v1820_v56  ;;  %v4107_v56 = vld [vmem:[%s6055_s4 + $0x18] sm:$0xff]  }
 0x93d   : > { %v1883_v55 = vpop.permute.xlu0 %1882 }
 0x93e   : > { %4300 = vpow2.f32 %v1832_v53  ;;  %3950 = vmatprep.subr.bf16.mxu0 %v1883_v55  ;;  %v4108_v53 = vld [vmem:[%s6055_s4 + $0x20] sm:$0xff]  }
 0x93f   : > { %3951 = vmatpush3.bf16.msra.mxu0 %v1883_v55  ;;  %4302 = vpow2.f32 %v1834_v54  ;;  %v4109_v55 = vld [vmem:[%s6055_s4 + $0x28] sm:$0xff]   ;;  %v4110_v54 = vld [vmem:[%s6055_s4 + $0x30] sm:$0xff]  }
 0x941   : > { %v1885_v18 = vpop.permute.xlu0 %1884 }
 0x942   : > { %3952 = vmatprep.subr.bf16.mxu0 %v1885_v18 }
 0x943   : > { %3953 = vmatpush3.bf16.msra.mxu0 %v1885_v18  ;;  %v4111_v18 = vld [vmem:[%s6055_s4 + $0x38] sm:$0xff]  }
 0x944   : > { %v5169_v7 = vpop.eup %4296  ;;  %3954 = vmatprep.subr.bf16.mxu0 %v1887_v19 }
 0x945   : > { %1852 = vadd.xlane.f32.xlu0 %v5169_v7  ;;  %v5172_v43 = vpop.eup %4298 }
 0x947   : > { %3955 = vmatpush3.bf16.msra.mxu0 %v1887_v19 }
 0x948   : > { %v4301_v17 = vpop.eup %4300 }
 0x949   : > { %1854 = vadd.xlane.f32.xlu0 %v5172_v43  ;;  %1848 = vadd.xlane.f32.xlu1 %v4301_v17  ;;  %v4303_v6 = vpop.eup %4302 }
 0x94d   : > { %1850 = vadd.xlane.f32.xlu0 %v4303_v6 }
 0x95a   : > { %1890 = vrot.lane.b32.xlu1 %v4418_v20, %s4463_s16 }
 0x95e   : > { %1311 = vrot.lane.b32.xlu1 %v1303_v15, %s4463_s16 }
 0x962   : > { %1313 = vrot.lane.b32.xlu1 %v1304_v57, %s4463_s16 }
 0x963   : > { %1888 = vrot.lane.b32.xlu0 %v4419_v38, %s4463_s16 }
 0x966   : > { %1644 = vrot.lane.b32.xlu1 %v1635_v62, %s4462_s22 }
 0x967   : > { %1642 = vrot.lane.b32.xlu0 %v1634_v2, %s4462_s22 }
 0x995   : > { %v1845_v9 = vpop.xlane.xlu1 %1844 }
 0x999   : > { %v1841_v8 = vpop.xlane.xlu1 %1840 }
 0x99a   : > { %4304 = vrcp.f32 %v1841_v8 }
 0x99d   : > { %v1847_v15 = vpop.xlane.xlu1 %1846 }
 0x9a1   : > { %v1843_v45 = vpop.xlane.xlu1 %1842 }
 0x9a2   : > { %4306 = vrcp.f32 %v1843_v45 }
 0x9a3   : > { %4308 = vrcp.f32 %v1847_v15 }
 0x9a4   : > { %v4305_v4 = vpop.eup %4304  ;;  %4310 = vrcp.f32 %v1845_v9 }
 0x9a5   : > { %v1864_v57 = vmul.f32 %v4305_v4, %v4291_v36 }
 0x9ac   : > { %v4307_v10 = vpop.eup %4306 }
 0x9ad   : > { %v1865_v42 = vmul.f32 %v4307_v10, %v4295_v37  ;;  %v4309_v63 = vpop.eup %4308  ;;  %v3509_v10 = vld [vmem:[%s6056_s5] ss:$0 sm:$0xff] }
 0x9ae   : > { %v4311_v3 = vpop.eup %4310  ;;  %v1867_v11 = vmul.f32 %v4309_v63, %v5166_v1 }
 0x9af   : > { %v1872_v44 = vpack.c.bf16 %v1865_v42, %v1864_v57  ;;  %v1866_v33 = vmul.f32 %v4311_v3, %v5163_v35 }
 0x9b1   : > { %3960 = vmatprep.mubr.bf16.mxu0 %v1872_v44  ;;  %v1873_v36 = vpack.c.bf16 %v1867_v11, %v1866_v33 }
 0x9d2   : > { %v1853_v27 = vpop.xlane.xlu0 %1852 }
 0x9d6   : > { %v1849_v58 = vpop.xlane.xlu1 %1848  ;;  %v1855_v30 = vpop.xlane.xlu0 %1854 }
 0x9d7   : > { %4312 = vrcp.f32 %v1849_v58 }
 0x9da   : > { %v1891_v28 = vpop.permute.xlu1 %1890  ;;  %v1851_v62 = vpop.xlane.xlu0 %1850 }
 0x9db   : > { %4314 = vrcp.f32 %v1851_v62 }
 0x9dc   : > { %4316 = vrcp.f32 %v1855_v30 }
 0x9dd   : > { %4318 = vrcp.f32 %v1853_v27 }
 0x9de   : > { %v1312_v2 = vpop.permute.xlu1 %1311  ;;  %v1889_v61 = vpop.permute.xlu0 %1888 }
 0x9df   : > { %1324 = vst.msk [vmem:[#allocation2] sm:$0xff] %vm1323_vm0, %v1312_v2  ;;  %3956 = vmatprep.subr.bf16.mxu0 %v1889_v61 }
 0x9e0   : > { %3957 = vmatpush3.bf16.msra.mxu0 %v1889_v61 }
 0x9e1   : > { %3958 = vmatprep.subr.bf16.mxu0 %v1891_v28  ;;  %v4313_v32 = vpop.eup %4312 }
 0x9e2   : > { %v1314_v50 = vpop.permute.xlu1 %1313  ;;  %v1643_v14 = vpop.permute.xlu0 %1642  ;;  %v1868_v41 = vmul.f32 %v4313_v32, %v4301_v17 }
 0x9e3   : > { %1325 = vst.msk [vmem:[#allocation2 + $0x8] sm:$0xff] %vm1323_vm0, %v1314_v50 }
 0x9e4   : > { %1655 = vst.msk [vmem:[#allocation2] sm:$0xff] %vm1654_vm3, %v1643_v14  ;;  %3959 = vmatpush3.bf16.msra.mxu0 %v1891_v28 }
 0x9e5   : > { %v4315_v34 = vpop.eup %4314  ;;  %3968 = vmatprep.subr.bf16.mxu0 %v4104_v21 }
 0x9e6   : > { %v4317_v37 = vpop.eup %4316  ;;  %v1645_v40 = vpop.permute.xlu1 %1644  ;;  %v1869_v52 = vmul.f32 %v4315_v34, %v4303_v6 }
 0x9e7   : > { %1656 = vst.msk [vmem:[#allocation2 + $0x8] sm:$0xff] %vm1654_vm3, %v1645_v40  ;;  %3961 = vmatmul.mubr.bf16.vlgmr.msra.gmra.mrb[24].mxu0 %v1873_v36  ;;  %v4319_v1 = vpop.eup %4318  ;;  %v1871_v16 = vmul.f32 %v4317_v37, %v5172_v43 }
 0x9e8   : > { %v1874_v12 = vpack.c.bf16 %v1869_v52, %v1868_v41  ;;  %v1870_v35 = vmul.f32 %v4319_v1, %v5169_v7  ;;  %3969 = vmatpush3.bf16.msra.mxu0 %v4104_v21 }
 0x9e9   : > { %3970 = vmatprep.subr.bf16.mxu0 %v4105_v39 }
 0x9ea   : > { %3964 = vmatprep.mubr.bf16.mxu0 %v1874_v12  ;;  %v1875_v23 = vpack.c.bf16 %v1871_v16, %v1870_v35 }
 0x9ec   : > { %3971 = vmatpush3.bf16.msra.mxu0 %v4105_v39 }
 0x9ed   : > { %3972 = vmatprep.subr.bf16.mxu0 %v4106_v46 }
 0x9ef   : > { %3965 = vmatmul.mubr.bf16.gmra.mrb[28].mxu0 %v1875_v23 }
 0x9f0   : > { %3973 = vmatpush3.bf16.msra.mxu0 %v4106_v46 }
 0x9f1   : > { %3974 = vmatprep.subr.bf16.mxu0 %v4107_v56 }
 0x9f4   : > { %3975 = vmatpush3.bf16.msra.mxu0 %v4107_v56 }
 0x9f5   : > { %3976 = vmatprep.subr.bf16.mxu0 %v4108_v53 }
 0x9f8   : > { %3977 = vmatpush3.bf16.msra.mxu0 %v4108_v53  ;;  %v4112_v53 = vld [vmem:[%s6059_s8] ss:$16 sps:$4 sm:$0xff]  }
 0x9f9   : > { %3978 = vmatprep.subr.bf16.mxu0 %v4109_v55 }
 0x9fc   : > { %3979 = vmatpush3.bf16.msra.mxu0 %v4109_v55  ;;  %v4114_v55 = vld [vmem:[%s6059_s8 + $0x4] ss:$16 sps:$4 sm:$0xff]  }
 0x9fd   : > { %3980 = vmatprep.subr.bf16.mxu0 %v4110_v54  ;;  %2475 = vmatprep.subr.bf16.mxu1 %v4114_v55  ;;  %v4142_v55 = vld [vmem:[%s6059_s8 + $0xa0] ss:$16 sps:$4 sm:$0xff]  }
 0x9fe   : > { %2476 = vmatpush1.bf16.msra.mxu1 %v4112_v53  ;;  %v4147_v53 = vld [vmem:[%s6059_s8 + $0xac] ss:$16 sps:$4 sm:$0xff]  }
 0xa00   : > { %3981 = vmatpush3.bf16.msra.mxu0 %v4110_v54  ;;  %v4115_v54 = vld [vmem:[%s6059_s8 + $0x8] ss:$16 sps:$4 sm:$0xff]  }
 0xa01   : > { %3982 = vmatprep.subr.bf16.mxu0 %v4111_v18 }
 0xa04   : > { %3983 = vmatpush3.bf16.msra.mxu0 %v4111_v18  ;;  %v4117_v18 = vld [vmem:[%s6059_s8 + $0xc] ss:$16 sps:$4 sm:$0xff]  }
 0xa05   : > { %2548 = vmatprep.subr.bf16.mxu0 %v4117_v18  ;;  %v4150_v18 = vld [vmem:[%s6059_s8 + $0xc4] ss:$16 sps:$4 sm:$0xff]  }
 0xaba   : > { %v3962_v19 = vpop.f32.mrb[24].mxu0 }
 0xabb   : > { %v1934_v7 = vpop.f32.mrb[25].mxu0 }
 0xabc   : > { %v3963_v43 = vpop.f32.mrb[26].mxu0 }
 0xabd   : > { %v1966_v17 = vpack.c.bf16 %v3963_v43, %v3962_v19  ;;  %v1937_v6 = vpop.f32.mrb[27].mxu0  ;;  %v4120_v19 = vld [vmem:[%s6059_s8 + $0x24] ss:$16 sps:$4 sm:$0xff]   ;;  %v4118_v43 = vld [vmem:[%s6059_s8 + $0x20] ss:$16 sps:$4 sm:$0xff]  }
 0xabe   : > { %v1965_v20 = vpack.c.bf16 %v1937_v6, %v1934_v7  ;;  %v4123_v7 = vld [vmem:[%s6059_s8 + $0x2c] ss:$16 sps:$4 sm:$0xff]   ;;  %2477 = vmatprep.subr.bf16.mxu1 %v4120_v19 }
 0xabf   : > { %1975 = vrot.lane.b32.xlu1 %v1966_v17, %s4461_s21  ;;  %v4121_v17 = vld [vmem:[%s6059_s8 + $0x28] ss:$16 sps:$4 sm:$0xff]   ;;  %2478 = vmatpush1.bf16.msra.mxu1 %v4118_v43  ;;  %v4153_v19 = vld [vmem:[%s6059_s8 + $0xcc] ss:$16 sps:$4 sm:$0xff]  }
 0xac0   : > { %1973 = vrot.lane.b32.xlu0 %v1965_v20, %s4461_s21  ;;  %v4151_v43 = vld [vmem:[%s6059_s8 + $0xc8] ss:$16 sps:$4 sm:$0xff]  }
 0xac2   : > { %v3966_v38 = vpop.f32.mrb[28].mxu0 }
 0xac3   : > { %1317 = vrot.lane.b32.xlu1 %v1306_v31, %s4463_s16  ;;  %v1950_v9 = vpop.f32.mrb[29].mxu0 }
 0xac4   : > { %1315 = vrot.lane.b32.xlu0 %v1305_v51, %s4463_s16  ;;  %v3967_v8 = vpop.f32.mrb[30].mxu0 }
 0xac5   : > { %v1968_v15 = vpack.c.bf16 %v3967_v8, %v3966_v38  ;;  %v1953_v45 = vpop.f32.mrb[31].mxu0 }
 0xac6   : > { %v1967_v4 = vpack.c.bf16 %v1953_v45, %v1950_v9 }
 0xac7   : > { %1648 = vrot.lane.b32.xlu1 %v1637_v25, %s4462_s22 }
 0xac8   : > { %1646 = vrot.lane.b32.xlu0 %v1636_v47, %s4462_s22 }
 0xacb   : > { %1979 = vrot.lane.b32.xlu1 %v1968_v15, %s4461_s21 }
 0xacc   : > { %1977 = vrot.lane.b32.xlu0 %v1967_v4, %s4461_s21  ;;  %s3462_s21 = sshll.u32 %s6187_s13, 3 }
 0xacd   : > { %s5262_s14 = scalar_lea.vmem %s6052_s1, %s3462_s21  ;;  %s6011_s22 = scalar_lea.vmem %s6063_s12, %s3462_s21 }
 0xace   : > { %v529_v42 = vld [vmem:[%s5262_s14] sm:$0xff]  ;;  %v530_v30 = vld [vmem:[%s5262_s14 + $0x8] sm:$0xff]  ;;  %v531_v61 = vld [vmem:[%s5262_s14 + $0x10] sm:$0xff] }
 0xacf   : > { %v532_v14 = vld [vmem:[%s5262_s14 + $0x18] sm:$0xff]  ;;  %v533_v34 = vld [vmem:[%s5262_s14 + $0x20] sm:$0xff]  ;;  %v534_v41 = vld [vmem:[%s5262_s14 + $0x28] sm:$0xff] }
 0xad0   : > { %v535_v35 = vld [vmem:[%s5262_s14 + $0x30] sm:$0xff]  ;;  %v536_v39 = vld [vmem:[%s5262_s14 + $0x38] sm:$0xff] }
 0xb31   : > { %v1976_v29 = vpop.permute.xlu1 %1975 }
 0xb32   : > { %1987 = vst.msk [vmem:[#allocation2 + $0x8] sm:$0xff] %vm1985_vm5, %v1976_v29  ;;  %v1974_v59 = vpop.permute.xlu0 %1973 }
 0xb33   : > { %1986 = vst.msk [vmem:[#allocation2] sm:$0xff] %vm1985_vm5, %v1974_v59 }
 0xb35   : > { %v1318_v60 = vpop.permute.xlu1 %1317 }
 0xb36   : > { %1327 = vst.msk [vmem:[#allocation2 + $0x18] sm:$0xff] %vm1323_vm0, %v1318_v60  ;;  %v1316_v31 = vpop.permute.xlu0 %1315 }
 0xb37   : > { %1326 = vst.msk [vmem:[#allocation2 + $0x10] sm:$0xff] %vm1323_vm0, %v1316_v31 }
 0xb39   : > { %v1649_v48 = vpop.permute.xlu1 %1648  ;;  %v1991_v5 = vld [vmem:[#allocation2 + $0x8] sm:$0xff] }
 0xb3a   : > { %1658 = vst.msk [vmem:[#allocation2 + $0x18] sm:$0xff] %vm1654_vm3, %v1649_v48  ;;  %v1647_v51 = vpop.permute.xlu0 %1646  ;;  %v1990_v13 = vld [vmem:[#allocation2] sm:$0xff] }
 0xb3b   : > { %1657 = vst.msk [vmem:[#allocation2 + $0x10] sm:$0xff] %vm1654_vm3, %v1647_v51  ;;  %3984 = vmatprep.mubr.bf16.mxu0 %v1990_v13 }
 0xb3c   : > { %3985 = vmatmul.mubr.bf16.vlgmr.msra.gmra.mrb[32].mxu0 %v1991_v5 }
 0xb3d   : > { %v1980_v49 = vpop.permute.xlu1 %1979  ;;  %2549 = vmatpush1.bf16.msra.mxu0 %v4115_v54  ;;  %v4145_v54 = vld [vmem:[%s6059_s8 + $0xa8] ss:$16 sps:$4 sm:$0xff]  }
 0xb3e   : > { %1989 = vst.msk [vmem:[#allocation2 + $0x18] sm:$0xff] %vm1985_vm5, %v1980_v49  ;;  %v1978_v25 = vpop.permute.xlu0 %1977  ;;  %2550 = vmatprep.subr.bf16.mxu0 %v4123_v7  ;;  %v4148_v7 = vld [vmem:[%s6059_s8 + $0xc0] ss:$16 sps:$4 sm:$0xff]  }
 0xb3f   : > { %1988 = vst.msk [vmem:[#allocation2 + $0x10] sm:$0xff] %vm1985_vm5, %v1978_v25 }
 0xb41   : > { %2551 = vmatpush1.bf16.msra.mxu0 %v4121_v17  ;;  %v4156_v17 = vld [vmem:[%s6059_s8 + $0xe4] ss:$16 sps:$4 sm:$0xff]  }
 0xb45   : > { %v1993_v47 = vld [vmem:[#allocation2 + $0x18] sm:$0xff] }
 0xb46   : > { %v1992_v0 = vld [vmem:[#allocation2 + $0x10] sm:$0xff] }
 0xb47   : > { %3988 = vmatprep.mubr.bf16.mxu0 %v1992_v0 }
 0xb48   : > { %3989 = vmatmul.mubr.bf16.gmra.mrb[36].mxu0 %v1993_v47 }
 0xb49   : > { %2580 = vmatprep.mubr.bf16.mxu0 %v4460_v26 }
 0xc0f   : > { %v3986_v57 = vpop.f32.mrb[32].mxu0 }
 0xc10   : > { %v2099_v44 = vpop.f32.mrb[33].mxu0  ;;  %v2108_v62 = vadd.f32 %v3986_v57, %v3509_v10 }
 0xc11   : > { %v2100_v27 = vadd.f32 %v3509_v10, %v2099_v44  ;;  %v3987_v58 = vpop.f32.mrb[34].mxu0 }
 0xc12   : > { %v2102_v28 = vpop.f32.mrb[35].mxu0  ;;  %v5275_v11 = vadd.f32 %v2108_v62, %v531_v61  ;;  %v2111_v50 = vadd.f32 %v3987_v58, %v3509_v10 }
 0xc13   : > { %v5269_v63 = vadd.f32 %v2100_v27, %v529_v42  ;;  %v2103_v2 = vadd.f32 %v3509_v10, %v2102_v28 }
 0xc14   : > { %6111 = vst [vmem:[#allocation5_spill] sm:$0xff] %v5275_v11  ;;  %v5280_v32 = vadd.f32 %v2111_v50, %v532_v14  ;;  %v4126_v50 = vld [vmem:[%s6059_s8 + $0x44] ss:$16 sps:$4 sm:$0xff]   ;;  %v4129_v14 = vld [vmem:[%s6059_s8 + $0x4c] ss:$16 sps:$4 sm:$0xff]  }
 0xc15   : > { %6109 = vst [vmem:[#allocation3_spill] sm:$0xff] %v5269_v63  ;;  %v5272_v3 = vadd.f32 %v2103_v2, %v530_v30  ;;  %2140 = vadd.xlane.f32.xlu0 %v5269_v63  ;;  %2479 = vmatprep.subr.bf16.mxu1 %v4126_v50 }
 0xc16   : > { %6112 = vst [vmem:[#allocation6_spill] sm:$0xff] %v5280_v32  ;;  %2552 = vmatprep.subr.bf16.mxu0 %v4129_v14 }
 0xc17   : > { %6110 = vst [vmem:[#allocation4_spill] sm:$0xff] %v5272_v3  ;;  %2142 = vadd.xlane.f32.xlu1 %v5272_v3 }
 0xc19   : > { %2144 = vadd.xlane.f32.xlu0 %v5275_v11 }
 0xc1b   : > { %v3990_v33 = vpop.f32.mrb[36].mxu0 }
 0xc1c   : > { %v2115_v36 = vpop.f32.mrb[37].mxu0  ;;  %v2124_v1 = vadd.f32 %v3990_v33, %v3509_v10  ;;  %v4124_v33 = vld [vmem:[%s6059_s8 + $0x40] ss:$16 sps:$4 sm:$0xff]  }
 0xc1d   : > { %v2116_v37 = vadd.f32 %v3509_v10, %v2115_v36  ;;  %2146 = vadd.xlane.f32.xlu0 %v5280_v32  ;;  %v3991_v40 = vpop.f32.mrb[38].mxu0  ;;  %2480 = vmatpush1.bf16.msra.mxu1 %v4124_v33 }
 0xc1e   : > { %v2118_v52 = vpop.f32.mrb[39].mxu0  ;;  %v2127_v23 = vadd.f32 %v3991_v40, %v3509_v10  ;;  %v5292_v46 = vadd.f32 %v2124_v1, %v535_v35  ;;  %v4135_v40 = vld [vmem:[%s6059_s8 + $0x6c] ss:$16 sps:$4 sm:$0xff]   ;;  %v4138_v1 = vld [vmem:[%s6059_s8 + $0x84] ss:$16 sps:$4 sm:$0xff]  }
 0xc1f   : > { %v5285_v12 = vadd.f32 %v2116_v37, %v533_v34  ;;  %v2119_v16 = vadd.f32 %v3509_v10, %v2118_v52  ;;  %v4127_v34 = vld [vmem:[%s6059_s8 + $0x48] ss:$16 sps:$4 sm:$0xff]   ;;  %v4132_v37 = vld [vmem:[%s6059_s8 + $0x64] ss:$16 sps:$4 sm:$0xff]   ;;  %v4136_v35 = vld [vmem:[%s6059_s8 + $0x80] ss:$16 sps:$4 sm:$0xff]  }
 0xc20   : > { %6115 = vst [vmem:[#allocation9_spill] sm:$0xff] %v5292_v46  ;;  %v5295_v56 = vadd.f32 %v2127_v23, %v536_v39  ;;  %2553 = vmatpush1.bf16.msra.mxu0 %v4127_v34  ;;  %v4133_v52 = vld [vmem:[%s6059_s8 + $0x68] ss:$16 sps:$4 sm:$0xff]   ;;  %2481 = vmatprep.subr.bf16.mxu1 %v4132_v37  ;;  %v4144_v39 = vld [vmem:[%s6059_s8 + $0xa4] ss:$16 sps:$4 sm:$0xff]  }
 0xc21   : > { %6113 = vst [vmem:[#allocation7_spill] sm:$0xff] %v5285_v12  ;;  %v5288_v21 = vadd.f32 %v2119_v16, %v534_v41  ;;  %2148 = vadd.xlane.f32.xlu0 %v5285_v12  ;;  %v4130_v41 = vld [vmem:[%s6059_s8 + $0x60] ss:$16 sps:$4 sm:$0xff]   ;;  %2554 = vmatprep.subr.bf16.mxu0 %v4135_v40  ;;  %v4141_v16 = vld [vmem:[%s6059_s8 + $0x8c] ss:$16 sps:$4 sm:$0xff]  }
 0xc22   : > { %6116 = vst [vmem:[#allocation10_spill] sm:$0xff] %v5295_v56  ;;  %2482 = vmatpush1.bf16.msra.mxu1 %v4130_v41  ;;  %v4139_v23 = vld [vmem:[%s6059_s8 + $0x88] ss:$16 sps:$4 sm:$0xff]  }
 0xc23   : > { %6114 = vst [vmem:[#allocation8_spill] sm:$0xff] %v5288_v21  ;;  %2150 = vadd.xlane.f32.xlu1 %v5288_v21  ;;  %2483 = vmatprep.subr.bf16.mxu1 %v4138_v1  ;;  %v3519_v1 = vld [vmem:[%s6058_s7] ss:$0 sm:$0xff] }
 0xc24   : > { %2555 = vmatpush1.bf16.msra.mxu0 %v4133_v52 }
 0xc25   : > { %2152 = vadd.xlane.f32.xlu0 %v5292_v46  ;;  %2556 = vmatprep.subr.bf16.mxu0 %v4141_v16 }
 0xc26   : > { %2484 = vmatpush1.bf16.msra.mxu1 %v4136_v35 }
 0xc27   : > { %2154 = vadd.xlane.f32.xlu1 %v5295_v56  ;;  %2485 = vmatprep.subr.bf16.mxu1 %v4144_v39 }
 0xc28   : > { %2557 = vmatpush1.bf16.msra.mxu0 %v4139_v23 }
 0xc29   : > { %2558 = vmatprep.subr.bf16.mxu0 %v4147_v53 }
 0xc2a   : > { %2486 = vmatpush1.bf16.msra.mxu1 %v4142_v55 }
 0xc2b   : > { %2487 = vmatprep.subr.bf16.mxu1 %v4150_v18 }
 0xc2c   : > { %2559 = vmatpush1.bf16.msra.mxu0 %v4145_v54 }
 0xc2d   : > { %2560 = vmatprep.subr.bf16.mxu0 %v4153_v19 }
 0xc2e   : > { %2488 = vmatpush1.bf16.msra.mxu1 %v4148_v7 }
 0xc2f   : > { %2489 = vmatprep.subr.bf16.mxu1 %v4156_v17 }
 0xc30   : > { %2561 = vmatpush1.bf16.msra.mxu0 %v4151_v43 }
 0xca2   : > { %v2141_v6 = vpop.xlane.xlu0 %2140 }
 0xca3   : > { %v2157_v20 = vmul.f32 0.0078125, %v2141_v6  ;;  %v4159_v6 = vld [vmem:[%s6059_s8 + $0xec] ss:$16 sps:$4 sm:$0xff]  }
 0xca4   : > { %v2143_v38 = vpop.xlane.xlu1 %2142  ;;  %2562 = vmatprep.subr.bf16.mxu0 %v4159_v6 }
 0xca5   : > { %v5324_v9 = vsub.f32 %v5269_v63, %v2157_v20  ;;  %v2158_v8 = vmul.f32 0.0078125, %v2143_v38  ;;  %v4154_v20 = vld [vmem:[%s6059_s8 + $0xe0] ss:$16 sps:$4 sm:$0xff]   ;;  %v4157_v38 = vld [vmem:[%s6059_s8 + $0xe8] ss:$16 sps:$4 sm:$0xff]  }
 0xca6   : > { %v2145_v15 = vpop.xlane.xlu0 %2144  ;;  %2490 = vmatpush1.bf16.msra.mxu1 %v4154_v20  ;;  %2563 = vmatpush1.bf16.msra.mxu0 %v4157_v38 }
 0xca7   : > { %v5327_v45 = vsub.f32 %v5272_v3, %v2158_v8  ;;  %v2159_v4 = vmul.f32 0.0078125, %v2145_v15  ;;  %v2173_v29 = vmul.f32 %v5324_v9, %v5324_v9 }
 0xca9   : > { %v5332_v59 = vsub.f32 %v5275_v11, %v2159_v4  ;;  %2181 = vadd.xlane.f32.xlu0 %v2173_v29  ;;  %v2174_v60 = vmul.f32 %v5327_v45, %v5327_v45 }
 0xcaa   : > { %v2147_v31 = vpop.xlane.xlu0 %2146 }
 0xcab   : > { %v2160_v48 = vmul.f32 0.0078125, %v2147_v31  ;;  %2183 = vadd.xlane.f32.xlu1 %v2174_v60  ;;  %v2175_v51 = vmul.f32 %v5332_v59, %v5332_v59 }
 0xcad   : > { %v5339_v13 = vsub.f32 %v5280_v32, %v2160_v48  ;;  %2185 = vadd.xlane.f32.xlu0 %v2175_v51 }
 0xcae   : > { %v2149_v5 = vpop.xlane.xlu0 %2148 }
 0xcaf   : > { %v2161_v49 = vmul.f32 0.0078125, %v2149_v5  ;;  %v2176_v25 = vmul.f32 %v5339_v13, %v5339_v13 }
 0xcb0   : > { %v2151_v0 = vpop.xlane.xlu1 %2150 }
 0xcb1   : > { %v5344_v47 = vsub.f32 %v5285_v12, %v2161_v49  ;;  %v2162_v10 = vmul.f32 0.0078125, %v2151_v0  ;;  %2187 = vadd.xlane.f32.xlu1 %v2176_v25 }
 0xcb2   : > { %v2153_v57 = vpop.xlane.xlu0 %2152 }
 0xcb3   : > { %v5347_v42 = vsub.f32 %v5288_v21, %v2162_v10  ;;  %v2163_v44 = vmul.f32 0.0078125, %v2153_v57  ;;  %v2177_v27 = vmul.f32 %v5344_v47, %v5344_v47 }
 0xcb4   : > { %v2155_v58 = vpop.xlane.xlu1 %2154 }
 0xcb5   : > { %v5352_v30 = vsub.f32 %v5292_v46, %v2163_v44  ;;  %v2164_v28 = vmul.f32 0.0078125, %v2155_v58  ;;  %2189 = vadd.xlane.f32.xlu0 %v2177_v27  ;;  %v2178_v62 = vmul.f32 %v5347_v42, %v5347_v42  ;;  %v3518_v58 = vld [vmem:[%s6057_s6] ss:$0 sm:$0xff] }
 0xcb7   : > { %v5357_v2 = vsub.f32 %v5295_v56, %v2164_v28  ;;  %2191 = vadd.xlane.f32.xlu1 %v2178_v62  ;;  %v2179_v61 = vmul.f32 %v5352_v30, %v5352_v30 }
 0xcb9   : > { %2193 = vadd.xlane.f32.xlu0 %v2179_v61  ;;  %v2180_v36 = vmul.f32 %v5357_v2, %v5357_v2 }
 0xcbb   : > { %2195 = vadd.xlane.f32.xlu1 %v2180_v36 }
 0xd36   : > { %v2182_v8 = vpop.xlane.xlu0 %2181 }
 0xd37   : > { %v2197_v15 = vmul.f32 0.0078125, %v2182_v8 }
 0xd38   : > { %v2184_v4 = vpop.xlane.xlu1 %2183 }
 0xd39   : > { %v2205_v29 = vadd.f32 1e-05, %v2197_v15  ;;  %v2198_v60 = vmul.f32 0.0078125, %v2184_v4 }
 0xd3a   : > { %v2186_v31 = vpop.xlane.xlu0 %2185 }
 0xd3b   : > { %4320 = vrsqrt.f32 %v2205_v29  ;;  %v2206_v48 = vadd.f32 1e-05, %v2198_v60  ;;  %v2199_v51 = vmul.f32 0.0078125, %v2186_v31 }
 0xd3d   : > { %4322 = vrsqrt.f32 %v2206_v48  ;;  %v2207_v5 = vadd.f32 1e-05, %v2199_v51 }
 0xd3e   : > { %v2188_v49 = vpop.xlane.xlu1 %2187 }
 0xd3f   : > { %4324 = vrsqrt.f32 %v2207_v5  ;;  %v2200_v25 = vmul.f32 0.0078125, %v2188_v49 }
 0xd41   : > { %v2208_v0 = vadd.f32 1e-05, %v2200_v25 }
 0xd42   : > { %v2190_v10 = vpop.xlane.xlu0 %2189 }
 0xd43   : > { %4326 = vrsqrt.f32 %v2208_v0  ;;  %v2201_v57 = vmul.f32 0.0078125, %v2190_v10  ;;  %v4161_v0 = vld [vmem:[%s6061_s10] sm:$0xff]   ;;  %v4164_v10 = vld [vmem:[%s6061_s10 + $0x48] sm:$0xff]  }
 0xd44   : > { %v2192_v44 = vpop.xlane.xlu1 %2191 }
 0xd45   : > { %v4321_v27 = vpop.eup %4320  ;;  %v2209_v28 = vadd.f32 1e-05, %v2201_v57  ;;  %v2202_v62 = vmul.f32 0.0078125, %v2192_v44  ;;  %v5476_v57 = vld [vmem:[%s6061_s10 + $0xc8] sm:$0xff]  }
 0xd46   : > { %v2221_v61 = vmul.f32 %v4321_v27, %v5324_v9  ;;  %v2194_v50 = vpop.xlane.xlu0 %2193  ;;  %6118 = vst [vmem:[#allocation12_spill] sm:$0xff] %v5476_v57  ;;  %v4165_v44 = vld [vmem:[%s6061_s10 + $0x8] sm:$0xff]  }
 0xd47   : > { %v4323_v14 = vpop.eup %4322  ;;  %4328 = vrsqrt.f32 %v2209_v28  ;;  %v2210_v33 = vadd.f32 1e-05, %v2202_v62  ;;  %v2203_v34 = vmul.f32 0.0078125, %v2194_v50  ;;  %v5484_v27 = vld [vmem:[%s6061_s10 + $0x88] sm:$0xff]   ;;  %v5494_v28 = vld [vmem:[%s6061_s10 + $0xd0] sm:$0xff]   ;;  %v4172_v50 = vld [vmem:[%s6061_s10 + $0x58] sm:$0xff]  }
 0xd48   : > { %v2235_v36 = vmul.f32 %v3518_v58, %v2221_v61  ;;  %v2222_v37 = vmul.f32 %v4323_v14, %v5327_v45  ;;  %v2196_v40 = vpop.xlane.xlu1 %2195  ;;  %6119 = vst [vmem:[#allocation13_spill] sm:$0xff] %v5484_v27  ;;  %6120 = vst [vmem:[#allocation14_spill] sm:$0xff] %v5494_v28  ;;  %v4169_v62 = vld [vmem:[%s6061_s10 + $0x10] sm:$0xff]   ;;  %v5512_v14 = vld [vmem:[%s6061_s10 + $0xd8] sm:$0xff]  }
 0xd49   : > { %v4325_v41 = vpop.eup %4324  ;;  %4330 = vrsqrt.f32 %v2210_v33  ;;  %v2204_v52 = vmul.f32 0.0078125, %v2196_v40  ;;  %v2211_v35 = vadd.f32 1e-05, %v2203_v34  ;;  %v5503_v61 = vld [vmem:[%s6061_s10 + $0x90] sm:$0xff]   ;;  %6122 = vst [vmem:[#allocation16_spill] sm:$0xff] %v5512_v14  ;;  %v4173_v33 = vld [vmem:[%s6061_s10 + $0x18] sm:$0xff]  }
 0xd4a   : > { %v2236_v16 = vmul.f32 %v3518_v58, %v2222_v37  ;;  %v2249_v9 = vadd.f32 %v3519_v1, %v2235_v36  ;;  %v2223_v53 = vmul.f32 %v4325_v41, %v5332_v59  ;;  %6121 = vst [vmem:[#allocation15_spill] sm:$0xff] %v5503_v61  ;;  %v5520_v34 = vld [vmem:[%s6061_s10 + $0x98] sm:$0xff]   ;;  %v4176_v36 = vld [vmem:[%s6061_s10 + $0x60] sm:$0xff]  }
 0xd4b   : > { %v2212_v23 = vadd.f32 1e-05, %v2204_v52  ;;  %6123 = vst [vmem:[#allocation17_spill] sm:$0xff] %v5520_v34  ;;  %v5530_v37 = vld [vmem:[%s6061_s10 + $0xe0] sm:$0xff]   ;;  %v4180_v52 = vld [vmem:[%s6061_s10 + $0x68] sm:$0xff]  }
 0xd4c   : > { %v2250_v39 = vadd.f32 %v3519_v1, %v2236_v16  ;;  %v2237_v18 = vmul.f32 %v3518_v58, %v2223_v53  ;;  %6124 = vst [vmem:[#allocation18_spill] sm:$0xff] %v5530_v37  ;;  %v4177_v40 = vld [vmem:[%s6061_s10 + $0x20] sm:$0xff]   ;;  %v4181_v16 = vld [vmem:[%s6061_s10 + $0x28] sm:$0xff]   ;;  %v5575_v53 = vld [vmem:[%s6061_s10 + $0xb0] sm:$0xff]  }
 0xd4d   : > { %v4327_v55 = vpop.eup %4326  ;;  %4332 = vrsqrt.f32 %v2212_v23  ;;  %v5538_v41 = vld [vmem:[%s6061_s10 + $0xa0] sm:$0xff]   ;;  %v4184_v23 = vld [vmem:[%s6061_s10 + $0x70] sm:$0xff]   ;;  %6129 = vst [vmem:[#allocation23_spill] sm:$0xff] %v5575_v53 }
 0xd4e   : > { %v2257_v54 = vpack.c.bf16 %v2250_v39, %v2249_v9  ;;  %v2224_v45 = vmul.f32 %v4327_v55, %v5339_v13  ;;  %4334 = vrsqrt.f32 %v2211_v35  ;;  %v2251_v6 = vadd.f32 %v3519_v1, %v2237_v18  ;;  %6125 = vst [vmem:[#allocation19_spill] sm:$0xff] %v5538_v41  ;;  %v5556_v35 = vld [vmem:[%s6061_s10 + $0xa8] sm:$0xff]   ;;  %v5566_v9 = vld [vmem:[%s6061_s10 + $0xf0] sm:$0xff]   ;;  %v4188_v55 = vld [vmem:[%s6061_s10 + $0x78] sm:$0xff]  }
 0xd4f   : > { %6127 = vst [vmem:[#allocation21_spill] sm:$0xff] %v5556_v35  ;;  %6128 = vst [vmem:[#allocation22_spill] sm:$0xff] %v5566_v9  ;;  %v4185_v39 = vld [vmem:[%s6061_s10 + $0x30] sm:$0xff]   ;;  %v5592_v18 = vld [vmem:[%s6061_s10 + $0xb8] sm:$0xff]  }
 0xd50   : > { %2508 = vmatmul.mubr.bf16.vlgmr.msra.gmra.mrb[32].mxu1 %v2257_v54  ;;  %2581 = vmatmul.mubr.bf16.vlgmr.msra.gmra.mrb[40].mxu0 %v2257_v54  ;;  %v2238_v19 = vmul.f32 %v3518_v58, %v2224_v45  ;;  %v5584_v54 = vld [vmem:[%s6061_s10 + $0xf8] sm:$0xff]   ;;  %6131 = vst [vmem:[#allocation25_spill] sm:$0xff] %v5592_v18 }
 0xd51   : > { %v4329_v7 = vpop.eup %4328  ;;  %2517 = vmatprep.mubr.bf16.mxu1 %v4460_v26  ;;  %2590 = vmatprep.mubr.bf16.mxu0 %v4460_v26  ;;  %6130 = vst [vmem:[#allocation24_spill] sm:$0xff] %v5584_v54  ;;  %v4189_v45 = vld [vmem:[%s6061_s10 + $0x38] sm:$0xff]  }
 0xd52   : > { %v2252_v43 = vadd.f32 %v3519_v1, %v2238_v19  ;;  %v2225_v59 = vmul.f32 %v4329_v7, %v5344_v47  ;;  %v2305_v19 = vsub.s32 2, %v4660_v22  ;;  %v2293_v7 = vld [vmem:[%s6060_s9] sm:$0xf] }
 0xd53   : > { %v4331_v17 = vpop.eup %4330 }
 0xd54   : > { %v2226_v20 = vmul.f32 %v4331_v17, %v5347_v42  ;;  %v2258_v38 = vpack.c.bf16 %v2252_v43, %v2251_v6  ;;  %v2239_v15 = vmul.f32 %v3518_v58, %v2225_v59  ;;  %v2301_v43 = vsub.s32 1, %v4660_v22 }
 0xd55   : > { %v2309_v17 = vsub.s32 3, %v4660_v22  ;;  %v5604_v6 = vrot.slane %v2293_v7, %v611_v24  ;;  %v5606_v59 = vrot.slane %v2293_v7, %v2305_v19 }
 0xd56   : > { %v2240_v8 = vmul.f32 %v3518_v58, %v2226_v20  ;;  %v2253_v31 = vadd.f32 %v3519_v1, %v2239_v15  ;;  %v5608_v20 = vrot.slane %v2293_v7, %v2301_v43 }
 0xd57   : > { %v4333_v13 = vpop.eup %4332 }
 0xd58   : > { %2518 = vmatmul.mubr.bf16.gmra.mrb[36].mxu1 %v2258_v38  ;;  %2591 = vmatmul.mubr.bf16.gmra.mrb[44].mxu0 %v2258_v38  ;;  %v4335_v4 = vpop.eup %4334  ;;  %v2254_v29 = vadd.f32 %v3519_v1, %v2240_v8  ;;  %v2228_v60 = vmul.f32 %v4333_v13, %v5357_v2  ;;  %v4160_v2 = vld [vmem:[%s6061_s10 + $0x40] sm:$0xff]   ;;  %v5610_v38 = vrot.slane %v2293_v7, %v2309_v17 }
 0xd59   : > { %2527 = vmatprep.mubr.bf16.mxu1 %v4460_v26  ;;  %2600 = vmatprep.mubr.bf16.mxu0 %v4460_v26  ;;  %v2227_v48 = vmul.f32 %v4335_v4, %v5352_v30  ;;  %v4162_v30 = vld [vmem:[%s6061_s10 + $0xc0] sm:$0xff]  }
 0xd5a   : > { %v2259_v47 = vpack.c.bf16 %v2254_v29, %v2253_v31  ;;  %v2242_v51 = vmul.f32 %v3518_v58, %v2228_v60  ;;  %3696 = vmatprep.subr.bf16.mxu1 %v4160_v2  ;;  %3736 = vmatprep.subr.bf16.mxu0 %v4162_v30 }
 0xd5b   : > { %v2241_v42 = vmul.f32 %v3518_v58, %v2227_v48  ;;  %3697 = vmatpush3.bf16.msra.mxu1 %v4161_v0  ;;  %v4168_v58 = vld [vmem:[%s6061_s10 + $0x50] sm:$0xff]  }
 0xd5c   : > { %v2256_v5 = vadd.f32 %v3519_v1, %v2242_v51  ;;  %3698 = vmatprep.subr.bf16.mxu1 %v4164_v10 }
 0xd5d   : > { %v2255_v49 = vadd.f32 %v3519_v1, %v2241_v42  ;;  %v5548_v1 = vld [vmem:[%s6061_s10 + $0xe8] sm:$0xff]  }
 0xd5e   : > { %6126 = vst [vmem:[#allocation20_spill] sm:$0xff] %v5548_v1 }
 0xd5f   : > { %v2260_v25 = vpack.c.bf16 %v2256_v5, %v2255_v49  ;;  %3699 = vmatpush3.bf16.msra.mxu1 %v4165_v44 }
 0xd60   : > { %2528 = vmatmul.mubr.bf16.gmra.mrb[40].mxu1 %v2259_v47  ;;  %2601 = vmatmul.mubr.bf16.gmra.mrb[48].mxu0 %v2259_v47 }
 0xd61   : > { %2537 = vmatprep.mubr.bf16.mxu1 %v4460_v26  ;;  %2610 = vmatprep.mubr.bf16.mxu0 %v4460_v26  ;;  %v5467_v26 = vld [vmem:[%s6061_s10 + $0x80] sm:$0xff]  }
 0xd62   : > { %6117 = vst [vmem:[#allocation11_spill] sm:$0xff] %v5467_v26  ;;  %3737 = vmatpush3.bf16.msra.mxu0 %v5467_v26  ;;  %3700 = vmatprep.subr.bf16.mxu1 %v4168_v58 }
 0xd63   : > { %3738 = vmatprep.subr.bf16.mxu0 %v5476_v57  ;;  %3701 = vmatpush3.bf16.msra.mxu1 %v4169_v62 }
 0xd64   : > { %3702 = vmatprep.subr.bf16.mxu1 %v4172_v50 }
 0xd66   : > { %3739 = vmatpush3.bf16.msra.mxu0 %v5484_v27 }
 0xd67   : > { %3740 = vmatprep.subr.bf16.mxu0 %v5494_v28  ;;  %3703 = vmatpush3.bf16.msra.mxu1 %v4173_v33 }
 0xd68   : > { %2538 = vmatmul.mubr.bf16.gmra.mrb[44].mxu1 %v2260_v25  ;;  %2611 = vmatmul.mubr.bf16.gmra.mrb[52].mxu0 %v2260_v25 }
 0xd69   : > { %3704 = vmatprep.subr.bf16.mxu1 %v4176_v36 }
 0xd6a   : > { %3741 = vmatpush3.bf16.msra.mxu0 %v5503_v61 }
 0xd6b   : > { %3742 = vmatprep.subr.bf16.mxu0 %v5512_v14  ;;  %3705 = vmatpush3.bf16.msra.mxu1 %v4177_v40 }
 0xd6c   : > { %3706 = vmatprep.subr.bf16.mxu1 %v4180_v52 }
 0xd6e   : > { %3743 = vmatpush3.bf16.msra.mxu0 %v5520_v34 }
 0xd6f   : > { %3744 = vmatprep.subr.bf16.mxu0 %v5530_v37  ;;  %3707 = vmatpush3.bf16.msra.mxu1 %v4181_v16 }
 0xd70   : > { %3708 = vmatprep.subr.bf16.mxu1 %v4184_v23 }
 0xd72   : > { %3745 = vmatpush3.bf16.msra.mxu0 %v5538_v41 }
 0xd73   : > { %3746 = vmatprep.subr.bf16.mxu0 %v5548_v1  ;;  %3709 = vmatpush3.bf16.msra.mxu1 %v4185_v39 }
 0xd74   : > { %3710 = vmatprep.subr.bf16.mxu1 %v4188_v55 }
 0xd76   : > { %3747 = vmatpush3.bf16.msra.mxu0 %v5556_v35 }
 0xd77   : > { %3748 = vmatprep.subr.bf16.mxu0 %v5566_v9  ;;  %3711 = vmatpush3.bf16.msra.mxu1 %v4189_v45 }
 0xd78   : > { %3992 = vmatprep.subr.bf16.mxu1 %v4162_v30 }
 0xd7a   : > { %3749 = vmatpush3.bf16.msra.mxu0 %v5575_v53 }
 0xd7b   : > { %3750 = vmatprep.subr.bf16.mxu0 %v5584_v54 }
 0xd7e   : > { %3751 = vmatpush3.bf16.msra.mxu0 %v5592_v18 }
 0xe23   : > { %v2509_v8 = vpop.f32.mrb[32].mxu1  ;;  %v2582_v13 = vpop.f32.mrb[40].mxu0 }
 0xe24   : > { %v2510_v15 = vadd.f32 %v2509_v8, %v5604_v6  ;;  %v2583_v4 = vadd.f32 %v2582_v13, %v5606_v59  ;;  %v2511_v29 = vpop.f32.mrb[33].mxu1  ;;  %v2584_v60 = vpop.f32.mrb[41].mxu0 }
 0xe25   : > { %v5615_v31 = vadd.f32 %v2511_v29, %v5608_v20  ;;  %v5618_v22 = vadd.f32 %v2584_v60, %v5610_v38  ;;  %v2513_v24 = vpop.f32.mrb[34].mxu1  ;;  %v2586_v48 = vpop.f32.mrb[42].mxu0 }
 0xe26   : > { %v2653_v47 = vmul.f32 0.044715, %v2510_v15  ;;  %v2655_v51 = vmul.f32 0.044715, %v2583_v4  ;;  %v2514_v49 = vadd.f32 %v2513_v24, %v5604_v6  ;;  %v2587_v25 = vadd.f32 %v2586_v48, %v5606_v59  ;;  %v2515_v2 = vpop.f32.mrb[35].mxu1  ;;  %v2588_v30 = vpop.f32.mrb[43].mxu0 }
 0xe27   : > { %v2654_v42 = vmul.f32 0.044715, %v5615_v31  ;;  %v2656_v5 = vmul.f32 0.044715, %v5618_v22  ;;  %v5625_v44 = vadd.f32 %v2515_v2, %v5608_v20  ;;  %v5628_v58 = vadd.f32 %v2588_v30, %v5610_v38 }
 0xe28   : > { %v2685_v0 = vmul.f32 %v2653_v47, %v2510_v15  ;;  %v2687_v10 = vmul.f32 %v2655_v51, %v2583_v4  ;;  %v2657_v62 = vmul.f32 0.044715, %v2514_v49  ;;  %v2659_v36 = vmul.f32 0.044715, %v2587_v25 }
 0xe29   : > { %v2686_v40 = vmul.f32 %v2654_v42, %v5615_v31  ;;  %v2688_v52 = vmul.f32 %v2656_v5, %v5618_v22  ;;  %v2658_v23 = vmul.f32 0.044715, %v5625_v44  ;;  %v2660_v43 = vmul.f32 0.044715, %v5628_v58 }
 0xe2a   : > { %v2717_v50 = vmul.f32 %v2685_v0, %v2510_v15  ;;  %v2719_v33 = vmul.f32 %v2687_v10, %v2583_v4  ;;  %v2689_v16 = vmul.f32 %v2657_v62, %v2514_v49  ;;  %v2691_v7 = vmul.f32 %v2659_v36, %v2587_v25 }
 0xe2b   : > { %v2519_v39 = vpop.f32.mrb[36].mxu1  ;;  %v2592_v55 = vpop.f32.mrb[44].mxu0  ;;  %v2690_v29 = vmul.f32 %v2658_v23, %v5625_v44  ;;  %v5641_v51 = vmul.f32 0.5, %v2510_v15  ;;  %v5643_v5 = vmul.f32 0.5, %v2583_v4  ;;  %v5645_v10 = vmul.f32 0.5, %v2514_v49 }
 0xe2c   : > { %v2749_v45 = vadd.f32 %v2717_v50, %v2510_v15  ;;  %v2751_v19 = vadd.f32 %v2719_v33, %v2583_v4  ;;  %v2521_v17 = vpop.f32.mrb[37].mxu1  ;;  %v2594_v8 = vpop.f32.mrb[45].mxu0  ;;  %v2721_v13 = vmul.f32 %v2689_v16, %v2514_v49  ;;  %v5636_v60 = vadd.f32 %v2519_v39, %v5604_v6 }
 0xe2d   : > { %v5639_v24 = vadd.f32 %v2592_v55, %v5606_v59  ;;  %v2523_v48 = vpop.f32.mrb[38].mxu1  ;;  %v2596_v47 = vpop.f32.mrb[46].mxu0  ;;  %v2723_v2 = vmul.f32 %v2691_v7, %v2587_v25  ;;  %v5647_v50 = vmul.f32 0.5, %v2587_v25  ;;  %v5651_v36 = vmul.f32 %v2686_v40, %v5615_v31 }
 0xe2e   : > { %v2781_v42 = vmul.f32 0.7978846, %v2749_v45  ;;  %v2525_v30 = vpop.f32.mrb[39].mxu1  ;;  %v2598_v0 = vpop.f32.mrb[47].mxu0  ;;  %v2753_v62 = vadd.f32 %v2721_v13, %v2514_v49  ;;  %v2661_v33 = vmul.f32 0.044715, %v5636_v60  ;;  %v5655_v23 = vadd.f32 %v2521_v17, %v5608_v20 }
 0xe2f   : > { %6132 = vst [vmem:[#allocation26_spill] sm:$0xff] %v5639_v24  ;;  %v2755_v16 = vadd.f32 %v2723_v2, %v2587_v25  ;;  %v2663_v15 = vmul.f32 0.044715, %v5639_v24  ;;  %v2783_v4 = vmul.f32 0.7978846, %v2751_v19  ;;  %v5658_v39 = vmul.f32 %v2688_v52, %v5618_v22 }
 0xe30   : > { %v5661_v55 = vmul.f32 %v2690_v29, %v5625_v44  ;;  %v2692_v49 = vmul.f32 %v2660_v43, %v5628_v58  ;;  %4336 = vtanh.f32 %v2781_v42  ;;  %v2662_v45 = vmul.f32 0.044715, %v5655_v23 }
 0xe31   : > { %v5666_v40 = vadd.f32 %v2594_v8, %v5610_v38  ;;  %v5669_v25 = vadd.f32 %v2523_v48, %v5604_v6  ;;  %v2785_v7 = vmul.f32 0.7978846, %v2753_v62  ;;  %v2787_v17 = vmul.f32 0.7978846, %v2755_v16 }
 0xe32   : > { %v2693_v19 = vmul.f32 %v2661_v33, %v5636_v60  ;;  %v5673_v52 = vadd.f32 %v2596_v47, %v5606_v59  ;;  %v2695_v43 = vmul.f32 %v2663_v15, %v5639_v24  ;;  %v2694_v42 = vmul.f32 %v2662_v45, %v5655_v23 }
 0xe33   : > { %v2529_v13 = vpop.f32.mrb[40].mxu1  ;;  %v2602_v29 = vpop.f32.mrb[48].mxu0  ;;  %v2664_v2 = vmul.f32 0.044715, %v5666_v40  ;;  %v2665_v8 = vmul.f32 0.044715, %v5669_v25  ;;  %v5681_v16 = vadd.f32 %v2525_v30, %v5608_v20  ;;  %v5684_v47 = vadd.f32 %v2598_v0, %v5610_v38 }
 0xe34   : > { %6133 = vst [vmem:[#allocation27_spill] sm:$0xff] %v5673_v52  ;;  %v2531_v56 = vpop.f32.mrb[41].mxu1  ;;  %v2604_v48 = vpop.f32.mrb[49].mxu0  ;;  %v2667_v62 = vmul.f32 0.044715, %v5673_v52  ;;  %v5687_v33 = vadd.f32 %v2529_v13, %v5604_v6  ;;  %4338 = vtanh.f32 %v2783_v4  ;;  %v5690_v45 = vmul.f32 %v2692_v49, %v5628_v58 }
 0xe35   : > { %v2533_v15 = vpop.f32.mrb[42].mxu1  ;;  %v2606_v46 = vpop.f32.mrb[50].mxu0  ;;  %v2696_v21 = vmul.f32 %v2664_v2, %v5666_v40  ;;  %v2603_v12 = vadd.f32 %v2602_v29, %v5606_v59  ;;  %4340 = vtanh.f32 %v2785_v7  ;;  %v2697_v30 = vmul.f32 %v2665_v8, %v5669_v25 }
 0xe36   : > { %6134 = vst [vmem:[#allocation28_spill] sm:$0xff] %v5687_v33  ;;  %v2535_v32 = vpop.f32.mrb[43].mxu1  ;;  %v2608_v11 = vpop.f32.mrb[51].mxu0  ;;  %v2666_v0 = vmul.f32 0.044715, %v5681_v16  ;;  %v5698_v3 = vmul.f32 %v2693_v19, %v5636_v60  ;;  %v5701_v4 = vmul.f32 %v2695_v43, %v5639_v24  ;;  %4342 = vtanh.f32 %v2787_v17 }
 0xe37   : > { %v2668_v13 = vmul.f32 0.044715, %v5684_v47  ;;  %v2669_v49 = vmul.f32 0.044715, %v5687_v33  ;;  %v2671_v2 = vmul.f32 0.044715, %v2603_v12  ;;  %v5705_v29 = vmul.f32 %v2694_v42, %v5655_v23 }
 0xe38   : > { %6135 = vst [vmem:[#allocation29_spill] sm:$0xff] %v5701_v4  ;;  %v5708_v7 = vmul.f32 %v2696_v21, %v5666_v40  ;;  %v2699_v8 = vmul.f32 %v2667_v62, %v5673_v52  ;;  %v5712_v18 = vadd.f32 %v2531_v56, %v5608_v20  ;;  %v5715_v19 = vadd.f32 %v2604_v48, %v5610_v38 }
 0xe39   : > { %v2703_v63 = vmul.f32 %v2671_v2, %v2603_v12  ;;  %v5718_v43 = vadd.f32 %v2533_v15, %v5604_v6  ;;  %v5721_v17 = vmul.f32 %v2697_v30, %v5669_v25  ;;  %v2698_v42 = vmul.f32 %v2666_v0, %v5681_v16 }
 0xe3a   : > { %v2700_v21 = vmul.f32 %v2668_v13, %v5684_v47  ;;  %v2607_v54 = vadd.f32 %v2606_v46, %v5606_v59  ;;  %v5726_v53 = vpop.eup %4336  ;;  %v2701_v56 = vmul.f32 %v2669_v49, %v5687_v33  ;;  %v2670_v9 = vmul.f32 0.044715, %v5712_v18 }
 0xe3b   : > { %v2539_v62 = vpop.f32.mrb[44].mxu1  ;;  %v2612_v2 = vpop.f32.mrb[52].mxu0  ;;  %v2735_v48 = vmul.f32 %v2703_v63, %v2603_v12  ;;  %v2672_v15 = vmul.f32 0.044715, %v5715_v19  ;;  %v2673_v30 = vmul.f32 0.044715, %v5718_v43  ;;  %v5733_v0 = vadd.f32 %v2535_v32, %v5608_v20 }
 0xe3c   : > { %v2675_v35 = vmul.f32 0.044715, %v2607_v54  ;;  %v5736_v13 = vadd.f32 %v2608_v11, %v5610_v38  ;;  %v2541_v46 = vpop.f32.mrb[45].mxu1  ;;  %v2614_v1 = vpop.f32.mrb[53].mxu0  ;;  %v5739_v41 = vmul.f32 %v2699_v8, %v5673_v52  ;;  %v5741_v49 = vmul.f32 0.5, %v2603_v12 }
 0xe3d   : > { %v2767_v63 = vadd.f32 %v2735_v48, %v2603_v12  ;;  %v2702_v37 = vmul.f32 %v2670_v9, %v5712_v18  ;;  %v2543_v34 = vpop.f32.mrb[46].mxu1  ;;  %v2616_v14 = vpop.f32.mrb[54].mxu0  ;;  %v2674_v28 = vmul.f32 0.044715, %v5733_v0  ;;  %v5747_v11 = vadd.f32 %v2539_v62, %v5604_v6 }
 0xe3e   : > { %6136 = vst [vmem:[#allocation30_spill] sm:$0xff] %v5739_v41  ;;  %6137 = vst [vmem:[#allocation31_spill] sm:$0xff] %v5741_v49  ;;  %v2707_v61 = vmul.f32 %v2675_v35, %v2607_v54  ;;  %v2676_v32 = vmul.f32 0.044715, %v5736_v13  ;;  %v2545_v27 = vpop.f32.mrb[47].mxu1  ;;  %v2618_v57 = vpop.f32.mrb[55].mxu0  ;;  %v5750_v8 = vmul.f32 %v2698_v42, %v5681_v16  ;;  %v5753_v12 = vmul.f32 %v2700_v21, %v5684_v47 }
 0xe3f   : > { %v4339_v26 = vpop.eup %4338  ;;  %v5756_v9 = vmul.f32 %v2701_v56, %v5687_v33  ;;  %v5758_v35 = vmul.f32 0.5, %v2607_v54  ;;  %v2704_v49 = vmul.f32 %v2672_v15, %v5715_v19  ;;  %v2705_v62 = vmul.f32 %v2673_v30, %v5718_v43 }
 0xe40   : > { %v4341_v48 = vpop.eup %4340  ;;  %v2739_v41 = vmul.f32 %v2707_v61, %v2607_v54  ;;  %v2677_v52 = vmul.f32 0.044715, %v5747_v11  ;;  %v2799_v4 = vmul.f32 0.7978846, %v2767_v63  ;;  %v5764_v42 = vadd.f32 %v2612_v2, %v5606_v59 }
 0xe41   : > { %6138 = vst [vmem:[#allocation32_spill] sm:$0xff] %v5756_v9  ;;  %6139 = vst [vmem:[#allocation33_spill] sm:$0xff] %v5758_v35  ;;  %v5767_v21 = vadd.f32 %v2541_v46, %v5608_v20  ;;  %v5770_v56 = vadd.f32 %v2614_v1, %v5610_v38  ;;  %v4343_v9 = vpop.eup %4342  ;;  %v5773_v35 = vmul.f32 %v2702_v37, %v5712_v18 }
 0xe42   : > { %v2771_v15 = vadd.f32 %v2739_v41, %v2607_v54  ;;  %v2706_v30 = vmul.f32 %v2674_v28, %v5733_v0  ;;  %v2708_v61 = vmul.f32 %v2676_v32, %v5736_v13  ;;  %v2679_v63 = vmul.f32 0.044715, %v5764_v42 }
 0xe43   : > { %6140 = vst [vmem:[#allocation34_spill] sm:$0xff] %v5773_v35  ;;  %v2678_v2 = vmul.f32 0.044715, %v5767_v21  ;;  %v2680_v33 = vmul.f32 0.044715, %v5770_v56  ;;  %v5781_v46 = vadd.f32 %v2543_v34, %v5604_v6  ;;  %v2709_v24 = vmul.f32 %v2677_v52, %v5747_v11 }
 0xe44   : > { %v2803_v1 = vmul.f32 0.7978846, %v2771_v15  ;;  %v5785_v37 = vadd.f32 %v2616_v14, %v5606_v59  ;;  %v5788_v41 = vadd.f32 %v2545_v27, %v5608_v20  ;;  %v2711_v28 = vmul.f32 %v2679_v63, %v5764_v42 }
 0xe45   : > { %v2710_v54 = vmul.f32 %v2678_v2, %v5767_v21  ;;  %v2712_v32 = vmul.f32 %v2680_v33, %v5770_v56  ;;  %v2681_v35 = vmul.f32 0.044715, %v5781_v46  ;;  %v5795_v34 = vmul.f32 %v2704_v49, %v5715_v19 }
 0xe46   : > { %v2683_v6 = vmul.f32 0.044715, %v5785_v37  ;;  %v2682_v52 = vmul.f32 0.044715, %v5788_v41  ;;  %v5800_v14 = vadd.f32 %v2618_v57, %v5610_v38  ;;  %4344 = vtanh.f32 %v2799_v4 }
 0xe47   : > { %v5803_v27 = vmul.f32 %v2705_v62, %v5718_v43  ;;  %v5806_v59 = vmul.f32 %v2706_v30, %v5733_v0  ;;  %v2713_v20 = vmul.f32 %v2681_v35, %v5781_v46  ;;  %4346 = vtanh.f32 %v2803_v1 }
 0xe48   : > { %v5810_v33 = vmul.f32 %v2708_v61, %v5736_v13  ;;  %v5813_v49 = vmul.f32 %v2709_v24, %v5747_v11  ;;  %v5816_v15 = vmul.f32 %v2711_v28, %v5764_v42  ;;  %v5819_v57 = vmul.f32 %v2710_v54, %v5767_v21 }
 0xe49   : > { %v5822_v38 = vmul.f32 %v2712_v32, %v5770_v56  ;;  %v2750_v4 = vadd.f32 %v5651_v36, %v5615_v31  ;;  %v2754_v35 = vadd.f32 %v5661_v55, %v5625_v44  ;;  %v2715_v62 = vmul.f32 %v2683_v6, %v5785_v37 }
 0xe4a   : > { %v2714_v24 = vmul.f32 %v2682_v52, %v5788_v41  ;;  %v2684_v30 = vmul.f32 0.044715, %v5800_v14  ;;  %v5832_v61 = vmul.f32 0.5, %v5615_v31  ;;  %v5835_v63 = vmul.f32 %v2713_v20, %v5781_v46 }
 0xe4b   : > { %v2782_v2 = vmul.f32 0.7978846, %v2750_v4  ;;  %v2786_v1 = vmul.f32 0.7978846, %v2754_v35  ;;  %v2752_v36 = vadd.f32 %v5658_v39, %v5618_v22  ;;  %v5840_v28 = vmul.f32 0.5, %v5625_v44 }
 0xe4c   : > { %v2756_v55 = vadd.f32 %v5690_v45, %v5628_v58  ;;  %v2845_v54 = vadd.f32 1.0, %v5726_v53  ;;  %v2849_v32 = vadd.f32 1.0, %v4341_v48  ;;  %v2847_v6 = vadd.f32 1.0, %v4339_v26 }
 0xe4d   : > { %4348 = vtanh.f32 %v2782_v2  ;;  %v2784_v31 = vmul.f32 0.7978846, %v2752_v36  ;;  %v2851_v52 = vadd.f32 1.0, %v4343_v9  ;;  %v2716_v44 = vmul.f32 %v2684_v30, %v5800_v14 }
 0xe4e   : > { %4350 = vtanh.f32 %v2786_v1  ;;  %v2788_v20 = vmul.f32 0.7978846, %v2756_v55  ;;  %v5846_v4 = vmul.f32 %v2845_v54, %v5641_v51  ;;  %v5849_v39 = vmul.f32 %v2849_v32, %v5645_v10 }
 0xe4f   : > { %4352 = vtanh.f32 %v2784_v31  ;;  %v5853_v45 = vmul.f32 %v2847_v6, %v5643_v5  ;;  %v5856_v53 = vmul.f32 %v2851_v52, %v5647_v50  ;;  %v5859_v26 = vmul.f32 %v2715_v62, %v5785_v37  ;;  %v6142_v6 = vld [vmem:[#allocation29_spill] sm:$0xff] }
 0xe50   : > { %4354 = vtanh.f32 %v2788_v20  ;;  %v2909_v51 = vpack.c.bf16 %v5849_v39, %v5846_v4  ;;  %v2758_v10 = vadd.f32 %v5705_v29, %v5655_v23  ;;  %v5865_v9 = vpop.eup %4344  ;;  %v5868_v48 = vmul.f32 %v2714_v24, %v5788_v41  ;;  %v6144_v20 = vld [vmem:[#allocation30_spill] sm:$0xff]  ;;  %v6150_v4 = vld [vmem:[#allocation12_spill] sm:$0xff] }
 0xe51   : > { %v2624_v5 = vmul.f32 0.5, %v5618_v22  ;;  %v2762_v35 = vadd.f32 %v5750_v8, %v5681_v16  ;;  %v5875_v62 = vpop.eup %4346  ;;  %v2628_v30 = vmul.f32 0.5, %v5628_v58  ;;  %v2760_v29 = vadd.f32 %v5708_v7, %v5666_v40 }
 0xe52   : > { %v2790_v2 = vmul.f32 0.7978846, %v2758_v10  ;;  %v2764_v24 = vadd.f32 %v5753_v12, %v5684_v47  ;;  %v5883_v1 = vmul.f32 %v2716_v44, %v5800_v14  ;;  %v2757_v36 = vadd.f32 %v5698_v3, %v5636_v60  ;;  %v6141_v3 = vld [vmem:[#allocation26_spill] sm:$0xff] }
 0xe53   : > { %v2794_v22 = vmul.f32 0.7978846, %v2762_v35  ;;  %v2761_v8 = vadd.f32 %v5721_v17, %v5669_v25  ;;  %v5890_v55 = vmul.f32 0.5, %v5655_v23  ;;  %v2792_v58 = vmul.f32 0.7978846, %v2760_v29  ;;  %v6143_v17 = vld [vmem:[#allocation27_spill] sm:$0xff] }
 0xe54   : > { %4356 = vtanh.f32 %v2790_v2  ;;  %v2796_v54 = vmul.f32 0.7978846, %v2764_v24  ;;  %v5893_v7 = vmul.f32 0.5, %v5681_v16  ;;  %v2789_v12 = vmul.f32 0.7978846, %v2757_v36  ;;  %v6145_v16 = vld [vmem:[#allocation34_spill] sm:$0xff] }
 0xe55   : > { %4358 = vtanh.f32 %v2794_v22  ;;  %v2793_v32 = vmul.f32 0.7978846, %v2761_v8  ;;  %v5896_v31 = vmul.f32 0.5, %v5666_v40  ;;  %v2759_v52 = vadd.f32 %v6142_v6, %v6141_v3 }
 0xe56   : > { %4360 = vtanh.f32 %v2792_v58  ;;  %v2763_v23 = vadd.f32 %v6144_v20, %v6143_v17  ;;  %v5903_v10 = vmul.f32 0.5, %v5684_v47  ;;  %v2766_v35 = vadd.f32 %v6145_v16, %v5712_v18 }
 0xe57   : > { %v4349_v44 = vpop.eup %4348  ;;  %4362 = vtanh.f32 %v2796_v54  ;;  %v2770_v2 = vadd.f32 %v5806_v59, %v5733_v0  ;;  %v2791_v24 = vmul.f32 0.7978846, %v2759_v52  ;;  %v2629_v54 = vmul.f32 0.5, %v5636_v60 }
 0xe58   : > { %v4351_v40 = vpop.eup %4350  ;;  %v2846_v29 = vadd.f32 1.0, %v4349_v44  ;;  %4364 = vtanh.f32 %v2789_v12  ;;  %v2795_v22 = vmul.f32 0.7978846, %v2763_v23  ;;  %v2798_v58 = vmul.f32 0.7978846, %v2766_v35  ;;  %v6147_v23 = vld [vmem:[#allocation32_spill] sm:$0xff] }
 0xe59   : > { %v4353_v36 = vpop.eup %4352  ;;  %v2850_v8 = vadd.f32 1.0, %v4351_v40  ;;  %4366 = vtanh.f32 %v2793_v32  ;;  %v2802_v6 = vmul.f32 0.7978846, %v2770_v2  ;;  %v5911_v50 = vmul.f32 0.5, %v5669_v25  ;;  %v6146_v32 = vld [vmem:[#allocation28_spill] sm:$0xff] }
 0xe5a   : > { %v4355_v20 = vpop.eup %4354  ;;  %v2848_v47 = vadd.f32 1.0, %v4353_v36  ;;  %4368 = vtanh.f32 %v2791_v24  ;;  %v2878_v59 = vmul.f32 %v2846_v29, %v5832_v61  ;;  %v5916_v52 = vmul.f32 0.5, %v6141_v3 }
 0xe5b   : > { %v2882_v44 = vmul.f32 %v2850_v8, %v5840_v28  ;;  %v2852_v12 = vadd.f32 1.0, %v4355_v20  ;;  %4370 = vtanh.f32 %v2795_v22  ;;  %v2765_v16 = vadd.f32 %v6147_v23, %v6146_v32 }
 0xe5c   : > { %4372 = vtanh.f32 %v2798_v58  ;;  %v2769_v60 = vadd.f32 %v5803_v27, %v5718_v43  ;;  %v2880_v25 = vmul.f32 %v2848_v47, %v2624_v5  ;;  %v2635_v61 = vmul.f32 0.5, %v6143_v17 }
 0xe5d   : > { %v2910_v35 = vpack.c.bf16 %v2882_v44, %v2878_v59  ;;  %v2884_v2 = vmul.f32 %v2852_v12, %v2628_v30  ;;  %4374 = vtanh.f32 %v2802_v6  ;;  %v2797_v28 = vmul.f32 0.7978846, %v2765_v16  ;;  %v6148_v6 = vld [vmem:[#allocation11_spill] sm:$0xff] }
 0xe5e   : > { %v4357_v40 = vpop.eup %4356  ;;  %v2801_v29 = vmul.f32 0.7978846, %v2769_v60  ;;  %v2774_v3 = vadd.f32 %v5819_v57, %v5767_v21  ;;  %v5926_v8 = vmul.f32 0.5, %v5712_v18  ;;  %v2778_v27 = vadd.f32 %v5868_v48, %v5788_v41 }
 0xe5f   : > { %v4359_v24 = vpop.eup %4358  ;;  %3213 = vmatprep.mubr.bf16.mxu1 %v2910_v35  ;;  %v2912_v22 = vpack.c.bf16 %v2884_v2, %v2880_v25  ;;  %v2854_v36 = vadd.f32 1.0, %v4357_v40  ;;  %v2642_v17 = vmul.f32 0.5, %v5733_v0  ;;  %4376 = vtanh.f32 %v2797_v28  ;;  %v6151_v25 = vld [vmem:[#allocation13_spill] sm:$0xff] }
 0xe60   : > { %v4361_v5 = vpop.eup %4360  ;;  %3214 = vmatmul.mubr.bf16.vlgmr.msra.gmra.mrb[48].mxu1 %v2909_v51  ;;  %v2858_v30 = vadd.f32 1.0, %v4359_v24  ;;  %v2806_v57 = vmul.f32 0.7978846, %v2774_v3  ;;  %4378 = vtanh.f32 %v2801_v29  ;;  %v2810_v47 = vmul.f32 0.7978846, %v2778_v27  ;;  %v6152_v29 = vld [vmem:[#allocation14_spill] sm:$0xff] }
 0xe61   : > { %v4363_v58 = vpop.eup %4362  ;;  %3278 = vmatprep.mubr.bf16.mxu0 %v2912_v22  ;;  %4000 = vmatpush3.bf16.msra.mxu1 %v6148_v6  ;;  %v2886_v18 = vmul.f32 %v2854_v36, %v5890_v55  ;;  %v2856_v20 = vadd.f32 1.0, %v4361_v5  ;;  %v6149_v59 = vpack.c.bf16 %v5856_v53, %v5853_v45  ;;  %v2773_v51 = vadd.f32 %v5813_v49, %v5747_v11 }
 0xe62   : > { %v4365_v48 = vpop.eup %4364  ;;  %3993 = vmatprep.subr.bf16.mxu1 %v6150_v4  ;;  %v2890_v0 = vmul.f32 %v2858_v30, %v5893_v7  ;;  %v2860_v39 = vadd.f32 1.0, %v4363_v58  ;;  %4380 = vtanh.f32 %v2806_v57  ;;  %v2777_v23 = vadd.f32 %v5835_v63, %v5781_v46  ;;  %v6153_v57 = vld [vmem:[#allocation15_spill] sm:$0xff] }
 0xe63   : > { %3279 = vmatmul.mubr.bf16.vlgmr.msra.gmra.mrb[56].mxu0 %v6149_v59  ;;  %v4367_v44 = vpop.eup %4366  ;;  %v2888_v55 = vmul.f32 %v2856_v20, %v5896_v31  ;;  %v2853_v12 = vadd.f32 1.0, %v4365_v48  ;;  %4382 = vtanh.f32 %v2810_v47  ;;  %v2805_v35 = vmul.f32 0.7978846, %v2773_v51  ;;  %v6154_v20 = vld [vmem:[#allocation16_spill] sm:$0xff] }
 0xe64   : > { %v4369_v16 = vpop.eup %4368  ;;  %v2914_v45 = vpack.c.bf16 %v2890_v0, %v2886_v18  ;;  %v2892_v53 = vmul.f32 %v2860_v39, %v5903_v10  ;;  %v2857_v60 = vadd.f32 1.0, %v4367_v44  ;;  %v2637_v49 = vmul.f32 0.5, %v6146_v32 }
 0xe65   : > { %v4371_v7 = vpop.eup %4370  ;;  %4001 = vmatpush3.bf16.msra.mxu1 %v6151_v25  ;;  %v2885_v2 = vmul.f32 %v2853_v12, %v2629_v54  ;;  %v2855_v40 = vadd.f32 1.0, %v4369_v16  ;;  %v2809_v28 = vmul.f32 0.7978846, %v2777_v23  ;;  %4384 = vtanh.f32 %v2805_v35  ;;  %v6158_v16 = vld [vmem:[#allocation18_spill] sm:$0xff] }
 0xe66   : > { %v4373_v31 = vpop.eup %4372  ;;  %3221 = vmatprep.mubr.bf16.mxu1 %v2914_v45  ;;  %3994 = vmatprep.subr.bf16.mxu1 %v6152_v29  ;;  %v2916_v3 = vpack.c.bf16 %v2892_v53, %v2888_v55  ;;  %v2889_v63 = vmul.f32 %v2857_v60, %v5911_v50  ;;  %v2859_v24 = vadd.f32 1.0, %v4371_v7  ;;  %v2641_v27 = vmul.f32 0.5, %v5718_v43  ;;  %v6159_v29 = vld [vmem:[#allocation19_spill] sm:$0xff] }
 0xe67   : > { %v4375_v10 = vpop.eup %4374  ;;  %v2887_v22 = vmul.f32 %v2855_v40, %v5916_v52  ;;  %v2862_v36 = vadd.f32 1.0, %v4373_v31  ;;  %4386 = vtanh.f32 %v2809_v28  ;;  %v2768_v30 = vadd.f32 %v5795_v34, %v5715_v19 }
 0xe68   : > { %3286 = vmatprep.mubr.bf16.mxu0 %v2916_v3  ;;  %v2913_v54 = vpack.c.bf16 %v2889_v63, %v2885_v2  ;;  %v2891_v32 = vmul.f32 %v2859_v24, %v2635_v61  ;;  %v2866_v5 = vadd.f32 1.0, %v4375_v10  ;;  %v2646_v50 = vmul.f32 0.5, %v5767_v21  ;;  %v6155_v21 = vld [vmem:[#allocation31_spill] sm:$0xff] }
 0xe69   : > { %4002 = vmatpush3.bf16.msra.mxu1 %v6153_v57  ;;  %v2772_v58 = vadd.f32 %v5810_v33, %v5736_v13  ;;  %v2863_v52 = vadd.f32 1.0, %v5865_v9  ;;  %v2867_v6 = vadd.f32 1.0, %v5875_v62  ;;  %v4377_v43 = vpop.eup %4376  ;;  %v2894_v61 = vmul.f32 %v2862_v36, %v5926_v8  ;;  %v6156_v33 = vld [vmem:[#allocation33_spill] sm:$0xff] }
 0xe6a   : > { %3222 = vmatmul.mubr.bf16.gmra.mrb[52].mxu1 %v2913_v54  ;;  %v2915_v18 = vpack.c.bf16 %v2891_v32, %v2887_v22  ;;  %3995 = vmatprep.subr.bf16.mxu1 %v6154_v20  ;;  %v2898_v47 = vmul.f32 %v2866_v5, %v2642_v17  ;;  %v2800_v34 = vmul.f32 0.7978846, %v2768_v30  ;;  %v4379_v48 = vpop.eup %4378  ;;  %v2861_v59 = vadd.f32 1.0, %v4377_v43  ;;  %v6157_v8 = vld [vmem:[#allocation17_spill] sm:$0xff] }
 0xe6b   : > { %v2804_v4 = vmul.f32 0.7978846, %v2772_v58  ;;  %v5964_v0 = vmul.f32 %v2863_v52, %v6155_v21  ;;  %v5967_v39 = vmul.f32 %v2867_v6, %v6156_v33  ;;  %v2865_v51 = vadd.f32 1.0, %v4379_v48  ;;  %v6163_v52 = vld [vmem:[#allocation23_spill] sm:$0xff] }
 0xe6c   : > { %v4381_v9 = vpop.eup %4380  ;;  %3287 = vmatmul.mubr.bf16.gmra.mrb[60].mxu0 %v2915_v18  ;;  %v2918_v62 = vpack.c.bf16 %v2898_v47, %v2894_v61  ;;  %v2650_v44 = vmul.f32 0.5, %v5788_v41  ;;  %4388 = vtanh.f32 %v2800_v34  ;;  %v2893_v17 = vmul.f32 %v2861_v59, %v2637_v49  ;;  %v6164_v18 = vld [vmem:[#allocation24_spill] sm:$0xff]  ;;  %v6165_v34 = vld [vmem:[#allocation25_spill] sm:$0xff] }
 0xe6d   : > { %v4383_v55 = vpop.eup %4382  ;;  %4003 = vmatpush3.bf16.msra.mxu1 %v6157_v8  ;;  %v2870_v12 = vadd.f32 1.0, %v4381_v9  ;;  %4390 = vtanh.f32 %v2804_v4  ;;  %v2919_v23 = vpack.c.bf16 %v5967_v39, %v5964_v0  ;;  %v2897_v45 = vmul.f32 %v2865_v51, %v2641_v27 }
 0xe6e   : > { %3229 = vmatprep.mubr.bf16.mxu1 %v2918_v62  ;;  %3996 = vmatprep.subr.bf16.mxu1 %v6158_v16  ;;  %v2874_v53 = vadd.f32 1.0, %v4383_v55  ;;  %v2776_v60 = vadd.f32 %v5822_v38, %v5770_v56  ;;  %v2780_v41 = vadd.f32 %v5883_v1, %v5800_v14  ;;  %v2775_v7 = vadd.f32 %v5816_v15, %v5764_v42  ;;  %v6160_v1 = vld [vmem:[#allocation20_spill] sm:$0xff] }
 0xe6f   : > { %v2902_v35 = vmul.f32 %v2870_v12, %v2646_v50  ;;  %v4385_v25 = vpop.eup %4384  ;;  %v2917_v2 = vpack.c.bf16 %v2897_v45, %v2893_v17  ;;  %v2645_v3 = vmul.f32 0.5, %v5747_v11  ;;  %v2779_v38 = vadd.f32 %v5859_v26, %v5785_v37  ;;  %v6161_v11 = vld [vmem:[#allocation21_spill] sm:$0xff]  ;;  %v6162_v26 = vld [vmem:[#allocation22_spill] sm:$0xff] }
 0xe70   : > { %v2906_v40 = vmul.f32 %v2874_v53, %v2650_v44  ;;  %v2808_v49 = vmul.f32 0.7978846, %v2776_v60  ;;  %v2812_v28 = vmul.f32 0.7978846, %v2780_v41  ;;  %v2869_v63 = vadd.f32 1.0, %v4385_v25 }
 0xe71   : > { %v4387_v31 = vpop.eup %4386  ;;  %4004 = vmatpush3.bf16.msra.mxu1 %v6159_v29  ;;  %v2807_v24 = vmul.f32 0.7978846, %v2775_v7  ;;  %v2649_v15 = vmul.f32 0.5, %v5781_v46  ;;  %v2811_v36 = vmul.f32 0.7978846, %v2779_v38  ;;  %v2640_v50 = vmul.f32 0.5, %v5715_v19 }
 0xe72   : > { %3230 = vmatmul.mubr.bf16.gmra.mrb[56].mxu1 %v2917_v2  ;;  %3997 = vmatprep.subr.bf16.mxu1 %v6160_v1  ;;  %v2922_v10 = vpack.c.bf16 %v2906_v40, %v2902_v35  ;;  %v2873_v22 = vadd.f32 1.0, %v4387_v31  ;;  %4392 = vtanh.f32 %v2808_v49  ;;  %v2901_v27 = vmul.f32 %v2869_v63, %v2645_v3  ;;  %v6166_v2 = vld [vmem:[#allocation3_spill] sm:$0xff]  ;;  %v6167_v31 = vld [vmem:[#allocation4_spill] sm:$0xff] }
 0xe73   : > { %4394 = vtanh.f32 %v2812_v28  ;;  %v2644_v46 = vmul.f32 0.5, %v5736_v13  ;;  %v2648_v19 = vmul.f32 0.5, %v5770_v56  ;;  %v2652_v13 = vmul.f32 0.5, %v5800_v14 }
 0xe74   : > { %3237 = vmatprep.mubr.bf16.mxu1 %v2922_v10  ;;  %v2905_v54 = vmul.f32 %v2873_v22, %v2649_v15  ;;  %4396 = vtanh.f32 %v2807_v24  ;;  %v2647_v33 = vmul.f32 0.5, %v5764_v42  ;;  %v2651_v44 = vmul.f32 0.5, %v5785_v37 }
 0xe75   : > { %4005 = vmatpush3.bf16.msra.mxu1 %v6161_v11  ;;  %4398 = vtanh.f32 %v2811_v36 }
 0xe76   : > { %v4389_v32 = vpop.eup %4388  ;;  %3998 = vmatprep.subr.bf16.mxu1 %v6162_v26  ;;  %v2921_v5 = vpack.c.bf16 %v2905_v54, %v2901_v27 }
 0xe77   : > { %v4391_v30 = vpop.eup %4390  ;;  %v2864_v57 = vadd.f32 1.0, %v4389_v32 }
 0xe78   : > { %v2868_v58 = vadd.f32 1.0, %v4391_v30 }
 0xe79   : > { %4006 = vmatpush3.bf16.msra.mxu1 %v6163_v52  ;;  %v2896_v6 = vmul.f32 %v2864_v57, %v2640_v50  ;;  %v6169_v52 = vld [vmem:[#allocation6_spill] sm:$0xff] }
 0xe7a   : > { %3238 = vmatmul.mubr.bf16.gmra.mrb[60].mxu1 %v2921_v5  ;;  %v2900_v43 = vmul.f32 %v2868_v58, %v2644_v46  ;;  %3999 = vmatprep.subr.bf16.mxu1 %v6164_v18  ;;  %v6168_v5 = vld [vmem:[#allocation5_spill] sm:$0xff] }
 0xe7c   : > { %v4393_v20 = vpop.eup %4392  ;;  %v2920_v61 = vpack.c.bf16 %v2900_v43, %v2896_v6 }
 0xe7d   : > { %v4395_v47 = vpop.eup %4394  ;;  %4007 = vmatpush3.bf16.msra.mxu1 %v6165_v34  ;;  %v2872_v48 = vadd.f32 1.0, %v4393_v20 }
 0xe7e   : > { %v4397_v59 = vpop.eup %4396  ;;  %3294 = vmatprep.mubr.bf16.mxu1 %v2920_v61  ;;  %v2876_v4 = vadd.f32 1.0, %v4395_v47 }
 0xe7f   : > { %v4399_v21 = vpop.eup %4398  ;;  %v2871_v9 = vadd.f32 1.0, %v4397_v59  ;;  %v2904_v62 = vmul.f32 %v2872_v48, %v2648_v19 }
 0xe80   : > { %v2908_v51 = vmul.f32 %v2876_v4, %v2652_v13  ;;  %v2875_v55 = vadd.f32 1.0, %v4399_v21 }
 0xe81   : > { %v2903_v17 = vmul.f32 %v2871_v9, %v2647_v33 }
 0xe82   : > { %3295 = vmatmul.mubr.bf16.vlgmr.msra.gmra.mrb[64].mxu1 %v2919_v23  ;;  %v2924_v8 = vpack.c.bf16 %v2908_v51, %v2904_v62  ;;  %v2907_v12 = vmul.f32 %v2875_v55, %v2651_v44  ;;  %v6003_v23 = vld [vmem:[%s6062_s11] ss:$0 sm:$0xff] }
 0xe84   : > { %3302 = vmatprep.mubr.bf16.mxu1 %v2924_v8  ;;  %v2923_v56 = vpack.c.bf16 %v2907_v12, %v2903_v17  ;;  %v6170_v8 = vld [vmem:[#allocation7_spill] sm:$0xff] }
 0xe8a   : > { %3303 = vmatmul.mubr.bf16.gmra.mrb[68].mxu1 %v2923_v56 }
 0xf33   : > { %v3712_v14 = vpop.f32.mrb[48].mxu1 }
 0xf34   : > { %v3713_v16 = vpop.f32.mrb[49].mxu1 }
 0xf35   : > { %v3714_v45 = vadd.f32 %v3713_v16, %v3712_v14  ;;  %v3715_v53 = vpop.f32.mrb[50].mxu1  ;;  %v6171_v14 = vld [vmem:[#allocation8_spill] sm:$0xff] }
 0xf36   : > { %v3752_v42 = vpop.f32.mrb[56].mxu0  ;;  %v3716_v41 = vpop.f32.mrb[51].mxu1 }
 0xf37   : > { %v3753_v60 = vpop.f32.mrb[57].mxu0  ;;  %v3717_v7 = vadd.f32 %v3716_v41, %v3715_v53 }
 0xf38   : > { %v3754_v37 = vadd.f32 %v3753_v60, %v3752_v42  ;;  %v3755_v35 = vpop.f32.mrb[58].mxu0 }
 0xf39   : > { %v3756_v25 = vpop.f32.mrb[59].mxu0 }
 0xf3a   : > { %v3281_v0 = vadd.f32 %v3754_v37, %v3714_v45  ;;  %v3757_v39 = vadd.f32 %v3756_v25, %v3755_v35  ;;  %v6172_v25 = vld [vmem:[#allocation9_spill] sm:$0xff] }
 0xf3c   : > { %v3311_v40 = vadd.f32 %v3281_v0, %v6166_v2  ;;  %v3284_v49 = vadd.f32 %v3757_v39, %v3717_v7 }
 0xf3d   : > { %v3718_v3 = vpop.f32.mrb[52].mxu1 }
 0xf3e   : > { %v3326_v28 = vadd.f32 %v6003_v23, %v3311_v40  ;;  %v3312_v29 = vadd.f32 %v3284_v49, %v6167_v31  ;;  %v3719_v63 = vpop.f32.mrb[53].mxu1  ;;  %v6173_v40 = vld [vmem:[#allocation10_spill] sm:$0xff] }
 0xf3f   : > { %v3758_v24 = vpop.f32.mrb[60].mxu0  ;;  %v3720_v1 = vadd.f32 %v3719_v63, %v3718_v3  ;;  %v3721_v10 = vpop.f32.mrb[54].mxu1 }
 0xf40   : > { %3334 = vst [vmem:[%s6011_s22] sm:$0xff] %v3326_v28  ;;  %v3327_v38 = vadd.f32 %v6003_v23, %v3312_v29  ;;  %v3759_v15 = vpop.f32.mrb[61].mxu0  ;;  %v3722_v22 = vpop.f32.mrb[55].mxu1 }
 0xf41   : > { %v3760_v36 = vadd.f32 %v3759_v15, %v3758_v24  ;;  %v3761_v27 = vpop.f32.mrb[62].mxu0  ;;  %v3723_v54 = vadd.f32 %v3722_v22, %v3721_v10 }
 0xf42   : > { %3335 = vst [vmem:[%s6011_s22 + $0x8] sm:$0xff] %v3327_v38  ;;  %v3762_v11 = vpop.f32.mrb[63].mxu0 }
 0xf43   : > { %v3289_v32 = vadd.f32 %v3760_v36, %v3720_v1  ;;  %v3763_v26 = vadd.f32 %v3762_v11, %v3761_v27 }
 0xf45   : > { %v3313_v30 = vadd.f32 %v3289_v32, %v6168_v5  ;;  %v3292_v57 = vadd.f32 %v3763_v26, %v3723_v54  ;;  %v3724_v50 = vpop.f32.mrb[56].mxu1 }
 0xf46   : > { %v3725_v46 = vpop.f32.mrb[57].mxu1 }
 0xf47   : > { %v3328_v58 = vadd.f32 %v6003_v23, %v3313_v30  ;;  %v3314_v6 = vadd.f32 %v3292_v57, %v6169_v52  ;;  %v3726_v43 = vadd.f32 %v3725_v46, %v3724_v50  ;;  %v3727_v18 = vpop.f32.mrb[58].mxu1 }
 0xf48   : > { %v3728_v20 = vpop.f32.mrb[59].mxu1 }
 0xf49   : > { %3336 = vst [vmem:[%s6011_s22 + $0x10] sm:$0xff] %v3328_v58  ;;  %v3329_v61 = vadd.f32 %v6003_v23, %v3314_v6  ;;  %v3729_v47 = vadd.f32 %v3728_v20, %v3727_v18 }
 0xf4b   : > { %3337 = vst [vmem:[%s6011_s22 + $0x18] sm:$0xff] %v3329_v61 }
 0xf4d   : > { %v3730_v34 = vpop.f32.mrb[60].mxu1 }
 0xf4e   : > { %v3731_v48 = vpop.f32.mrb[61].mxu1 }
 0xf4f   : > { %v3732_v59 = vadd.f32 %v3731_v48, %v3730_v34  ;;  %v3733_v19 = vpop.f32.mrb[62].mxu1 }
 0xf50   : > { %v3734_v13 = vpop.f32.mrb[63].mxu1 }
 0xf51   : > { %v3735_v4 = vadd.f32 %v3734_v13, %v3733_v19 }
 0xf55   : > { %v3764_v21 = vpop.f32.mrb[64].mxu1 }
 0xf56   : > { %v3765_v33 = vpop.f32.mrb[65].mxu1 }
 0xf57   : > { %v3766_v9 = vadd.f32 %v3765_v33, %v3764_v21  ;;  %v3767_v62 = vpop.f32.mrb[66].mxu1 }
 0xf58   : > { %v3768_v51 = vpop.f32.mrb[67].mxu1 }
 0xf59   : > { %v3297_v44 = vadd.f32 %v3766_v9, %v3726_v43  ;;  %v3769_v55 = vadd.f32 %v3768_v51, %v3767_v62 }
 0xf5b   : > { %v3315_v17 = vadd.f32 %v3297_v44, %v6170_v8  ;;  %v3300_v12 = vadd.f32 %v3769_v55, %v3729_v47 }
 0xf5d   : > { %v3330_v56 = vadd.f32 %v6003_v23, %v3315_v17  ;;  %v3316_v16 = vadd.f32 %v3300_v12, %v6171_v14  ;;  %v3770_v42 = vpop.f32.mrb[68].mxu1 }
 0xf5e   : > { %v3771_v45 = vpop.f32.mrb[69].mxu1 }
 0xf5f   : > { %3338 = vst [vmem:[%s6011_s22 + $0x20] sm:$0xff] %v3330_v56  ;;  %v3331_v53 = vadd.f32 %v6003_v23, %v3316_v16  ;;  %v3772_v60 = vadd.f32 %v3771_v45, %v3770_v42  ;;  %v3773_v41 = vpop.f32.mrb[70].mxu1 }
 0xf60   : > { %v3774_v37 = vpop.f32.mrb[71].mxu1 }
 0xf61   : > { %3339 = vst [vmem:[%s6011_s22 + $0x28] sm:$0xff] %v3331_v53  ;;  %v3305_v35 = vadd.f32 %v3772_v60, %v3732_v59  ;;  %v3775_v7 = vadd.f32 %v3774_v37, %v3773_v41 }
 0xf63   : > { %v3317_v0 = vadd.f32 %v3305_v35, %v6172_v25  ;;  %v3308_v39 = vadd.f32 %v3775_v7, %v3735_v4 }
 0xf65   : > { %v3332_v2 = vadd.f32 %v6003_v23, %v3317_v0  ;;  %v3318_v49 = vadd.f32 %v3308_v39, %v6173_v40 }
 0xf67   : > { %3340 = vst [vmem:[%s6011_s22 + $0x30] sm:$0xff] %v3332_v2  ;;  %v3333_v28 = vadd.f32 %v6003_v23, %v3318_v49 }
 0xf69   : > { %3341 = vst [vmem:[%s6011_s22 + $0x38] sm:$0xff] %v3333_v28 }
 0xf6a PF: > { %s22_s25 = sadd.s32 1, %s4458_s25   ;;  %s6174_s21 = smov %s4450_s23 }
 0xf6b   : > { %p19_p8 = scmp.ge.s32.totalorder %s22_s25, 6   ;;  %s6175_s22 = smov %s4454_s24 }
 0xf6c   : > { %s6176_s23 = smov %s6179_s26  ;;  %s6177_s24 = smov %s6183_s27 }
 0xf6d   :  { %21 = sbr.rel (!%p19_p8) target bundleno = 3 (0x3), region = 107 }

</bundles_post_ra>
